<compile_context>
chip_gen: v6e
topology: v6e:2x2x1
jax: 0.10.0
libtpu: 0.0.40
codegen_flags: <defaults>
</compile_context>

<pallas_src>
import functools

import jax
import jax.numpy as jnp
from jax import lax
from jax.experimental import pallas as pl
from jax.experimental.pallas import tpu as pltpu


def _cbam_kernel(x_ref, w1_ref, b1_ref, w2_ref, b2_ref, ws_ref, o_ref,
                 cav_ref, mc_ref, sflat_ref, pad_ref, acc_ref, msflat_ref,
                 *, H, W):
    Bt, C, HW = x_ref.shape
    x = x_ref[...].astype(jnp.float32)                            # (Bt, C, HW) lane-dense

    # ---------------- channel attention ----------------
    # global average pool over HW (lane reduction, keepdims keeps natural layout)
    cav_ref[...] = jnp.mean(x, axis=2, keepdims=True)             # (Bt, C, 1)

    # tiny 1x1-conv MLP per batch element (C and C//ratio are small); results are
    # staged in mc_ref so the big multiply below is one batched lane-broadcast.
    for b in range(Bt):
        h = jnp.dot(w1_ref[...], cav_ref[b],
                    preferred_element_type=jnp.float32) + b1_ref[...]      # (Ch, 1)
        h = jnp.maximum(h, 0.0)                                            # ReLU
        m = jnp.dot(w2_ref[...], h,
                    preferred_element_type=jnp.float32) + b2_ref[...]      # (C, 1)
        mc_ref[b] = jax.nn.sigmoid(m)

    xc = x * mc_ref[...]                                          # (Bt, C, HW) * (Bt, C, 1)

    # ---------------- spatial attention ----------------
    # channel mean / max, still lane-dense
    sflat_ref[0] = jnp.mean(xc, axis=1, keepdims=True)            # (Bt, 1, HW)
    sflat_ref[1] = jnp.max(xc, axis=1, keepdims=True)             # (Bt, 1, HW)

    # zero-padded (pad=3) conv input; fully rewritten each step (tiny buffer).
    pad_ref[...] = jnp.zeros(pad_ref.shape, jnp.float32)
    for i in range(H):                                            # flat -> (H, W) via small ref copies
        pad_ref[:, :, 3 + i:4 + i, 3:3 + W] = sflat_ref[:, :, :, i * W:(i + 1) * W]

    # 7x7 conv (2 in-channels -> 1 out-channel) as 98 shifted MACs.
    taps = [ws_ref[i] for i in range(2 * 49)]                     # hoist SMEM reads out of the loop
    bias = ws_ref[2 * 49]
    acc = jnp.full((Bt, H, W), bias, dtype=jnp.float32)
    for c in range(2):
        for ki in range(7):
            for kj in range(7):
                acc = acc + taps[c * 49 + ki * 7 + kj] * pad_ref[c, :, ki:ki + H, kj:kj + W]
    acc_ref[...] = acc

    for i in range(H):                                            # (H, W) -> flat via small ref copies
        msflat_ref[:, :, i * W:(i + 1) * W] = acc_ref[:, i:i + 1, :]
    ms = jax.nn.sigmoid(msflat_ref[...])                          # (Bt, 1, HW)

    # final multiply + lane-dense store (re-read x so nothing big stays live
    # across the conv section).
    o_ref[...] = (x_ref[...].astype(jnp.float32) * mc_ref[...] * ms).astype(o_ref.dtype)


def _choose_bt(B, C, HW):
    """Pick how many batch elements to process per grid step."""
    elem_bytes = C * HW * 4                      # one batch element of the f32 tile
    budget = 32 * 1024 * 1024                    # conservative: double-buffered in+out fits v7x 64 MiB VMEM
    cap = max(1, budget // (4 * elem_bytes))     # 2 (double buffer) x 2 (input + output)
    cap = min(cap, 8)                            # bound per-step unrolled code (per-element MLP / conv)
    divs = [d for d in range(1, B + 1) if B % d == 0 and d <= cap]
    multi = [d for d in divs if B // d >= 2]     # keep >= 2 grid steps so both v7x TCs get work
    return max(multi) if multi else max(divs)


def cbam_pallas(x, w1, b1, w2, b2, ws, bs):
    """CBAM forward.

    x : (B, C, H, W) f32
    w1: (Ch, C), b1: (Ch,)        -> Conv2d(C, Ch, 1)
    w2: (C, Ch), b2: (C,)         -> Conv2d(Ch, C, 1)
    ws: (1, 2, 7, 7), bs: (1,)    -> Conv2d(2, 1, 7, padding=3)
    """
    B, C, H, W = x.shape
    Ch = w1.shape[0]
    HW = H * W
    Bt = _choose_bt(B, C, HW)

    x_flat = x.reshape(B, C, HW)                                  # pure layout plumbing
    b1c = b1.reshape(Ch, 1).astype(jnp.float32)
    b2c = b2.reshape(C, 1).astype(jnp.float32)
    ws_flat = jnp.concatenate([ws.reshape(-1), bs.reshape(-1)]).astype(jnp.float32)  # (99,)

    kernel = functools.partial(_cbam_kernel, H=H, W=W)
    out_flat = pl.pallas_call(
        kernel,
        out_shape=jax.ShapeDtypeStruct((B, C, HW), x.dtype),
        grid_spec=pltpu.PrefetchScalarGridSpec(
            num_scalar_prefetch=0,
            grid=(B // Bt,),
            in_specs=[
                pl.BlockSpec((Bt, C, HW), lambda b: (b, 0, 0)),
                pl.BlockSpec((Ch, C), lambda b: (0, 0)),
                pl.BlockSpec((Ch, 1), lambda b: (0, 0)),
                pl.BlockSpec((C, Ch), lambda b: (0, 0)),
                pl.BlockSpec((C, 1), lambda b: (0, 0)),
                pl.BlockSpec(memory_space=pltpu.MemorySpace.SMEM),
            ],
            out_specs=pl.BlockSpec((Bt, C, HW), lambda b: (b, 0, 0)),
            scratch_shapes=[
                pltpu.VMEM((Bt, C, 1), jnp.float32),              # global-avg-pool result
                pltpu.VMEM((Bt, C, 1), jnp.float32),              # channel mask (sigmoid MLP output)
                pltpu.VMEM((2, Bt, 1, HW), jnp.float32),          # channel mean / max, flat
                pltpu.VMEM((2, Bt, H + 6, W + 6), jnp.float32),   # zero-padded 7x7-conv input
                pltpu.VMEM((Bt, H, W), jnp.float32),              # conv accumulator (spatial)
                pltpu.VMEM((Bt, 1, HW), jnp.float32),             # conv accumulator (flat)
            ],
        ),
        compiler_params=pltpu.CompilerParams(
            dimension_semantics=("parallel",),
            vmem_limit_bytes=48 * 1024 * 1024,
        ),
    )(x_flat, w1, b1c, w2, b2c, ws_flat)
    return out_flat.reshape(B, C, H, W)


def cbam_ref(x, w1, b1, w2, b2, ws, bs):
    """Pure-JAX reference matching the PyTorch module."""
    hp = lax.Precision.HIGHEST
    avg = jnp.mean(x, axis=(2, 3), keepdims=True)                            # (B,C,1,1)
    h = jnp.einsum('oc,bcij->boij', w1, avg, precision=hp) + b1.reshape(1, -1, 1, 1)
    h = jax.nn.relu(h)
    mc = jnp.einsum('oc,bcij->boij', w2, h, precision=hp) + b2.reshape(1, -1, 1, 1)
    mc = jax.nn.sigmoid(mc)
    xc = x * mc
    avg_s = jnp.mean(xc, axis=1, keepdims=True)
    max_s = jnp.max(xc, axis=1, keepdims=True)
    sp = jnp.concatenate([avg_s, max_s], axis=1)                             # (B,2,H,W)
    conv = lax.conv_general_dilated(
        sp, ws, window_strides=(1, 1), padding=((3, 3), (3, 3)),
        dimension_numbers=('NCHW', 'OIHW', 'NCHW'),
        precision=hp) + bs.reshape(1, 1, 1, 1)
    ms = jax.nn.sigmoid(conv)
    return xc * ms


if __name__ == "__main__":
    # channels must satisfy channels // ratio >= 1 (PyTorch module requirement)
    B, C, H, W = 4, 32, 16, 16
    ratio = 16
    Ch = C // ratio  # 2

    key = jax.random.PRNGKey(0)
    ks = jax.random.split(key, 7)
    x = jax.random.normal(ks[0], (B, C, H, W), jnp.float32)
    w1 = jax.random.normal(ks[1], (Ch, C), jnp.float32) * 0.2       # Conv2d(C, Ch, 1) weight
    b1 = jax.random.normal(ks[2], (Ch,), jnp.float32) * 0.1
    w2 = jax.random.normal(ks[3], (C, Ch), jnp.float32) * 0.2       # Conv2d(Ch, C, 1) weight
    b2 = jax.random.normal(ks[4], (C,), jnp.float32) * 0.1
    ws = jax.random.normal(ks[5], (1, 2, 7, 7), jnp.float32) * 0.1  # Conv2d(2, 1, 7, pad=3)
    bs = jax.random.normal(ks[6], (1,), jnp.float32) * 0.1

    out = cbam_pallas(x, w1, b1, w2, b2, ws, bs)
    out = jax.block_until_ready(out)

    ref = cbam_ref(x, w1, b1, w2, b2, ws, bs)
    err = float(jnp.max(jnp.abs(out - ref)))
    assert err < 2e-3, f"max abs error {err}"
    print("KERNEL_OK")
</pallas_src>

<mosaic_0001>
module attributes {stable_mosaic.version = 11 : i64} {
  func.func @_cbam_kernel(%arg0: i32, %arg1: memref<2x32x256xf32, #tpu.memory_space<vmem>>, %arg2: memref<2x32xf32, #tpu.memory_space<vmem>>, %arg3: memref<2x1xf32, #tpu.memory_space<vmem>>, %arg4: memref<32x2xf32, #tpu.memory_space<vmem>>, %arg5: memref<32x1xf32, #tpu.memory_space<vmem>>, %arg6: memref<99xf32, #tpu.memory_space<smem>>, %arg7: memref<2x32x256xf32, #tpu.memory_space<vmem>>, %arg8: memref<2x32x1xf32, #tpu.memory_space<vmem>>, %arg9: memref<2x32x1xf32, #tpu.memory_space<vmem>>, %arg10: memref<2x2x1x256xf32, #tpu.memory_space<vmem>>, %arg11: memref<2x2x22x22xf32, #tpu.memory_space<vmem>>, %arg12: memref<2x16x16xf32, #tpu.memory_space<vmem>>, %arg13: memref<2x1x256xf32, #tpu.memory_space<vmem>>) attributes {dimension_semantics = [#tpu.dimension_semantics<parallel>], iteration_bounds = array<i64: 2>, scalar_prefetch = 0 : i64, scratch_operands = 6 : i64, tpu.core_type = #tpu.core_type<tc>, window_params = [{transform_indices = @transform_0, window_bounds = array<i64: 2, 32, 256>}, {pipeline_mode = #tpu.pipeline_mode<synchronous>, transform_indices = @transform_1, window_bounds = array<i64: 2, 32>}, {pipeline_mode = #tpu.pipeline_mode<synchronous>, transform_indices = @transform_2, window_bounds = array<i64: 2, 1>}, {pipeline_mode = #tpu.pipeline_mode<synchronous>, transform_indices = @transform_3, window_bounds = array<i64: 32, 2>}, {pipeline_mode = #tpu.pipeline_mode<synchronous>, transform_indices = @transform_4, window_bounds = array<i64: 32, 1>}, {transform_indices = @transform_5, window_bounds = array<i64: 99>}, {transform_indices = @transform_6, window_bounds = array<i64: 2, 32, 256>}]} {
    %c0 = arith.constant 0 : index
    %c0_0 = arith.constant 0 : index
    %c0_1 = arith.constant 0 : index
    %0 = vector.load %arg1[%c0, %c0_0, %c0_1] : memref<2x32x256xf32, #tpu.memory_space<vmem>>, vector<2x32x256xf32>
    %cst = arith.constant dense<0.000000e+00> : vector<2x32xf32>
    %1 = vector.multi_reduction <add>, %0, %cst [2] : vector<2x32x256xf32> to vector<2x32xf32>
    %2 = vector.shape_cast %1 : vector<2x32xf32> to vector<2x32x1xf32>
    %cst_2 = arith.constant 2.560000e+02 : f32
    %3 = vector.broadcast %cst_2 : f32 to vector<2x32x1xf32>
    %4 = arith.divf %2, %3 : vector<2x32x1xf32>
    %c0_3 = arith.constant 0 : index
    %c0_4 = arith.constant 0 : index
    %c0_5 = arith.constant 0 : index
    %5 = vector.load %arg8[%c0_3, %c0_4, %c0_5] : memref<2x32x1xf32, #tpu.memory_space<vmem>>, vector<2x32x1xf32>
    tpu.vector_store %arg8[%c0_3, %c0_4, %c0_5], %4 {strides = array<i32>} : memref<2x32x1xf32, #tpu.memory_space<vmem>>, vector<2x32x1xf32>,
    %c0_6 = arith.constant 0 : index
    %c0_7 = arith.constant 0 : index
    %6 = vector.load %arg2[%c0_6, %c0_7] : memref<2x32xf32, #tpu.memory_space<vmem>>, vector<2x32xf32>
    %c0_8 = arith.constant 0 : index
    %c0_9 = arith.constant 0 : index
    %c0_10 = arith.constant 0 : index
    %7 = vector.load %arg8[%c0_8, %c0_9, %c0_10] : memref<2x32x1xf32, #tpu.memory_space<vmem>>, vector<1x32x1xf32>
    %8 = vector.shape_cast %7 : vector<1x32x1xf32> to vector<32x1xf32>
    %cst_11 = arith.constant dense<0.000000e+00> : vector<2x1xf32>
    %9 = tpu.matmul %6, %8, %cst_11 {dimension_numbers = #tpu.dot_dimension_numbers<[1], [0], [0], [1], [0, 0, 1, 1], [], []>} : vector<2x32xf32>, vector<32x1xf32>, vector<2x1xf32> -> vector<2x1xf32>
    %c0_12 = arith.constant 0 : index
    %c0_13 = arith.constant 0 : index
    %10 = vector.load %arg3[%c0_12, %c0_13] : memref<2x1xf32, #tpu.memory_space<vmem>>, vector<2x1xf32>
    %11 = arith.addf %9, %10 : vector<2x1xf32>
    %cst_14 = arith.constant 0.000000e+00 : f32
    %12 = vector.broadcast %cst_14 : f32 to vector<2x1xf32>
    %13 = arith.maximumf %11, %12 : vector<2x1xf32>
    %c0_15 = arith.constant 0 : index
    %c0_16 = arith.constant 0 : index
    %14 = vector.load %arg4[%c0_15, %c0_16] : memref<32x2xf32, #tpu.memory_space<vmem>>, vector<32x2xf32>
    %cst_17 = arith.constant dense<0.000000e+00> : vector<32x1xf32>
    %15 = tpu.matmul %14, %13, %cst_17 {dimension_numbers = #tpu.dot_dimension_numbers<[1], [0], [0], [1], [0, 0, 1, 1], [], []>} : vector<32x2xf32>, vector<2x1xf32>, vector<32x1xf32> -> vector<32x1xf32>
    %c0_18 = arith.constant 0 : index
    %c0_19 = arith.constant 0 : index
    %16 = vector.load %arg5[%c0_18, %c0_19] : memref<32x1xf32, #tpu.memory_space<vmem>>, vector<32x1xf32>
    %17 = arith.addf %15, %16 : vector<32x1xf32>
    %18 = arith.negf %17 : vector<32x1xf32>
    %19 = math.exp %18 : vector<32x1xf32>
    %cst_20 = arith.constant 1.000000e+00 : f32
    %20 = vector.broadcast %cst_20 : f32 to vector<32x1xf32>
    %21 = arith.addf %20, %19 : vector<32x1xf32>
    %22 = arith.divf %20, %21 : vector<32x1xf32>
    %c0_21 = arith.constant 0 : index
    %c0_22 = arith.constant 0 : index
    %c0_23 = arith.constant 0 : index
    %23 = vector.load %arg9[%c0_21, %c0_22, %c0_23] : memref<2x32x1xf32, #tpu.memory_space<vmem>>, vector<1x32x1xf32>
    %24 = vector.shape_cast %23 : vector<1x32x1xf32> to vector<32x1xf32>
    %25 = vector.shape_cast %22 : vector<32x1xf32> to vector<1x32x1xf32>
    tpu.vector_store %arg9[%c0_21, %c0_22, %c0_23], %25 {strides = array<i32>} : memref<2x32x1xf32, #tpu.memory_space<vmem>>, vector<1x32x1xf32>,
    %c0_24 = arith.constant 0 : index
    %c0_25 = arith.constant 0 : index
    %26 = vector.load %arg2[%c0_24, %c0_25] : memref<2x32xf32, #tpu.memory_space<vmem>>, vector<2x32xf32>
    %c1 = arith.constant 1 : index
    %c0_26 = arith.constant 0 : index
    %c0_27 = arith.constant 0 : index
    %27 = vector.load %arg8[%c1, %c0_26, %c0_27] : memref<2x32x1xf32, #tpu.memory_space<vmem>>, vector<1x32x1xf32>
    %28 = vector.shape_cast %27 : vector<1x32x1xf32> to vector<32x1xf32>
    %cst_28 = arith.constant dense<0.000000e+00> : vector<2x1xf32>
    %29 = tpu.matmul %26, %28, %cst_28 {dimension_numbers = #tpu.dot_dimension_numbers<[1], [0], [0], [1], [0, 0, 1, 1], [], []>} : vector<2x32xf32>, vector<32x1xf32>, vector<2x1xf32> -> vector<2x1xf32>
    %c0_29 = arith.constant 0 : index
    %c0_30 = arith.constant 0 : index
    %30 = vector.load %arg3[%c0_29, %c0_30] : memref<2x1xf32, #tpu.memory_space<vmem>>, vector<2x1xf32>
    %31 = arith.addf %29, %30 : vector<2x1xf32>
    %cst_31 = arith.constant 0.000000e+00 : f32
    %32 = vector.broadcast %cst_31 : f32 to vector<2x1xf32>
    %33 = arith.maximumf %31, %32 : vector<2x1xf32>
    %c0_32 = arith.constant 0 : index
    %c0_33 = arith.constant 0 : index
    %34 = vector.load %arg4[%c0_32, %c0_33] : memref<32x2xf32, #tpu.memory_space<vmem>>, vector<32x2xf32>
    %cst_34 = arith.constant dense<0.000000e+00> : vector<32x1xf32>
    %35 = tpu.matmul %34, %33, %cst_34 {dimension_numbers = #tpu.dot_dimension_numbers<[1], [0], [0], [1], [0, 0, 1, 1], [], []>} : vector<32x2xf32>, vector<2x1xf32>, vector<32x1xf32> -> vector<32x1xf32>
    %c0_35 = arith.constant 0 : index
    %c0_36 = arith.constant 0 : index
    %36 = vector.load %arg5[%c0_35, %c0_36] : memref<32x1xf32, #tpu.memory_space<vmem>>, vector<32x1xf32>
    %37 = arith.addf %35, %36 : vector<32x1xf32>
    %38 = arith.negf %37 : vector<32x1xf32>
    %39 = math.exp %38 : vector<32x1xf32>
    %cst_37 = arith.constant 1.000000e+00 : f32
    %40 = vector.broadcast %cst_37 : f32 to vector<32x1xf32>
    %41 = arith.addf %40, %39 : vector<32x1xf32>
    %42 = arith.divf %40, %41 : vector<32x1xf32>
    %c1_38 = arith.constant 1 : index
    %c0_39 = arith.constant 0 : index
    %c0_40 = arith.constant 0 : index
    %43 = vector.load %arg9[%c1_38, %c0_39, %c0_40] : memref<2x32x1xf32, #tpu.memory_space<vmem>>, vector<1x32x1xf32>
    %44 = vector.shape_cast %43 : vector<1x32x1xf32> to vector<32x1xf32>
    %45 = vector.shape_cast %42 : vector<32x1xf32> to vector<1x32x1xf32>
    tpu.vector_store %arg9[%c1_38, %c0_39, %c0_40], %45 {strides = array<i32>} : memref<2x32x1xf32, #tpu.memory_space<vmem>>, vector<1x32x1xf32>,
    %c0_41 = arith.constant 0 : index
    %c0_42 = arith.constant 0 : index
    %c0_43 = arith.constant 0 : index
    %46 = vector.load %arg9[%c0_41, %c0_42, %c0_43] : memref<2x32x1xf32, #tpu.memory_space<vmem>>, vector<2x32x1xf32>
    %47 = vector.broadcast %46 : vector<2x32x1xf32> to vector<2x32x256xf32>
    %48 = arith.mulf %0, %47 : vector<2x32x256xf32>
    %cst_44 = arith.constant dense<0.000000e+00> : vector<2x256xf32>
    %49 = vector.multi_reduction <add>, %48, %cst_44 [1] : vector<2x32x256xf32> to vector<2x256xf32>
    %50 = vector.shape_cast %49 : vector<2x256xf32> to vector<2x1x256xf32>
    %cst_45 = arith.constant 3.200000e+01 : f32
    %51 = vector.broadcast %cst_45 : f32 to vector<2x1x256xf32>
    %52 = arith.divf %50, %51 : vector<2x1x256xf32>
    %c0_46 = arith.constant 0 : index
    %c0_47 = arith.constant 0 : index
    %c0_48 = arith.constant 0 : index
    %c0_49 = arith.constant 0 : index
    %53 = vector.load %arg10[%c0_46, %c0_47, %c0_48, %c0_49] : memref<2x2x1x256xf32, #tpu.memory_space<vmem>>, vector<1x2x1x256xf32>
    %54 = vector.shape_cast %53 : vector<1x2x1x256xf32> to vector<2x1x256xf32>
    %55 = vector.shape_cast %52 : vector<2x1x256xf32> to vector<1x2x1x256xf32>
    tpu.vector_store %arg10[%c0_46, %c0_47, %c0_48, %c0_49], %55 {strides = array<i32>} : memref<2x2x1x256xf32, #tpu.memory_space<vmem>>, vector<1x2x1x256xf32>,
    %cst_50 = arith.constant dense<0xFF800000> : vector<2x256xf32>
    %56 = vector.multi_reduction <maximumf>, %48, %cst_50 [1] : vector<2x32x256xf32> to vector<2x256xf32>
    %57 = vector.shape_cast %56 : vector<2x256xf32> to vector<2x1x256xf32>
    %c1_51 = arith.constant 1 : index
    %c0_52 = arith.constant 0 : index
    %c0_53 = arith.constant 0 : index
    %c0_54 = arith.constant 0 : index
    %58 = vector.load %arg10[%c1_51, %c0_52, %c0_53, %c0_54] : memref<2x2x1x256xf32, #tpu.memory_space<vmem>>, vector<1x2x1x256xf32>
    %59 = vector.shape_cast %58 : vector<1x2x1x256xf32> to vector<2x1x256xf32>
    %60 = vector.shape_cast %57 : vector<2x1x256xf32> to vector<1x2x1x256xf32>
    tpu.vector_store %arg10[%c1_51, %c0_52, %c0_53, %c0_54], %60 {strides = array<i32>} : memref<2x2x1x256xf32, #tpu.memory_space<vmem>>, vector<1x2x1x256xf32>,
    %cst_55 = arith.constant 0.000000e+00 : f32
    %61 = vector.broadcast %cst_55 : f32 to vector<2x2x22x22xf32>
    %c0_56 = arith.constant 0 : index
    %c0_57 = arith.constant 0 : index
    %c0_58 = arith.constant 0 : index
    %c0_59 = arith.constant 0 : index
    %62 = vector.load %arg11[%c0_56, %c0_57, %c0_58, %c0_59] : memref<2x2x22x22xf32, #tpu.memory_space<vmem>>, vector<2x2x22x22xf32>
    tpu.vector_store %arg11[%c0_56, %c0_57, %c0_58, %c0_59], %61 {strides = array<i32>} : memref<2x2x22x22xf32, #tpu.memory_space<vmem>>, vector<2x2x22x22xf32>,
    %c0_60 = arith.constant 0 : index
    %c0_61 = arith.constant 0 : index
    %c0_62 = arith.constant 0 : index
    %c0_63 = arith.constant 0 : index
    %63 = vector.load %arg10[%c0_60, %c0_61, %c0_62, %c0_63] : memref<2x2x1x256xf32, #tpu.memory_space<vmem>>, vector<2x2x1x16xf32>
    %c0_64 = arith.constant 0 : index
    %c0_65 = arith.constant 0 : index
    %c3 = arith.constant 3 : index
    %c3_66 = arith.constant 3 : index
    %64 = vector.load %arg11[%c0_64, %c0_65, %c3, %c3_66] : memref<2x2x22x22xf32, #tpu.memory_space<vmem>>, vector<2x2x1x16xf32>
    tpu.vector_store %arg11[%c0_64, %c0_65, %c3, %c3_66], %63 {strides = array<i32>} : memref<2x2x22x22xf32, #tpu.memory_space<vmem>>, vector<2x2x1x16xf32>,
    %c0_67 = arith.constant 0 : index
    %c0_68 = arith.constant 0 : index
    %c0_69 = arith.constant 0 : index
    %c16 = arith.constant 16 : index
    %65 = vector.load %arg10[%c0_67, %c0_68, %c0_69, %c16] : memref<2x2x1x256xf32, #tpu.memory_space<vmem>>, vector<2x2x1x16xf32>
    %c0_70 = arith.constant 0 : index
    %c0_71 = arith.constant 0 : index
    %c4 = arith.constant 4 : index
    %c3_72 = arith.constant 3 : index
    %66 = vector.load %arg11[%c0_70, %c0_71, %c4, %c3_72] : memref<2x2x22x22xf32, #tpu.memory_space<vmem>>, vector<2x2x1x16xf32>
    tpu.vector_store %arg11[%c0_70, %c0_71, %c4, %c3_72], %65 {strides = array<i32>} : memref<2x2x22x22xf32, #tpu.memory_space<vmem>>, vector<2x2x1x16xf32>,
    %c0_73 = arith.constant 0 : index
    %c0_74 = arith.constant 0 : index
    %c0_75 = arith.constant 0 : index
    %c32 = arith.constant 32 : index
    %67 = vector.load %arg10[%c0_73, %c0_74, %c0_75, %c32] : memref<2x2x1x256xf32, #tpu.memory_space<vmem>>, vector<2x2x1x16xf32>
    %c0_76 = arith.constant 0 : index
    %c0_77 = arith.constant 0 : index
    %c5 = arith.constant 5 : index
    %c3_78 = arith.constant 3 : index
    %68 = vector.load %arg11[%c0_76, %c0_77, %c5, %c3_78] : memref<2x2x22x22xf32, #tpu.memory_space<vmem>>, vector<2x2x1x16xf32>
    tpu.vector_store %arg11[%c0_76, %c0_77, %c5, %c3_78], %67 {strides = array<i32>} : memref<2x2x22x22xf32, #tpu.memory_space<vmem>>, vector<2x2x1x16xf32>,
    %c0_79 = arith.constant 0 : index
    %c0_80 = arith.constant 0 : index
    %c0_81 = arith.constant 0 : index
    %c48 = arith.constant 48 : index
    %69 = vector.load %arg10[%c0_79, %c0_80, %c0_81, %c48] : memref<2x2x1x256xf32, #tpu.memory_space<vmem>>, vector<2x2x1x16xf32>
    %c0_82 = arith.constant 0 : index
    %c0_83 = arith.constant 0 : index
    %c6 = arith.constant 6 : index
    %c3_84 = arith.constant 3 : index
    %70 = vector.load %arg11[%c0_82, %c0_83, %c6, %c3_84] : memref<2x2x22x22xf32, #tpu.memory_space<vmem>>, vector<2x2x1x16xf32>
    tpu.vector_store %arg11[%c0_82, %c0_83, %c6, %c3_84], %69 {strides = array<i32>} : memref<2x2x22x22xf32, #tpu.memory_space<vmem>>, vector<2x2x1x16xf32>,
    %c0_85 = arith.constant 0 : index
    %c0_86 = arith.constant 0 : index
    %c0_87 = arith.constant 0 : index
    %c64 = arith.constant 64 : index
    %71 = vector.load %arg10[%c0_85, %c0_86, %c0_87, %c64] : memref<2x2x1x256xf32, #tpu.memory_space<vmem>>, vector<2x2x1x16xf32>
    %c0_88 = arith.constant 0 : index
    %c0_89 = arith.constant 0 : index
    %c7 = arith.constant 7 : index
    %c3_90 = arith.constant 3 : index
    %72 = vector.load %arg11[%c0_88, %c0_89, %c7, %c3_90] : memref<2x2x22x22xf32, #tpu.memory_space<vmem>>, vector<2x2x1x16xf32>
    tpu.vector_store %arg11[%c0_88, %c0_89, %c7, %c3_90], %71 {strides = array<i32>} : memref<2x2x22x22xf32, #tpu.memory_space<vmem>>, vector<2x2x1x16xf32>,
    %c0_91 = arith.constant 0 : index
    %c0_92 = arith.constant 0 : index
    %c0_93 = arith.constant 0 : index
    %c80 = arith.constant 80 : index
    %73 = vector.load %arg10[%c0_91, %c0_92, %c0_93, %c80] : memref<2x2x1x256xf32, #tpu.memory_space<vmem>>, vector<2x2x1x16xf32>
    %c0_94 = arith.constant 0 : index
    %c0_95 = arith.constant 0 : index
    %c8 = arith.constant 8 : index
    %c3_96 = arith.constant 3 : index
    %74 = vector.load %arg11[%c0_94, %c0_95, %c8, %c3_96] : memref<2x2x22x22xf32, #tpu.memory_space<vmem>>, vector<2x2x1x16xf32>
    tpu.vector_store %arg11[%c0_94, %c0_95, %c8, %c3_96], %73 {strides = array<i32>} : memref<2x2x22x22xf32, #tpu.memory_space<vmem>>, vector<2x2x1x16xf32>,
    %c0_97 = arith.constant 0 : index
    %c0_98 = arith.constant 0 : index
    %c0_99 = arith.constant 0 : index
    %c96 = arith.constant 96 : index
    %75 = vector.load %arg10[%c0_97, %c0_98, %c0_99, %c96] : memref<2x2x1x256xf32, #tpu.memory_space<vmem>>, vector<2x2x1x16xf32>
    %c0_100 = arith.constant 0 : index
    %c0_101 = arith.constant 0 : index
    %c9 = arith.constant 9 : index
    %c3_102 = arith.constant 3 : index
    %76 = vector.load %arg11[%c0_100, %c0_101, %c9, %c3_102] : memref<2x2x22x22xf32, #tpu.memory_space<vmem>>, vector<2x2x1x16xf32>
    tpu.vector_store %arg11[%c0_100, %c0_101, %c9, %c3_102], %75 {strides = array<i32>} : memref<2x2x22x22xf32, #tpu.memory_space<vmem>>, vector<2x2x1x16xf32>,
    %c0_103 = arith.constant 0 : index
    %c0_104 = arith.constant 0 : index
    %c0_105 = arith.constant 0 : index
    %c112 = arith.constant 112 : index
    %77 = vector.load %arg10[%c0_103, %c0_104, %c0_105, %c112] : memref<2x2x1x256xf32, #tpu.memory_space<vmem>>, vector<2x2x1x16xf32>
    %c0_106 = arith.constant 0 : index
    %c0_107 = arith.constant 0 : index
    %c10 = arith.constant 10 : index
    %c3_108 = arith.constant 3 : index
    %78 = vector.load %arg11[%c0_106, %c0_107, %c10, %c3_108] : memref<2x2x22x22xf32, #tpu.memory_space<vmem>>, vector<2x2x1x16xf32>
    tpu.vector_store %arg11[%c0_106, %c0_107, %c10, %c3_108], %77 {strides = array<i32>} : memref<2x2x22x22xf32, #tpu.memory_space<vmem>>, vector<2x2x1x16xf32>,
    %c0_109 = arith.constant 0 : index
    %c0_110 = arith.constant 0 : index
    %c0_111 = arith.constant 0 : index
    %c128 = arith.constant 128 : index
    %79 = vector.load %arg10[%c0_109, %c0_110, %c0_111, %c128] : memref<2x2x1x256xf32, #tpu.memory_space<vmem>>, vector<2x2x1x16xf32>
    %c0_112 = arith.constant 0 : index
    %c0_113 = arith.constant 0 : index
    %c11 = arith.constant 11 : index
    %c3_114 = arith.constant 3 : index
    %80 = vector.load %arg11[%c0_112, %c0_113, %c11, %c3_114] : memref<2x2x22x22xf32, #tpu.memory_space<vmem>>, vector<2x2x1x16xf32>
    tpu.vector_store %arg11[%c0_112, %c0_113, %c11, %c3_114], %79 {strides = array<i32>} : memref<2x2x22x22xf32, #tpu.memory_space<vmem>>, vector<2x2x1x16xf32>,
    %c0_115 = arith.constant 0 : index
    %c0_116 = arith.constant 0 : index
    %c0_117 = arith.constant 0 : index
    %c144 = arith.constant 144 : index
    %81 = vector.load %arg10[%c0_115, %c0_116, %c0_117, %c144] : memref<2x2x1x256xf32, #tpu.memory_space<vmem>>, vector<2x2x1x16xf32>
    %c0_118 = arith.constant 0 : index
    %c0_119 = arith.constant 0 : index
    %c12 = arith.constant 12 : index
    %c3_120 = arith.constant 3 : index
    %82 = vector.load %arg11[%c0_118, %c0_119, %c12, %c3_120] : memref<2x2x22x22xf32, #tpu.memory_space<vmem>>, vector<2x2x1x16xf32>
    tpu.vector_store %arg11[%c0_118, %c0_119, %c12, %c3_120], %81 {strides = array<i32>} : memref<2x2x22x22xf32, #tpu.memory_space<vmem>>, vector<2x2x1x16xf32>,
    %c0_121 = arith.constant 0 : index
    %c0_122 = arith.constant 0 : index
    %c0_123 = arith.constant 0 : index
    %c160 = arith.constant 160 : index
    %83 = vector.load %arg10[%c0_121, %c0_122, %c0_123, %c160] : memref<2x2x1x256xf32, #tpu.memory_space<vmem>>, vector<2x2x1x16xf32>
    %c0_124 = arith.constant 0 : index
    %c0_125 = arith.constant 0 : index
    %c13 = arith.constant 13 : index
    %c3_126 = arith.constant 3 : index
    %84 = vector.load %arg11[%c0_124, %c0_125, %c13, %c3_126] : memref<2x2x22x22xf32, #tpu.memory_space<vmem>>, vector<2x2x1x16xf32>
    tpu.vector_store %arg11[%c0_124, %c0_125, %c13, %c3_126], %83 {strides = array<i32>} : memref<2x2x22x22xf32, #tpu.memory_space<vmem>>, vector<2x2x1x16xf32>,
    %c0_127 = arith.constant 0 : index
    %c0_128 = arith.constant 0 : index
    %c0_129 = arith.constant 0 : index
    %c176 = arith.constant 176 : index
    %85 = vector.load %arg10[%c0_127, %c0_128, %c0_129, %c176] : memref<2x2x1x256xf32, #tpu.memory_space<vmem>>, vector<2x2x1x16xf32>
    %c0_130 = arith.constant 0 : index
    %c0_131 = arith.constant 0 : index
    %c14 = arith.constant 14 : index
    %c3_132 = arith.constant 3 : index
    %86 = vector.load %arg11[%c0_130, %c0_131, %c14, %c3_132] : memref<2x2x22x22xf32, #tpu.memory_space<vmem>>, vector<2x2x1x16xf32>
    tpu.vector_store %arg11[%c0_130, %c0_131, %c14, %c3_132], %85 {strides = array<i32>} : memref<2x2x22x22xf32, #tpu.memory_space<vmem>>, vector<2x2x1x16xf32>,
    %c0_133 = arith.constant 0 : index
    %c0_134 = arith.constant 0 : index
    %c0_135 = arith.constant 0 : index
    %c192 = arith.constant 192 : index
    %87 = vector.load %arg10[%c0_133, %c0_134, %c0_135, %c192] : memref<2x2x1x256xf32, #tpu.memory_space<vmem>>, vector<2x2x1x16xf32>
    %c0_136 = arith.constant 0 : index
    %c0_137 = arith.constant 0 : index
    %c15 = arith.constant 15 : index
    %c3_138 = arith.constant 3 : index
    %88 = vector.load %arg11[%c0_136, %c0_137, %c15, %c3_138] : memref<2x2x22x22xf32, #tpu.memory_space<vmem>>, vector<2x2x1x16xf32>
    tpu.vector_store %arg11[%c0_136, %c0_137, %c15, %c3_138], %87 {strides = array<i32>} : memref<2x2x22x22xf32, #tpu.memory_space<vmem>>, vector<2x2x1x16xf32>,
    %c0_139 = arith.constant 0 : index
    %c0_140 = arith.constant 0 : index
    %c0_141 = arith.constant 0 : index
    %c208 = arith.constant 208 : index
    %89 = vector.load %arg10[%c0_139, %c0_140, %c0_141, %c208] : memref<2x2x1x256xf32, #tpu.memory_space<vmem>>, vector<2x2x1x16xf32>
    %c0_142 = arith.constant 0 : index
    %c0_143 = arith.constant 0 : index
    %c16_144 = arith.constant 16 : index
    %c3_145 = arith.constant 3 : index
    %90 = vector.load %arg11[%c0_142, %c0_143, %c16_144, %c3_145] : memref<2x2x22x22xf32, #tpu.memory_space<vmem>>, vector<2x2x1x16xf32>
    tpu.vector_store %arg11[%c0_142, %c0_143, %c16_144, %c3_145], %89 {strides = array<i32>} : memref<2x2x22x22xf32, #tpu.memory_space<vmem>>, vector<2x2x1x16xf32>,
    %c0_146 = arith.constant 0 : index
    %c0_147 = arith.constant 0 : index
    %c0_148 = arith.constant 0 : index
    %c224 = arith.constant 224 : index
    %91 = vector.load %arg10[%c0_146, %c0_147, %c0_148, %c224] : memref<2x2x1x256xf32, #tpu.memory_space<vmem>>, vector<2x2x1x16xf32>
    %c0_149 = arith.constant 0 : index
    %c0_150 = arith.constant 0 : index
    %c17 = arith.constant 17 : index
    %c3_151 = arith.constant 3 : index
    %92 = vector.load %arg11[%c0_149, %c0_150, %c17, %c3_151] : memref<2x2x22x22xf32, #tpu.memory_space<vmem>>, vector<2x2x1x16xf32>
    tpu.vector_store %arg11[%c0_149, %c0_150, %c17, %c3_151], %91 {strides = array<i32>} : memref<2x2x22x22xf32, #tpu.memory_space<vmem>>, vector<2x2x1x16xf32>,
    %c0_152 = arith.constant 0 : index
    %c0_153 = arith.constant 0 : index
    %c0_154 = arith.constant 0 : index
    %c240 = arith.constant 240 : index
    %93 = vector.load %arg10[%c0_152, %c0_153, %c0_154, %c240] : memref<2x2x1x256xf32, #tpu.memory_space<vmem>>, vector<2x2x1x16xf32>
    %c0_155 = arith.constant 0 : index
    %c0_156 = arith.constant 0 : index
    %c18 = arith.constant 18 : index
    %c3_157 = arith.constant 3 : index
    %94 = vector.load %arg11[%c0_155, %c0_156, %c18, %c3_157] : memref<2x2x22x22xf32, #tpu.memory_space<vmem>>, vector<2x2x1x16xf32>
    tpu.vector_store %arg11[%c0_155, %c0_156, %c18, %c3_157], %93 {strides = array<i32>} : memref<2x2x22x22xf32, #tpu.memory_space<vmem>>, vector<2x2x1x16xf32>,
    %c0_158 = arith.constant 0 : index
    %95 = memref.load %arg6[%c0_158] : memref<99xf32, #tpu.memory_space<smem>>
    %c1_159 = arith.constant 1 : index
    %96 = memref.load %arg6[%c1_159] : memref<99xf32, #tpu.memory_space<smem>>
    %c2 = arith.constant 2 : index
    %97 = memref.load %arg6[%c2] : memref<99xf32, #tpu.memory_space<smem>>
    %c3_160 = arith.constant 3 : index
    %98 = memref.load %arg6[%c3_160] : memref<99xf32, #tpu.memory_space<smem>>
    %c4_161 = arith.constant 4 : index
    %99 = memref.load %arg6[%c4_161] : memref<99xf32, #tpu.memory_space<smem>>
    %c5_162 = arith.constant 5 : index
    %100 = memref.load %arg6[%c5_162] : memref<99xf32, #tpu.memory_space<smem>>
    %c6_163 = arith.constant 6 : index
    %101 = memref.load %arg6[%c6_163] : memref<99xf32, #tpu.memory_space<smem>>
    %c7_164 = arith.constant 7 : index
    %102 = memref.load %arg6[%c7_164] : memref<99xf32, #tpu.memory_space<smem>>
    %c8_165 = arith.constant 8 : index
    %103 = memref.load %arg6[%c8_165] : memref<99xf32, #tpu.memory_space<smem>>
    %c9_166 = arith.constant 9 : index
    %104 = memref.load %arg6[%c9_166] : memref<99xf32, #tpu.memory_space<smem>>
    %c10_167 = arith.constant 10 : index
    %105 = memref.load %arg6[%c10_167] : memref<99xf32, #tpu.memory_space<smem>>
    %c11_168 = arith.constant 11 : index
    %106 = memref.load %arg6[%c11_168] : memref<99xf32, #tpu.memory_space<smem>>
    %c12_169 = arith.constant 12 : index
    %107 = memref.load %arg6[%c12_169] : memref<99xf32, #tpu.memory_space<smem>>
    %c13_170 = arith.constant 13 : index
    %108 = memref.load %arg6[%c13_170] : memref<99xf32, #tpu.memory_space<smem>>
    %c14_171 = arith.constant 14 : index
    %109 = memref.load %arg6[%c14_171] : memref<99xf32, #tpu.memory_space<smem>>
    %c15_172 = arith.constant 15 : index
    %110 = memref.load %arg6[%c15_172] : memref<99xf32, #tpu.memory_space<smem>>
    %c16_173 = arith.constant 16 : index
    %111 = memref.load %arg6[%c16_173] : memref<99xf32, #tpu.memory_space<smem>>
    %c17_174 = arith.constant 17 : index
    %112 = memref.load %arg6[%c17_174] : memref<99xf32, #tpu.memory_space<smem>>
    %c18_175 = arith.constant 18 : index
    %113 = memref.load %arg6[%c18_175] : memref<99xf32, #tpu.memory_space<smem>>
    %c19 = arith.constant 19 : index
    %114 = memref.load %arg6[%c19] : memref<99xf32, #tpu.memory_space<smem>>
    %c20 = arith.constant 20 : index
    %115 = memref.load %arg6[%c20] : memref<99xf32, #tpu.memory_space<smem>>
    %c21 = arith.constant 21 : index
    %116 = memref.load %arg6[%c21] : memref<99xf32, #tpu.memory_space<smem>>
    %c22 = arith.constant 22 : index
    %117 = memref.load %arg6[%c22] : memref<99xf32, #tpu.memory_space<smem>>
    %c23 = arith.constant 23 : index
    %118 = memref.load %arg6[%c23] : memref<99xf32, #tpu.memory_space<smem>>
    %c24 = arith.constant 24 : index
    %119 = memref.load %arg6[%c24] : memref<99xf32, #tpu.memory_space<smem>>
    %c25 = arith.constant 25 : index
    %120 = memref.load %arg6[%c25] : memref<99xf32, #tpu.memory_space<smem>>
    %c26 = arith.constant 26 : index
    %121 = memref.load %arg6[%c26] : memref<99xf32, #tpu.memory_space<smem>>
    %c27 = arith.constant 27 : index
    %122 = memref.load %arg6[%c27] : memref<99xf32, #tpu.memory_space<smem>>
    %c28 = arith.constant 28 : index
    %123 = memref.load %arg6[%c28] : memref<99xf32, #tpu.memory_space<smem>>
    %c29 = arith.constant 29 : index
    %124 = memref.load %arg6[%c29] : memref<99xf32, #tpu.memory_space<smem>>
    %c30 = arith.constant 30 : index
    %125 = memref.load %arg6[%c30] : memref<99xf32, #tpu.memory_space<smem>>
    %c31 = arith.constant 31 : index
    %126 = memref.load %arg6[%c31] : memref<99xf32, #tpu.memory_space<smem>>
    %c32_176 = arith.constant 32 : index
    %127 = memref.load %arg6[%c32_176] : memref<99xf32, #tpu.memory_space<smem>>
    %c33 = arith.constant 33 : index
    %128 = memref.load %arg6[%c33] : memref<99xf32, #tpu.memory_space<smem>>
    %c34 = arith.constant 34 : index
    %129 = memref.load %arg6[%c34] : memref<99xf32, #tpu.memory_space<smem>>
    %c35 = arith.constant 35 : index
    %130 = memref.load %arg6[%c35] : memref<99xf32, #tpu.memory_space<smem>>
    %c36 = arith.constant 36 : index
    %131 = memref.load %arg6[%c36] : memref<99xf32, #tpu.memory_space<smem>>
    %c37 = arith.constant 37 : index
    %132 = memref.load %arg6[%c37] : memref<99xf32, #tpu.memory_space<smem>>
    %c38 = arith.constant 38 : index
    %133 = memref.load %arg6[%c38] : memref<99xf32, #tpu.memory_space<smem>>
    %c39 = arith.constant 39 : index
    %134 = memref.load %arg6[%c39] : memref<99xf32, #tpu.memory_space<smem>>
    %c40 = arith.constant 40 : index
    %135 = memref.load %arg6[%c40] : memref<99xf32, #tpu.memory_space<smem>>
    %c41 = arith.constant 41 : index
    %136 = memref.load %arg6[%c41] : memref<99xf32, #tpu.memory_space<smem>>
    %c42 = arith.constant 42 : index
    %137 = memref.load %arg6[%c42] : memref<99xf32, #tpu.memory_space<smem>>
    %c43 = arith.constant 43 : index
    %138 = memref.load %arg6[%c43] : memref<99xf32, #tpu.memory_space<smem>>
    %c44 = arith.constant 44 : index
    %139 = memref.load %arg6[%c44] : memref<99xf32, #tpu.memory_space<smem>>
    %c45 = arith.constant 45 : index
    %140 = memref.load %arg6[%c45] : memref<99xf32, #tpu.memory_space<smem>>
    %c46 = arith.constant 46 : index
    %141 = memref.load %arg6[%c46] : memref<99xf32, #tpu.memory_space<smem>>
    %c47 = arith.constant 47 : index
    %142 = memref.load %arg6[%c47] : memref<99xf32, #tpu.memory_space<smem>>
    %c48_177 = arith.constant 48 : index
    %143 = memref.load %arg6[%c48_177] : memref<99xf32, #tpu.memory_space<smem>>
    %c49 = arith.constant 49 : index
    %144 = memref.load %arg6[%c49] : memref<99xf32, #tpu.memory_space<smem>>
    %c50 = arith.constant 50 : index
    %145 = memref.load %arg6[%c50] : memref<99xf32, #tpu.memory_space<smem>>
    %c51 = arith.constant 51 : index
    %146 = memref.load %arg6[%c51] : memref<99xf32, #tpu.memory_space<smem>>
    %c52 = arith.constant 52 : index
    %147 = memref.load %arg6[%c52] : memref<99xf32, #tpu.memory_space<smem>>
    %c53 = arith.constant 53 : index
    %148 = memref.load %arg6[%c53] : memref<99xf32, #tpu.memory_space<smem>>
    %c54 = arith.constant 54 : index
    %149 = memref.load %arg6[%c54] : memref<99xf32, #tpu.memory_space<smem>>
    %c55 = arith.constant 55 : index
    %150 = memref.load %arg6[%c55] : memref<99xf32, #tpu.memory_space<smem>>
    %c56 = arith.constant 56 : index
    %151 = memref.load %arg6[%c56] : memref<99xf32, #tpu.memory_space<smem>>
    %c57 = arith.constant 57 : index
    %152 = memref.load %arg6[%c57] : memref<99xf32, #tpu.memory_space<smem>>
    %c58 = arith.constant 58 : index
    %153 = memref.load %arg6[%c58] : memref<99xf32, #tpu.memory_space<smem>>
    %c59 = arith.constant 59 : index
    %154 = memref.load %arg6[%c59] : memref<99xf32, #tpu.memory_space<smem>>
    %c60 = arith.constant 60 : index
    %155 = memref.load %arg6[%c60] : memref<99xf32, #tpu.memory_space<smem>>
    %c61 = arith.constant 61 : index
    %156 = memref.load %arg6[%c61] : memref<99xf32, #tpu.memory_space<smem>>
    %c62 = arith.constant 62 : index
    %157 = memref.load %arg6[%c62] : memref<99xf32, #tpu.memory_space<smem>>
    %c63 = arith.constant 63 : index
    %158 = memref.load %arg6[%c63] : memref<99xf32, #tpu.memory_space<smem>>
    %c64_178 = arith.constant 64 : index
    %159 = memref.load %arg6[%c64_178] : memref<99xf32, #tpu.memory_space<smem>>
    %c65 = arith.constant 65 : index
    %160 = memref.load %arg6[%c65] : memref<99xf32, #tpu.memory_space<smem>>
    %c66 = arith.constant 66 : index
    %161 = memref.load %arg6[%c66] : memref<99xf32, #tpu.memory_space<smem>>
    %c67 = arith.constant 67 : index
    %162 = memref.load %arg6[%c67] : memref<99xf32, #tpu.memory_space<smem>>
    %c68 = arith.constant 68 : index
    %163 = memref.load %arg6[%c68] : memref<99xf32, #tpu.memory_space<smem>>
    %c69 = arith.constant 69 : index
    %164 = memref.load %arg6[%c69] : memref<99xf32, #tpu.memory_space<smem>>
    %c70 = arith.constant 70 : index
    %165 = memref.load %arg6[%c70] : memref<99xf32, #tpu.memory_space<smem>>
    %c71 = arith.constant 71 : index
    %166 = memref.load %arg6[%c71] : memref<99xf32, #tpu.memory_space<smem>>
    %c72 = arith.constant 72 : index
    %167 = memref.load %arg6[%c72] : memref<99xf32, #tpu.memory_space<smem>>
    %c73 = arith.constant 73 : index
    %168 = memref.load %arg6[%c73] : memref<99xf32, #tpu.memory_space<smem>>
    %c74 = arith.constant 74 : index
    %169 = memref.load %arg6[%c74] : memref<99xf32, #tpu.memory_space<smem>>
    %c75 = arith.constant 75 : index
    %170 = memref.load %arg6[%c75] : memref<99xf32, #tpu.memory_space<smem>>
    %c76 = arith.constant 76 : index
    %171 = memref.load %arg6[%c76] : memref<99xf32, #tpu.memory_space<smem>>
    %c77 = arith.constant 77 : index
    %172 = memref.load %arg6[%c77] : memref<99xf32, #tpu.memory_space<smem>>
    %c78 = arith.constant 78 : index
    %173 = memref.load %arg6[%c78] : memref<99xf32, #tpu.memory_space<smem>>
    %c79 = arith.constant 79 : index
    %174 = memref.load %arg6[%c79] : memref<99xf32, #tpu.memory_space<smem>>
    %c80_179 = arith.constant 80 : index
    %175 = memref.load %arg6[%c80_179] : memref<99xf32, #tpu.memory_space<smem>>
    %c81 = arith.constant 81 : index
    %176 = memref.load %arg6[%c81] : memref<99xf32, #tpu.memory_space<smem>>
    %c82 = arith.constant 82 : index
    %177 = memref.load %arg6[%c82] : memref<99xf32, #tpu.memory_space<smem>>
    %c83 = arith.constant 83 : index
    %178 = memref.load %arg6[%c83] : memref<99xf32, #tpu.memory_space<smem>>
    %c84 = arith.constant 84 : index
    %179 = memref.load %arg6[%c84] : memref<99xf32, #tpu.memory_space<smem>>
    %c85 = arith.constant 85 : index
    %180 = memref.load %arg6[%c85] : memref<99xf32, #tpu.memory_space<smem>>
    %c86 = arith.constant 86 : index
    %181 = memref.load %arg6[%c86] : memref<99xf32, #tpu.memory_space<smem>>
    %c87 = arith.constant 87 : index
    %182 = memref.load %arg6[%c87] : memref<99xf32, #tpu.memory_space<smem>>
    %c88 = arith.constant 88 : index
    %183 = memref.load %arg6[%c88] : memref<99xf32, #tpu.memory_space<smem>>
    %c89 = arith.constant 89 : index
    %184 = memref.load %arg6[%c89] : memref<99xf32, #tpu.memory_space<smem>>
    %c90 = arith.constant 90 : index
    %185 = memref.load %arg6[%c90] : memref<99xf32, #tpu.memory_space<smem>>
    %c91 = arith.constant 91 : index
    %186 = memref.load %arg6[%c91] : memref<99xf32, #tpu.memory_space<smem>>
    %c92 = arith.constant 92 : index
    %187 = memref.load %arg6[%c92] : memref<99xf32, #tpu.memory_space<smem>>
    %c93 = arith.constant 93 : index
    %188 = memref.load %arg6[%c93] : memref<99xf32, #tpu.memory_space<smem>>
    %c94 = arith.constant 94 : index
    %189 = memref.load %arg6[%c94] : memref<99xf32, #tpu.memory_space<smem>>
    %c95 = arith.constant 95 : index
    %190 = memref.load %arg6[%c95] : memref<99xf32, #tpu.memory_space<smem>>
    %c96_180 = arith.constant 96 : index
    %191 = memref.load %arg6[%c96_180] : memref<99xf32, #tpu.memory_space<smem>>
    %c97 = arith.constant 97 : index
    %192 = memref.load %arg6[%c97] : memref<99xf32, #tpu.memory_space<smem>>
    %c98 = arith.constant 98 : index
    %193 = memref.load %arg6[%c98] : memref<99xf32, #tpu.memory_space<smem>>
    %194 = vector.broadcast %193 : f32 to vector<2x16x16xf32>
    %c0_181 = arith.constant 0 : index
    %c0_182 = arith.constant 0 : index
    %c0_183 = arith.constant 0 : index
    %c0_184 = arith.constant 0 : index
    %195 = vector.load %arg11[%c0_181, %c0_182, %c0_183, %c0_184] : memref<2x2x22x22xf32, #tpu.memory_space<vmem>>, vector<1x2x16x16xf32>
    %196 = vector.shape_cast %195 : vector<1x2x16x16xf32> to vector<2x16x16xf32>
    %197 = vector.broadcast %95 : f32 to vector<2x16x16xf32>
    %198 = arith.mulf %197, %196 : vector<2x16x16xf32>
    %199 = arith.addf %194, %198 : vector<2x16x16xf32>
    %c0_185 = arith.constant 0 : index
    %c0_186 = arith.constant 0 : index
    %c0_187 = arith.constant 0 : index
    %c1_188 = arith.constant 1 : index
    %200 = vector.load %arg11[%c0_185, %c0_186, %c0_187, %c1_188] : memref<2x2x22x22xf32, #tpu.memory_space<vmem>>, vector<1x2x16x16xf32>
    %201 = vector.shape_cast %200 : vector<1x2x16x16xf32> to vector<2x16x16xf32>
    %202 = vector.broadcast %96 : f32 to vector<2x16x16xf32>
    %203 = arith.mulf %202, %201 : vector<2x16x16xf32>
    %204 = arith.addf %199, %203 : vector<2x16x16xf32>
    %c0_189 = arith.constant 0 : index
    %c0_190 = arith.constant 0 : index
    %c0_191 = arith.constant 0 : index
    %c2_192 = arith.constant 2 : index
    %205 = vector.load %arg11[%c0_189, %c0_190, %c0_191, %c2_192] : memref<2x2x22x22xf32, #tpu.memory_space<vmem>>, vector<1x2x16x16xf32>
    %206 = vector.shape_cast %205 : vector<1x2x16x16xf32> to vector<2x16x16xf32>
    %207 = vector.broadcast %97 : f32 to vector<2x16x16xf32>
    %208 = arith.mulf %207, %206 : vector<2x16x16xf32>
    %209 = arith.addf %204, %208 : vector<2x16x16xf32>
    %c0_193 = arith.constant 0 : index
    %c0_194 = arith.constant 0 : index
    %c0_195 = arith.constant 0 : index
    %c3_196 = arith.constant 3 : index
    %210 = vector.load %arg11[%c0_193, %c0_194, %c0_195, %c3_196] : memref<2x2x22x22xf32, #tpu.memory_space<vmem>>, vector<1x2x16x16xf32>
    %211 = vector.shape_cast %210 : vector<1x2x16x16xf32> to vector<2x16x16xf32>
    %212 = vector.broadcast %98 : f32 to vector<2x16x16xf32>
    %213 = arith.mulf %212, %211 : vector<2x16x16xf32>
    %214 = arith.addf %209, %213 : vector<2x16x16xf32>
    %c0_197 = arith.constant 0 : index
    %c0_198 = arith.constant 0 : index
    %c0_199 = arith.constant 0 : index
    %c4_200 = arith.constant 4 : index
    %215 = vector.load %arg11[%c0_197, %c0_198, %c0_199, %c4_200] : memref<2x2x22x22xf32, #tpu.memory_space<vmem>>, vector<1x2x16x16xf32>
    %216 = vector.shape_cast %215 : vector<1x2x16x16xf32> to vector<2x16x16xf32>
    %217 = vector.broadcast %99 : f32 to vector<2x16x16xf32>
    %218 = arith.mulf %217, %216 : vector<2x16x16xf32>
    %219 = arith.addf %214, %218 : vector<2x16x16xf32>
    %c0_201 = arith.constant 0 : index
    %c0_202 = arith.constant 0 : index
    %c0_203 = arith.constant 0 : index
    %c5_204 = arith.constant 5 : index
    %220 = vector.load %arg11[%c0_201, %c0_202, %c0_203, %c5_204] : memref<2x2x22x22xf32, #tpu.memory_space<vmem>>, vector<1x2x16x16xf32>
    %221 = vector.shape_cast %220 : vector<1x2x16x16xf32> to vector<2x16x16xf32>
    %222 = vector.broadcast %100 : f32 to vector<2x16x16xf32>
    %223 = arith.mulf %222, %221 : vector<2x16x16xf32>
    %224 = arith.addf %219, %223 : vector<2x16x16xf32>
    %c0_205 = arith.constant 0 : index
    %c0_206 = arith.constant 0 : index
    %c0_207 = arith.constant 0 : index
    %c6_208 = arith.constant 6 : index
    %225 = vector.load %arg11[%c0_205, %c0_206, %c0_207, %c6_208] : memref<2x2x22x22xf32, #tpu.memory_space<vmem>>, vector<1x2x16x16xf32>
    %226 = vector.shape_cast %225 : vector<1x2x16x16xf32> to vector<2x16x16xf32>
    %227 = vector.broadcast %101 : f32 to vector<2x16x16xf32>
    %228 = arith.mulf %227, %226 : vector<2x16x16xf32>
    %229 = arith.addf %224, %228 : vector<2x16x16xf32>
    %c0_209 = arith.constant 0 : index
    %c0_210 = arith.constant 0 : index
    %c1_211 = arith.constant 1 : index
    %c0_212 = arith.constant 0 : index
    %230 = vector.load %arg11[%c0_209, %c0_210, %c1_211, %c0_212] : memref<2x2x22x22xf32, #tpu.memory_space<vmem>>, vector<1x2x16x16xf32>
    %231 = vector.shape_cast %230 : vector<1x2x16x16xf32> to vector<2x16x16xf32>
    %232 = vector.broadcast %102 : f32 to vector<2x16x16xf32>
    %233 = arith.mulf %232, %231 : vector<2x16x16xf32>
    %234 = arith.addf %229, %233 : vector<2x16x16xf32>
    %c0_213 = arith.constant 0 : index
    %c0_214 = arith.constant 0 : index
    %c1_215 = arith.constant 1 : index
    %c1_216 = arith.constant 1 : index
    %235 = vector.load %arg11[%c0_213, %c0_214, %c1_215, %c1_216] : memref<2x2x22x22xf32, #tpu.memory_space<vmem>>, vector<1x2x16x16xf32>
    %236 = vector.shape_cast %235 : vector<1x2x16x16xf32> to vector<2x16x16xf32>
    %237 = vector.broadcast %103 : f32 to vector<2x16x16xf32>
    %238 = arith.mulf %237, %236 : vector<2x16x16xf32>
    %239 = arith.addf %234, %238 : vector<2x16x16xf32>
    %c0_217 = arith.constant 0 : index
    %c0_218 = arith.constant 0 : index
    %c1_219 = arith.constant 1 : index
    %c2_220 = arith.constant 2 : index
    %240 = vector.load %arg11[%c0_217, %c0_218, %c1_219, %c2_220] : memref<2x2x22x22xf32, #tpu.memory_space<vmem>>, vector<1x2x16x16xf32>
    %241 = vector.shape_cast %240 : vector<1x2x16x16xf32> to vector<2x16x16xf32>
    %242 = vector.broadcast %104 : f32 to vector<2x16x16xf32>
    %243 = arith.mulf %242, %241 : vector<2x16x16xf32>
    %244 = arith.addf %239, %243 : vector<2x16x16xf32>
    %c0_221 = arith.constant 0 : index
    %c0_222 = arith.constant 0 : index
    %c1_223 = arith.constant 1 : index
    %c3_224 = arith.constant 3 : index
    %245 = vector.load %arg11[%c0_221, %c0_222, %c1_223, %c3_224] : memref<2x2x22x22xf32, #tpu.memory_space<vmem>>, vector<1x2x16x16xf32>
    %246 = vector.shape_cast %245 : vector<1x2x16x16xf32> to vector<2x16x16xf32>
    %247 = vector.broadcast %105 : f32 to vector<2x16x16xf32>
    %248 = arith.mulf %247, %246 : vector<2x16x16xf32>
    %249 = arith.addf %244, %248 : vector<2x16x16xf32>
    %c0_225 = arith.constant 0 : index
    %c0_226 = arith.constant 0 : index
    %c1_227 = arith.constant 1 : index
    %c4_228 = arith.constant 4 : index
    %250 = vector.load %arg11[%c0_225, %c0_226, %c1_227, %c4_228] : memref<2x2x22x22xf32, #tpu.memory_space<vmem>>, vector<1x2x16x16xf32>
    %251 = vector.shape_cast %250 : vector<1x2x16x16xf32> to vector<2x16x16xf32>
    %252 = vector.broadcast %106 : f32 to vector<2x16x16xf32>
    %253 = arith.mulf %252, %251 : vector<2x16x16xf32>
    %254 = arith.addf %249, %253 : vector<2x16x16xf32>
    %c0_229 = arith.constant 0 : index
    %c0_230 = arith.constant 0 : index
    %c1_231 = arith.constant 1 : index
    %c5_232 = arith.constant 5 : index
    %255 = vector.load %arg11[%c0_229, %c0_230, %c1_231, %c5_232] : memref<2x2x22x22xf32, #tpu.memory_space<vmem>>, vector<1x2x16x16xf32>
    %256 = vector.shape_cast %255 : vector<1x2x16x16xf32> to vector<2x16x16xf32>
    %257 = vector.broadcast %107 : f32 to vector<2x16x16xf32>
    %258 = arith.mulf %257, %256 : vector<2x16x16xf32>
    %259 = arith.addf %254, %258 : vector<2x16x16xf32>
    %c0_233 = arith.constant 0 : index
    %c0_234 = arith.constant 0 : index
    %c1_235 = arith.constant 1 : index
    %c6_236 = arith.constant 6 : index
    %260 = vector.load %arg11[%c0_233, %c0_234, %c1_235, %c6_236] : memref<2x2x22x22xf32, #tpu.memory_space<vmem>>, vector<1x2x16x16xf32>
    %261 = vector.shape_cast %260 : vector<1x2x16x16xf32> to vector<2x16x16xf32>
    %262 = vector.broadcast %108 : f32 to vector<2x16x16xf32>
    %263 = arith.mulf %262, %261 : vector<2x16x16xf32>
    %264 = arith.addf %259, %263 : vector<2x16x16xf32>
    %c0_237 = arith.constant 0 : index
    %c0_238 = arith.constant 0 : index
    %c2_239 = arith.constant 2 : index
    %c0_240 = arith.constant 0 : index
    %265 = vector.load %arg11[%c0_237, %c0_238, %c2_239, %c0_240] : memref<2x2x22x22xf32, #tpu.memory_space<vmem>>, vector<1x2x16x16xf32>
    %266 = vector.shape_cast %265 : vector<1x2x16x16xf32> to vector<2x16x16xf32>
    %267 = vector.broadcast %109 : f32 to vector<2x16x16xf32>
    %268 = arith.mulf %267, %266 : vector<2x16x16xf32>
    %269 = arith.addf %264, %268 : vector<2x16x16xf32>
    %c0_241 = arith.constant 0 : index
    %c0_242 = arith.constant 0 : index
    %c2_243 = arith.constant 2 : index
    %c1_244 = arith.constant 1 : index
    %270 = vector.load %arg11[%c0_241, %c0_242, %c2_243, %c1_244] : memref<2x2x22x22xf32, #tpu.memory_space<vmem>>, vector<1x2x16x16xf32>
    %271 = vector.shape_cast %270 : vector<1x2x16x16xf32> to vector<2x16x16xf32>
    %272 = vector.broadcast %110 : f32 to vector<2x16x16xf32>
    %273 = arith.mulf %272, %271 : vector<2x16x16xf32>
    %274 = arith.addf %269, %273 : vector<2x16x16xf32>
    %c0_245 = arith.constant 0 : index
    %c0_246 = arith.constant 0 : index
    %c2_247 = arith.constant 2 : index
    %c2_248 = arith.constant 2 : index
    %275 = vector.load %arg11[%c0_245, %c0_246, %c2_247, %c2_248] : memref<2x2x22x22xf32, #tpu.memory_space<vmem>>, vector<1x2x16x16xf32>
    %276 = vector.shape_cast %275 : vector<1x2x16x16xf32> to vector<2x16x16xf32>
    %277 = vector.broadcast %111 : f32 to vector<2x16x16xf32>
    %278 = arith.mulf %277, %276 : vector<2x16x16xf32>
    %279 = arith.addf %274, %278 : vector<2x16x16xf32>
    %c0_249 = arith.constant 0 : index
    %c0_250 = arith.constant 0 : index
    %c2_251 = arith.constant 2 : index
    %c3_252 = arith.constant 3 : index
    %280 = vector.load %arg11[%c0_249, %c0_250, %c2_251, %c3_252] : memref<2x2x22x22xf32, #tpu.memory_space<vmem>>, vector<1x2x16x16xf32>
    %281 = vector.shape_cast %280 : vector<1x2x16x16xf32> to vector<2x16x16xf32>
    %282 = vector.broadcast %112 : f32 to vector<2x16x16xf32>
    %283 = arith.mulf %282, %281 : vector<2x16x16xf32>
    %284 = arith.addf %279, %283 : vector<2x16x16xf32>
    %c0_253 = arith.constant 0 : index
    %c0_254 = arith.constant 0 : index
    %c2_255 = arith.constant 2 : index
    %c4_256 = arith.constant 4 : index
    %285 = vector.load %arg11[%c0_253, %c0_254, %c2_255, %c4_256] : memref<2x2x22x22xf32, #tpu.memory_space<vmem>>, vector<1x2x16x16xf32>
    %286 = vector.shape_cast %285 : vector<1x2x16x16xf32> to vector<2x16x16xf32>
    %287 = vector.broadcast %113 : f32 to vector<2x16x16xf32>
    %288 = arith.mulf %287, %286 : vector<2x16x16xf32>
    %289 = arith.addf %284, %288 : vector<2x16x16xf32>
    %c0_257 = arith.constant 0 : index
    %c0_258 = arith.constant 0 : index
    %c2_259 = arith.constant 2 : index
    %c5_260 = arith.constant 5 : index
    %290 = vector.load %arg11[%c0_257, %c0_258, %c2_259, %c5_260] : memref<2x2x22x22xf32, #tpu.memory_space<vmem>>, vector<1x2x16x16xf32>
    %291 = vector.shape_cast %290 : vector<1x2x16x16xf32> to vector<2x16x16xf32>
    %292 = vector.broadcast %114 : f32 to vector<2x16x16xf32>
    %293 = arith.mulf %292, %291 : vector<2x16x16xf32>
    %294 = arith.addf %289, %293 : vector<2x16x16xf32>
    %c0_261 = arith.constant 0 : index
    %c0_262 = arith.constant 0 : index
    %c2_263 = arith.constant 2 : index
    %c6_264 = arith.constant 6 : index
    %295 = vector.load %arg11[%c0_261, %c0_262, %c2_263, %c6_264] : memref<2x2x22x22xf32, #tpu.memory_space<vmem>>, vector<1x2x16x16xf32>
    %296 = vector.shape_cast %295 : vector<1x2x16x16xf32> to vector<2x16x16xf32>
    %297 = vector.broadcast %115 : f32 to vector<2x16x16xf32>
    %298 = arith.mulf %297, %296 : vector<2x16x16xf32>
    %299 = arith.addf %294, %298 : vector<2x16x16xf32>
    %c0_265 = arith.constant 0 : index
    %c0_266 = arith.constant 0 : index
    %c3_267 = arith.constant 3 : index
    %c0_268 = arith.constant 0 : index
    %300 = vector.load %arg11[%c0_265, %c0_266, %c3_267, %c0_268] : memref<2x2x22x22xf32, #tpu.memory_space<vmem>>, vector<1x2x16x16xf32>
    %301 = vector.shape_cast %300 : vector<1x2x16x16xf32> to vector<2x16x16xf32>
    %302 = vector.broadcast %116 : f32 to vector<2x16x16xf32>
    %303 = arith.mulf %302, %301 : vector<2x16x16xf32>
    %304 = arith.addf %299, %303 : vector<2x16x16xf32>
    %c0_269 = arith.constant 0 : index
    %c0_270 = arith.constant 0 : index
    %c3_271 = arith.constant 3 : index
    %c1_272 = arith.constant 1 : index
    %305 = vector.load %arg11[%c0_269, %c0_270, %c3_271, %c1_272] : memref<2x2x22x22xf32, #tpu.memory_space<vmem>>, vector<1x2x16x16xf32>
    %306 = vector.shape_cast %305 : vector<1x2x16x16xf32> to vector<2x16x16xf32>
    %307 = vector.broadcast %117 : f32 to vector<2x16x16xf32>
    %308 = arith.mulf %307, %306 : vector<2x16x16xf32>
    %309 = arith.addf %304, %308 : vector<2x16x16xf32>
    %c0_273 = arith.constant 0 : index
    %c0_274 = arith.constant 0 : index
    %c3_275 = arith.constant 3 : index
    %c2_276 = arith.constant 2 : index
    %310 = vector.load %arg11[%c0_273, %c0_274, %c3_275, %c2_276] : memref<2x2x22x22xf32, #tpu.memory_space<vmem>>, vector<1x2x16x16xf32>
    %311 = vector.shape_cast %310 : vector<1x2x16x16xf32> to vector<2x16x16xf32>
    %312 = vector.broadcast %118 : f32 to vector<2x16x16xf32>
    %313 = arith.mulf %312, %311 : vector<2x16x16xf32>
    %314 = arith.addf %309, %313 : vector<2x16x16xf32>
    %c0_277 = arith.constant 0 : index
    %c0_278 = arith.constant 0 : index
    %c3_279 = arith.constant 3 : index
    %c3_280 = arith.constant 3 : index
    %315 = vector.load %arg11[%c0_277, %c0_278, %c3_279, %c3_280] : memref<2x2x22x22xf32, #tpu.memory_space<vmem>>, vector<1x2x16x16xf32>
    %316 = vector.shape_cast %315 : vector<1x2x16x16xf32> to vector<2x16x16xf32>
    %317 = vector.broadcast %119 : f32 to vector<2x16x16xf32>
    %318 = arith.mulf %317, %316 : vector<2x16x16xf32>
    %319 = arith.addf %314, %318 : vector<2x16x16xf32>
    %c0_281 = arith.constant 0 : index
    %c0_282 = arith.constant 0 : index
    %c3_283 = arith.constant 3 : index
    %c4_284 = arith.constant 4 : index
    %320 = vector.load %arg11[%c0_281, %c0_282, %c3_283, %c4_284] : memref<2x2x22x22xf32, #tpu.memory_space<vmem>>, vector<1x2x16x16xf32>
    %321 = vector.shape_cast %320 : vector<1x2x16x16xf32> to vector<2x16x16xf32>
    %322 = vector.broadcast %120 : f32 to vector<2x16x16xf32>
    %323 = arith.mulf %322, %321 : vector<2x16x16xf32>
    %324 = arith.addf %319, %323 : vector<2x16x16xf32>
    %c0_285 = arith.constant 0 : index
    %c0_286 = arith.constant 0 : index
    %c3_287 = arith.constant 3 : index
    %c5_288 = arith.constant 5 : index
    %325 = vector.load %arg11[%c0_285, %c0_286, %c3_287, %c5_288] : memref<2x2x22x22xf32, #tpu.memory_space<vmem>>, vector<1x2x16x16xf32>
    %326 = vector.shape_cast %325 : vector<1x2x16x16xf32> to vector<2x16x16xf32>
    %327 = vector.broadcast %121 : f32 to vector<2x16x16xf32>
    %328 = arith.mulf %327, %326 : vector<2x16x16xf32>
    %329 = arith.addf %324, %328 : vector<2x16x16xf32>
    %c0_289 = arith.constant 0 : index
    %c0_290 = arith.constant 0 : index
    %c3_291 = arith.constant 3 : index
    %c6_292 = arith.constant 6 : index
    %330 = vector.load %arg11[%c0_289, %c0_290, %c3_291, %c6_292] : memref<2x2x22x22xf32, #tpu.memory_space<vmem>>, vector<1x2x16x16xf32>
    %331 = vector.shape_cast %330 : vector<1x2x16x16xf32> to vector<2x16x16xf32>
    %332 = vector.broadcast %122 : f32 to vector<2x16x16xf32>
    %333 = arith.mulf %332, %331 : vector<2x16x16xf32>
    %334 = arith.addf %329, %333 : vector<2x16x16xf32>
    %c0_293 = arith.constant 0 : index
    %c0_294 = arith.constant 0 : index
    %c4_295 = arith.constant 4 : index
    %c0_296 = arith.constant 0 : index
    %335 = vector.load %arg11[%c0_293, %c0_294, %c4_295, %c0_296] : memref<2x2x22x22xf32, #tpu.memory_space<vmem>>, vector<1x2x16x16xf32>
    %336 = vector.shape_cast %335 : vector<1x2x16x16xf32> to vector<2x16x16xf32>
    %337 = vector.broadcast %123 : f32 to vector<2x16x16xf32>
    %338 = arith.mulf %337, %336 : vector<2x16x16xf32>
    %339 = arith.addf %334, %338 : vector<2x16x16xf32>
    %c0_297 = arith.constant 0 : index
    %c0_298 = arith.constant 0 : index
    %c4_299 = arith.constant 4 : index
    %c1_300 = arith.constant 1 : index
    %340 = vector.load %arg11[%c0_297, %c0_298, %c4_299, %c1_300] : memref<2x2x22x22xf32, #tpu.memory_space<vmem>>, vector<1x2x16x16xf32>
    %341 = vector.shape_cast %340 : vector<1x2x16x16xf32> to vector<2x16x16xf32>
    %342 = vector.broadcast %124 : f32 to vector<2x16x16xf32>
    %343 = arith.mulf %342, %341 : vector<2x16x16xf32>
    %344 = arith.addf %339, %343 : vector<2x16x16xf32>
    %c0_301 = arith.constant 0 : index
    %c0_302 = arith.constant 0 : index
    %c4_303 = arith.constant 4 : index
    %c2_304 = arith.constant 2 : index
    %345 = vector.load %arg11[%c0_301, %c0_302, %c4_303, %c2_304] : memref<2x2x22x22xf32, #tpu.memory_space<vmem>>, vector<1x2x16x16xf32>
    %346 = vector.shape_cast %345 : vector<1x2x16x16xf32> to vector<2x16x16xf32>
    %347 = vector.broadcast %125 : f32 to vector<2x16x16xf32>
    %348 = arith.mulf %347, %346 : vector<2x16x16xf32>
    %349 = arith.addf %344, %348 : vector<2x16x16xf32>
    %c0_305 = arith.constant 0 : index
    %c0_306 = arith.constant 0 : index
    %c4_307 = arith.constant 4 : index
    %c3_308 = arith.constant 3 : index
    %350 = vector.load %arg11[%c0_305, %c0_306, %c4_307, %c3_308] : memref<2x2x22x22xf32, #tpu.memory_space<vmem>>, vector<1x2x16x16xf32>
    %351 = vector.shape_cast %350 : vector<1x2x16x16xf32> to vector<2x16x16xf32>
    %352 = vector.broadcast %126 : f32 to vector<2x16x16xf32>
    %353 = arith.mulf %352, %351 : vector<2x16x16xf32>
    %354 = arith.addf %349, %353 : vector<2x16x16xf32>
    %c0_309 = arith.constant 0 : index
    %c0_310 = arith.constant 0 : index
    %c4_311 = arith.constant 4 : index
    %c4_312 = arith.constant 4 : index
    %355 = vector.load %arg11[%c0_309, %c0_310, %c4_311, %c4_312] : memref<2x2x22x22xf32, #tpu.memory_space<vmem>>, vector<1x2x16x16xf32>
    %356 = vector.shape_cast %355 : vector<1x2x16x16xf32> to vector<2x16x16xf32>
    %357 = vector.broadcast %127 : f32 to vector<2x16x16xf32>
    %358 = arith.mulf %357, %356 : vector<2x16x16xf32>
    %359 = arith.addf %354, %358 : vector<2x16x16xf32>
    %c0_313 = arith.constant 0 : index
    %c0_314 = arith.constant 0 : index
    %c4_315 = arith.constant 4 : index
    %c5_316 = arith.constant 5 : index
    %360 = vector.load %arg11[%c0_313, %c0_314, %c4_315, %c5_316] : memref<2x2x22x22xf32, #tpu.memory_space<vmem>>, vector<1x2x16x16xf32>
    %361 = vector.shape_cast %360 : vector<1x2x16x16xf32> to vector<2x16x16xf32>
    %362 = vector.broadcast %128 : f32 to vector<2x16x16xf32>
    %363 = arith.mulf %362, %361 : vector<2x16x16xf32>
    %364 = arith.addf %359, %363 : vector<2x16x16xf32>
    %c0_317 = arith.constant 0 : index
    %c0_318 = arith.constant 0 : index
    %c4_319 = arith.constant 4 : index
    %c6_320 = arith.constant 6 : index
    %365 = vector.load %arg11[%c0_317, %c0_318, %c4_319, %c6_320] : memref<2x2x22x22xf32, #tpu.memory_space<vmem>>, vector<1x2x16x16xf32>
    %366 = vector.shape_cast %365 : vector<1x2x16x16xf32> to vector<2x16x16xf32>
    %367 = vector.broadcast %129 : f32 to vector<2x16x16xf32>
    %368 = arith.mulf %367, %366 : vector<2x16x16xf32>
    %369 = arith.addf %364, %368 : vector<2x16x16xf32>
    %c0_321 = arith.constant 0 : index
    %c0_322 = arith.constant 0 : index
    %c5_323 = arith.constant 5 : index
    %c0_324 = arith.constant 0 : index
    %370 = vector.load %arg11[%c0_321, %c0_322, %c5_323, %c0_324] : memref<2x2x22x22xf32, #tpu.memory_space<vmem>>, vector<1x2x16x16xf32>
    %371 = vector.shape_cast %370 : vector<1x2x16x16xf32> to vector<2x16x16xf32>
    %372 = vector.broadcast %130 : f32 to vector<2x16x16xf32>
    %373 = arith.mulf %372, %371 : vector<2x16x16xf32>
    %374 = arith.addf %369, %373 : vector<2x16x16xf32>
    %c0_325 = arith.constant 0 : index
    %c0_326 = arith.constant 0 : index
    %c5_327 = arith.constant 5 : index
    %c1_328 = arith.constant 1 : index
    %375 = vector.load %arg11[%c0_325, %c0_326, %c5_327, %c1_328] : memref<2x2x22x22xf32, #tpu.memory_space<vmem>>, vector<1x2x16x16xf32>
    %376 = vector.shape_cast %375 : vector<1x2x16x16xf32> to vector<2x16x16xf32>
    %377 = vector.broadcast %131 : f32 to vector<2x16x16xf32>
    %378 = arith.mulf %377, %376 : vector<2x16x16xf32>
    %379 = arith.addf %374, %378 : vector<2x16x16xf32>
    %c0_329 = arith.constant 0 : index
    %c0_330 = arith.constant 0 : index
    %c5_331 = arith.constant 5 : index
    %c2_332 = arith.constant 2 : index
    %380 = vector.load %arg11[%c0_329, %c0_330, %c5_331, %c2_332] : memref<2x2x22x22xf32, #tpu.memory_space<vmem>>, vector<1x2x16x16xf32>
    %381 = vector.shape_cast %380 : vector<1x2x16x16xf32> to vector<2x16x16xf32>
    %382 = vector.broadcast %132 : f32 to vector<2x16x16xf32>
    %383 = arith.mulf %382, %381 : vector<2x16x16xf32>
    %384 = arith.addf %379, %383 : vector<2x16x16xf32>
    %c0_333 = arith.constant 0 : index
    %c0_334 = arith.constant 0 : index
    %c5_335 = arith.constant 5 : index
    %c3_336 = arith.constant 3 : index
    %385 = vector.load %arg11[%c0_333, %c0_334, %c5_335, %c3_336] : memref<2x2x22x22xf32, #tpu.memory_space<vmem>>, vector<1x2x16x16xf32>
    %386 = vector.shape_cast %385 : vector<1x2x16x16xf32> to vector<2x16x16xf32>
    %387 = vector.broadcast %133 : f32 to vector<2x16x16xf32>
    %388 = arith.mulf %387, %386 : vector<2x16x16xf32>
    %389 = arith.addf %384, %388 : vector<2x16x16xf32>
    %c0_337 = arith.constant 0 : index
    %c0_338 = arith.constant 0 : index
    %c5_339 = arith.constant 5 : index
    %c4_340 = arith.constant 4 : index
    %390 = vector.load %arg11[%c0_337, %c0_338, %c5_339, %c4_340] : memref<2x2x22x22xf32, #tpu.memory_space<vmem>>, vector<1x2x16x16xf32>
    %391 = vector.shape_cast %390 : vector<1x2x16x16xf32> to vector<2x16x16xf32>
    %392 = vector.broadcast %134 : f32 to vector<2x16x16xf32>
    %393 = arith.mulf %392, %391 : vector<2x16x16xf32>
    %394 = arith.addf %389, %393 : vector<2x16x16xf32>
    %c0_341 = arith.constant 0 : index
    %c0_342 = arith.constant 0 : index
    %c5_343 = arith.constant 5 : index
    %c5_344 = arith.constant 5 : index
    %395 = vector.load %arg11[%c0_341, %c0_342, %c5_343, %c5_344] : memref<2x2x22x22xf32, #tpu.memory_space<vmem>>, vector<1x2x16x16xf32>
    %396 = vector.shape_cast %395 : vector<1x2x16x16xf32> to vector<2x16x16xf32>
    %397 = vector.broadcast %135 : f32 to vector<2x16x16xf32>
    %398 = arith.mulf %397, %396 : vector<2x16x16xf32>
    %399 = arith.addf %394, %398 : vector<2x16x16xf32>
    %c0_345 = arith.constant 0 : index
    %c0_346 = arith.constant 0 : index
    %c5_347 = arith.constant 5 : index
    %c6_348 = arith.constant 6 : index
    %400 = vector.load %arg11[%c0_345, %c0_346, %c5_347, %c6_348] : memref<2x2x22x22xf32, #tpu.memory_space<vmem>>, vector<1x2x16x16xf32>
    %401 = vector.shape_cast %400 : vector<1x2x16x16xf32> to vector<2x16x16xf32>
    %402 = vector.broadcast %136 : f32 to vector<2x16x16xf32>
    %403 = arith.mulf %402, %401 : vector<2x16x16xf32>
    %404 = arith.addf %399, %403 : vector<2x16x16xf32>
    %c0_349 = arith.constant 0 : index
    %c0_350 = arith.constant 0 : index
    %c6_351 = arith.constant 6 : index
    %c0_352 = arith.constant 0 : index
    %405 = vector.load %arg11[%c0_349, %c0_350, %c6_351, %c0_352] : memref<2x2x22x22xf32, #tpu.memory_space<vmem>>, vector<1x2x16x16xf32>
    %406 = vector.shape_cast %405 : vector<1x2x16x16xf32> to vector<2x16x16xf32>
    %407 = vector.broadcast %137 : f32 to vector<2x16x16xf32>
    %408 = arith.mulf %407, %406 : vector<2x16x16xf32>
    %409 = arith.addf %404, %408 : vector<2x16x16xf32>
    %c0_353 = arith.constant 0 : index
    %c0_354 = arith.constant 0 : index
    %c6_355 = arith.constant 6 : index
    %c1_356 = arith.constant 1 : index
    %410 = vector.load %arg11[%c0_353, %c0_354, %c6_355, %c1_356] : memref<2x2x22x22xf32, #tpu.memory_space<vmem>>, vector<1x2x16x16xf32>
    %411 = vector.shape_cast %410 : vector<1x2x16x16xf32> to vector<2x16x16xf32>
    %412 = vector.broadcast %138 : f32 to vector<2x16x16xf32>
    %413 = arith.mulf %412, %411 : vector<2x16x16xf32>
    %414 = arith.addf %409, %413 : vector<2x16x16xf32>
    %c0_357 = arith.constant 0 : index
    %c0_358 = arith.constant 0 : index
    %c6_359 = arith.constant 6 : index
    %c2_360 = arith.constant 2 : index
    %415 = vector.load %arg11[%c0_357, %c0_358, %c6_359, %c2_360] : memref<2x2x22x22xf32, #tpu.memory_space<vmem>>, vector<1x2x16x16xf32>
    %416 = vector.shape_cast %415 : vector<1x2x16x16xf32> to vector<2x16x16xf32>
    %417 = vector.broadcast %139 : f32 to vector<2x16x16xf32>
    %418 = arith.mulf %417, %416 : vector<2x16x16xf32>
    %419 = arith.addf %414, %418 : vector<2x16x16xf32>
    %c0_361 = arith.constant 0 : index
    %c0_362 = arith.constant 0 : index
    %c6_363 = arith.constant 6 : index
    %c3_364 = arith.constant 3 : index
    %420 = vector.load %arg11[%c0_361, %c0_362, %c6_363, %c3_364] : memref<2x2x22x22xf32, #tpu.memory_space<vmem>>, vector<1x2x16x16xf32>
    %421 = vector.shape_cast %420 : vector<1x2x16x16xf32> to vector<2x16x16xf32>
    %422 = vector.broadcast %140 : f32 to vector<2x16x16xf32>
    %423 = arith.mulf %422, %421 : vector<2x16x16xf32>
    %424 = arith.addf %419, %423 : vector<2x16x16xf32>
    %c0_365 = arith.constant 0 : index
    %c0_366 = arith.constant 0 : index
    %c6_367 = arith.constant 6 : index
    %c4_368 = arith.constant 4 : index
    %425 = vector.load %arg11[%c0_365, %c0_366, %c6_367, %c4_368] : memref<2x2x22x22xf32, #tpu.memory_space<vmem>>, vector<1x2x16x16xf32>
    %426 = vector.shape_cast %425 : vector<1x2x16x16xf32> to vector<2x16x16xf32>
    %427 = vector.broadcast %141 : f32 to vector<2x16x16xf32>
    %428 = arith.mulf %427, %426 : vector<2x16x16xf32>
    %429 = arith.addf %424, %428 : vector<2x16x16xf32>
    %c0_369 = arith.constant 0 : index
    %c0_370 = arith.constant 0 : index
    %c6_371 = arith.constant 6 : index
    %c5_372 = arith.constant 5 : index
    %430 = vector.load %arg11[%c0_369, %c0_370, %c6_371, %c5_372] : memref<2x2x22x22xf32, #tpu.memory_space<vmem>>, vector<1x2x16x16xf32>
    %431 = vector.shape_cast %430 : vector<1x2x16x16xf32> to vector<2x16x16xf32>
    %432 = vector.broadcast %142 : f32 to vector<2x16x16xf32>
    %433 = arith.mulf %432, %431 : vector<2x16x16xf32>
    %434 = arith.addf %429, %433 : vector<2x16x16xf32>
    %c0_373 = arith.constant 0 : index
    %c0_374 = arith.constant 0 : index
    %c6_375 = arith.constant 6 : index
    %c6_376 = arith.constant 6 : index
    %435 = vector.load %arg11[%c0_373, %c0_374, %c6_375, %c6_376] : memref<2x2x22x22xf32, #tpu.memory_space<vmem>>, vector<1x2x16x16xf32>
    %436 = vector.shape_cast %435 : vector<1x2x16x16xf32> to vector<2x16x16xf32>
    %437 = vector.broadcast %143 : f32 to vector<2x16x16xf32>
    %438 = arith.mulf %437, %436 : vector<2x16x16xf32>
    %439 = arith.addf %434, %438 : vector<2x16x16xf32>
    %c1_377 = arith.constant 1 : index
    %c0_378 = arith.constant 0 : index
    %c0_379 = arith.constant 0 : index
    %c0_380 = arith.constant 0 : index
    %440 = vector.load %arg11[%c1_377, %c0_378, %c0_379, %c0_380] : memref<2x2x22x22xf32, #tpu.memory_space<vmem>>, vector<1x2x16x16xf32>
    %441 = vector.shape_cast %440 : vector<1x2x16x16xf32> to vector<2x16x16xf32>
    %442 = vector.broadcast %144 : f32 to vector<2x16x16xf32>
    %443 = arith.mulf %442, %441 : vector<2x16x16xf32>
    %444 = arith.addf %439, %443 : vector<2x16x16xf32>
    %c1_381 = arith.constant 1 : index
    %c0_382 = arith.constant 0 : index
    %c0_383 = arith.constant 0 : index
    %c1_384 = arith.constant 1 : index
    %445 = vector.load %arg11[%c1_381, %c0_382, %c0_383, %c1_384] : memref<2x2x22x22xf32, #tpu.memory_space<vmem>>, vector<1x2x16x16xf32>
    %446 = vector.shape_cast %445 : vector<1x2x16x16xf32> to vector<2x16x16xf32>
    %447 = vector.broadcast %145 : f32 to vector<2x16x16xf32>
    %448 = arith.mulf %447, %446 : vector<2x16x16xf32>
    %449 = arith.addf %444, %448 : vector<2x16x16xf32>
    %c1_385 = arith.constant 1 : index
    %c0_386 = arith.constant 0 : index
    %c0_387 = arith.constant 0 : index
    %c2_388 = arith.constant 2 : index
    %450 = vector.load %arg11[%c1_385, %c0_386, %c0_387, %c2_388] : memref<2x2x22x22xf32, #tpu.memory_space<vmem>>, vector<1x2x16x16xf32>
    %451 = vector.shape_cast %450 : vector<1x2x16x16xf32> to vector<2x16x16xf32>
    %452 = vector.broadcast %146 : f32 to vector<2x16x16xf32>
    %453 = arith.mulf %452, %451 : vector<2x16x16xf32>
    %454 = arith.addf %449, %453 : vector<2x16x16xf32>
    %c1_389 = arith.constant 1 : index
    %c0_390 = arith.constant 0 : index
    %c0_391 = arith.constant 0 : index
    %c3_392 = arith.constant 3 : index
    %455 = vector.load %arg11[%c1_389, %c0_390, %c0_391, %c3_392] : memref<2x2x22x22xf32, #tpu.memory_space<vmem>>, vector<1x2x16x16xf32>
    %456 = vector.shape_cast %455 : vector<1x2x16x16xf32> to vector<2x16x16xf32>
    %457 = vector.broadcast %147 : f32 to vector<2x16x16xf32>
    %458 = arith.mulf %457, %456 : vector<2x16x16xf32>
    %459 = arith.addf %454, %458 : vector<2x16x16xf32>
    %c1_393 = arith.constant 1 : index
    %c0_394 = arith.constant 0 : index
    %c0_395 = arith.constant 0 : index
    %c4_396 = arith.constant 4 : index
    %460 = vector.load %arg11[%c1_393, %c0_394, %c0_395, %c4_396] : memref<2x2x22x22xf32, #tpu.memory_space<vmem>>, vector<1x2x16x16xf32>
    %461 = vector.shape_cast %460 : vector<1x2x16x16xf32> to vector<2x16x16xf32>
    %462 = vector.broadcast %148 : f32 to vector<2x16x16xf32>
    %463 = arith.mulf %462, %461 : vector<2x16x16xf32>
    %464 = arith.addf %459, %463 : vector<2x16x16xf32>
    %c1_397 = arith.constant 1 : index
    %c0_398 = arith.constant 0 : index
    %c0_399 = arith.constant 0 : index
    %c5_400 = arith.constant 5 : index
    %465 = vector.load %arg11[%c1_397, %c0_398, %c0_399, %c5_400] : memref<2x2x22x22xf32, #tpu.memory_space<vmem>>, vector<1x2x16x16xf32>
    %466 = vector.shape_cast %465 : vector<1x2x16x16xf32> to vector<2x16x16xf32>
    %467 = vector.broadcast %149 : f32 to vector<2x16x16xf32>
    %468 = arith.mulf %467, %466 : vector<2x16x16xf32>
    %469 = arith.addf %464, %468 : vector<2x16x16xf32>
    %c1_401 = arith.constant 1 : index
    %c0_402 = arith.constant 0 : index
    %c0_403 = arith.constant 0 : index
    %c6_404 = arith.constant 6 : index
    %470 = vector.load %arg11[%c1_401, %c0_402, %c0_403, %c6_404] : memref<2x2x22x22xf32, #tpu.memory_space<vmem>>, vector<1x2x16x16xf32>
    %471 = vector.shape_cast %470 : vector<1x2x16x16xf32> to vector<2x16x16xf32>
    %472 = vector.broadcast %150 : f32 to vector<2x16x16xf32>
    %473 = arith.mulf %472, %471 : vector<2x16x16xf32>
    %474 = arith.addf %469, %473 : vector<2x16x16xf32>
    %c1_405 = arith.constant 1 : index
    %c0_406 = arith.constant 0 : index
    %c1_407 = arith.constant 1 : index
    %c0_408 = arith.constant 0 : index
    %475 = vector.load %arg11[%c1_405, %c0_406, %c1_407, %c0_408] : memref<2x2x22x22xf32, #tpu.memory_space<vmem>>, vector<1x2x16x16xf32>
    %476 = vector.shape_cast %475 : vector<1x2x16x16xf32> to vector<2x16x16xf32>
    %477 = vector.broadcast %151 : f32 to vector<2x16x16xf32>
    %478 = arith.mulf %477, %476 : vector<2x16x16xf32>
    %479 = arith.addf %474, %478 : vector<2x16x16xf32>
    %c1_409 = arith.constant 1 : index
    %c0_410 = arith.constant 0 : index
    %c1_411 = arith.constant 1 : index
    %c1_412 = arith.constant 1 : index
    %480 = vector.load %arg11[%c1_409, %c0_410, %c1_411, %c1_412] : memref<2x2x22x22xf32, #tpu.memory_space<vmem>>, vector<1x2x16x16xf32>
    %481 = vector.shape_cast %480 : vector<1x2x16x16xf32> to vector<2x16x16xf32>
    %482 = vector.broadcast %152 : f32 to vector<2x16x16xf32>
    %483 = arith.mulf %482, %481 : vector<2x16x16xf32>
    %484 = arith.addf %479, %483 : vector<2x16x16xf32>
    %c1_413 = arith.constant 1 : index
    %c0_414 = arith.constant 0 : index
    %c1_415 = arith.constant 1 : index
    %c2_416 = arith.constant 2 : index
    %485 = vector.load %arg11[%c1_413, %c0_414, %c1_415, %c2_416] : memref<2x2x22x22xf32, #tpu.memory_space<vmem>>, vector<1x2x16x16xf32>
    %486 = vector.shape_cast %485 : vector<1x2x16x16xf32> to vector<2x16x16xf32>
    %487 = vector.broadcast %153 : f32 to vector<2x16x16xf32>
    %488 = arith.mulf %487, %486 : vector<2x16x16xf32>
    %489 = arith.addf %484, %488 : vector<2x16x16xf32>
    %c1_417 = arith.constant 1 : index
    %c0_418 = arith.constant 0 : index
    %c1_419 = arith.constant 1 : index
    %c3_420 = arith.constant 3 : index
    %490 = vector.load %arg11[%c1_417, %c0_418, %c1_419, %c3_420] : memref<2x2x22x22xf32, #tpu.memory_space<vmem>>, vector<1x2x16x16xf32>
    %491 = vector.shape_cast %490 : vector<1x2x16x16xf32> to vector<2x16x16xf32>
    %492 = vector.broadcast %154 : f32 to vector<2x16x16xf32>
    %493 = arith.mulf %492, %491 : vector<2x16x16xf32>
    %494 = arith.addf %489, %493 : vector<2x16x16xf32>
    %c1_421 = arith.constant 1 : index
    %c0_422 = arith.constant 0 : index
    %c1_423 = arith.constant 1 : index
    %c4_424 = arith.constant 4 : index
    %495 = vector.load %arg11[%c1_421, %c0_422, %c1_423, %c4_424] : memref<2x2x22x22xf32, #tpu.memory_space<vmem>>, vector<1x2x16x16xf32>
    %496 = vector.shape_cast %495 : vector<1x2x16x16xf32> to vector<2x16x16xf32>
    %497 = vector.broadcast %155 : f32 to vector<2x16x16xf32>
    %498 = arith.mulf %497, %496 : vector<2x16x16xf32>
    %499 = arith.addf %494, %498 : vector<2x16x16xf32>
    %c1_425 = arith.constant 1 : index
    %c0_426 = arith.constant 0 : index
    %c1_427 = arith.constant 1 : index
    %c5_428 = arith.constant 5 : index
    %500 = vector.load %arg11[%c1_425, %c0_426, %c1_427, %c5_428] : memref<2x2x22x22xf32, #tpu.memory_space<vmem>>, vector<1x2x16x16xf32>
    %501 = vector.shape_cast %500 : vector<1x2x16x16xf32> to vector<2x16x16xf32>
    %502 = vector.broadcast %156 : f32 to vector<2x16x16xf32>
    %503 = arith.mulf %502, %501 : vector<2x16x16xf32>
    %504 = arith.addf %499, %503 : vector<2x16x16xf32>
    %c1_429 = arith.constant 1 : index
    %c0_430 = arith.constant 0 : index
    %c1_431 = arith.constant 1 : index
    %c6_432 = arith.constant 6 : index
    %505 = vector.load %arg11[%c1_429, %c0_430, %c1_431, %c6_432] : memref<2x2x22x22xf32, #tpu.memory_space<vmem>>, vector<1x2x16x16xf32>
    %506 = vector.shape_cast %505 : vector<1x2x16x16xf32> to vector<2x16x16xf32>
    %507 = vector.broadcast %157 : f32 to vector<2x16x16xf32>
    %508 = arith.mulf %507, %506 : vector<2x16x16xf32>
    %509 = arith.addf %504, %508 : vector<2x16x16xf32>
    %c1_433 = arith.constant 1 : index
    %c0_434 = arith.constant 0 : index
    %c2_435 = arith.constant 2 : index
    %c0_436 = arith.constant 0 : index
    %510 = vector.load %arg11[%c1_433, %c0_434, %c2_435, %c0_436] : memref<2x2x22x22xf32, #tpu.memory_space<vmem>>, vector<1x2x16x16xf32>
    %511 = vector.shape_cast %510 : vector<1x2x16x16xf32> to vector<2x16x16xf32>
    %512 = vector.broadcast %158 : f32 to vector<2x16x16xf32>
    %513 = arith.mulf %512, %511 : vector<2x16x16xf32>
    %514 = arith.addf %509, %513 : vector<2x16x16xf32>
    %c1_437 = arith.constant 1 : index
    %c0_438 = arith.constant 0 : index
    %c2_439 = arith.constant 2 : index
    %c1_440 = arith.constant 1 : index
    %515 = vector.load %arg11[%c1_437, %c0_438, %c2_439, %c1_440] : memref<2x2x22x22xf32, #tpu.memory_space<vmem>>, vector<1x2x16x16xf32>
    %516 = vector.shape_cast %515 : vector<1x2x16x16xf32> to vector<2x16x16xf32>
    %517 = vector.broadcast %159 : f32 to vector<2x16x16xf32>
    %518 = arith.mulf %517, %516 : vector<2x16x16xf32>
    %519 = arith.addf %514, %518 : vector<2x16x16xf32>
    %c1_441 = arith.constant 1 : index
    %c0_442 = arith.constant 0 : index
    %c2_443 = arith.constant 2 : index
    %c2_444 = arith.constant 2 : index
    %520 = vector.load %arg11[%c1_441, %c0_442, %c2_443, %c2_444] : memref<2x2x22x22xf32, #tpu.memory_space<vmem>>, vector<1x2x16x16xf32>
    %521 = vector.shape_cast %520 : vector<1x2x16x16xf32> to vector<2x16x16xf32>
    %522 = vector.broadcast %160 : f32 to vector<2x16x16xf32>
    %523 = arith.mulf %522, %521 : vector<2x16x16xf32>
    %524 = arith.addf %519, %523 : vector<2x16x16xf32>
    %c1_445 = arith.constant 1 : index
    %c0_446 = arith.constant 0 : index
    %c2_447 = arith.constant 2 : index
    %c3_448 = arith.constant 3 : index
    %525 = vector.load %arg11[%c1_445, %c0_446, %c2_447, %c3_448] : memref<2x2x22x22xf32, #tpu.memory_space<vmem>>, vector<1x2x16x16xf32>
    %526 = vector.shape_cast %525 : vector<1x2x16x16xf32> to vector<2x16x16xf32>
    %527 = vector.broadcast %161 : f32 to vector<2x16x16xf32>
    %528 = arith.mulf %527, %526 : vector<2x16x16xf32>
    %529 = arith.addf %524, %528 : vector<2x16x16xf32>
    %c1_449 = arith.constant 1 : index
    %c0_450 = arith.constant 0 : index
    %c2_451 = arith.constant 2 : index
    %c4_452 = arith.constant 4 : index
    %530 = vector.load %arg11[%c1_449, %c0_450, %c2_451, %c4_452] : memref<2x2x22x22xf32, #tpu.memory_space<vmem>>, vector<1x2x16x16xf32>
    %531 = vector.shape_cast %530 : vector<1x2x16x16xf32> to vector<2x16x16xf32>
    %532 = vector.broadcast %162 : f32 to vector<2x16x16xf32>
    %533 = arith.mulf %532, %531 : vector<2x16x16xf32>
    %534 = arith.addf %529, %533 : vector<2x16x16xf32>
    %c1_453 = arith.constant 1 : index
    %c0_454 = arith.constant 0 : index
    %c2_455 = arith.constant 2 : index
    %c5_456 = arith.constant 5 : index
    %535 = vector.load %arg11[%c1_453, %c0_454, %c2_455, %c5_456] : memref<2x2x22x22xf32, #tpu.memory_space<vmem>>, vector<1x2x16x16xf32>
    %536 = vector.shape_cast %535 : vector<1x2x16x16xf32> to vector<2x16x16xf32>
    %537 = vector.broadcast %163 : f32 to vector<2x16x16xf32>
    %538 = arith.mulf %537, %536 : vector<2x16x16xf32>
    %539 = arith.addf %534, %538 : vector<2x16x16xf32>
    %c1_457 = arith.constant 1 : index
    %c0_458 = arith.constant 0 : index
    %c2_459 = arith.constant 2 : index
    %c6_460 = arith.constant 6 : index
    %540 = vector.load %arg11[%c1_457, %c0_458, %c2_459, %c6_460] : memref<2x2x22x22xf32, #tpu.memory_space<vmem>>, vector<1x2x16x16xf32>
    %541 = vector.shape_cast %540 : vector<1x2x16x16xf32> to vector<2x16x16xf32>
    %542 = vector.broadcast %164 : f32 to vector<2x16x16xf32>
    %543 = arith.mulf %542, %541 : vector<2x16x16xf32>
    %544 = arith.addf %539, %543 : vector<2x16x16xf32>
    %c1_461 = arith.constant 1 : index
    %c0_462 = arith.constant 0 : index
    %c3_463 = arith.constant 3 : index
    %c0_464 = arith.constant 0 : index
    %545 = vector.load %arg11[%c1_461, %c0_462, %c3_463, %c0_464] : memref<2x2x22x22xf32, #tpu.memory_space<vmem>>, vector<1x2x16x16xf32>
    %546 = vector.shape_cast %545 : vector<1x2x16x16xf32> to vector<2x16x16xf32>
    %547 = vector.broadcast %165 : f32 to vector<2x16x16xf32>
    %548 = arith.mulf %547, %546 : vector<2x16x16xf32>
    %549 = arith.addf %544, %548 : vector<2x16x16xf32>
    %c1_465 = arith.constant 1 : index
    %c0_466 = arith.constant 0 : index
    %c3_467 = arith.constant 3 : index
    %c1_468 = arith.constant 1 : index
    %550 = vector.load %arg11[%c1_465, %c0_466, %c3_467, %c1_468] : memref<2x2x22x22xf32, #tpu.memory_space<vmem>>, vector<1x2x16x16xf32>
    %551 = vector.shape_cast %550 : vector<1x2x16x16xf32> to vector<2x16x16xf32>
    %552 = vector.broadcast %166 : f32 to vector<2x16x16xf32>
    %553 = arith.mulf %552, %551 : vector<2x16x16xf32>
    %554 = arith.addf %549, %553 : vector<2x16x16xf32>
    %c1_469 = arith.constant 1 : index
    %c0_470 = arith.constant 0 : index
    %c3_471 = arith.constant 3 : index
    %c2_472 = arith.constant 2 : index
    %555 = vector.load %arg11[%c1_469, %c0_470, %c3_471, %c2_472] : memref<2x2x22x22xf32, #tpu.memory_space<vmem>>, vector<1x2x16x16xf32>
    %556 = vector.shape_cast %555 : vector<1x2x16x16xf32> to vector<2x16x16xf32>
    %557 = vector.broadcast %167 : f32 to vector<2x16x16xf32>
    %558 = arith.mulf %557, %556 : vector<2x16x16xf32>
    %559 = arith.addf %554, %558 : vector<2x16x16xf32>
    %c1_473 = arith.constant 1 : index
    %c0_474 = arith.constant 0 : index
    %c3_475 = arith.constant 3 : index
    %c3_476 = arith.constant 3 : index
    %560 = vector.load %arg11[%c1_473, %c0_474, %c3_475, %c3_476] : memref<2x2x22x22xf32, #tpu.memory_space<vmem>>, vector<1x2x16x16xf32>
    %561 = vector.shape_cast %560 : vector<1x2x16x16xf32> to vector<2x16x16xf32>
    %562 = vector.broadcast %168 : f32 to vector<2x16x16xf32>
    %563 = arith.mulf %562, %561 : vector<2x16x16xf32>
    %564 = arith.addf %559, %563 : vector<2x16x16xf32>
    %c1_477 = arith.constant 1 : index
    %c0_478 = arith.constant 0 : index
    %c3_479 = arith.constant 3 : index
    %c4_480 = arith.constant 4 : index
    %565 = vector.load %arg11[%c1_477, %c0_478, %c3_479, %c4_480] : memref<2x2x22x22xf32, #tpu.memory_space<vmem>>, vector<1x2x16x16xf32>
    %566 = vector.shape_cast %565 : vector<1x2x16x16xf32> to vector<2x16x16xf32>
    %567 = vector.broadcast %169 : f32 to vector<2x16x16xf32>
    %568 = arith.mulf %567, %566 : vector<2x16x16xf32>
    %569 = arith.addf %564, %568 : vector<2x16x16xf32>
    %c1_481 = arith.constant 1 : index
    %c0_482 = arith.constant 0 : index
    %c3_483 = arith.constant 3 : index
    %c5_484 = arith.constant 5 : index
    %570 = vector.load %arg11[%c1_481, %c0_482, %c3_483, %c5_484] : memref<2x2x22x22xf32, #tpu.memory_space<vmem>>, vector<1x2x16x16xf32>
    %571 = vector.shape_cast %570 : vector<1x2x16x16xf32> to vector<2x16x16xf32>
    %572 = vector.broadcast %170 : f32 to vector<2x16x16xf32>
    %573 = arith.mulf %572, %571 : vector<2x16x16xf32>
    %574 = arith.addf %569, %573 : vector<2x16x16xf32>
    %c1_485 = arith.constant 1 : index
    %c0_486 = arith.constant 0 : index
    %c3_487 = arith.constant 3 : index
    %c6_488 = arith.constant 6 : index
    %575 = vector.load %arg11[%c1_485, %c0_486, %c3_487, %c6_488] : memref<2x2x22x22xf32, #tpu.memory_space<vmem>>, vector<1x2x16x16xf32>
    %576 = vector.shape_cast %575 : vector<1x2x16x16xf32> to vector<2x16x16xf32>
    %577 = vector.broadcast %171 : f32 to vector<2x16x16xf32>
    %578 = arith.mulf %577, %576 : vector<2x16x16xf32>
    %579 = arith.addf %574, %578 : vector<2x16x16xf32>
    %c1_489 = arith.constant 1 : index
    %c0_490 = arith.constant 0 : index
    %c4_491 = arith.constant 4 : index
    %c0_492 = arith.constant 0 : index
    %580 = vector.load %arg11[%c1_489, %c0_490, %c4_491, %c0_492] : memref<2x2x22x22xf32, #tpu.memory_space<vmem>>, vector<1x2x16x16xf32>
    %581 = vector.shape_cast %580 : vector<1x2x16x16xf32> to vector<2x16x16xf32>
    %582 = vector.broadcast %172 : f32 to vector<2x16x16xf32>
    %583 = arith.mulf %582, %581 : vector<2x16x16xf32>
    %584 = arith.addf %579, %583 : vector<2x16x16xf32>
    %c1_493 = arith.constant 1 : index
    %c0_494 = arith.constant 0 : index
    %c4_495 = arith.constant 4 : index
    %c1_496 = arith.constant 1 : index
    %585 = vector.load %arg11[%c1_493, %c0_494, %c4_495, %c1_496] : memref<2x2x22x22xf32, #tpu.memory_space<vmem>>, vector<1x2x16x16xf32>
    %586 = vector.shape_cast %585 : vector<1x2x16x16xf32> to vector<2x16x16xf32>
    %587 = vector.broadcast %173 : f32 to vector<2x16x16xf32>
    %588 = arith.mulf %587, %586 : vector<2x16x16xf32>
    %589 = arith.addf %584, %588 : vector<2x16x16xf32>
    %c1_497 = arith.constant 1 : index
    %c0_498 = arith.constant 0 : index
    %c4_499 = arith.constant 4 : index
    %c2_500 = arith.constant 2 : index
    %590 = vector.load %arg11[%c1_497, %c0_498, %c4_499, %c2_500] : memref<2x2x22x22xf32, #tpu.memory_space<vmem>>, vector<1x2x16x16xf32>
    %591 = vector.shape_cast %590 : vector<1x2x16x16xf32> to vector<2x16x16xf32>
    %592 = vector.broadcast %174 : f32 to vector<2x16x16xf32>
    %593 = arith.mulf %592, %591 : vector<2x16x16xf32>
    %594 = arith.addf %589, %593 : vector<2x16x16xf32>
    %c1_501 = arith.constant 1 : index
    %c0_502 = arith.constant 0 : index
    %c4_503 = arith.constant 4 : index
    %c3_504 = arith.constant 3 : index
    %595 = vector.load %arg11[%c1_501, %c0_502, %c4_503, %c3_504] : memref<2x2x22x22xf32, #tpu.memory_space<vmem>>, vector<1x2x16x16xf32>
    %596 = vector.shape_cast %595 : vector<1x2x16x16xf32> to vector<2x16x16xf32>
    %597 = vector.broadcast %175 : f32 to vector<2x16x16xf32>
    %598 = arith.mulf %597, %596 : vector<2x16x16xf32>
    %599 = arith.addf %594, %598 : vector<2x16x16xf32>
    %c1_505 = arith.constant 1 : index
    %c0_506 = arith.constant 0 : index
    %c4_507 = arith.constant 4 : index
    %c4_508 = arith.constant 4 : index
    %600 = vector.load %arg11[%c1_505, %c0_506, %c4_507, %c4_508] : memref<2x2x22x22xf32, #tpu.memory_space<vmem>>, vector<1x2x16x16xf32>
    %601 = vector.shape_cast %600 : vector<1x2x16x16xf32> to vector<2x16x16xf32>
    %602 = vector.broadcast %176 : f32 to vector<2x16x16xf32>
    %603 = arith.mulf %602, %601 : vector<2x16x16xf32>
    %604 = arith.addf %599, %603 : vector<2x16x16xf32>
    %c1_509 = arith.constant 1 : index
    %c0_510 = arith.constant 0 : index
    %c4_511 = arith.constant 4 : index
    %c5_512 = arith.constant 5 : index
    %605 = vector.load %arg11[%c1_509, %c0_510, %c4_511, %c5_512] : memref<2x2x22x22xf32, #tpu.memory_space<vmem>>, vector<1x2x16x16xf32>
    %606 = vector.shape_cast %605 : vector<1x2x16x16xf32> to vector<2x16x16xf32>
    %607 = vector.broadcast %177 : f32 to vector<2x16x16xf32>
    %608 = arith.mulf %607, %606 : vector<2x16x16xf32>
    %609 = arith.addf %604, %608 : vector<2x16x16xf32>
    %c1_513 = arith.constant 1 : index
    %c0_514 = arith.constant 0 : index
    %c4_515 = arith.constant 4 : index
    %c6_516 = arith.constant 6 : index
    %610 = vector.load %arg11[%c1_513, %c0_514, %c4_515, %c6_516] : memref<2x2x22x22xf32, #tpu.memory_space<vmem>>, vector<1x2x16x16xf32>
    %611 = vector.shape_cast %610 : vector<1x2x16x16xf32> to vector<2x16x16xf32>
    %612 = vector.broadcast %178 : f32 to vector<2x16x16xf32>
    %613 = arith.mulf %612, %611 : vector<2x16x16xf32>
    %614 = arith.addf %609, %613 : vector<2x16x16xf32>
    %c1_517 = arith.constant 1 : index
    %c0_518 = arith.constant 0 : index
    %c5_519 = arith.constant 5 : index
    %c0_520 = arith.constant 0 : index
    %615 = vector.load %arg11[%c1_517, %c0_518, %c5_519, %c0_520] : memref<2x2x22x22xf32, #tpu.memory_space<vmem>>, vector<1x2x16x16xf32>
    %616 = vector.shape_cast %615 : vector<1x2x16x16xf32> to vector<2x16x16xf32>
    %617 = vector.broadcast %179 : f32 to vector<2x16x16xf32>
    %618 = arith.mulf %617, %616 : vector<2x16x16xf32>
    %619 = arith.addf %614, %618 : vector<2x16x16xf32>
    %c1_521 = arith.constant 1 : index
    %c0_522 = arith.constant 0 : index
    %c5_523 = arith.constant 5 : index
    %c1_524 = arith.constant 1 : index
    %620 = vector.load %arg11[%c1_521, %c0_522, %c5_523, %c1_524] : memref<2x2x22x22xf32, #tpu.memory_space<vmem>>, vector<1x2x16x16xf32>
    %621 = vector.shape_cast %620 : vector<1x2x16x16xf32> to vector<2x16x16xf32>
    %622 = vector.broadcast %180 : f32 to vector<2x16x16xf32>
    %623 = arith.mulf %622, %621 : vector<2x16x16xf32>
    %624 = arith.addf %619, %623 : vector<2x16x16xf32>
    %c1_525 = arith.constant 1 : index
    %c0_526 = arith.constant 0 : index
    %c5_527 = arith.constant 5 : index
    %c2_528 = arith.constant 2 : index
    %625 = vector.load %arg11[%c1_525, %c0_526, %c5_527, %c2_528] : memref<2x2x22x22xf32, #tpu.memory_space<vmem>>, vector<1x2x16x16xf32>
    %626 = vector.shape_cast %625 : vector<1x2x16x16xf32> to vector<2x16x16xf32>
    %627 = vector.broadcast %181 : f32 to vector<2x16x16xf32>
    %628 = arith.mulf %627, %626 : vector<2x16x16xf32>
    %629 = arith.addf %624, %628 : vector<2x16x16xf32>
    %c1_529 = arith.constant 1 : index
    %c0_530 = arith.constant 0 : index
    %c5_531 = arith.constant 5 : index
    %c3_532 = arith.constant 3 : index
    %630 = vector.load %arg11[%c1_529, %c0_530, %c5_531, %c3_532] : memref<2x2x22x22xf32, #tpu.memory_space<vmem>>, vector<1x2x16x16xf32>
    %631 = vector.shape_cast %630 : vector<1x2x16x16xf32> to vector<2x16x16xf32>
    %632 = vector.broadcast %182 : f32 to vector<2x16x16xf32>
    %633 = arith.mulf %632, %631 : vector<2x16x16xf32>
    %634 = arith.addf %629, %633 : vector<2x16x16xf32>
    %c1_533 = arith.constant 1 : index
    %c0_534 = arith.constant 0 : index
    %c5_535 = arith.constant 5 : index
    %c4_536 = arith.constant 4 : index
    %635 = vector.load %arg11[%c1_533, %c0_534, %c5_535, %c4_536] : memref<2x2x22x22xf32, #tpu.memory_space<vmem>>, vector<1x2x16x16xf32>
    %636 = vector.shape_cast %635 : vector<1x2x16x16xf32> to vector<2x16x16xf32>
    %637 = vector.broadcast %183 : f32 to vector<2x16x16xf32>
    %638 = arith.mulf %637, %636 : vector<2x16x16xf32>
    %639 = arith.addf %634, %638 : vector<2x16x16xf32>
    %c1_537 = arith.constant 1 : index
    %c0_538 = arith.constant 0 : index
    %c5_539 = arith.constant 5 : index
    %c5_540 = arith.constant 5 : index
    %640 = vector.load %arg11[%c1_537, %c0_538, %c5_539, %c5_540] : memref<2x2x22x22xf32, #tpu.memory_space<vmem>>, vector<1x2x16x16xf32>
    %641 = vector.shape_cast %640 : vector<1x2x16x16xf32> to vector<2x16x16xf32>
    %642 = vector.broadcast %184 : f32 to vector<2x16x16xf32>
    %643 = arith.mulf %642, %641 : vector<2x16x16xf32>
    %644 = arith.addf %639, %643 : vector<2x16x16xf32>
    %c1_541 = arith.constant 1 : index
    %c0_542 = arith.constant 0 : index
    %c5_543 = arith.constant 5 : index
    %c6_544 = arith.constant 6 : index
    %645 = vector.load %arg11[%c1_541, %c0_542, %c5_543, %c6_544] : memref<2x2x22x22xf32, #tpu.memory_space<vmem>>, vector<1x2x16x16xf32>
    %646 = vector.shape_cast %645 : vector<1x2x16x16xf32> to vector<2x16x16xf32>
    %647 = vector.broadcast %185 : f32 to vector<2x16x16xf32>
    %648 = arith.mulf %647, %646 : vector<2x16x16xf32>
    %649 = arith.addf %644, %648 : vector<2x16x16xf32>
    %c1_545 = arith.constant 1 : index
    %c0_546 = arith.constant 0 : index
    %c6_547 = arith.constant 6 : index
    %c0_548 = arith.constant 0 : index
    %650 = vector.load %arg11[%c1_545, %c0_546, %c6_547, %c0_548] : memref<2x2x22x22xf32, #tpu.memory_space<vmem>>, vector<1x2x16x16xf32>
    %651 = vector.shape_cast %650 : vector<1x2x16x16xf32> to vector<2x16x16xf32>
    %652 = vector.broadcast %186 : f32 to vector<2x16x16xf32>
    %653 = arith.mulf %652, %651 : vector<2x16x16xf32>
    %654 = arith.addf %649, %653 : vector<2x16x16xf32>
    %c1_549 = arith.constant 1 : index
    %c0_550 = arith.constant 0 : index
    %c6_551 = arith.constant 6 : index
    %c1_552 = arith.constant 1 : index
    %655 = vector.load %arg11[%c1_549, %c0_550, %c6_551, %c1_552] : memref<2x2x22x22xf32, #tpu.memory_space<vmem>>, vector<1x2x16x16xf32>
    %656 = vector.shape_cast %655 : vector<1x2x16x16xf32> to vector<2x16x16xf32>
    %657 = vector.broadcast %187 : f32 to vector<2x16x16xf32>
    %658 = arith.mulf %657, %656 : vector<2x16x16xf32>
    %659 = arith.addf %654, %658 : vector<2x16x16xf32>
    %c1_553 = arith.constant 1 : index
    %c0_554 = arith.constant 0 : index
    %c6_555 = arith.constant 6 : index
    %c2_556 = arith.constant 2 : index
    %660 = vector.load %arg11[%c1_553, %c0_554, %c6_555, %c2_556] : memref<2x2x22x22xf32, #tpu.memory_space<vmem>>, vector<1x2x16x16xf32>
    %661 = vector.shape_cast %660 : vector<1x2x16x16xf32> to vector<2x16x16xf32>
    %662 = vector.broadcast %188 : f32 to vector<2x16x16xf32>
    %663 = arith.mulf %662, %661 : vector<2x16x16xf32>
    %664 = arith.addf %659, %663 : vector<2x16x16xf32>
    %c1_557 = arith.constant 1 : index
    %c0_558 = arith.constant 0 : index
    %c6_559 = arith.constant 6 : index
    %c3_560 = arith.constant 3 : index
    %665 = vector.load %arg11[%c1_557, %c0_558, %c6_559, %c3_560] : memref<2x2x22x22xf32, #tpu.memory_space<vmem>>, vector<1x2x16x16xf32>
    %666 = vector.shape_cast %665 : vector<1x2x16x16xf32> to vector<2x16x16xf32>
    %667 = vector.broadcast %189 : f32 to vector<2x16x16xf32>
    %668 = arith.mulf %667, %666 : vector<2x16x16xf32>
    %669 = arith.addf %664, %668 : vector<2x16x16xf32>
    %c1_561 = arith.constant 1 : index
    %c0_562 = arith.constant 0 : index
    %c6_563 = arith.constant 6 : index
    %c4_564 = arith.constant 4 : index
    %670 = vector.load %arg11[%c1_561, %c0_562, %c6_563, %c4_564] : memref<2x2x22x22xf32, #tpu.memory_space<vmem>>, vector<1x2x16x16xf32>
    %671 = vector.shape_cast %670 : vector<1x2x16x16xf32> to vector<2x16x16xf32>
    %672 = vector.broadcast %190 : f32 to vector<2x16x16xf32>
    %673 = arith.mulf %672, %671 : vector<2x16x16xf32>
    %674 = arith.addf %669, %673 : vector<2x16x16xf32>
    %c1_565 = arith.constant 1 : index
    %c0_566 = arith.constant 0 : index
    %c6_567 = arith.constant 6 : index
    %c5_568 = arith.constant 5 : index
    %675 = vector.load %arg11[%c1_565, %c0_566, %c6_567, %c5_568] : memref<2x2x22x22xf32, #tpu.memory_space<vmem>>, vector<1x2x16x16xf32>
    %676 = vector.shape_cast %675 : vector<1x2x16x16xf32> to vector<2x16x16xf32>
    %677 = vector.broadcast %191 : f32 to vector<2x16x16xf32>
    %678 = arith.mulf %677, %676 : vector<2x16x16xf32>
    %679 = arith.addf %674, %678 : vector<2x16x16xf32>
    %c1_569 = arith.constant 1 : index
    %c0_570 = arith.constant 0 : index
    %c6_571 = arith.constant 6 : index
    %c6_572 = arith.constant 6 : index
    %680 = vector.load %arg11[%c1_569, %c0_570, %c6_571, %c6_572] : memref<2x2x22x22xf32, #tpu.memory_space<vmem>>, vector<1x2x16x16xf32>
    %681 = vector.shape_cast %680 : vector<1x2x16x16xf32> to vector<2x16x16xf32>
    %682 = vector.broadcast %192 : f32 to vector<2x16x16xf32>
    %683 = arith.mulf %682, %681 : vector<2x16x16xf32>
    %684 = arith.addf %679, %683 : vector<2x16x16xf32>
    %c0_573 = arith.constant 0 : index
    %c0_574 = arith.constant 0 : index
    %c0_575 = arith.constant 0 : index
    %685 = vector.load %arg12[%c0_573, %c0_574, %c0_575] : memref<2x16x16xf32, #tpu.memory_space<vmem>>, vector<2x16x16xf32>
    tpu.vector_store %arg12[%c0_573, %c0_574, %c0_575], %684 {strides = array<i32>} : memref<2x16x16xf32, #tpu.memory_space<vmem>>, vector<2x16x16xf32>,
    %c0_576 = arith.constant 0 : index
    %c0_577 = arith.constant 0 : index
    %c0_578 = arith.constant 0 : index
    %686 = vector.load %arg12[%c0_576, %c0_577, %c0_578] : memref<2x16x16xf32, #tpu.memory_space<vmem>>, vector<2x1x16xf32>
    %c0_579 = arith.constant 0 : index
    %c0_580 = arith.constant 0 : index
    %c0_581 = arith.constant 0 : index
    %687 = vector.load %arg13[%c0_579, %c0_580, %c0_581] : memref<2x1x256xf32, #tpu.memory_space<vmem>>, vector<2x1x16xf32>
    tpu.vector_store %arg13[%c0_579, %c0_580, %c0_581], %686 {strides = array<i32>} : memref<2x1x256xf32, #tpu.memory_space<vmem>>, vector<2x1x16xf32>,
    %c0_582 = arith.constant 0 : index
    %c1_583 = arith.constant 1 : index
    %c0_584 = arith.constant 0 : index
    %688 = vector.load %arg12[%c0_582, %c1_583, %c0_584] : memref<2x16x16xf32, #tpu.memory_space<vmem>>, vector<2x1x16xf32>
    %c0_585 = arith.constant 0 : index
    %c0_586 = arith.constant 0 : index
    %c16_587 = arith.constant 16 : index
    %689 = vector.load %arg13[%c0_585, %c0_586, %c16_587] : memref<2x1x256xf32, #tpu.memory_space<vmem>>, vector<2x1x16xf32>
    tpu.vector_store %arg13[%c0_585, %c0_586, %c16_587], %688 {strides = array<i32>} : memref<2x1x256xf32, #tpu.memory_space<vmem>>, vector<2x1x16xf32>,
    %c0_588 = arith.constant 0 : index
    %c2_589 = arith.constant 2 : index
    %c0_590 = arith.constant 0 : index
    %690 = vector.load %arg12[%c0_588, %c2_589, %c0_590] : memref<2x16x16xf32, #tpu.memory_space<vmem>>, vector<2x1x16xf32>
    %c0_591 = arith.constant 0 : index
    %c0_592 = arith.constant 0 : index
    %c32_593 = arith.constant 32 : index
    %691 = vector.load %arg13[%c0_591, %c0_592, %c32_593] : memref<2x1x256xf32, #tpu.memory_space<vmem>>, vector<2x1x16xf32>
    tpu.vector_store %arg13[%c0_591, %c0_592, %c32_593], %690 {strides = array<i32>} : memref<2x1x256xf32, #tpu.memory_space<vmem>>, vector<2x1x16xf32>,
    %c0_594 = arith.constant 0 : index
    %c3_595 = arith.constant 3 : index
    %c0_596 = arith.constant 0 : index
    %692 = vector.load %arg12[%c0_594, %c3_595, %c0_596] : memref<2x16x16xf32, #tpu.memory_space<vmem>>, vector<2x1x16xf32>
    %c0_597 = arith.constant 0 : index
    %c0_598 = arith.constant 0 : index
    %c48_599 = arith.constant 48 : index
    %693 = vector.load %arg13[%c0_597, %c0_598, %c48_599] : memref<2x1x256xf32, #tpu.memory_space<vmem>>, vector<2x1x16xf32>
    tpu.vector_store %arg13[%c0_597, %c0_598, %c48_599], %692 {strides = array<i32>} : memref<2x1x256xf32, #tpu.memory_space<vmem>>, vector<2x1x16xf32>,
    %c0_600 = arith.constant 0 : index
    %c4_601 = arith.constant 4 : index
    %c0_602 = arith.constant 0 : index
    %694 = vector.load %arg12[%c0_600, %c4_601, %c0_602] : memref<2x16x16xf32, #tpu.memory_space<vmem>>, vector<2x1x16xf32>
    %c0_603 = arith.constant 0 : index
    %c0_604 = arith.constant 0 : index
    %c64_605 = arith.constant 64 : index
    %695 = vector.load %arg13[%c0_603, %c0_604, %c64_605] : memref<2x1x256xf32, #tpu.memory_space<vmem>>, vector<2x1x16xf32>
    tpu.vector_store %arg13[%c0_603, %c0_604, %c64_605], %694 {strides = array<i32>} : memref<2x1x256xf32, #tpu.memory_space<vmem>>, vector<2x1x16xf32>,
    %c0_606 = arith.constant 0 : index
    %c5_607 = arith.constant 5 : index
    %c0_608 = arith.constant 0 : index
    %696 = vector.load %arg12[%c0_606, %c5_607, %c0_608] : memref<2x16x16xf32, #tpu.memory_space<vmem>>, vector<2x1x16xf32>
    %c0_609 = arith.constant 0 : index
    %c0_610 = arith.constant 0 : index
    %c80_611 = arith.constant 80 : index
    %697 = vector.load %arg13[%c0_609, %c0_610, %c80_611] : memref<2x1x256xf32, #tpu.memory_space<vmem>>, vector<2x1x16xf32>
    tpu.vector_store %arg13[%c0_609, %c0_610, %c80_611], %696 {strides = array<i32>} : memref<2x1x256xf32, #tpu.memory_space<vmem>>, vector<2x1x16xf32>,
    %c0_612 = arith.constant 0 : index
    %c6_613 = arith.constant 6 : index
    %c0_614 = arith.constant 0 : index
    %698 = vector.load %arg12[%c0_612, %c6_613, %c0_614] : memref<2x16x16xf32, #tpu.memory_space<vmem>>, vector<2x1x16xf32>
    %c0_615 = arith.constant 0 : index
    %c0_616 = arith.constant 0 : index
    %c96_617 = arith.constant 96 : index
    %699 = vector.load %arg13[%c0_615, %c0_616, %c96_617] : memref<2x1x256xf32, #tpu.memory_space<vmem>>, vector<2x1x16xf32>
    tpu.vector_store %arg13[%c0_615, %c0_616, %c96_617], %698 {strides = array<i32>} : memref<2x1x256xf32, #tpu.memory_space<vmem>>, vector<2x1x16xf32>,
    %c0_618 = arith.constant 0 : index
    %c7_619 = arith.constant 7 : index
    %c0_620 = arith.constant 0 : index
    %700 = vector.load %arg12[%c0_618, %c7_619, %c0_620] : memref<2x16x16xf32, #tpu.memory_space<vmem>>, vector<2x1x16xf32>
    %c0_621 = arith.constant 0 : index
    %c0_622 = arith.constant 0 : index
    %c112_623 = arith.constant 112 : index
    %701 = vector.load %arg13[%c0_621, %c0_622, %c112_623] : memref<2x1x256xf32, #tpu.memory_space<vmem>>, vector<2x1x16xf32>
    tpu.vector_store %arg13[%c0_621, %c0_622, %c112_623], %700 {strides = array<i32>} : memref<2x1x256xf32, #tpu.memory_space<vmem>>, vector<2x1x16xf32>,
    %c0_624 = arith.constant 0 : index
    %c8_625 = arith.constant 8 : index
    %c0_626 = arith.constant 0 : index
    %702 = vector.load %arg12[%c0_624, %c8_625, %c0_626] : memref<2x16x16xf32, #tpu.memory_space<vmem>>, vector<2x1x16xf32>
    %c0_627 = arith.constant 0 : index
    %c0_628 = arith.constant 0 : index
    %c128_629 = arith.constant 128 : index
    %703 = vector.load %arg13[%c0_627, %c0_628, %c128_629] : memref<2x1x256xf32, #tpu.memory_space<vmem>>, vector<2x1x16xf32>
    tpu.vector_store %arg13[%c0_627, %c0_628, %c128_629], %702 {strides = array<i32>} : memref<2x1x256xf32, #tpu.memory_space<vmem>>, vector<2x1x16xf32>,
    %c0_630 = arith.constant 0 : index
    %c9_631 = arith.constant 9 : index
    %c0_632 = arith.constant 0 : index
    %704 = vector.load %arg12[%c0_630, %c9_631, %c0_632] : memref<2x16x16xf32, #tpu.memory_space<vmem>>, vector<2x1x16xf32>
    %c0_633 = arith.constant 0 : index
    %c0_634 = arith.constant 0 : index
    %c144_635 = arith.constant 144 : index
    %705 = vector.load %arg13[%c0_633, %c0_634, %c144_635] : memref<2x1x256xf32, #tpu.memory_space<vmem>>, vector<2x1x16xf32>
    tpu.vector_store %arg13[%c0_633, %c0_634, %c144_635], %704 {strides = array<i32>} : memref<2x1x256xf32, #tpu.memory_space<vmem>>, vector<2x1x16xf32>,
    %c0_636 = arith.constant 0 : index
    %c10_637 = arith.constant 10 : index
    %c0_638 = arith.constant 0 : index
    %706 = vector.load %arg12[%c0_636, %c10_637, %c0_638] : memref<2x16x16xf32, #tpu.memory_space<vmem>>, vector<2x1x16xf32>
    %c0_639 = arith.constant 0 : index
    %c0_640 = arith.constant 0 : index
    %c160_641 = arith.constant 160 : index
    %707 = vector.load %arg13[%c0_639, %c0_640, %c160_641] : memref<2x1x256xf32, #tpu.memory_space<vmem>>, vector<2x1x16xf32>
    tpu.vector_store %arg13[%c0_639, %c0_640, %c160_641], %706 {strides = array<i32>} : memref<2x1x256xf32, #tpu.memory_space<vmem>>, vector<2x1x16xf32>,
    %c0_642 = arith.constant 0 : index
    %c11_643 = arith.constant 11 : index
    %c0_644 = arith.constant 0 : index
    %708 = vector.load %arg12[%c0_642, %c11_643, %c0_644] : memref<2x16x16xf32, #tpu.memory_space<vmem>>, vector<2x1x16xf32>
    %c0_645 = arith.constant 0 : index
    %c0_646 = arith.constant 0 : index
    %c176_647 = arith.constant 176 : index
    %709 = vector.load %arg13[%c0_645, %c0_646, %c176_647] : memref<2x1x256xf32, #tpu.memory_space<vmem>>, vector<2x1x16xf32>
    tpu.vector_store %arg13[%c0_645, %c0_646, %c176_647], %708 {strides = array<i32>} : memref<2x1x256xf32, #tpu.memory_space<vmem>>, vector<2x1x16xf32>,
    %c0_648 = arith.constant 0 : index
    %c12_649 = arith.constant 12 : index
    %c0_650 = arith.constant 0 : index
    %710 = vector.load %arg12[%c0_648, %c12_649, %c0_650] : memref<2x16x16xf32, #tpu.memory_space<vmem>>, vector<2x1x16xf32>
    %c0_651 = arith.constant 0 : index
    %c0_652 = arith.constant 0 : index
    %c192_653 = arith.constant 192 : index
    %711 = vector.load %arg13[%c0_651, %c0_652, %c192_653] : memref<2x1x256xf32, #tpu.memory_space<vmem>>, vector<2x1x16xf32>
    tpu.vector_store %arg13[%c0_651, %c0_652, %c192_653], %710 {strides = array<i32>} : memref<2x1x256xf32, #tpu.memory_space<vmem>>, vector<2x1x16xf32>,
    %c0_654 = arith.constant 0 : index
    %c13_655 = arith.constant 13 : index
    %c0_656 = arith.constant 0 : index
    %712 = vector.load %arg12[%c0_654, %c13_655, %c0_656] : memref<2x16x16xf32, #tpu.memory_space<vmem>>, vector<2x1x16xf32>
    %c0_657 = arith.constant 0 : index
    %c0_658 = arith.constant 0 : index
    %c208_659 = arith.constant 208 : index
    %713 = vector.load %arg13[%c0_657, %c0_658, %c208_659] : memref<2x1x256xf32, #tpu.memory_space<vmem>>, vector<2x1x16xf32>
    tpu.vector_store %arg13[%c0_657, %c0_658, %c208_659], %712 {strides = array<i32>} : memref<2x1x256xf32, #tpu.memory_space<vmem>>, vector<2x1x16xf32>,
    %c0_660 = arith.constant 0 : index
    %c14_661 = arith.constant 14 : index
    %c0_662 = arith.constant 0 : index
    %714 = vector.load %arg12[%c0_660, %c14_661, %c0_662] : memref<2x16x16xf32, #tpu.memory_space<vmem>>, vector<2x1x16xf32>
    %c0_663 = arith.constant 0 : index
    %c0_664 = arith.constant 0 : index
    %c224_665 = arith.constant 224 : index
    %715 = vector.load %arg13[%c0_663, %c0_664, %c224_665] : memref<2x1x256xf32, #tpu.memory_space<vmem>>, vector<2x1x16xf32>
    tpu.vector_store %arg13[%c0_663, %c0_664, %c224_665], %714 {strides = array<i32>} : memref<2x1x256xf32, #tpu.memory_space<vmem>>, vector<2x1x16xf32>,
    %c0_666 = arith.constant 0 : index
    %c15_667 = arith.constant 15 : index
    %c0_668 = arith.constant 0 : index
    %716 = vector.load %arg12[%c0_666, %c15_667, %c0_668] : memref<2x16x16xf32, #tpu.memory_space<vmem>>, vector<2x1x16xf32>
    %c0_669 = arith.constant 0 : index
    %c0_670 = arith.constant 0 : index
    %c240_671 = arith.constant 240 : index
    %717 = vector.load %arg13[%c0_669, %c0_670, %c240_671] : memref<2x1x256xf32, #tpu.memory_space<vmem>>, vector<2x1x16xf32>
    tpu.vector_store %arg13[%c0_669, %c0_670, %c240_671], %716 {strides = array<i32>} : memref<2x1x256xf32, #tpu.memory_space<vmem>>, vector<2x1x16xf32>,
    %c0_672 = arith.constant 0 : index
    %c0_673 = arith.constant 0 : index
    %c0_674 = arith.constant 0 : index
    %718 = vector.load %arg13[%c0_672, %c0_673, %c0_674] : memref<2x1x256xf32, #tpu.memory_space<vmem>>, vector<2x1x256xf32>
    %719 = arith.negf %718 : vector<2x1x256xf32>
    %720 = math.exp %719 : vector<2x1x256xf32>
    %cst_675 = arith.constant 1.000000e+00 : f32
    %721 = vector.broadcast %cst_675 : f32 to vector<2x1x256xf32>
    %722 = arith.addf %721, %720 : vector<2x1x256xf32>
    %723 = arith.divf %721, %722 : vector<2x1x256xf32>
    %c0_676 = arith.constant 0 : index
    %c0_677 = arith.constant 0 : index
    %c0_678 = arith.constant 0 : index
    %724 = vector.load %arg1[%c0_676, %c0_677, %c0_678] : memref<2x32x256xf32, #tpu.memory_space<vmem>>, vector<2x32x256xf32>
    %c0_679 = arith.constant 0 : index
    %c0_680 = arith.constant 0 : index
    %c0_681 = arith.constant 0 : index
    %725 = vector.load %arg9[%c0_679, %c0_680, %c0_681] : memref<2x32x1xf32, #tpu.memory_space<vmem>>, vector<2x32x1xf32>
    %726 = vector.broadcast %725 : vector<2x32x1xf32> to vector<2x32x256xf32>
    %727 = arith.mulf %724, %726 : vector<2x32x256xf32>
    %728 = vector.broadcast %723 : vector<2x1x256xf32> to vector<2x32x256xf32>
    %729 = arith.mulf %727, %728 : vector<2x32x256xf32>
    %c0_682 = arith.constant 0 : index
    %c0_683 = arith.constant 0 : index
    %c0_684 = arith.constant 0 : index
    %730 = vector.load %arg7[%c0_682, %c0_683, %c0_684] : memref<2x32x256xf32, #tpu.memory_space<vmem>>, vector<2x32x256xf32>
    tpu.vector_store %arg7[%c0_682, %c0_683, %c0_684], %729 {strides = array<i32>} : memref<2x32x256xf32, #tpu.memory_space<vmem>>, vector<2x32x256xf32>,
    return
  }
  func.func @transform_0(%arg0: i32) -> (i32, i32, i32) {
    %c0_i32 = arith.constant 0 : i32
    %c0_i32_0 = arith.constant 0 : i32
    %c0_i32_1 = arith.constant 0 : i32
    return %arg0, %c0_i32, %c0_i32_0 : i32, i32, i32
  }
  func.func @transform_1(%arg0: i32) -> (i32, i32) {
    %c0_i32 = arith.constant 0 : i32
    %c0_i32_0 = arith.constant 0 : i32
    %c0_i32_1 = arith.constant 0 : i32
    return %c0_i32, %c0_i32_0 : i32, i32
  }
  func.func @transform_2(%arg0: i32) -> (i32, i32) {
    %c0_i32 = arith.constant 0 : i32
    %c0_i32_0 = arith.constant 0 : i32
    %c0_i32_1 = arith.constant 0 : i32
    return %c0_i32, %c0_i32_0 : i32, i32
  }
  func.func @transform_3(%arg0: i32) -> (i32, i32) {
    %c0_i32 = arith.constant 0 : i32
    %c0_i32_0 = arith.constant 0 : i32
    %c0_i32_1 = arith.constant 0 : i32
    return %c0_i32, %c0_i32_0 : i32, i32
  }
  func.func @transform_4(%arg0: i32) -> (i32, i32) {
    %c0_i32 = arith.constant 0 : i32
    %c0_i32_0 = arith.constant 0 : i32
    %c0_i32_1 = arith.constant 0 : i32
    return %c0_i32, %c0_i32_0 : i32, i32
  }
  func.func @transform_5(%arg0: i32) -> i32 {
    %c0_i32 = arith.constant 0 : i32
    %c0_i32_0 = arith.constant 0 : i32
    return %c0_i32 : i32
  }
  func.func @transform_6(%arg0: i32) -> (i32, i32, i32) {
    %c0_i32 = arith.constant 0 : i32
    %c0_i32_0 = arith.constant 0 : i32
    %c0_i32_1 = arith.constant 0 : i32
    return %arg0, %c0_i32, %c0_i32_0 : i32, i32, i32
  }
}

</mosaic_0001>

<bundles_post_ra>
// kernel: tpu_custom_call.1
= control target key start
LH: loop header
LB: loop body
LE: loop exit
PB: predicated region body
PF: predicated region fallthrough
CT: control target
= control target key end

     0   :  { %s7812_s0 = inlined_call_operand.hbm [shape: f32[4,32,256], index: 0, kind: input, shape index: {}]   ;;  %s7813_s1 = inlined_call_operand.vmem [shape: f32[2,32], index: 1, kind: input, shape index: {}]   ;;  %s7814_s2 = inlined_call_operand.vmem [shape: f32[2,1], index: 2, kind: input, shape index: {}]   ;;  %s7815_s3 = inlined_call_operand.vmem [shape: f32[32,2], index: 3, kind: input, shape index: {}]   ;;  %s7816_s4 = inlined_call_operand.vmem [shape: f32[32,1], index: 4, kind: input, shape index: {}]   ;;  %s7817_s5 = inlined_call_operand.vmem [shape: f32[99], index: 5, kind: input, shape index: {}]   ;;  %s7818_s6 = inlined_call_operand.hbm [shape: f32[4,32,256], index: 6, kind: output, shape index: {}]  }
   0x1   :  { %7988 = sst [smem:[#allocation124_spill]] %s7817_s5 }
   0x2   :  { %11 = vsyncpa [#allocation9], 0 }
   0x3   :  { %13 = vsyncpa [#allocation9 + $0x1], 0 }
   0x4   :  { %14 = vsyncpa [#allocation11], 0 }
   0x5   :  { %15 = vsyncpa [#allocation10], 0 }
   0x6   :  { %17 = vsyncpa [#allocation10 + $0x1], 0  ;;  %s5516_s21 = smov 0   ;;  %s5518_s22 = smov 0  }
   0x7   :  { %s5520_s23 = smov 0   ;;  %s5522_s24 = smov 0  }
   0x8 LB: > { %s5537_s25 = sadd.s32 4294967295, %s5448_s24   ;;  %s4886_s26 = sadd.s32 4294967294, %s5448_s24   ;;  %s5448_s24 = sphi %s5522_s24, %s8334_s24   ;;  %s5444_s23 = sphi %s5520_s23, %s8333_s23   ;;  %s5440_s22 = sphi %s5518_s22, %s8332_s22   ;;  %s5436_s21 = sphi %s5516_s21, %s8331_s21  }
   0x9   : > { %s5541_s27 = sadd.s32 1, %s5448_s24   ;;  %s30_s28 = sadd.s32 1, %s5444_s23 }
   0xa   : > { %s27_s29 = ssub.s32 %s5448_s24, %s5541_s27  ;;  %p37_p0 = scmp.ne.s32.totalorder %s5444_s23, %s5440_s22 }
   0xb   : > { %p28_p1 = scmp.eq.s32.totalorder %s27_s29, 0  ;;  %p38_p2 = scmp.eq.s32.totalorder %s5448_s24, 0 }
   0xc   : > { %p43_p3 = scmp.ne.s32.totalorder %s5440_s22, %s5436_s21  ;;  %p7820_p4 = scmp.eq.s32.totalorder %s5537_s25, 0 }
   0xd   : > { %s5553_s30 = scalar_select %p28_p1, %s5444_s23, %s30_s28  }
   0xe   : > { %p5555_p5 = por %p38_p2, %p37_p0  ;;  %p5561_p6 = por %p7820_p4, %p43_p3 }
   0xf   : > { %p172_p7 = scmp.eq.s32.totalorder %s5537_s25, 1  ;;  %p178_p8 = scmp.eq.s32.totalorder %s4886_s26, 1 }
  0x10   : > { %s7990_s8 = scalar_select %p5561_p6, 1, 0 }
  0x11   : > { %p4887_p9 = scmp.ge.s32.totalorder %s5448_s24, 1  ;;  %p185_p10 = scmp.lt.s32.totalorder %s5448_s24, 3 }
  0x12   : > { %p5568_p11 = por %p172_p7, %p37_p0  ;;  %p5572_p12 = por %p178_p8, %p43_p3 }
  0x13   : > { %p5576_p13 = pnand %p4887_p9, %p185_p10  ;;  %s7994_s5 = sld [smem:[#allocation124_spill]] }
  0x14   : > { %s7991_s9 = scalar_select %p5568_p11, 1, 0 }
  0x15   : > { %s7992_s10 = scalar_select %p5572_p12, 1, 0 }
  0x16   : > { %s7993_s11 = scalar_select %p5576_p13, 1, 0 }
  0x17   : > { %p5188_p1 = pneg %p5576_p13  ;;  %p5201_p2 = scmp.lt.s32.totalorder %s5448_s24, 2 }
  0x18   : > { %s221_s16 = sand.u32 1, %s5444_s23  }
  0x19   : > { %s210_s14 = sshll.u32 %s7994_s5, 4  ;;  %p5589_p7 = pnand %p5188_p1, %p7820_p4  ;;  %s211_s14 = int_to_ptr.vmem [resolvable:$true] %s210_s14 }
  0x1a   : > { %p5596_p3 = pnand %p5201_p2, %p5555_p5  ;;  %s4890_s18 = sshll.u32 %s221_s16, 7 }
  0x1b   : > { %s5337_s19 = scalar_lea.vmem %s211_s14, 16  ;;  %p5339_p9 = pneg %p5589_p7 }
  0x1c   : > { %p5338_p8 = scmp.ne.s32.totalorder %s211_s14, %s5337_s19  ;;  %p5345_p12 = scmp.lt.s32.totalorder %s211_s14, %s211_s14 }
  0x1d   : > { %p5346_p11 = scmp.lt.s32.totalorder %s5337_s19, %s5337_s19 }
  0x1e   : > { %p5340_p10 = pnand %p5339_p9, %p5338_p8 }
  0x1f   : > { %p5347_p1 = por %p5346_p11, %p5345_p12 }
  0x20   : > { %p5341_p0 = pneg %p5340_p10 }
  0x22   : > { %p5348_p4 = pnand %p5347_p1, %p5341_p0 }
  0x24   : > { %5351 = shalt.err (!%p5348_p4)
}
  0x25   : > { %s5450_s20 = smov [#allocation12]   ;;  %s5117_s26 = sshll.u32 %s5448_s24, 11 }
  0x26   : > { %5191 = dma.vmem_to_smem (!%p5589_p7), %s211_s14, 16, %s5450_s20, [#allocation11]  }
  0x27   : > { %s225_s28 = scalar_lea.vmem [#allocation8], %s4890_s18  ;;  %s5608_s13 = scalar_lea.hbm %s7812_s0, %s5117_s26 }
  0x28   : > { %s233_s29 = sshll.u32 %s225_s28, 4  ;;  %s5612_s19 = scalar_lea.sflag [#allocation9], %s221_s16  ;;  %s5610_s29 = int_to_ptr.vmem [resolvable:$true] %s233_s29 }
  0x29   : > { %s5352_s5 = scalar_lea.hbm %s5608_s13, 2048  ;;  %p5354_p5 = pneg %p5596_p3 }
  0x2a   : > { %p5353_p4 = scmp.ne.s32.totalorder %s5608_s13, %s5352_s5  ;;  %s5357_s18 = scalar_lea.hbm %s7812_s0, 4096 }
  0x2b   : > { %p5358_p0 = scmp.lt.s32.totalorder %s5608_s13, %s7812_s0  ;;  %p5359_p2 = scmp.lt.s32.totalorder %s5357_s18, %s5352_s5 }
  0x2c   : > { %p5355_p11 = pnand %p5354_p5, %p5353_p4 }
  0x2d   : > { %p5360_p7 = por %p5359_p2, %p5358_p0 }
  0x2e   : > { %p5356_p12 = pneg %p5355_p11 }
  0x30   : > { %p5361_p8 = pnand %p5360_p7, %p5356_p12 }
  0x32   : > { %5364 = shalt.err (!%p5361_p8)
}
  0x33   : > { %s5365_s16 = scalar_lea.vmem %s5610_s29, 2048  ;;  %s5451_s28 = smov [#allocation8]  }
  0x34   : > { %p5366_p9 = scmp.ne.s32.totalorder %s5610_s29, %s5365_s16  ;;  %s5370_s7 = sshll.u32 %s5451_s28, 4  ;;  %s5371_s7 = int_to_ptr.vmem [resolvable:$false] %s5370_s7 }
  0x35   : > { %s5372_s12 = scalar_lea.vmem %s5371_s7, 4096  ;;  %p5373_p4 = scmp.lt.s32.totalorder %s5610_s29, %s5371_s7 }
  0x36   : > { %p5368_p10 = pnand %p5366_p9, %p5354_p5  ;;  %p5374_p11 = scmp.lt.s32.totalorder %s5372_s12, %s5365_s16 }
  0x38   : > { %p5369_p1 = pneg %p5368_p10  ;;  %p5375_p6 = por %p5374_p11, %p5373_p4 }
  0x3a   : > { %p5376_p13 = pnand %p5375_p6, %p5369_p1 }
  0x3c   : > { %5379 = shalt.err (!%p5376_p13)
}
  0x3d   : > { %s5452_s5 = smov 256   ;;  %s5453_s14 = smov 16  }
  0x3e   : > { %5195 = dma.hbm_to_vmem [thread:$0]  (!%p5596_p3), %s5608_s13, 2048, %s5610_s29, %s5612_s19, %s5452_s5, %s5452_s5, %s5453_s14  }
  0x3f   : > { %p7997_p5 = scmp.ne.s32.totalorder %s7993_s11, 0 }
  0x41   : > { %245 = sbr.rel (%p7997_p5) target bundleno = 2203 (0x89b), region = 44 }
  0x46   : > { %s5636_s15 = sand.u32 1, %s5440_s22   ;;  %p7998_p6 = scmp.ne.s32.totalorder %s7990_s8, 0 }
  0x47   : > { %s7823_s18 = sshll.u32 %s5636_s15, 7  ;;  %s248_s20 = scalar_lea.sflag [#allocation9], %s5636_s15 }
  0x48   : > { %s5642_s26 = scalar_lea.vmem [#allocation8], %s7823_s18 }
  0x49   : > { %5423 = dma.done.wait (%p7998_p6), %s248_s20, 2048  }
  0x4a   : > { %5425 = vsyncadd (%p7998_p6), %s248_s20, 4294965248  ;;  %p7999_p13 = scmp.eq.s32.totalorder %s5537_s25, 0 }
  0x4c   : > { %5427 = dma.done.wait (%p7999_p13), [#allocation11], 16   ;;  %p8000_p3 = pmov %p7999_p13 }
  0x4e   : > { %5429 = vsyncadd (%p8000_p3), [#allocation11], 4294967280 }
  0x4f   : > { %260 = sfence }
  0x50   : > { %v5653_v0 = vld [vmem:[%s5642_s26 + $0x30] sm:$0xff]  ;;  %v5656_v1 = vld [vmem:[%s5642_s26 + $0x38] sm:$0xff]  ;;  %v5659_v2 = vld [vmem:[%s5642_s26 + $0x20] sm:$0xff]  ;;  %v5454_v12 = vmov 0.0   ;;  %vm5455_vm0 = vmmov 0   ;;  %vm336_vm1 = vcmask 7168  }
  0x51   : > { %v312_v3 = vadd.f32 %v5656_v1, %v5653_v0  ;;  %v5664_v4 = vld [vmem:[%s5642_s26 + $0x28] sm:$0xff]  ;;  %v5667_v5 = vld [vmem:[%s5642_s26 + $0x10] sm:$0xff]  ;;  %v5670_v6 = vld [vmem:[%s5642_s26 + $0x18] sm:$0xff]  ;;  %5140 = vmatprep.subr.mxu0 %v5454_v12  ;;  %5148 = vmatprep.mubr.msk.f32.mxu0 %vm5455_vm0, %v5454_v12  ;;  %vm351_vm2 = vcmask 261120   ;;  %vm434_vm3 = vcmask 15360   ;;  %vm447_vm4 = vcmask 1041408  }
  0x52   : > { %v306_v7 = vadd.f32 %v5670_v6, %v5667_v5  ;;  %v5675_v8 = vld [vmem:[%s5642_s26] sm:$0xff]  ;;  %v5678_v9 = vld [vmem:[%s5642_s26 + $0x8] sm:$0xff]  ;;  %v309_v10 = vadd.f32 %v5664_v4, %v5659_v2  ;;  %v301_v13 = vld [vmem:[%s5642_s26 + $0x70] sm:$0xff]  ;;  %v5456_v60 = vmov 0   ;;  %vm1004_vm5 = vcmask 179200   ;;  %s5458_s14 = smov 3  }
  0x53   : > { %313 = vadd.xlane.f32.xlu0 %v312_v3  ;;  %v303_v11 = vadd.f32 %v5678_v9, %v5675_v8  ;;  %v302_v14 = vld [vmem:[%s5642_s26 + $0x78] sm:$0xff]  ;;  %v299_v15 = vld [vmem:[%s5642_s26 + $0x60] sm:$0xff]  ;;  %v300_v17 = vld [vmem:[%s5642_s26 + $0x68] sm:$0xff]  ;;  %5265 = vset.pattern.permute.xlu1 %v5456_v60  ;;  %1012 = vst.msk [vmem:[#allocation5 + $0x30] sm:$0xff] %vm1004_vm5, %v5454_v12  ;;  %s5459_s20 = smov 115   ;;  %s5460_s8 = smov 99  }
  0x54   : > { %307 = vadd.xlane.f32.xlu1 %v306_v7  ;;  %v324_v16 = vadd.f32 %v302_v14, %v301_v13  ;;  %v297_v18 = vld [vmem:[%s5642_s26 + $0x50] sm:$0xff]  ;;  %v298_v19 = vld [vmem:[%s5642_s26 + $0x58] sm:$0xff]  ;;  %v321_v20 = vadd.f32 %v300_v17, %v299_v15  ;;  %v295_v21 = vld [vmem:[%s5642_s26 + $0x40] sm:$0xff]  ;;  %5266 = vset.pattern.permute.xlu0 %v5456_v60  ;;  %1005 = vst.msk [vmem:[#allocation5] sm:$0xff] %vm1004_vm5, %v5454_v12  ;;  %s7940_s11 = smov 83   ;;  %s7830_s17 = smov 67  }
  0x55   : > { %v296_v22 = vld [vmem:[%s5642_s26 + $0x48] sm:$0xff]  ;;  %v318_v23 = vadd.f32 %v298_v19, %v297_v18  ;;  %v345_v37 = vld [vmem:[%s7813_s1] sm:$0x3]  ;;  %v427_v52 = vld [vmem:[%s7815_s3 + $0x8] sm:$0xff]  ;;  %1006 = vst.msk [vmem:[#allocation5 + $0x8] sm:$0xff] %vm1004_vm5, %v5454_v12  ;;  %s7828_s29 = smov 51  }
  0x56   : > { %v315_v24 = vadd.f32 %v296_v22, %v295_v21  ;;  %v426_v38 = vld [vmem:[%s7815_s3] sm:$0xff]  ;;  %v428_v53 = vld [vmem:[%s7815_s3 + $0x10] sm:$0xff]  ;;  %v429_v56 = vld [vmem:[%s7815_s3 + $0x18] sm:$0xff]  ;;  %1009 = vst.msk [vmem:[#allocation5 + $0x18] sm:$0xff] %vm1004_vm5, %v5454_v12  ;;  %s7826_s13 = smov 35   ;;  %s7824_s19 = smov 19  }
  0x57   : > { %310 = vadd.xlane.f32.xlu0 %v309_v10  ;;  %5153 = vmatprep.mubr.msk.f32.mxu1 %vm434_vm3, %v426_v38  ;;  %v350_v47 = vld [vmem:[%s7814_s2] sm:$0x3]  ;;  %v5746_v61 = vld [vmem:[%s7816_s4 + $0x8] sm:$0xff]  ;;  %v5757_v10 = vld [vmem:[%s7816_s4 + $0x18] sm:$0xff]  ;;  %1010 = vst.msk [vmem:[#allocation5 + $0x20] sm:$0xff] %vm1004_vm5, %v5454_v12  ;;  %vm1007_vm7 = vcmask 177152  }
  0x58   : > { %304 = vadd.xlane.f32.xlu1 %v303_v11  ;;  %v564_v59 = vld [vmem:[%s7813_s1] sm:$0x3]  ;;  %v5763_v15 = vld [vmem:[%s7816_s4 + $0x10] sm:$0xff]  ;;  %1013 = vst.msk [vmem:[#allocation5 + $0x38] sm:$0xff] %vm1004_vm5, %v5454_v12  ;;  %1015 = vst.msk [vmem:[#allocation5 + $0x48] sm:$0xff] %vm1004_vm5, %v5454_v12  ;;  %vm1054_vm8 = vcmask 147480  }
  0x59   : > { %v5751_v63 = vld [vmem:[%s7816_s4] sm:$0xff]  ;;  %1016 = vst.msk [vmem:[#allocation5 + $0x50] sm:$0xff] %vm1004_vm5, %v5454_v12  ;;  %s5031_s16 = sld [smem:[#allocation12 + $0x32]]  ;;  %s5466_s5 = smov 127   ;;  %vm4042_vm9 = vcmask 130048  }
  0x5a   : > { %v570_v19 = vld [vmem:[%s7814_s2] sm:$0x3]  ;;  %1014 = vst.msk [vmem:[#allocation5 + $0x40] sm:$0x3f] %vm1007_vm7, %v5454_v12  ;;  %1008 = vst.msk [vmem:[#allocation5 + $0x10] sm:$0x3f] %vm1007_vm7, %v5454_v12 }
  0x5b   : > { %325 = vadd.xlane.f32.xlu0 %v324_v16  ;;  %1011 = vst.msk [vmem:[#allocation5 + $0x28] sm:$0x3f] %vm1007_vm7, %v5454_v12  ;;  %1017 = vst.msk [vmem:[#allocation5 + $0x58] sm:$0x3f] %vm1007_vm7, %v5454_v12  ;;  %s5032_s28 = sld [smem:[#allocation12 + $0x33]]  ;;  %s5467_s18 = smov 126  }
  0x5c   : > { %322 = vadd.xlane.f32.xlu1 %v321_v20  ;;  %s5033_s7 = sld [smem:[#allocation12 + $0x34]]  ;;  %p8328_p0 = scmp.ne.s32.totalorder %s7991_s9, 0 }
  0x5d   : > { %s5034_s12 = sld [smem:[#allocation12 + $0x35]] }
  0x5f   : > { %319 = vadd.xlane.f32.xlu0 %v318_v23 }
  0x60   : > { %316 = vadd.xlane.f32.xlu1 %v315_v24 }
  0xdc   : > { %v314_v25 = vpop.xlane.xlu0 %313 }
  0xdd   : > { %v331_v26 = vmul.f32 0.00390625, %v314_v25  ;;  %v308_v27 = vpop.xlane.xlu1 %307 }
  0xde   : > { %v329_v28 = vmul.f32 0.00390625, %v308_v27 }
  0xdf   : > { %340 = vst.msk [vmem:[#allocation2 + $0x18] sm:$0xff] %vm336_vm1, %v331_v26 }
  0xe0   : > { %v311_v29 = vpop.xlane.xlu0 %310  ;;  %338 = vst.msk [vmem:[#allocation2 + $0x8] sm:$0xff] %vm336_vm1, %v329_v28 }
  0xe1   : > { %v330_v30 = vmul.f32 0.00390625, %v311_v29  ;;  %v305_v31 = vpop.xlane.xlu1 %304 }
  0xe2   : > { %v328_v32 = vmul.f32 0.00390625, %v305_v31 }
  0xe3   : > { %339 = vst.msk [vmem:[#allocation2 + $0x10] sm:$0xff] %vm336_vm1, %v330_v30 }
  0xe4   : > { %337 = vst.msk [vmem:[#allocation2] sm:$0xff] %vm336_vm1, %v328_v32  ;;  %v326_v39 = vpop.xlane.xlu0 %325 }
  0xe5   : > { %v323_v40 = vpop.xlane.xlu1 %322  ;;  %v335_v41 = vmul.f32 0.00390625, %v326_v39 }
  0xe6   : > { %v349_v33 = vld [vmem:[#allocation2 + $0x18] sm:$0xff]  ;;  %v334_v42 = vmul.f32 0.00390625, %v323_v40 }
  0xe7   : > { %5141 = vmatpush3.msra.mxu0 %v349_v33  ;;  %v347_v35 = vld [vmem:[#allocation2 + $0x8] sm:$0xff]  ;;  %344 = vst.msk [vmem:[#allocation2 + $0x38] sm:$0xff] %vm336_vm1, %v335_v41 }
  0xe8   : > { %5142 = vmatprep.subr.mxu0 %v5454_v12  ;;  %343 = vst.msk [vmem:[#allocation2 + $0x30] sm:$0xff] %vm336_vm1, %v334_v42  ;;  %v320_v43 = vpop.xlane.xlu0 %319 }
  0xe9   : > { %v317_v44 = vpop.xlane.xlu1 %316  ;;  %v333_v45 = vmul.f32 0.00390625, %v320_v43 }
  0xea   : > { %v348_v34 = vld [vmem:[#allocation2 + $0x10] sm:$0xff]  ;;  %v332_v46 = vmul.f32 0.00390625, %v317_v44 }
  0xeb   : > { %5143 = vmatpush3.msra.mxu0 %v348_v34  ;;  %v346_v36 = vld [vmem:[#allocation2] sm:$0xff]  ;;  %342 = vst.msk [vmem:[#allocation2 + $0x28] sm:$0xff] %vm336_vm1, %v333_v45 }
  0xec   : > { %5144 = vmatprep.subr.mxu0 %v5454_v12  ;;  %341 = vst.msk [vmem:[#allocation2 + $0x20] sm:$0xff] %vm336_vm1, %v332_v46 }
  0xed   : > { %5145 = vmatpush3.msra.mxu0 %v347_v35 }
  0xee   : > { %5146 = vmatprep.subr.mxu0 %v5454_v12  ;;  %v569_v54 = vld [vmem:[#allocation2 + $0x38] sm:$0xff] }
  0xef   : > { %5147 = vmatpush3.msra.mxu0 %v346_v36  ;;  %v568_v55 = vld [vmem:[#allocation2 + $0x30] sm:$0xff] }
  0xf0   : > { %5149 = vmatmul.mubr.msk.f32.vlgmr.msra.gmra.mxu0 %vm351_vm2, %v345_v37 }
  0xf1   : > { %5172 = vmatprep.mubr.msk.f32.mxu0 %vm434_vm3, %v426_v38 }
  0xf2   : > { %v567_v57 = vld [vmem:[#allocation2 + $0x28] sm:$0xff] }
  0xf3   : > { %v566_v58 = vld [vmem:[#allocation2 + $0x20] sm:$0xff] }
 0x1b0   : > { %v421_v48 = vpop.f32.mrf.mxu0 }
 0x1b1   : > { %v422_v49 = vadd.f32 %v421_v48, %v350_v47 }
 0x1b2   : > { %v5150_v50 = vpop.f32.mrf.mxu0 }
 0x1b3   : > { %v425_v51 = vmax.f32 %v422_v49, 0.0 }
 0x1b5   : > { %5151 = vmatprep.subr.msk.mxu1 %vm447_vm4, %v425_v51 }
 0x1b6   : > { %5152 = vmatpush3.msk.msra.mxu1 %vm447_vm4, %v425_v51 }
 0x1b7   : > { %5154 = vmatmul.mubr.msk.f32.vlgmr.msra.gmra.mxu1 %vm434_vm3, %v427_v52  ;;  %5159 = vmatprep.subr.mxu1 %v5454_v12 }
 0x1b8   : > { %5156 = vmatprep.mubr.msk.f32.mxu1 %vm434_vm3, %v428_v53  ;;  %5160 = vmatpush3.msra.mxu1 %v569_v54 }
 0x1b9   : > { %5161 = vmatprep.subr.mxu1 %v5454_v12 }
 0x1ba   : > { %5162 = vmatpush3.msra.mxu1 %v568_v55 }
 0x1bb   : > { %5157 = vmatmul.mubr.msk.f32.gmra.mxu1 %vm434_vm3, %v429_v56  ;;  %5163 = vmatprep.subr.mxu1 %v5454_v12 }
 0x1bc   : > { %5164 = vmatpush3.msra.mxu1 %v567_v57  ;;  %5167 = vmatprep.mubr.msk.f32.mxu1 %vm5455_vm0, %v5454_v12 }
 0x1bd   : > { %5165 = vmatprep.subr.mxu1 %v5454_v12 }
 0x1be   : > { %5166 = vmatpush3.msra.mxu1 %v566_v58 }
 0x1bf   : > { %5168 = vmatmul.mubr.msk.f32.vlgmr.msra.gmra.mxu1 %vm351_vm2, %v564_v59 }
 0x1c0   : > { %5175 = vmatprep.mubr.msk.f32.mxu1 %vm434_vm3, %v428_v53 }
 0x277   : > { %v5155_v62 = vpop.f32.mrf.mxu1 }
 0x278   : > { %v523_v3 = vadd.f32 %v5155_v62, %v5746_v61 }
 0x279   : > { %v517_v7 = vpop.f32.mrf.mxu1 }
 0x27a   : > { %v4905_v11 = vmul.f32 -1.442695, %v523_v3  ;;  %v518_v13 = vadd.f32 %v517_v7, %v5751_v63 }
 0x27b   : > { %v5158_v14 = vpop.f32.mrf.mxu1 }
 0x27c   : > { %5267 = vpow2.f32 %v4905_v11  ;;  %v4904_v16 = vmul.f32 -1.442695, %v518_v13  ;;  %v533_v17 = vadd.f32 %v5158_v14, %v5757_v10 }
 0x27d   : > { %v527_v18 = vpop.f32.mrf.mxu1 }
 0x27e   : > { %5269 = vpow2.f32 %v4904_v16  ;;  %v4907_v20 = vmul.f32 -1.442695, %v533_v17  ;;  %v528_v21 = vadd.f32 %v527_v18, %v5763_v15  ;;  %v5457_v16 = vmov 1966171168  }
 0x27f   : > { %v640_v22 = vpop.f32.mrf.mxu1  ;;  %v7832_v17 = vlaneseq }
 0x280   : > { %5271 = vpow2.f32 %v4907_v20  ;;  %v4906_v23 = vmul.f32 -1.442695, %v528_v21  ;;  %v641_v24 = vadd.f32 %v640_v22, %v570_v19 }
 0x281   : > { %v5169_v25 = vpop.f32.mrf.mxu1  ;;  %vm5804_vm6 = vcmp.lt.s32.totalorder %v7832_v17, 256 }
 0x282   : > { %5273 = vpow2.f32 %v4906_v23  ;;  %v644_v26 = vmax.f32 %v641_v24, 0.0  ;;  %v5789_v24 = vshrl.u32 %v7832_v17, 7 }
 0x284   : > { %5170 = vmatprep.subr.msk.mxu0 %vm447_vm4, %v644_v26  ;;  %5178 = vmatprep.subr.msk.mxu1 %vm447_vm4, %v644_v26  ;;  %8001 = vst [vmem:[#allocation17_spill] sm:$0xff] %v5789_v24 }
 0x285   : > { %5171 = vmatpush3.msk.msra.mxu0 %vm447_vm4, %v644_v26  ;;  %5179 = vmatpush3.msk.msra.mxu1 %vm447_vm4, %v644_v26 }
 0x286   : > { %5173 = vmatmul.mubr.msk.f32.vlgmr.msra.gmra.mxu0 %vm434_vm3, %v427_v52  ;;  %5176 = vmatmul.mubr.msk.f32.vlgmr.msra.gmra.mxu1 %vm434_vm3, %v429_v56 }
 0x289   : > { %v5268_v27 = vpop.eup %5267 }
 0x28a   : > { %v549_v28 = vadd.f32 1.0, %v5268_v27 }
 0x28b   : > { %v5270_v29 = vpop.eup %5269 }
 0x28c   : > { %5275 = vrcp.f32 %v549_v28  ;;  %v548_v30 = vadd.f32 1.0, %v5270_v29 }
 0x28d   : > { %v5272_v31 = vpop.eup %5271 }
 0x28e   : > { %5277 = vrcp.f32 %v548_v30  ;;  %v551_v32 = vadd.f32 1.0, %v5272_v31 }
 0x28f   : > { %v5274_v33 = vpop.eup %5273 }
 0x290   : > { %5279 = vrcp.f32 %v551_v32  ;;  %v550_v34 = vadd.f32 1.0, %v5274_v33 }
 0x292   : > { %5281 = vrcp.f32 %v550_v34 }
 0x299   : > { %v5276_v35 = vpop.eup %5275 }
 0x29a   : > { %561 = vst.msk [vmem:[#allocation3 + $0x8] sm:$0xff] %vm336_vm1, %v5276_v35 }
 0x29b   : > { %v5278_v36 = vpop.eup %5277 }
 0x29c   : > { %560 = vst.msk [vmem:[#allocation3] sm:$0xff] %vm336_vm1, %v5278_v36 }
 0x29d   : > { %v5280_v37 = vpop.eup %5279 }
 0x29e   : > { %563 = vst.msk [vmem:[#allocation3 + $0x18] sm:$0xff] %vm336_vm1, %v5280_v37 }
 0x29f   : > { %v5282_v38 = vpop.eup %5281 }
 0x2a0   : > { %562 = vst.msk [vmem:[#allocation3 + $0x10] sm:$0xff] %vm336_vm1, %v5282_v38 }
 0x2a1   : > { %v783_v39 = vld [vmem:[#allocation3 + $0x8] sm:$0xff] }
 0x2a2   : > { %797 = vperm.xlu1 %5265, %v783_v39  }
 0x2a3   : > { %v782_v40 = vld [vmem:[#allocation3] sm:$0xff] }
 0x2a4   : > { %792 = vperm.xlu0 %5266, %v782_v40  }
 0x2a5   : > { %v785_v41 = vld [vmem:[#allocation3 + $0x18] sm:$0xff] }
 0x2a6   : > { %807 = vperm.xlu1 %5265, %v785_v41  }
 0x2a7   : > { %v784_v42 = vld [vmem:[#allocation3 + $0x10] sm:$0xff] }
 0x2aa   : > { %802 = vperm.xlu1 %5265, %v784_v42  }
 0x31d   : > { %v798_v43 = vpop.permute.xlu1 %797 }
 0x31e   : > { %v832_v48 = vmul.f32 %v798_v43, %v5667_v5  ;;  %v833_v49 = vmul.f32 %v798_v43, %v5670_v6 }
 0x31f   : > { %v793_v44 = vpop.permute.xlu0 %792 }
 0x320   : > { %v830_v45 = vmul.f32 %v793_v44, %v5675_v8  ;;  %v831_v46 = vmul.f32 %v793_v44, %v5678_v9 }
 0x321   : > { %v808_v47 = vpop.permute.xlu1 %807 }
 0x322   : > { %v846_v50 = vadd.f32 %v832_v48, %v830_v45  ;;  %v855_v51 = vadd.f32 %v833_v49, %v831_v46  ;;  %v929_v53 = vmax.f32 %v830_v45, %v832_v48  ;;  %v938_v54 = vmax.f32 %v831_v46, %v833_v49 }
 0x323   : > { %v836_v57 = vmul.f32 %v808_v47, %v5653_v0  ;;  %v837_v8 = vmul.f32 %v808_v47, %v5656_v1 }
 0x325   : > { %v803_v52 = vpop.permute.xlu1 %802 }
 0x326   : > { %v834_v55 = vmul.f32 %v803_v52, %v5659_v2  ;;  %v835_v56 = vmul.f32 %v803_v52, %v5664_v4  ;;  %v893_v2 = vunpack.c.l.s4 %v5457_v16 }
 0x328   : > { %v847_v58 = vadd.f32 %v846_v50, %v834_v55  ;;  %v856_v9 = vadd.f32 %v855_v51, %v835_v56  ;;  %v930_v59 = vmax.f32 %v929_v53, %v834_v55  ;;  %v939_v60 = vmax.f32 %v938_v54, %v835_v56 }
 0x329   : > { %v894_v23 = vunpack.c.0.s8 %v893_v2 }
 0x32a   : > { %v848_v5 = vadd.f32 %v847_v58, %v836_v57  ;;  %v857_v62 = vadd.f32 %v856_v9, %v837_v8  ;;  %v931_v6 = vmax.f32 %v930_v59, %v836_v57  ;;  %v940_v3 = vmax.f32 %v939_v60, %v837_v8 }
 0x32b   : > { %v5792_v33 = vsub.s32 %v894_v23, %v5789_v24 }
 0x32c   : > { %v849_v7 = vrot.slane %v848_v5, 4  ;;  %v858_v11 = vrot.slane %v857_v62, 4  ;;  %v932_v13 = vrot.slane %v931_v6, 4  ;;  %v941_v14 = vrot.slane %v940_v3, 4 }
 0x32d   : > { %8002 = vst [vmem:[#allocation18_spill] sm:$0xff] %v5792_v33 }
 0x32e   : > { %v850_v4 = vadd.f32 %v849_v7, %v848_v5  ;;  %v859_v18 = vadd.f32 %v858_v11, %v857_v62  ;;  %v933_v0 = vmax.f32 %v931_v6, %v932_v13  ;;  %v942_v19 = vmax.f32 %v940_v3, %v941_v14 }
 0x330   : > { %v851_v1 = vrot.slane %v850_v4, 2  ;;  %v860_v20 = vrot.slane %v859_v18, 2  ;;  %v934_v21 = vrot.slane %v933_v0, 2  ;;  %v943_v22 = vrot.slane %v942_v19, 2 }
 0x332   : > { %v852_v25 = vadd.f32 %v851_v1, %v850_v4  ;;  %v861_v26 = vadd.f32 %v860_v20, %v859_v18  ;;  %v935_v27 = vmax.f32 %v933_v0, %v934_v21  ;;  %v944_v28 = vmax.f32 %v942_v19, %v943_v22 }
 0x334   : > { %v853_v29 = vrot.slane %v852_v25, 1  ;;  %v862_v30 = vrot.slane %v861_v26, 1  ;;  %v936_v31 = vrot.slane %v935_v27, 1  ;;  %v945_v32 = vrot.slane %v944_v28, 1 }
 0x336   : > { %v854_v34 = vadd.f32 %v853_v29, %v852_v25  ;;  %v863_v35 = vadd.f32 %v862_v30, %v861_v26  ;;  %v937_v36 = vmax.f32 %v935_v27, %v936_v31  ;;  %v946_v37 = vmax.f32 %v944_v28, %v945_v32 }
 0x337   : > { %v5866_v25 = vstv %s5031_s16  ;;  %v5870_v28 = vstv %s5032_s28  ;;  %v5875_v31 = vstv %s5033_s7  ;;  %s5035_s16 = sld [smem:[#allocation12 + $0x36]] }
 0x338   : > { %v883_v38 = vmul.f32 0.03125, %v854_v34  ;;  %v884_v39 = vmul.f32 0.03125, %v863_v35  ;;  %v969_v40 = vcombine.low %v937_v36, %v946_v37  ;;  %8005 = vst [vmem:[#allocation19_spill] sm:$0xff] %v5866_v25  ;;  %8006 = vst [vmem:[#allocation20_spill] sm:$0xff] %v5870_v28  ;;  %v5880_v35 = vstv %s5034_s12  ;;  %s5036_s28 = sld [smem:[#allocation12 + $0x37]] }
 0x339   : > { %8007 = vst [vmem:[#allocation21_spill] sm:$0xff] %v5875_v31  ;;  %8008 = vst [vmem:[#allocation22_spill] sm:$0xff] %v5880_v35  ;;  %s5038_s7 = sld [smem:[#allocation12 + $0x39]] }
 0x33a   : > { %v891_v41 = vcombine.low %v883_v38, %v884_v39  ;;  %v976_v42 = vrot.slane %v969_v40, %v5792_v33  ;;  %s5039_s12 = sld [smem:[#allocation12 + $0x3a]] }
 0x33c   : > { %v898_v44 = vrot.slane %v891_v41, %v5792_v33  ;;  %v983_v45 = vrot.slane %v976_v42, %v5792_v33 }
 0x33d   : > { %v5885_v38 = vstv %s5035_s16  ;;  %s5040_s16 = sld [smem:[#allocation12 + $0x3b]] }
 0x33e   : > { %v905_v46 = vrot.slane %v898_v44, %v5792_v33  ;;  %1002 = vst.msk [vmem:[#allocation4 + $0x4] sm:$0x3] %vm5804_vm6, %v983_v45  ;;  %8009 = vst [vmem:[#allocation23_spill] sm:$0xff] %v5885_v38  ;;  %v5890_v41 = vstv %s5036_s28  ;;  %s5041_s28 = sld [smem:[#allocation12 + $0x3c]] }
 0x33f   : > { %8010 = vst [vmem:[#allocation24_spill] sm:$0xff] %v5890_v41 }
 0x340   : > { %927 = vst.msk [vmem:[#allocation4] sm:$0x3] %vm5804_vm6, %v905_v46  ;;  %v5895_v46 = vstv %s5038_s7  ;;  %s5042_s7 = sld [smem:[#allocation12 + $0x3d]] }
 0x341   : > { %8011 = vst [vmem:[#allocation25_spill] sm:$0xff] %v5895_v46 }
 0x345   : > { %v4920_v47 = vld [vmem:[#allocation4 + $0x4] ss:$0 sm:$0xff]  ;;  %v4952_v62 = vld [vmem:[#allocation4 + $0x5] ss:$0 sm:$0xff] }
 0x346   : > { %1046 = vrot.lane.b32.xlu1 %v4920_v47, %s5458_s14  ;;  %v5174_v48 = vpop.f32.mrf.mxu0  ;;  %v5177_v49 = vpop.f32.mrf.mxu1 }
 0x347   : > { %v740_v50 = vadd.f32 %v5174_v48, %v5746_v61  ;;  %v750_v51 = vadd.f32 %v5177_v49, %v5757_v10  ;;  %v4918_v13 = vld [vmem:[#allocation4] ss:$0 sm:$0xff]  ;;  %v4950_v12 = vld [vmem:[#allocation4 + $0x1] ss:$0 sm:$0xff]  ;;  %v5900_v49 = vstv %s5039_s12  ;;  %s5043_s12 = sld [smem:[#allocation12 + $0x3e]] }
 0x348   : > { %v734_v52 = vpop.f32.mrf.mxu0  ;;  %v744_v53 = vpop.f32.mrf.mxu1  ;;  %8012 = vst [vmem:[#allocation26_spill] sm:$0xff] %v5900_v49 }
 0x349   : > { %v4915_v54 = vmul.f32 -1.442695, %v740_v50  ;;  %v4917_v55 = vmul.f32 -1.442695, %v750_v51  ;;  %v735_v56 = vadd.f32 %v734_v52, %v5751_v63  ;;  %v745_v57 = vadd.f32 %v744_v53, %v5763_v15 }
 0x34a   : > { %1087 = vrot.lane.b32.xlu1 %v4920_v47, %s5459_s20 }
 0x34b   : > { %5283 = vpow2.f32 %v4915_v54  ;;  %v4914_v8 = vmul.f32 -1.442695, %v735_v56  ;;  %v4916_v58 = vmul.f32 -1.442695, %v745_v57  ;;  %v5906_v54 = vstv %s5040_s16  ;;  %s5045_s16 = sld [smem:[#allocation12 + $0x40]] }
 0x34c   : > { %5285 = vpow2.f32 %v4917_v55  ;;  %8013 = vst [vmem:[#allocation27_spill] sm:$0xff] %v5906_v54 }
 0x34d   : > { %5287 = vpow2.f32 %v4914_v8  ;;  %v5913_v8 = vstv %s5041_s28  ;;  %s5046_s28 = sld [smem:[#allocation12 + $0x41]] }
 0x34e   : > { %1127 = vrot.lane.b32.xlu1 %v4920_v47, %s5460_s8  ;;  %5289 = vpow2.f32 %v4916_v58  ;;  %8014 = vst [vmem:[#allocation28_spill] sm:$0xff] %v5913_v8 }
 0x352   : > { %1167 = vrot.lane.b32.xlu1 %v4920_v47, %s7940_s11 }
 0x356   : > { %1207 = vrot.lane.b32.xlu1 %v4920_v47, %s7830_s17 }
 0x358   : > { %v5284_v61 = vpop.eup %5283 }
 0x359   : > { %v5286_v63 = vpop.eup %5285  ;;  %v766_v10 = vadd.f32 1.0, %v5284_v61 }
 0x35a   : > { %v5288_v15 = vpop.eup %5287  ;;  %1247 = vrot.lane.b32.xlu1 %v4920_v47, %s7828_s29  ;;  %v768_v9 = vadd.f32 1.0, %v5286_v63 }
 0x35b   : > { %v5290_v59 = vpop.eup %5289  ;;  %5291 = vrcp.f32 %v766_v10  ;;  %v765_v60 = vadd.f32 1.0, %v5288_v15  ;;  %v5920_v10 = vstv %s5042_s7  ;;  %s5047_s7 = sld [smem:[#allocation12 + $0x42]] }
 0x35c   : > { %5293 = vrcp.f32 %v768_v9  ;;  %v767_v5 = vadd.f32 1.0, %v5290_v59  ;;  %8015 = vst [vmem:[#allocation29_spill] sm:$0xff] %v5920_v10 }
 0x35d   : > { %5295 = vrcp.f32 %v765_v60  ;;  %v5927_v60 = vstv %s5043_s12  ;;  %s5048_s12 = sld [smem:[#allocation12 + $0x43]] }
 0x35e   : > { %1287 = vrot.lane.b32.xlu1 %v4920_v47, %s7826_s13  ;;  %5297 = vrcp.f32 %v767_v5  ;;  %8016 = vst [vmem:[#allocation30_spill] sm:$0xff] %v5927_v60 }
 0x362   : > { %1327 = vrot.lane.b32.xlu1 %v4920_v47, %s7824_s19 }
 0x366   : > { %1367 = vrot.lane.b32.xlu1 %v4952_v62, %s5458_s14 }
 0x368   : > { %v5292_v6 = vpop.eup %5291 }
 0x369   : > { %v5294_v3 = vpop.eup %5293  ;;  %779 = vst.msk [vmem:[#allocation3 + $0x28] sm:$0xff] %vm336_vm1, %v5292_v6 }
 0x36a   : > { %v5296_v7 = vpop.eup %5295  ;;  %1407 = vrot.lane.b32.xlu1 %v4952_v62, %s5459_s20  ;;  %781 = vst.msk [vmem:[#allocation3 + $0x38] sm:$0xff] %vm336_vm1, %v5294_v3 }
 0x36b   : > { %v5298_v11 = vpop.eup %5297  ;;  %778 = vst.msk [vmem:[#allocation3 + $0x20] sm:$0xff] %vm336_vm1, %v5296_v7  ;;  %v5934_v7 = vstv %s5045_s16  ;;  %s5049_s16 = sld [smem:[#allocation12 + $0x44]] }
 0x36c   : > { %780 = vst.msk [vmem:[#allocation3 + $0x30] sm:$0xff] %vm336_vm1, %v5298_v11  ;;  %8017 = vst [vmem:[#allocation31_spill] sm:$0xff] %v5934_v7 }
 0x36e   : > { %1447 = vrot.lane.b32.xlu1 %v4952_v62, %s5460_s8 }
 0x370   : > { %v787_v4 = vld [vmem:[#allocation3 + $0x28] sm:$0xff] }
 0x371   : > { %v789_v0 = vld [vmem:[#allocation3 + $0x38] sm:$0xff] }
 0x372   : > { %1487 = vrot.lane.b32.xlu1 %v4952_v62, %s7940_s11  ;;  %v786_v1 = vld [vmem:[#allocation3 + $0x20] sm:$0xff] }
 0x373   : > { %v788_v21 = vld [vmem:[#allocation3 + $0x30] sm:$0xff] }
 0x376   : > { %1527 = vrot.lane.b32.xlu1 %v4952_v62, %s7830_s17 }
 0x37a   : > { %1567 = vrot.lane.b32.xlu1 %v4952_v62, %s7828_s29 }
 0x37e   : > { %1607 = vrot.lane.b32.xlu1 %v4952_v62, %s7826_s13 }
 0x382   : > { %1647 = vrot.lane.b32.xlu1 %v4952_v62, %s7824_s19 }
 0x386   : > { %1042 = vrot.lane.b32.xlu1 %v4918_v13, %s5458_s14 }
 0x38a   : > { %1083 = vrot.lane.b32.xlu1 %v4918_v13, %s5459_s20 }
 0x38e   : > { %1123 = vrot.lane.b32.xlu1 %v4918_v13, %s5460_s8 }
 0x392   : > { %1163 = vrot.lane.b32.xlu1 %v4918_v13, %s7940_s11 }
 0x396   : > { %1203 = vrot.lane.b32.xlu1 %v4918_v13, %s7830_s17 }
 0x39a   : > { %1243 = vrot.lane.b32.xlu1 %v4918_v13, %s7828_s29 }
 0x39e   : > { %1283 = vrot.lane.b32.xlu1 %v4918_v13, %s7826_s13 }
 0x3a2   : > { %1323 = vrot.lane.b32.xlu1 %v4918_v13, %s7824_s19 }
 0x3a6   : > { %1363 = vrot.lane.b32.xlu1 %v4950_v12, %s5458_s14 }
 0x3aa   : > { %1403 = vrot.lane.b32.xlu1 %v4950_v12, %s5459_s20 }
 0x3ae   : > { %1443 = vrot.lane.b32.xlu1 %v4950_v12, %s5460_s8 }
 0x3b2   : > { %1483 = vrot.lane.b32.xlu1 %v4950_v12, %s7940_s11  ;;  %s5079_s11 = sld [smem:[#allocation12 + $0x62]] }
 0x3b6   : > { %1523 = vrot.lane.b32.xlu1 %v4950_v12, %s7830_s17  ;;  %s7976_s17 = smov 122  }
 0x3b8   : > { %v1047_v14 = vpop.permute.xlu1 %1046 }
 0x3b9   : > { %1057 = vst.msk [vmem:[#allocation5 + $0x33] sm:$0x1] %vm1054_vm8, %v1047_v14  ;;  %v5941_v14 = vstv %s5046_s28  ;;  %s5050_s28 = sld [smem:[#allocation12 + $0x45]] }
 0x3ba   : > { %1563 = vrot.lane.b32.xlu1 %v4950_v12, %s7828_s29  ;;  %s7978_s29 = smov 123   ;;  %8018 = vst [vmem:[#allocation32_spill] sm:$0xff] %v5941_v14 }
 0x3bc   : > { %v1088_v16 = vpop.permute.xlu1 %1087 }
 0x3bd   : > { %1097 = vst.msk [vmem:[#allocation5 + $0x34] sm:$0x1] %vm1054_vm8, %v1088_v16 }
 0x3be   : > { %1603 = vrot.lane.b32.xlu1 %v4950_v12, %s7826_s13  ;;  %s5469_s13 = smov 124  }
 0x3c0   : > { %v1128_v2 = vpop.permute.xlu1 %1127 }
 0x3c1   : > { %1137 = vst.msk [vmem:[#allocation5 + $0x35] sm:$0x1] %vm1054_vm8, %v1128_v2 }
 0x3c2   : > { %1643 = vrot.lane.b32.xlu1 %v4950_v12, %s7824_s19  ;;  %s5468_s19 = smov 125  }
 0x3c4   : > { %v1168_v18 = vpop.permute.xlu1 %1167 }
 0x3c5   : > { %1177 = vst.msk [vmem:[#allocation5 + $0x36] sm:$0x1] %vm1054_vm8, %v1168_v18 }
 0x3c6   : > { %817 = vperm.xlu1 %5265, %v787_v4  }
 0x3c8   : > { %v1208_v19 = vpop.permute.xlu1 %1207 }
 0x3c9   : > { %1217 = vst.msk [vmem:[#allocation5 + $0x37] sm:$0x1] %vm1054_vm8, %v1208_v19 }
 0x3ca   : > { %827 = vperm.xlu1 %5265, %v789_v0   ;;  %v5948_v0 = vstv %s5047_s7  ;;  %s5052_s7 = sld [smem:[#allocation12 + $0x47]] }
 0x3cb   : > { %8019 = vst [vmem:[#allocation33_spill] sm:$0xff] %v5948_v0 }
 0x3cc   : > { %v1248_v20 = vpop.permute.xlu1 %1247 }
 0x3cd   : > { %1257 = vst.msk [vmem:[#allocation5 + $0x38] sm:$0x1] %vm1054_vm8, %v1248_v20 }
 0x3ce   : > { %812 = vperm.xlu1 %5265, %v786_v1  }
 0x3d0   : > { %v1288_v22 = vpop.permute.xlu1 %1287  ;;  %v2901_v23 = vld [vmem:[#allocation5 + $0x30] sm:$0xff] }
 0x3d1   : > { %1297 = vst.msk [vmem:[#allocation5 + $0x39] sm:$0x1] %vm1054_vm8, %v1288_v22  ;;  %v2915_v27 = vmul.f32 %v5866_v25, %v2901_v23  ;;  %v2940_v30 = vmul.f32 %v5870_v28, %v2901_v23  ;;  %v2965_v34 = vmul.f32 %v5875_v31, %v2901_v23  ;;  %v2990_v37 = vmul.f32 %v5880_v35, %v2901_v23 }
 0x3d2   : > { %822 = vperm.xlu1 %5265, %v788_v21   ;;  %v3015_v40 = vmul.f32 %v5885_v38, %v2901_v23  ;;  %v3040_v44 = vmul.f32 %v5890_v41, %v2901_v23  ;;  %v5955_v21 = vstv %s5048_s12  ;;  %s5053_s12 = sld [smem:[#allocation12 + $0x48]] }
 0x3d3   : > { %8020 = vst [vmem:[#allocation34_spill] sm:$0xff] %v5955_v21 }
 0x3d4   : > { %v1328_v26 = vpop.permute.xlu1 %1327  ;;  %v3064_v45 = vld [vmem:[#allocation5 + $0x31] sm:$0xff] }
 0x3d5   : > { %1337 = vst.msk [vmem:[#allocation5 + $0x3a] sm:$0x1] %vm1054_vm8, %v1328_v26  ;;  %v3078_v48 = vmul.f32 %v5895_v46, %v3064_v45  ;;  %v3103_v51 = vmul.f32 %v5900_v49, %v3064_v45  ;;  %v3128_v56 = vmul.f32 %v5906_v54, %v3064_v45  ;;  %v3153_v61 = vmul.f32 %v5913_v8, %v3064_v45 }
 0x3d6   : > { %2923 = vrot.lane.b32.xlu1 %v2915_v27, %s5466_s5  ;;  %v3178_v9 = vmul.f32 %v5920_v10, %v3064_v45  ;;  %v3203_v62 = vmul.f32 %v5927_v60, %v3064_v45  ;;  %v5962_v27 = vstv %s5049_s16  ;;  %s5054_s16 = sld [smem:[#allocation12 + $0x49]] }
 0x3d7   : > { %8021 = vst [vmem:[#allocation35_spill] sm:$0xff] %v5962_v27 }
 0x3d8   : > { %v1368_v29 = vpop.permute.xlu1 %1367  ;;  %v3227_v3 = vld [vmem:[#allocation5 + $0x32] sm:$0xff] }
 0x3d9   : > { %1377 = vst.msk [vmem:[#allocation5 + $0x3b] sm:$0x1] %vm1054_vm8, %v1368_v29  ;;  %v3241_v13 = vmul.f32 %v5934_v7, %v3227_v3  ;;  %v3266_v4 = vmul.f32 %v5941_v14, %v3227_v3  ;;  %v3291_v1 = vmul.f32 %v5948_v0, %v3227_v3  ;;  %v3316_v23 = vmul.f32 %v5955_v21, %v3227_v3 }
 0x3da   : > { %2948 = vrot.lane.b32.xlu1 %v2940_v30, %s5467_s18  ;;  %v3341_v30 = vmul.f32 %v5962_v27, %v3227_v3 }
 0x3dc   : > { %v1408_v32 = vpop.permute.xlu1 %1407 }
 0x3dd   : > { %1417 = vst.msk [vmem:[#allocation5 + $0x3c] sm:$0x1] %vm1054_vm8, %v1408_v32 }
 0x3de   : > { %2973 = vrot.lane.b32.xlu1 %v2965_v34, %s5468_s19  ;;  %v5969_v34 = vstv %s5050_s28  ;;  %s5055_s28 = sld [smem:[#allocation12 + $0x4a]] }
 0x3df   : > { %8022 = vst [vmem:[#allocation36_spill] sm:$0xff] %v5969_v34 }
 0x3e0   : > { %v1448_v36 = vpop.permute.xlu1 %1447 }
 0x3e1   : > { %1457 = vst.msk [vmem:[#allocation5 + $0x3d] sm:$0x1] %vm1054_vm8, %v1448_v36 }
 0x3e2   : > { %2998 = vrot.lane.b32.xlu1 %v2990_v37, %s5469_s13  ;;  %v3366_v37 = vmul.f32 %v5969_v34, %v3227_v3 }
 0x3e4   : > { %v1488_v39 = vpop.permute.xlu1 %1487 }
 0x3e5   : > { %1497 = vst.msk [vmem:[#allocation5 + $0x3e] sm:$0x1] %vm1054_vm8, %v1488_v39 }
 0x3e6   : > { %3023 = vrot.lane.b32.xlu1 %v3015_v40, %s7978_s29  ;;  %v3390_v40 = vld [vmem:[#allocation5 + $0x33] sm:$0xff] }
 0x3e8   : > { %v1528_v42 = vpop.permute.xlu1 %1527 }
 0x3e9   : > { %1537 = vst.msk [vmem:[#allocation5 + $0x3f] sm:$0x1] %vm1054_vm8, %v1528_v42  ;;  %v5976_v42 = vstv %s5052_s7  ;;  %s5056_s7 = sld [smem:[#allocation12 + $0x4b]] }
 0x3ea   : > { %3048 = vrot.lane.b32.xlu1 %v3040_v44, %s7976_s17  ;;  %8023 = vst [vmem:[#allocation37_spill] sm:$0xff] %v5976_v42  ;;  %v3404_v45 = vmul.f32 %v5976_v42, %v3390_v40 }
 0x3ec   : > { %v1568_v47 = vpop.permute.xlu1 %1567 }
 0x3ed   : > { %1577 = vst.msk [vmem:[#allocation5 + $0x40] sm:$0x1] %vm1054_vm8, %v1568_v47 }
 0x3ee   : > { %3086 = vrot.lane.b32.xlu1 %v3078_v48, %s5466_s5  ;;  %v5983_v48 = vstv %s5053_s12  ;;  %s5057_s12 = sld [smem:[#allocation12 + $0x4c]] }
 0x3ef   : > { %8024 = vst [vmem:[#allocation38_spill] sm:$0xff] %v5983_v48 }
 0x3f0   : > { %v1608_v50 = vpop.permute.xlu1 %1607  ;;  %v2902_v52 = vld [vmem:[#allocation5 + $0x38] sm:$0xff] }
 0x3f1   : > { %1617 = vst.msk [vmem:[#allocation5 + $0x41] sm:$0x1] %vm1054_vm8, %v1608_v50  ;;  %v2916_v53 = vmul.f32 %v5866_v25, %v2902_v52  ;;  %v2941_v57 = vmul.f32 %v5870_v28, %v2902_v52  ;;  %v2966_v63 = vmul.f32 %v5875_v31, %v2902_v52  ;;  %v2991_v59 = vmul.f32 %v5880_v35, %v2902_v52 }
 0x3f2   : > { %3111 = vrot.lane.b32.xlu1 %v3103_v51, %s5467_s18  ;;  %v3016_v6 = vmul.f32 %v5885_v38, %v2902_v52  ;;  %v3041_v12 = vmul.f32 %v5890_v41, %v2902_v52  ;;  %v3429_v52 = vmul.f32 %v5983_v48, %v3390_v40 }
 0x3f3   : > { %2925 = vrot.lane.b32.xlu0 %v2916_v53, %s5466_s5 }
 0x3f4   : > { %v1648_v55 = vpop.permute.xlu1 %1647  ;;  %v3065_v16 = vld [vmem:[#allocation5 + $0x39] sm:$0xff]  ;;  %v6011_v3 = vstv %s5057_s12  ;;  %s5062_s12 = sld [smem:[#allocation12 + $0x51]] }
 0x3f5   : > { %1657 = vst.msk [vmem:[#allocation5 + $0x42] sm:$0x1] %vm1054_vm8, %v1648_v55  ;;  %v3079_v18 = vmul.f32 %v5895_v46, %v3065_v16  ;;  %v3104_v20 = vmul.f32 %v5900_v49, %v3065_v16  ;;  %v3129_v26 = vmul.f32 %v5906_v54, %v3065_v16  ;;  %v3154_v32 = vmul.f32 %v5913_v8, %v3065_v16 }
 0x3f6   : > { %3136 = vrot.lane.b32.xlu1 %v3128_v56, %s5468_s19  ;;  %v3179_v39 = vmul.f32 %v5920_v10, %v3065_v16  ;;  %v3204_v47 = vmul.f32 %v5927_v60, %v3065_v16  ;;  %v5990_v55 = vstv %s5054_s16  ;;  %s5059_s16 = sld [smem:[#allocation12 + $0x4e]]  ;;  %8028 = vst [vmem:[#allocation42_spill] sm:$0xff] %v6011_v3  ;;  %v3553_v16 = vld [vmem:[#allocation5 + $0x34] sm:$0xff] }
 0x3f7   : > { %2950 = vrot.lane.b32.xlu0 %v2941_v57, %s5467_s18  ;;  %8025 = vst [vmem:[#allocation39_spill] sm:$0xff] %v5990_v55  ;;  %v3454_v57 = vmul.f32 %v5990_v55, %v3390_v40 }
 0x3f8   : > { %v1043_v58 = vpop.permute.xlu1 %1042  ;;  %v3228_v50 = vld [vmem:[#allocation5 + $0x3a] sm:$0xff] }
 0x3f9   : > { %1055 = vst.msk [vmem:[#allocation5 + $0x3] sm:$0x1] %vm1054_vm8, %v1043_v58  ;;  %v3242_v53 = vmul.f32 %v5934_v7, %v3228_v50  ;;  %v3267_v58 = vmul.f32 %v5941_v14, %v3228_v50 }
 0x3fa   : > { %3161 = vrot.lane.b32.xlu1 %v3153_v61, %s5469_s13  ;;  %v5997_v61 = vstv %s5055_s28  ;;  %s5060_s28 = sld [smem:[#allocation12 + $0x4f]] }
 0x3fb   : > { %2975 = vrot.lane.b32.xlu0 %v2966_v63, %s5468_s19  ;;  %8026 = vst [vmem:[#allocation40_spill] sm:$0xff] %v5997_v61 }
 0x3fc   : > { %v1084_v15 = vpop.permute.xlu1 %1083 }
 0x3fd   : > { %1095 = vst.msk [vmem:[#allocation5 + $0x4] sm:$0x1] %vm1054_vm8, %v1084_v15  ;;  %v3479_v15 = vmul.f32 %v5997_v61, %v3390_v40 }
 0x3fe   : > { %3186 = vrot.lane.b32.xlu1 %v3178_v9, %s7978_s29  ;;  %v3292_v9 = vmul.f32 %v5948_v0, %v3228_v50 }
 0x3ff   : > { %3000 = vrot.lane.b32.xlu0 %v2991_v59, %s5469_s13  ;;  %v6004_v59 = vstv %s5056_s7  ;;  %s5061_s7 = sld [smem:[#allocation12 + $0x50]] }
 0x400   : > { %v1124_v5 = vpop.permute.xlu1 %1123  ;;  %8027 = vst [vmem:[#allocation41_spill] sm:$0xff] %v6004_v59 }
 0x401   : > { %1135 = vst.msk [vmem:[#allocation5 + $0x5] sm:$0x1] %vm1054_vm8, %v1124_v5 }
 0x402   : > { %3211 = vrot.lane.b32.xlu1 %v3203_v62, %s7976_s17  ;;  %v3504_v62 = vmul.f32 %v6004_v59, %v3390_v40 }
 0x403   : > { %3025 = vrot.lane.b32.xlu0 %v3016_v6, %s7978_s29  ;;  %v3317_v6 = vmul.f32 %v5955_v21, %v3228_v50 }
 0x404   : > { %v1164_v11 = vpop.permute.xlu1 %1163 }
 0x405   : > { %1175 = vst.msk [vmem:[#allocation5 + $0x6] sm:$0x1] %vm1054_vm8, %v1164_v11 }
 0x406   : > { %3249 = vrot.lane.b32.xlu1 %v3241_v13, %s5466_s5  ;;  %v3529_v13 = vmul.f32 %v6011_v3, %v3390_v40 }
 0x407   : > { %3050 = vrot.lane.b32.xlu0 %v3041_v12, %s7976_s17  ;;  %v3342_v12 = vmul.f32 %v5962_v27, %v3228_v50 }
 0x408   : > { %v1204_v2 = vpop.permute.xlu1 %1203 }
 0x409   : > { %1215 = vst.msk [vmem:[#allocation5 + $0x7] sm:$0x1] %vm1054_vm8, %v1204_v2  ;;  %v6018_v2 = vstv %s5059_s16  ;;  %s5063_s16 = sld [smem:[#allocation12 + $0x52]] }
 0x40a   : > { %3274 = vrot.lane.b32.xlu1 %v3266_v4, %s5467_s18  ;;  %8029 = vst [vmem:[#allocation43_spill] sm:$0xff] %v6018_v2 }
 0x40b   : > { %3088 = vrot.lane.b32.xlu0 %v3079_v18, %s5466_s5  ;;  %v3567_v18 = vmul.f32 %v6018_v2, %v3553_v16 }
 0x40c   : > { %v1244_v19 = vpop.permute.xlu1 %1243 }
 0x40d   : > { %1255 = vst.msk [vmem:[#allocation5 + $0x8] sm:$0x1] %vm1054_vm8, %v1244_v19  ;;  %v3367_v19 = vmul.f32 %v5969_v34, %v3228_v50 }
 0x40e   : > { %3299 = vrot.lane.b32.xlu1 %v3291_v1, %s5468_s19  ;;  %v6025_v1 = vstv %s5060_s28  ;;  %s5064_s28 = sld [smem:[#allocation12 + $0x53]] }
 0x40f   : > { %3113 = vrot.lane.b32.xlu0 %v3104_v20, %s5467_s18  ;;  %8030 = vst [vmem:[#allocation44_spill] sm:$0xff] %v6025_v1  ;;  %v3391_v20 = vld [vmem:[#allocation5 + $0x3b] sm:$0xff]  ;;  %v6043_v40 = vstv %s5063_s16  ;;  %s6053_s16 = sld [smem:[#allocation12 + $0x3]] }
 0x410   : > { %v1284_v22 = vpop.permute.xlu1 %1283  ;;  %8033 = vst [vmem:[#allocation47_spill] sm:$0xff] %v6043_v40 }
 0x411   : > { %1295 = vst.msk [vmem:[#allocation5 + $0x9] sm:$0x1] %vm1054_vm8, %v1284_v22  ;;  %v3592_v22 = vmul.f32 %v6025_v1, %v3553_v16 }
 0x412   : > { %3324 = vrot.lane.b32.xlu1 %v3316_v23, %s5469_s13  ;;  %v3405_v23 = vmul.f32 %v5976_v42, %v3391_v20 }
 0x413   : > { %3138 = vrot.lane.b32.xlu0 %v3129_v26, %s5468_s19  ;;  %v6031_v26 = vstv %s5061_s7  ;;  %s4982_s7 = sld [smem:[#allocation12 + $0x1]] }
 0x414   : > { %v1324_v29 = vpop.permute.xlu1 %1323  ;;  %8031 = vst [vmem:[#allocation45_spill] sm:$0xff] %v6031_v26  ;;  %v6049_v50 = vstv %s5064_s28  ;;  %s6067_s28 = sld [smem:[#allocation12 + $0x4]] }
 0x415   : > { %1335 = vst.msk [vmem:[#allocation5 + $0xa] sm:$0x1] %vm1054_vm8, %v1324_v29  ;;  %v3617_v29 = vmul.f32 %v6031_v26, %v3553_v16  ;;  %8034 = vst [vmem:[#allocation48_spill] sm:$0xff] %v6049_v50 }
 0x416   : > { %3349 = vrot.lane.b32.xlu1 %v3341_v30, %s7978_s29  ;;  %v3430_v30 = vmul.f32 %v5983_v48, %v3391_v20 }
 0x417   : > { %3163 = vrot.lane.b32.xlu0 %v3154_v32, %s5469_s13  ;;  %v6037_v32 = vstv %s5062_s12  ;;  %s4983_s12 = sld [smem:[#allocation12 + $0x2]] }
 0x418   : > { %v1364_v36 = vpop.permute.xlu1 %1363  ;;  %8032 = vst [vmem:[#allocation46_spill] sm:$0xff] %v6037_v32 }
 0x419   : > { %1375 = vst.msk [vmem:[#allocation5 + $0xb] sm:$0x1] %vm1054_vm8, %v1364_v36  ;;  %v3642_v36 = vmul.f32 %v6037_v32, %v3553_v16 }
 0x41a   : > { %3374 = vrot.lane.b32.xlu1 %v3366_v37, %s7976_s17 }
 0x41b   : > { %3188 = vrot.lane.b32.xlu0 %v3179_v39, %s7978_s29  ;;  %v3455_v39 = vmul.f32 %v5990_v55, %v3391_v20 }
 0x41c   : > { %v1404_v44 = vpop.permute.xlu1 %1403  ;;  %v6290_v27 = vld [vmem:[#allocation5 + $0x3] sm:$0xff] }
 0x41d   : > { %1415 = vst.msk [vmem:[#allocation5 + $0xc] sm:$0x1] %vm1054_vm8, %v1404_v44  ;;  %v3667_v44 = vmul.f32 %v6043_v40, %v3553_v16 }
 0x41e   : > { %3412 = vrot.lane.b32.xlu1 %v3404_v45, %s5466_s5 }
 0x41f   : > { %3213 = vrot.lane.b32.xlu0 %v3204_v47, %s7976_s17  ;;  %v3480_v47 = vmul.f32 %v5997_v61, %v3391_v20 }
 0x420   : > { %v1444_v51 = vpop.permute.xlu1 %1443  ;;  %v6366_v35 = vld [vmem:[#allocation5 + $0x4] sm:$0xff] }
 0x421   : > { %1455 = vst.msk [vmem:[#allocation5 + $0xd] sm:$0x1] %vm1054_vm8, %v1444_v51  ;;  %v3692_v51 = vmul.f32 %v6049_v50, %v3553_v16 }
 0x422   : > { %3437 = vrot.lane.b32.xlu1 %v3429_v52, %s5467_s18  ;;  %v6056_v52 = vld [vmem:[#allocation5] sm:$0xff] }
 0x423   : > { %3251 = vrot.lane.b32.xlu0 %v3242_v53, %s5466_s5 }
 0x424   : > { %v1484_v56 = vpop.permute.xlu1 %1483 }
 0x425   : > { %1495 = vst.msk [vmem:[#allocation5 + $0xe] sm:$0x1] %vm1054_vm8, %v1484_v56  ;;  %v3505_v56 = vmul.f32 %v6004_v59, %v3391_v20 }
 0x426   : > { %3462 = vrot.lane.b32.xlu1 %v3454_v57, %s5468_s19  ;;  %v6059_v57 = vstv %s4982_s7  ;;  %s4986_s7 = sld [smem:[#allocation12 + $0x5]] }
 0x427   : > { %3276 = vrot.lane.b32.xlu0 %v3267_v58, %s5467_s18  ;;  %8035 = vst [vmem:[#allocation49_spill] sm:$0xff] %v6059_v57  ;;  %v5307_v58 = vld [vmem:[%s5642_s26 + $0x40] sm:$0xff] }
 0x428   : > { %v1524_v63 = vpop.permute.xlu1 %1523 }
 0x429   : > { %1535 = vst.msk [vmem:[#allocation5 + $0xf] sm:$0x1] %vm1054_vm8, %v1524_v63 }
 0x42a   : > { %3487 = vrot.lane.b32.xlu1 %v3479_v15, %s5469_s13  ;;  %v5308_v15 = vld [vmem:[%s5642_s26 + $0x48] sm:$0xff] }
 0x42b   : > { %3301 = vrot.lane.b32.xlu0 %v3292_v9, %s5468_s19 }
 0x42c   : > { %v1564_v5 = vpop.permute.xlu1 %1563 }
 0x42d   : > { %1575 = vst.msk [vmem:[#allocation5 + $0x10] sm:$0x1] %vm1054_vm8, %v1564_v5  ;;  %v5309_v5 = vld [vmem:[%s5642_s26 + $0x50] sm:$0xff] }
 0x42e   : > { %3512 = vrot.lane.b32.xlu1 %v3504_v62, %s7978_s29 }
 0x42f   : > { %3326 = vrot.lane.b32.xlu0 %v3317_v6, %s5469_s13  ;;  %v5310_v6 = vld [vmem:[%s5642_s26 + $0x58] sm:$0xff] }
 0x430   : > { %v1604_v11 = vpop.permute.xlu1 %1603 }
 0x431   : > { %1615 = vst.msk [vmem:[#allocation5 + $0x11] sm:$0x1] %vm1054_vm8, %v1604_v11 }
 0x432   : > { %3537 = vrot.lane.b32.xlu1 %v3529_v13, %s7976_s17  ;;  %v1773_v13 = vmul.f32 %v6059_v57, %v6056_v52 }
 0x433   : > { %3351 = vrot.lane.b32.xlu0 %v3342_v12, %s7978_s29  ;;  %v6071_v12 = vstv %s4983_s12  ;;  %s4987_s12 = sld [smem:[#allocation12 + $0x6]] }
 0x434   : > { %v1644_v4 = vpop.permute.xlu1 %1643  ;;  %8036 = vst [vmem:[#allocation50_spill] sm:$0xff] %v6071_v12 }
 0x435   : > { %1655 = vst.msk [vmem:[#allocation5 + $0x12] sm:$0x1] %vm1054_vm8, %v1644_v4 }
 0x436   : > { %3575 = vrot.lane.b32.xlu1 %v3567_v18, %s5466_s5 }
 0x437   : > { %3376 = vrot.lane.b32.xlu0 %v3367_v19, %s7976_s17  ;;  %v3530_v19 = vmul.f32 %v6011_v3, %v3391_v20  ;;  %v6085_v20 = vstv %s6053_s16  ;;  %s4989_s16 = sld [smem:[#allocation12 + $0x8]] }
 0x438   : > { %8037 = vst [vmem:[#allocation51_spill] sm:$0xff] %v6085_v20  ;;  %v6307_v14 = vld [vmem:[#allocation5 + $0xa] sm:$0xff] }
 0x43a   : > { %3600 = vrot.lane.b32.xlu1 %v3592_v22, %s5467_s18 }
 0x43b   : > { %3414 = vrot.lane.b32.xlu0 %v3405_v23, %s5466_s5 }
 0x43c   : > { %v6459_v31 = vld [vmem:[#allocation5 + $0xc] sm:$0xff] }
 0x43e   : > { %3625 = vrot.lane.b32.xlu1 %v3617_v29, %s5468_s19  ;;  %v5311_v29 = vld [vmem:[%s5642_s26 + $0x60] sm:$0xff] }
 0x43f   : > { %3439 = vrot.lane.b32.xlu0 %v3430_v30, %s5467_s18 }
 0x441   : > { %v818_v37 = vpop.permute.xlu1 %817 }
 0x442   : > { %3650 = vrot.lane.b32.xlu1 %v3642_v36, %s5469_s13  ;;  %v840_v62 = vmul.f32 %v5309_v5, %v818_v37  ;;  %v841_v11 = vmul.f32 %v5310_v6, %v818_v37  ;;  %v5312_v36 = vld [vmem:[%s5642_s26 + $0x68] sm:$0xff] }
 0x443   : > { %3464 = vrot.lane.b32.xlu0 %v3455_v39, %s5468_s19  ;;  %v6077_v39 = vld [vmem:[#allocation5 + $0x3c] sm:$0xff] }
 0x444   : > { %v3643_v17 = vmul.f32 %v6037_v32, %v6077_v39  ;;  %v6230_v32 = vld [vmem:[#allocation5 + $0x9] sm:$0xff] }
 0x445   : > { %v828_v45 = vpop.permute.xlu1 %827 }
 0x446   : > { %3675 = vrot.lane.b32.xlu1 %v3667_v44, %s7978_s29  ;;  %v5313_v44 = vld [vmem:[%s5642_s26 + $0x70] sm:$0xff] }
 0x447   : > { %3489 = vrot.lane.b32.xlu0 %v3480_v47, %s5469_s13  ;;  %v844_v47 = vmul.f32 %v5313_v44, %v828_v45 }
 0x449   : > { %v813_v53 = vpop.permute.xlu1 %812 }
 0x44a   : > { %v838_v63 = vmul.f32 %v5307_v58, %v813_v53  ;;  %v839_v9 = vmul.f32 %v5308_v15, %v813_v53  ;;  %3700 = vrot.lane.b32.xlu1 %v3692_v51, %s7976_s17  ;;  %v5314_v51 = vld [vmem:[%s5642_s26 + $0x78] sm:$0xff] }
 0x44b   : > { %3514 = vrot.lane.b32.xlu0 %v3505_v56, %s7978_s29  ;;  %v845_v53 = vmul.f32 %v5314_v51, %v828_v45  ;;  %v1798_v56 = vmul.f32 %v6071_v12, %v6056_v52 }
 0x44c   : > { %v864_v16 = vadd.f32 %v840_v62, %v838_v63  ;;  %v873_v4 = vadd.f32 %v841_v11, %v839_v9  ;;  %v947_v22 = vmax.f32 %v838_v63, %v840_v62  ;;  %v956_v23 = vmax.f32 %v839_v9, %v841_v11 }
 0x44d   : > { %v823_v18 = vpop.permute.xlu1 %822  ;;  %v3568_v62 = vmul.f32 %v6018_v2, %v6077_v39 }
 0x44e   : > { %v842_v30 = vmul.f32 %v5311_v29, %v823_v18  ;;  %v843_v37 = vmul.f32 %v5312_v36, %v823_v18  ;;  %1781 = vrot.lane.b32.xlu1 %v1773_v13, %s5466_s5  ;;  %v1823_v18 = vmul.f32 %v6085_v20, %v6056_v52 }
 0x44f   : > { %3539 = vrot.lane.b32.xlu0 %v3530_v19, %s7976_s17 }
 0x450   : > { %v865_v58 = vadd.f32 %v864_v16, %v842_v30  ;;  %v874_v63 = vadd.f32 %v873_v4, %v843_v37  ;;  %v948_v15 = vmax.f32 %v947_v22, %v842_v30  ;;  %v957_v9 = vmax.f32 %v956_v23, %v843_v37 }
 0x451   : > { %v6087_v5 = vpop.permute.xlu1 %2923  ;;  %v6096_v16 = vstv %s6067_s28  ;;  %v3593_v30 = vmul.f32 %v6025_v1, %v6077_v39  ;;  %s4990_s28 = sld [smem:[#allocation12 + $0x9]] }
 0x452   : > { %v866_v6 = vadd.f32 %v865_v58, %v844_v47  ;;  %v875_v45 = vadd.f32 %v874_v63, %v845_v53  ;;  %v949_v11 = vmax.f32 %v948_v15, %v844_v47  ;;  %v958_v13 = vmax.f32 %v957_v9, %v845_v53  ;;  %1806 = vrot.lane.b32.xlu1 %v1798_v56, %s5467_s18 }
 0x453   : > { %3577 = vrot.lane.b32.xlu0 %v3568_v62, %s5466_s5  ;;  %8038 = vst [vmem:[#allocation52_spill] sm:$0xff] %v6096_v16  ;;  %v1848_v51 = vmul.f32 %v6096_v16, %v6056_v52  ;;  %v6106_v53 = vstv %s4986_s7  ;;  %v3618_v62 = vmul.f32 %v6031_v26, %v6077_v39  ;;  %s4991_s7 = sld [smem:[#allocation12 + $0xa]] }
 0x454   : > { %v867_v4 = vrot.slane %v866_v6, 4  ;;  %v876_v19 = vrot.slane %v875_v45, 4  ;;  %v950_v22 = vrot.slane %v949_v11, 4  ;;  %v959_v23 = vrot.slane %v958_v13, 4  ;;  %8039 = vst [vmem:[#allocation53_spill] sm:$0xff] %v6106_v53 }
 0x455   : > { %v6098_v29 = vpop.permute.xlu1 %2948 }
 0x456   : > { %v868_v36 = vadd.f32 %v867_v4, %v866_v6  ;;  %v877_v37 = vadd.f32 %v876_v19, %v875_v45  ;;  %v951_v44 = vmax.f32 %v949_v11, %v950_v22  ;;  %v960_v47 = vmax.f32 %v958_v13, %v959_v23  ;;  %1831 = vrot.lane.b32.xlu1 %v1823_v18, %s5468_s19 }
 0x457   : > { %3602 = vrot.lane.b32.xlu0 %v3593_v30, %s5467_s18  ;;  %v1873_v18 = vmul.f32 %v6106_v53, %v6056_v52 }
 0x458   : > { %v869_v56 = vrot.slane %v868_v36, 2  ;;  %v878_v58 = vrot.slane %v877_v37, 2  ;;  %v952_v63 = vrot.slane %v951_v44, 2  ;;  %v961_v15 = vrot.slane %v960_v47, 2 }
 0x459   : > { %v6108_v9 = vpop.permute.xlu1 %2973 }
 0x45a   : > { %v870_v6 = vadd.f32 %v869_v56, %v868_v36  ;;  %v879_v45 = vadd.f32 %v878_v58, %v877_v37  ;;  %v953_v11 = vmax.f32 %v951_v44, %v952_v63  ;;  %v962_v13 = vmax.f32 %v960_v47, %v961_v15  ;;  %1856 = vrot.lane.b32.xlu1 %v1848_v51, %s5469_s13 }
 0x45b   : > { %3627 = vrot.lane.b32.xlu0 %v3618_v62, %s5468_s19  ;;  %v6120_v36 = vstv %s4987_s12  ;;  %v6126_v62 = vld [vmem:[#allocation5 + $0x1] sm:$0xff]  ;;  %s4992_s12 = sld [smem:[#allocation12 + $0xb]] }
 0x45c   : > { %v871_v4 = vrot.slane %v870_v6, 1  ;;  %v880_v19 = vrot.slane %v879_v45, 1  ;;  %v954_v22 = vrot.slane %v953_v11, 1  ;;  %v963_v23 = vrot.slane %v962_v13, 1  ;;  %8040 = vst [vmem:[#allocation54_spill] sm:$0xff] %v6120_v36 }
 0x45d   : > { %v6116_v30 = vpop.permute.xlu1 %2998  ;;  %v1898_v15 = vmul.f32 %v6120_v36, %v6056_v52 }
 0x45e   : > { %v872_v37 = vadd.f32 %v871_v4, %v870_v6  ;;  %v881_v44 = vadd.f32 %v880_v19, %v879_v45  ;;  %v955_v47 = vmax.f32 %v953_v11, %v954_v22  ;;  %v964_v51 = vmax.f32 %v962_v13, %v963_v23  ;;  %1881 = vrot.lane.b32.xlu1 %v1873_v18, %s7978_s29 }
 0x45f   : > { %3652 = vrot.lane.b32.xlu0 %v3643_v17, %s5469_s13  ;;  %v3668_v6 = vmul.f32 %v6043_v40, %v6077_v39  ;;  %v6132_v45 = vstv %s4989_s16  ;;  %v3693_v23 = vmul.f32 %v6049_v50, %v6077_v39  ;;  %s4993_s16 = sld [smem:[#allocation12 + $0xc]] }
 0x460   : > { %v885_v56 = vmul.f32 0.03125, %v872_v37  ;;  %v886_v58 = vmul.f32 0.03125, %v881_v44  ;;  %v984_v63 = vcombine.low %v955_v47, %v964_v51  ;;  %8041 = vst [vmem:[#allocation55_spill] sm:$0xff] %v6132_v45  ;;  %v1936_v4 = vmul.f32 %v6132_v45, %v6126_v62  ;;  %v6149_v44 = vld [vmem:[#allocation5 + $0x8] sm:$0xff] }
 0x461   : > { %v6128_v24 = vpop.permute.xlu1 %3023  ;;  %v6147_v37 = vstv %s4990_s28  ;;  %s4994_s28 = sld [smem:[#allocation12 + $0xd]]  ;;  %v1899_v40 = vmul.f32 %v6120_v36, %v6149_v44  ;;  %v1937_v1 = vmul.f32 %v6132_v45, %v6230_v32 }
 0x462   : > { %v906_v11 = vcombine.low %v885_v56, %v886_v58  ;;  %v991_v13 = vrot.slane %v984_v63, %v5792_v33  ;;  %1906 = vrot.lane.b32.xlu1 %v1898_v15, %s7976_s17  ;;  %8042 = vst [vmem:[#allocation56_spill] sm:$0xff] %v6147_v37  ;;  %v1961_v39 = vmul.f32 %v6147_v37, %v6126_v62  ;;  %v6166_v63 = vstv %s4991_s7  ;;  %s4996_s7 = sld [smem:[#allocation12 + $0xf]] }
 0x463   : > { %3677 = vrot.lane.b32.xlu0 %v3668_v6, %s7978_s29  ;;  %v1774_v58 = vmul.f32 %v6059_v57, %v6149_v44  ;;  %8043 = vst [vmem:[#allocation57_spill] sm:$0xff] %v6166_v63  ;;  %v1986_v43 = vmul.f32 %v6166_v63, %v6126_v62  ;;  %v1962_v3 = vmul.f32 %v6147_v37, %v6230_v32 }
 0x464   : > { %v913_v17 = vrot.slane %v906_v11, %v5792_v33  ;;  %v998_v18 = vrot.slane %v991_v13, %v5792_v33  ;;  %v1799_v11 = vmul.f32 %v6071_v12, %v6149_v44  ;;  %v6178_v13 = vstv %s4992_s12  ;;  %s4997_s12 = sld [smem:[#allocation12 + $0x10]]  ;;  %v6214_v12 = vld [vmem:[#allocation5 + $0x2] sm:$0xff] }
 0x465   : > { %v6141_v19 = vpop.permute.xlu0 %2925  ;;  %v6143_v22 = vpop.permute.xlu1 %3048  ;;  %8044 = vst [vmem:[#allocation58_spill] sm:$0xff] %v6178_v13  ;;  %v1987_v61 = vmul.f32 %v6166_v63, %v6230_v32  ;;  %v2012_v48 = vmul.f32 %v6178_v13, %v6230_v32 }
 0x466   : > { %v920_v47 = vrot.slane %v913_v17, %v5792_v33  ;;  %1003 = vst.msk [vmem:[#allocation4 + $0x6] sm:$0x3] %vm5804_vm6, %v998_v18  ;;  %1944 = vrot.lane.b32.xlu1 %v1936_v4, %s5466_s5  ;;  %v2011_v17 = vmul.f32 %v6178_v13, %v6126_v62 }
 0x467   : > { %3702 = vrot.lane.b32.xlu0 %v3693_v23, %s7976_s17  ;;  %v1824_v23 = vmul.f32 %v6085_v20, %v6149_v44  ;;  %v6202_v33 = vstv %s4994_s28  ;;  %v1874_v20 = vmul.f32 %v6106_v53, %v6149_v44  ;;  %s4999_s28 = sld [smem:[#allocation12 + $0x12]] }
 0x468   : > { %928 = vst.msk [vmem:[#allocation4 + $0x2] sm:$0x3] %vm5804_vm6, %v920_v47  ;;  %v6190_v47 = vstv %s4993_s16  ;;  %8046 = vst [vmem:[#allocation60_spill] sm:$0xff] %v6202_v33  ;;  %s4998_s16 = sld [smem:[#allocation12 + $0x11]]  ;;  %v2062_v0 = vmul.f32 %v6202_v33, %v6230_v32 }
 0x469   : > { %v6160_v51 = vpop.permute.xlu0 %2950  ;;  %v6162_v56 = vpop.permute.xlu1 %3086  ;;  %8045 = vst [vmem:[#allocation59_spill] sm:$0xff] %v6190_v47  ;;  %v2037_v34 = vmul.f32 %v6190_v47, %v6230_v32 }
 0x46a   : > { %1969 = vrot.lane.b32.xlu1 %v1961_v39, %s5467_s18  ;;  %v2036_v39 = vmul.f32 %v6190_v47, %v6126_v62  ;;  %v6228_v53 = vstv %s4997_s12  ;;  %s5001_s12 = sld [smem:[#allocation12 + $0x14]] }
 0x46b   : > { %1783 = vrot.lane.b32.xlu0 %v1774_v58, %s5466_s5  ;;  %8048 = vst [vmem:[#allocation62_spill] sm:$0xff] %v6228_v53  ;;  %v2125_v8 = vmul.f32 %v6228_v53, %v6307_v14 }
 0x46d   : > { %v6172_v15 = vpop.permute.xlu0 %2975  ;;  %v6174_v6 = vpop.permute.xlu1 %3111  ;;  %v6254_v59 = vstv %s4999_s28  ;;  %s5004_s28 = sld [smem:[#allocation12 + $0x17]] }
 0x46e   : > { %1994 = vrot.lane.b32.xlu1 %v1986_v43, %s5468_s19  ;;  %v6242_v36 = vstv %s4998_s16  ;;  %8051 = vst [vmem:[#allocation65_spill] sm:$0xff] %v6254_v59  ;;  %s5003_s16 = sld [smem:[#allocation12 + $0x16]]  ;;  %v2175_v41 = vmul.f32 %v6254_v59, %v6307_v14 }
 0x46f   : > { %1808 = vrot.lane.b32.xlu0 %v1799_v11, %s5467_s18  ;;  %v1849_v11 = vmul.f32 %v6096_v16, %v6149_v44  ;;  %v6216_v16 = vstv %s4996_s7  ;;  %8049 = vst [vmem:[#allocation63_spill] sm:$0xff] %v6242_v36  ;;  %s5000_s7 = sld [smem:[#allocation12 + $0x13]]  ;;  %v2150_v49 = vmul.f32 %v6242_v36, %v6307_v14 }
 0x470   : > { %8047 = vst [vmem:[#allocation61_spill] sm:$0xff] %v6216_v16  ;;  %v6278_v42 = vstv %s5001_s12  ;;  %s5006_s12 = sld [smem:[#allocation12 + $0x19]]  ;;  %v2100_v60 = vmul.f32 %v6216_v16, %v6307_v14 }
 0x471   : > { %v6184_v18 = vpop.permute.xlu0 %3000  ;;  %v6186_v4 = vpop.permute.xlu1 %3136  ;;  %8055 = vst [vmem:[#allocation69_spill] sm:$0xff] %v6278_v42 }
 0x472   : > { %2019 = vrot.lane.b32.xlu1 %v2011_v17, %s5469_s13  ;;  %v2061_v17 = vmul.f32 %v6202_v33, %v6126_v62 }
 0x473   : > { %1833 = vrot.lane.b32.xlu0 %v1824_v23, %s5468_s19  ;;  %v6304_v47 = vstv %s5004_s28  ;;  %s5008_s28 = sld [smem:[#allocation12 + $0x1b]] }
 0x474   : > { %v6292_v13 = vstv %s5003_s16  ;;  %8060 = vst [vmem:[#allocation74_spill] sm:$0xff] %v6304_v47  ;;  %s5007_s16 = sld [smem:[#allocation12 + $0x1a]] }
 0x475   : > { %v6196_v58 = vpop.permute.xlu0 %3025  ;;  %v6198_v43 = vpop.permute.xlu1 %3161  ;;  %v6266_v55 = vstv %s5000_s7  ;;  %8057 = vst [vmem:[#allocation71_spill] sm:$0xff] %v6292_v13  ;;  %s5005_s7 = sld [smem:[#allocation12 + $0x18]] }
 0x476   : > { %2044 = vrot.lane.b32.xlu1 %v2036_v39, %s7978_s29  ;;  %v2099_v39 = vmul.f32 %v6216_v16, %v6214_v12  ;;  %8053 = vst [vmem:[#allocation67_spill] sm:$0xff] %v6266_v55  ;;  %v6330_v54 = vstv %s5006_s12  ;;  %s5011_s12 = sld [smem:[#allocation12 + $0x1e]] }
 0x477   : > { %1858 = vrot.lane.b32.xlu0 %v1849_v11, %s5469_s13  ;;  %8066 = vst [vmem:[#allocation80_spill] sm:$0xff] %v6330_v54 }
 0x479   : > { %v6208_v23 = vpop.permute.xlu0 %3050  ;;  %v6210_v50 = vpop.permute.xlu1 %3186  ;;  %v6354_v38 = vstv %s5008_s28  ;;  %s5013_s28 = sld [smem:[#allocation12 + $0x20]] }
 0x47a   : > { %2069 = vrot.lane.b32.xlu1 %v2061_v17, %s7976_s17  ;;  %v6342_v46 = vstv %s5007_s16  ;;  %8072 = vst [vmem:[#allocation86_spill] sm:$0xff] %v6354_v38  ;;  %s5012_s16 = sld [smem:[#allocation12 + $0x1f]] }
 0x47b   : > { %1883 = vrot.lane.b32.xlu0 %v1874_v20, %s7978_s29  ;;  %v2124_v20 = vmul.f32 %v6228_v53, %v6214_v12  ;;  %v6318_v33 = vstv %s5005_s7  ;;  %8069 = vst [vmem:[#allocation83_spill] sm:$0xff] %v6342_v46  ;;  %s5010_s7 = sld [smem:[#allocation12 + $0x1d]] }
 0x47c   : > { %8063 = vst [vmem:[#allocation77_spill] sm:$0xff] %v6318_v33 }
 0x47d   : > { %v6222_v11 = vpop.permute.xlu0 %3088  ;;  %v6224_v57 = vpop.permute.xlu1 %3211 }
 0x47e   : > { %2107 = vrot.lane.b32.xlu1 %v2099_v39, %s5466_s5 }
 0x47f   : > { %1908 = vrot.lane.b32.xlu0 %v1899_v40, %s7976_s17  ;;  %v2149_v40 = vmul.f32 %v6242_v36, %v6214_v12 }
 0x481   : > { %v6236_v17 = vpop.permute.xlu0 %3113  ;;  %v6238_v26 = vpop.permute.xlu1 %3249 }
 0x482   : > { %2132 = vrot.lane.b32.xlu1 %v2124_v20, %s5467_s18 }
 0x483   : > { %1946 = vrot.lane.b32.xlu0 %v1937_v1, %s5466_s5  ;;  %v2174_v1 = vmul.f32 %v6254_v59, %v6214_v12  ;;  %v6368_v59 = vstv %s5010_s7  ;;  %s5014_s7 = sld [smem:[#allocation12 + $0x21]] }
 0x484   : > { %8075 = vst [vmem:[#allocation89_spill] sm:$0xff] %v6368_v59 }
 0x485   : > { %v6248_v39 = vpop.permute.xlu0 %3138  ;;  %v6250_v2 = vpop.permute.xlu1 %3274 }
 0x486   : > { %8050 = vst [vmem:[#allocation64_spill] sm:$0xff] %v6248_v39  ;;  %2157 = vrot.lane.b32.xlu1 %v2149_v40, %s5468_s19 }
 0x487   : > { %1971 = vrot.lane.b32.xlu0 %v1962_v3, %s5467_s18  ;;  %v2199_v3 = vmul.f32 %v6266_v55, %v6214_v12 }
 0x489   : > { %v6260_v20 = vpop.permute.xlu0 %3163  ;;  %v6262_v45 = vpop.permute.xlu1 %3299 }
 0x48a   : > { %8052 = vst [vmem:[#allocation66_spill] sm:$0xff] %v6260_v20  ;;  %2182 = vrot.lane.b32.xlu1 %v2174_v1, %s5469_s13 }
 0x48b   : > { %1996 = vrot.lane.b32.xlu0 %v1987_v61, %s5468_s19  ;;  %v2224_v61 = vmul.f32 %v6278_v42, %v6214_v12 }
 0x48d   : > { %v6272_v40 = vpop.permute.xlu0 %3188  ;;  %v6274_v37 = vpop.permute.xlu1 %3324 }
 0x48e   : > { %8054 = vst [vmem:[#allocation68_spill] sm:$0xff] %v6272_v40  ;;  %2207 = vrot.lane.b32.xlu1 %v2199_v3, %s7978_s29 }
 0x48f   : > { %2021 = vrot.lane.b32.xlu0 %v2012_v48, %s5469_s13  ;;  %v2262_v48 = vmul.f32 %v6292_v13, %v6290_v27 }
 0x491   : > { %v6284_v1 = vpop.permute.xlu0 %3213  ;;  %v6286_v63 = vpop.permute.xlu1 %3349 }
 0x492   : > { %8056 = vst [vmem:[#allocation70_spill] sm:$0xff] %v6284_v1  ;;  %2232 = vrot.lane.b32.xlu1 %v2224_v61, %s7976_s17 }
 0x493   : > { %2046 = vrot.lane.b32.xlu0 %v2037_v34, %s7978_s29  ;;  %v2287_v34 = vmul.f32 %v6304_v47, %v6290_v27 }
 0x495   : > { %v6298_v3 = vpop.permute.xlu0 %3251  ;;  %v6300_v21 = vpop.permute.xlu1 %3374 }
 0x496   : > { %8058 = vst [vmem:[#allocation72_spill] sm:$0xff] %v6298_v3  ;;  %8059 = vst [vmem:[#allocation73_spill] sm:$0xff] %v6300_v21  ;;  %2270 = vrot.lane.b32.xlu1 %v2262_v48, %s5466_s5 }
 0x497   : > { %2071 = vrot.lane.b32.xlu0 %v2062_v0, %s7976_s17  ;;  %v2312_v0 = vmul.f32 %v6318_v33, %v6290_v27 }
 0x499   : > { %v6312_v61 = vpop.permute.xlu0 %3276  ;;  %v6314_v7 = vpop.permute.xlu1 %3412 }
 0x49a   : > { %8061 = vst [vmem:[#allocation75_spill] sm:$0xff] %v6312_v61  ;;  %8062 = vst [vmem:[#allocation76_spill] sm:$0xff] %v6314_v7  ;;  %2295 = vrot.lane.b32.xlu1 %v2287_v34, %s5467_s18 }
 0x49b   : > { %2109 = vrot.lane.b32.xlu0 %v2100_v60, %s5466_s5  ;;  %v2337_v60 = vmul.f32 %v6330_v54, %v6290_v27 }
 0x49d   : > { %v6324_v48 = vpop.permute.xlu0 %3301  ;;  %v6326_v10 = vpop.permute.xlu1 %3437 }
 0x49e   : > { %8064 = vst [vmem:[#allocation78_spill] sm:$0xff] %v6324_v48  ;;  %8065 = vst [vmem:[#allocation79_spill] sm:$0xff] %v6326_v10  ;;  %2320 = vrot.lane.b32.xlu1 %v2312_v0, %s5468_s19 }
 0x49f   : > { %2134 = vrot.lane.b32.xlu0 %v2125_v8, %s5467_s18  ;;  %v2362_v8 = vmul.f32 %v6342_v46, %v6290_v27 }
 0x4a1   : > { %v6336_v34 = vpop.permute.xlu0 %3326  ;;  %v6338_v16 = vpop.permute.xlu1 %3462 }
 0x4a2   : > { %8067 = vst [vmem:[#allocation81_spill] sm:$0xff] %v6336_v34  ;;  %8068 = vst [vmem:[#allocation82_spill] sm:$0xff] %v6338_v16  ;;  %2345 = vrot.lane.b32.xlu1 %v2337_v60, %s5469_s13  ;;  %v6383_v34 = vld [vmem:[#allocation5 + $0xb] sm:$0xff] }
 0x4a3   : > { %2159 = vrot.lane.b32.xlu0 %v2150_v49, %s5468_s19  ;;  %v2387_v49 = vmul.f32 %v6354_v38, %v6290_v27 }
 0x4a5   : > { %v6348_v0 = vpop.permute.xlu0 %3351  ;;  %v6350_v53 = vpop.permute.xlu1 %3487 }
 0x4a6   : > { %8070 = vst [vmem:[#allocation84_spill] sm:$0xff] %v6348_v0  ;;  %8071 = vst [vmem:[#allocation85_spill] sm:$0xff] %v6350_v53  ;;  %2370 = vrot.lane.b32.xlu1 %v2362_v8, %s7978_s29  ;;  %v2200_v0 = vmul.f32 %v6266_v55, %v6307_v14  ;;  %v6380_v55 = vstv %s5011_s12  ;;  %s5015_s12 = sld [smem:[#allocation12 + $0x22]] }
 0x4a7   : > { %2184 = vrot.lane.b32.xlu0 %v2175_v41, %s5469_s13  ;;  %v2425_v41 = vmul.f32 %v6368_v59, %v6366_v35  ;;  %8078 = vst [vmem:[#allocation92_spill] sm:$0xff] %v6380_v55 }
 0x4a9   : > { %v6360_v60 = vpop.permute.xlu0 %3376  ;;  %v6362_v36 = vpop.permute.xlu1 %3512 }
 0x4aa   : > { %8073 = vst [vmem:[#allocation87_spill] sm:$0xff] %v6360_v60  ;;  %8074 = vst [vmem:[#allocation88_spill] sm:$0xff] %v6362_v36  ;;  %2395 = vrot.lane.b32.xlu1 %v2387_v49, %s7976_s17  ;;  %v2225_v36 = vmul.f32 %v6278_v42, %v6307_v14  ;;  %v6394_v42 = vstv %s5012_s16  ;;  %s5017_s16 = sld [smem:[#allocation12 + $0x24]] }
 0x4ab   : > { %2209 = vrot.lane.b32.xlu0 %v2200_v0, %s7978_s29  ;;  %v2450_v0 = vmul.f32 %v6380_v55, %v6366_v35  ;;  %8081 = vst [vmem:[#allocation95_spill] sm:$0xff] %v6394_v42 }
 0x4ad   : > { %v6374_v8 = vpop.permute.xlu0 %3414  ;;  %v6376_v60 = vpop.permute.xlu1 %3537 }
 0x4ae   : > { %8076 = vst [vmem:[#allocation90_spill] sm:$0xff] %v6374_v8  ;;  %8077 = vst [vmem:[#allocation91_spill] sm:$0xff] %v6376_v60  ;;  %2433 = vrot.lane.b32.xlu1 %v2425_v41, %s5466_s5  ;;  %v2263_v60 = vmul.f32 %v6292_v13, %v6383_v34 }
 0x4af   : > { %2234 = vrot.lane.b32.xlu0 %v2225_v36, %s7976_s17  ;;  %v2475_v36 = vmul.f32 %v6394_v42, %v6366_v35 }
 0x4b1   : > { %v6388_v49 = vpop.permute.xlu0 %3439  ;;  %v6390_v8 = vpop.permute.xlu1 %3575 }
 0x4b2   : > { %8079 = vst [vmem:[#allocation93_spill] sm:$0xff] %v6388_v49  ;;  %8080 = vst [vmem:[#allocation94_spill] sm:$0xff] %v6390_v8  ;;  %2458 = vrot.lane.b32.xlu1 %v2450_v0, %s5467_s18  ;;  %v2288_v49 = vmul.f32 %v6304_v47, %v6383_v34  ;;  %v6406_v8 = vstv %s5013_s28  ;;  %s5018_s28 = sld [smem:[#allocation12 + $0x25]] }
 0x4b3   : > { %2272 = vrot.lane.b32.xlu0 %v2263_v60, %s5466_s5  ;;  %8084 = vst [vmem:[#allocation98_spill] sm:$0xff] %v6406_v8  ;;  %v2500_v60 = vmul.f32 %v6406_v8, %v6366_v35 }
 0x4b5   : > { %v6400_v41 = vpop.permute.xlu0 %3464  ;;  %v6402_v53 = vpop.permute.xlu1 %3600 }
 0x4b6   : > { %8082 = vst [vmem:[#allocation96_spill] sm:$0xff] %v6400_v41  ;;  %8083 = vst [vmem:[#allocation97_spill] sm:$0xff] %v6402_v53  ;;  %2483 = vrot.lane.b32.xlu1 %v2475_v36, %s5468_s19  ;;  %v2313_v41 = vmul.f32 %v6318_v33, %v6383_v34  ;;  %v6418_v53 = vstv %s5014_s7  ;;  %s5019_s7 = sld [smem:[#allocation12 + $0x26]] }
 0x4b7   : > { %2297 = vrot.lane.b32.xlu0 %v2288_v49, %s5467_s18  ;;  %8087 = vst [vmem:[#allocation101_spill] sm:$0xff] %v6418_v53  ;;  %v2525_v49 = vmul.f32 %v6418_v53, %v6366_v35 }
 0x4b9   : > { %v6412_v0 = vpop.permute.xlu0 %3489  ;;  %v6414_v13 = vpop.permute.xlu1 %3625 }
 0x4ba   : > { %8085 = vst [vmem:[#allocation99_spill] sm:$0xff] %v6412_v0  ;;  %8086 = vst [vmem:[#allocation100_spill] sm:$0xff] %v6414_v13  ;;  %2508 = vrot.lane.b32.xlu1 %v2500_v60, %s5469_s13  ;;  %v2338_v0 = vmul.f32 %v6330_v54, %v6383_v34  ;;  %v6430_v13 = vstv %s5015_s12  ;;  %v6444_v54 = vstv %s5017_s16  ;;  %s1659_s12 = sld [smem:[#allocation12]] }
 0x4bb   : > { %2322 = vrot.lane.b32.xlu0 %v2313_v41, %s5468_s19  ;;  %8090 = vst [vmem:[#allocation104_spill] sm:$0xff] %v6430_v13  ;;  %v2550_v41 = vmul.f32 %v6430_v13, %v6366_v35  ;;  %8093 = vst [vmem:[#allocation107_spill] sm:$0xff] %v6444_v54  ;;  %s5020_s16 = sld [smem:[#allocation12 + $0x27]] }
 0x4bd   : > { %v6424_v36 = vpop.permute.xlu0 %3514  ;;  %v6426_v47 = vpop.permute.xlu1 %3650 }
 0x4be   : > { %8088 = vst [vmem:[#allocation102_spill] sm:$0xff] %v6424_v36  ;;  %8089 = vst [vmem:[#allocation103_spill] sm:$0xff] %v6426_v47  ;;  %2533 = vrot.lane.b32.xlu1 %v2525_v49, %s7978_s29  ;;  %v2363_v36 = vmul.f32 %v6342_v46, %v6383_v34  ;;  %v6442_v47 = vld [vmem:[#allocation5 + $0x5] sm:$0xff]  ;;  %v2388_v46 = vmul.f32 %v6354_v38, %v6383_v34  ;;  %v6468_v38 = vstv %s5019_s7  ;;  %s5022_s7 = sld [smem:[#allocation12 + $0x29]] }
 0x4bf   : > { %2347 = vrot.lane.b32.xlu0 %v2338_v0, %s5469_s13  ;;  %v2588_v0 = vmul.f32 %v6444_v54, %v6442_v47  ;;  %8098 = vst [vmem:[#allocation112_spill] sm:$0xff] %v6468_v38 }
 0x4c1   : > { %v6436_v60 = vpop.permute.xlu0 %3539  ;;  %v6438_v33 = vpop.permute.xlu1 %3675  ;;  %v6480_v61 = vstv %s5020_s16  ;;  %s5025_s16 = sld [smem:[#allocation12 + $0x2c]] }
 0x4c2   : > { %8091 = vst [vmem:[#allocation105_spill] sm:$0xff] %v6436_v60  ;;  %8092 = vst [vmem:[#allocation106_spill] sm:$0xff] %v6438_v33  ;;  %2558 = vrot.lane.b32.xlu1 %v2550_v41, %s7976_s17  ;;  %v6456_v33 = vstv %s5018_s28  ;;  %s5021_s28 = sld [smem:[#allocation12 + $0x28]] }
 0x4c3   : > { %2372 = vrot.lane.b32.xlu0 %v2363_v36, %s7978_s29  ;;  %8096 = vst [vmem:[#allocation110_spill] sm:$0xff] %v6456_v33  ;;  %v2613_v36 = vmul.f32 %v6456_v33, %v6442_v47 }
 0x4c4   : > { %v6505_v25 = vstv %s5022_s7  ;;  %s5027_s7 = sld [smem:[#allocation12 + $0x2e]] }
 0x4c5   : > { %v6450_v49 = vpop.permute.xlu0 %3577  ;;  %v6452_v60 = vpop.permute.xlu1 %3700 }
 0x4c6   : > { %8094 = vst [vmem:[#allocation108_spill] sm:$0xff] %v6450_v49  ;;  %8095 = vst [vmem:[#allocation109_spill] sm:$0xff] %v6452_v60  ;;  %2596 = vrot.lane.b32.xlu1 %v2588_v0, %s5466_s5  ;;  %v2426_v60 = vmul.f32 %v6368_v59, %v6459_v31  ;;  %v6471_v0 = vstv %s1659_s12  ;;  %s5024_s12 = sld [smem:[#allocation12 + $0x2b]] }
 0x4c7   : > { %2397 = vrot.lane.b32.xlu0 %v2388_v46, %s7976_s17  ;;  %8099 = vst [vmem:[#allocation113_spill] sm:$0xff] %v6471_v0  ;;  %v2638_v46 = vmul.f32 %v6468_v38, %v6442_v47  ;;  %v1764_v59 = vmul.f32 %v6471_v0, %v6056_v52 }
 0x4c8   : > { %v6494_v3 = vstv %s5021_s28  ;;  %s5026_s28 = sld [smem:[#allocation12 + $0x2d]] }
 0x4c9   : > { %v6464_v41 = vpop.permute.xlu0 %3602  ;;  %v1782_v49 = vpop.permute.xlu1 %1781 }
 0x4ca   : > { %8097 = vst [vmem:[#allocation111_spill] sm:$0xff] %v6464_v41  ;;  %2621 = vrot.lane.b32.xlu1 %v2613_v36, %s5467_s18  ;;  %v2451_v41 = vmul.f32 %v6380_v55, %v6459_v31  ;;  %v6485_v36 = vstv %s5079_s11  ;;  %v2476_v55 = vmul.f32 %v6394_v42, %v6459_v31  ;;  %s4988_s11 = sld [smem:[#allocation12 + $0x7]]  ;;  %v2501_v42 = vmul.f32 %v6406_v8, %v6459_v31 }
 0x4cb   : > { %2435 = vrot.lane.b32.xlu0 %v2426_v60, %s5466_s5  ;;  %8101 = vst [vmem:[#allocation115_spill] sm:$0xff] %v6485_v36  ;;  %v2663_v60 = vmul.f32 %v6480_v61, %v6442_v47  ;;  %v1768_v52 = vadd.f32 %v1764_v59, %v6485_v36 }
 0x4cc   : > { %v6517_v8 = vstv %s5024_s12  ;;  %s5028_s12 = sld [smem:[#allocation12 + $0x2f]] }
 0x4cd   : > { %v6476_v48 = vpop.permute.xlu0 %3627  ;;  %v1807_v16 = vpop.permute.xlu1 %1806  ;;  %8105 = vst [vmem:[#allocation119_spill] sm:$0xff] %v6517_v8 }
 0x4ce   : > { %8100 = vst [vmem:[#allocation114_spill] sm:$0xff] %v6476_v48  ;;  %2646 = vrot.lane.b32.xlu1 %v2638_v46, %s5468_s19  ;;  %v2688_v46 = vmul.f32 %v6494_v3, %v6442_v47  ;;  %v6539_v40 = vstv %s5026_s28  ;;  %s5002_s28 = sld [smem:[#allocation12 + $0x15]] }
 0x4cf   : > { %2460 = vrot.lane.b32.xlu0 %v2451_v41, %s5467_s18  ;;  %v1793_v41 = vadd.f32 %v1782_v49, %v1768_v52  ;;  %v2526_v52 = vmul.f32 %v6418_v53, %v6459_v31  ;;  %v2551_v53 = vmul.f32 %v6430_v13, %v6459_v31 }
 0x4d1   : > { %v6490_v48 = vpop.permute.xlu0 %3652  ;;  %v1832_v28 = vpop.permute.xlu1 %1831  ;;  %v1818_v1 = vadd.f32 %v1807_v16, %v1793_v41  ;;  %v6520_v41 = vstv %s4988_s11  ;;  %s5029_s11 = sld [smem:[#allocation12 + $0x30]] }
 0x4d2   : > { %8102 = vst [vmem:[#allocation116_spill] sm:$0xff] %v6490_v48  ;;  %2671 = vrot.lane.b32.xlu1 %v2663_v60, %s5469_s13  ;;  %v6558_v20 = vstv %s5028_s12  ;;  %s8108_s12 = smov 83  }
 0x4d3   : > { %2485 = vrot.lane.b32.xlu0 %v2476_v55, %s5468_s19  ;;  %v1843_v59 = vadd.f32 %v1832_v28, %v1818_v1  ;;  %v2713_v55 = vmul.f32 %v6505_v25, %v6442_v47 }
 0x4d5   : > { %v6501_v10 = vpop.permute.xlu0 %3677  ;;  %v1857_v48 = vpop.permute.xlu1 %1856 }
 0x4d6   : > { %8103 = vst [vmem:[#allocation117_spill] sm:$0xff] %v6501_v10  ;;  %2696 = vrot.lane.b32.xlu1 %v2688_v46, %s7978_s29  ;;  %v6515_v10 = vld [vmem:[#allocation5 + $0x6] sm:$0xff]  ;;  %v1868_v16 = vadd.f32 %v1857_v48, %v1843_v59  ;;  %v1927_v48 = vmul.f32 %v6520_v41, %v6126_v62  ;;  %v1765_v62 = vmul.f32 %v6471_v0, %v6149_v44 }
 0x4d7   : > { %2510 = vrot.lane.b32.xlu0 %v2501_v42, %s5469_s13  ;;  %v2751_v42 = vmul.f32 %v6517_v8, %v6515_v10  ;;  %v6566_v21 = vstv %s5029_s11  ;;  %s8109_s11 = smov 67  }
 0x4d8   : > { %8107 = vst [vmem:[#allocation121_spill] sm:$0xff] %v6566_v21 }
 0x4d9   : > { %v6511_v49 = vpop.permute.xlu0 %3702  ;;  %v1882_v60 = vpop.permute.xlu1 %1881 }
 0x4da   : > { %8104 = vst [vmem:[#allocation118_spill] sm:$0xff] %v6511_v49  ;;  %2721 = vrot.lane.b32.xlu1 %v2713_v55, %s7976_s17  ;;  %v1893_v28 = vadd.f32 %v1882_v60, %v1868_v16  ;;  %v6527_v49 = vstv %s5025_s16  ;;  %v6532_v55 = vld [vmem:[#allocation5 + $0xd] sm:$0xff]  ;;  %s4995_s16 = sld [smem:[#allocation12 + $0xe]] }
 0x4db   : > { %2535 = vrot.lane.b32.xlu0 %v2526_v52, %s7978_s29  ;;  %8106 = vst [vmem:[#allocation120_spill] sm:$0xff] %v6527_v49  ;;  %v2776_v52 = vmul.f32 %v6527_v49, %v6515_v10  ;;  %v2589_v13 = vmul.f32 %v6444_v54, %v6532_v55  ;;  %v2639_v54 = vmul.f32 %v6468_v38, %v6532_v55 }
 0x4dd   : > { %v1784_v1 = vpop.permute.xlu0 %1783  ;;  %v1907_v46 = vpop.permute.xlu1 %1906 }
 0x4de   : > { %v1918_v59 = vadd.f32 %v1907_v46, %v1893_v28  ;;  %2759 = vrot.lane.b32.xlu1 %v2751_v42, %s5466_s5  ;;  %v2614_v46 = vmul.f32 %v6456_v33, %v6532_v55 }
 0x4df   : > { %2560 = vrot.lane.b32.xlu0 %v2551_v53, %s7976_s17  ;;  %v2801_v53 = vmul.f32 %v6539_v40, %v6515_v10 }
 0x4e0   : > { %v1931_v60 = vadd.f32 %v1927_v48, %v1918_v59  ;;  %v6549_v48 = vstv %s5027_s7  ;;  %v1769_v59 = vadd.f32 %v1765_v62, %v6485_v36  ;;  %v2664_v36 = vmul.f32 %v6480_v61, %v6532_v55  ;;  %s5009_s7 = sld [smem:[#allocation12 + $0x1c]] }
 0x4e1   : > { %v1809_v16 = vpop.permute.xlu0 %1808  ;;  %v1945_v7 = vpop.permute.xlu1 %1944 }
 0x4e2   : > { %2784 = vrot.lane.b32.xlu1 %v2776_v52, %s5467_s18  ;;  %v1794_v44 = vadd.f32 %v1784_v1, %v1769_v59  ;;  %v1956_v62 = vadd.f32 %v1945_v7, %v1931_v60  ;;  %v2851_v1 = vmul.f32 %v6558_v20, %v6515_v10 }
 0x4e3   : > { %2598 = vrot.lane.b32.xlu0 %v2589_v13, %s5466_s5  ;;  %v2826_v13 = vmul.f32 %v6549_v48, %v6515_v10 }
 0x4e4   : > { %v1819_v33 = vadd.f32 %v1809_v16, %v1794_v44  ;;  %v1928_v44 = vmul.f32 %v6520_v41, %v6230_v32  ;;  %v6584_v32 = vld [vmem:[#allocation5 + $0xe] sm:$0xff] }
 0x4e5   : > { %v1834_v28 = vpop.permute.xlu0 %1833  ;;  %v1970_v42 = vpop.permute.xlu1 %1969 }
 0x4e6   : > { %2809 = vrot.lane.b32.xlu1 %v2801_v53, %s5468_s19  ;;  %v1844_v53 = vadd.f32 %v1834_v28, %v1819_v33  ;;  %v1981_v38 = vadd.f32 %v1970_v42, %v1956_v62  ;;  %v2876_v33 = vmul.f32 %v6566_v21, %v6515_v10  ;;  %v2689_v28 = vmul.f32 %v6494_v3, %v6532_v55 }
 0x4e7   : > { %2623 = vrot.lane.b32.xlu0 %v2614_v46, %s5467_s18  ;;  %v2714_v62 = vmul.f32 %v6505_v25, %v6532_v55 }
 0x4e9   : > { %v1859_v52 = vpop.permute.xlu0 %1858  ;;  %v1995_v0 = vpop.permute.xlu1 %1994 }
 0x4ea   : > { %2834 = vrot.lane.b32.xlu1 %v2826_v13, %s5469_s13  ;;  %v1869_v39 = vadd.f32 %v1859_v52, %v1844_v53 }
 0x4eb   : > { %2648 = vrot.lane.b32.xlu0 %v2639_v54, %s5468_s19  ;;  %v2006_v54 = vadd.f32 %v1995_v0, %v1981_v38 }
 0x4ed   : > { %v1884_v46 = vpop.permute.xlu0 %1883  ;;  %v2020_v59 = vpop.permute.xlu1 %2019 }
 0x4ee   : > { %2859 = vrot.lane.b32.xlu1 %v2851_v1, %s7978_s29  ;;  %v1894_v16 = vadd.f32 %v1884_v46, %v1869_v39  ;;  %v2031_v13 = vadd.f32 %v2020_v59, %v2006_v54 }
 0x4ef   : > { %2673 = vrot.lane.b32.xlu0 %v2664_v36, %s5469_s13  ;;  %v6578_v36 = vstv %s4995_s16  ;;  %s8110_s16 = smov 51  }
 0x4f0   : > { %v2090_v53 = vmul.f32 %v6578_v36, %v6214_v12 }
 0x4f1   : > { %v1909_v7 = vpop.permute.xlu0 %1908  ;;  %v2045_v60 = vpop.permute.xlu1 %2044 }
 0x4f2   : > { %v1919_v42 = vadd.f32 %v1909_v7, %v1894_v16  ;;  %2884 = vrot.lane.b32.xlu1 %v2876_v33, %s7976_s17  ;;  %v2056_v39 = vadd.f32 %v2045_v60, %v2031_v13  ;;  %v2752_v16 = vmul.f32 %v6517_v8, %v6584_v32  ;;  %v2777_v60 = vmul.f32 %v6527_v49, %v6584_v32 }
 0x4f3   : > { %2698 = vrot.lane.b32.xlu0 %v2689_v28, %s7978_s29  ;;  %v2802_v13 = vmul.f32 %v6539_v40, %v6584_v32 }
 0x4f4   : > { %v1932_v38 = vadd.f32 %v1928_v44, %v1919_v42 }
 0x4f5   : > { %v1947_v0 = vpop.permute.xlu0 %1946  ;;  %v2070_v52 = vpop.permute.xlu1 %2069 }
 0x4f6   : > { %v2081_v1 = vadd.f32 %v2070_v52, %v2056_v39  ;;  %v1957_v12 = vadd.f32 %v1947_v0, %v1932_v38 }
 0x4f7   : > { %2723 = vrot.lane.b32.xlu0 %v2714_v62, %s7976_s17 }
 0x4f8   : > { %v2094_v46 = vadd.f32 %v2090_v53, %v2081_v1  ;;  %v2827_v1 = vmul.f32 %v6549_v48, %v6584_v32 }
 0x4f9   : > { %v1972_v59 = vpop.permute.xlu0 %1971  ;;  %v2108_v54 = vpop.permute.xlu1 %2107 }
 0x4fa   : > { %v1982_v42 = vadd.f32 %v1972_v59, %v1957_v12  ;;  %v2119_v39 = vadd.f32 %v2108_v54, %v2094_v46  ;;  %v2852_v59 = vmul.f32 %v6558_v20, %v6584_v32  ;;  %v2091_v46 = vmul.f32 %v6578_v36, %v6307_v14 }
 0x4fb   : > { %2761 = vrot.lane.b32.xlu0 %v2752_v16, %s5466_s5  ;;  %v6604_v54 = vstv %s5002_s28  ;;  %s8111_s28 = smov 35  }
 0x4fd   : > { %v1997_v33 = vpop.permute.xlu0 %1996  ;;  %v2133_v7 = vpop.permute.xlu1 %2132 }
 0x4fe   : > { %v2007_v52 = vadd.f32 %v1997_v33, %v1982_v42  ;;  %v2144_v16 = vadd.f32 %v2133_v7, %v2119_v39 }
 0x4ff   : > { %2786 = vrot.lane.b32.xlu0 %v2777_v60, %s5467_s18 }
 0x501   : > { %v2022_v28 = vpop.permute.xlu0 %2021  ;;  %v2158_v44 = vpop.permute.xlu1 %2157 }
 0x502   : > { %v2032_v49 = vadd.f32 %v2022_v28, %v2007_v52  ;;  %v2169_v38 = vadd.f32 %v2158_v44, %v2144_v16  ;;  %v2253_v44 = vmul.f32 %v6604_v54, %v6290_v27 }
 0x503   : > { %2811 = vrot.lane.b32.xlu0 %v2802_v13, %s5468_s19 }
 0x505   : > { %v2047_v62 = vpop.permute.xlu0 %2046  ;;  %v2183_v53 = vpop.permute.xlu1 %2182 }
 0x506   : > { %v2057_v0 = vadd.f32 %v2047_v62, %v2032_v49  ;;  %v2194_v12 = vadd.f32 %v2183_v53, %v2169_v38  ;;  %v2877_v49 = vmul.f32 %v6566_v21, %v6584_v32  ;;  %v4921_v53 = vld [vmem:[#allocation4 + $0x6] ss:$0 sm:$0xff] }
 0x507   : > { %2836 = vrot.lane.b32.xlu0 %v2827_v1, %s5469_s13 }
 0x509   : > { %v2072_v60 = vpop.permute.xlu0 %2071  ;;  %v2208_v8 = vpop.permute.xlu1 %2207 }
 0x50a   : > { %v2082_v13 = vadd.f32 %v2072_v60, %v2057_v0  ;;  %v2219_v7 = vadd.f32 %v2208_v8, %v2194_v12 }
 0x50b   : > { %2861 = vrot.lane.b32.xlu0 %v2852_v59, %s7978_s29  ;;  %s5037_s29 = sld [smem:[#allocation12 + $0x38]] }
 0x50c   : > { %v2095_v33 = vadd.f32 %v2091_v46, %v2082_v13 }
 0x50d   : > { %v2110_v28 = vpop.permute.xlu0 %2109  ;;  %v2233_v42 = vpop.permute.xlu1 %2232 }
 0x50e   : > { %v2244_v39 = vadd.f32 %v2233_v42, %v2219_v7  ;;  %v2120_v8 = vadd.f32 %v2110_v28, %v2095_v33  ;;  %v2254_v28 = vmul.f32 %v6604_v54, %v6383_v34 }
 0x50f   : > { %2886 = vrot.lane.b32.xlu0 %v2877_v49, %s7976_s17  ;;  %s8112_s17 = smov 19  }
 0x510   : > { %v2257_v52 = vadd.f32 %v2253_v44, %v2244_v39 }
 0x511   : > { %v2135_v62 = vpop.permute.xlu0 %2134  ;;  %v2271_v14 = vpop.permute.xlu1 %2270 }
 0x512   : > { %v2145_v60 = vadd.f32 %v2135_v62, %v2120_v8  ;;  %v2282_v27 = vadd.f32 %v2271_v14, %v2257_v52  ;;  %v6618_v62 = vstv %s5009_s7  ;;  %s5016_s7 = sld [smem:[#allocation12 + $0x23]] }
 0x513   : > { %1048 = vrot.lane.b32.xlu0 %v4921_v53, %s5458_s14  ;;  %v2416_v8 = vmul.f32 %v6618_v62, %v6366_v35 }
 0x515   : > { %v2160_v1 = vpop.permute.xlu0 %2159  ;;  %v2296_v16 = vpop.permute.xlu1 %2295 }
 0x516   : > { %v2170_v59 = vadd.f32 %v2160_v1, %v2145_v60  ;;  %v2307_v46 = vadd.f32 %v2296_v16, %v2282_v27 }
 0x517   : > { %1089 = vrot.lane.b32.xlu0 %v4921_v53, %s5459_s20 }
 0x519   : > { %v2185_v38 = vpop.permute.xlu0 %2184  ;;  %v2321_v0 = vpop.permute.xlu1 %2320 }
 0x51a   : > { %v2195_v7 = vadd.f32 %v2185_v38, %v2170_v59  ;;  %v2332_v42 = vadd.f32 %v2321_v0, %v2307_v46 }
 0x51b   : > { %1129 = vrot.lane.b32.xlu0 %v4921_v53, %s5460_s8 }
 0x51d   : > { %v2210_v12 = vpop.permute.xlu0 %2209  ;;  %v2346_v13 = vpop.permute.xlu1 %2345 }
 0x51e   : > { %v2220_v49 = vadd.f32 %v2210_v12, %v2195_v7  ;;  %v2357_v21 = vadd.f32 %v2346_v13, %v2332_v42  ;;  %v4953_v7 = vld [vmem:[#allocation4 + $0x7] ss:$0 sm:$0xff] }
 0x51f   : > { %1169 = vrot.lane.b32.xlu0 %v4921_v53, %s8108_s12 }
 0x521   : > { %v2235_v44 = vpop.permute.xlu0 %2234  ;;  %v2371_v39 = vpop.permute.xlu1 %2370 }
 0x522   : > { %v2245_v33 = vadd.f32 %v2235_v44, %v2220_v49  ;;  %v2382_v14 = vadd.f32 %v2371_v39, %v2357_v21 }
 0x523   : > { %1209 = vrot.lane.b32.xlu0 %v4921_v53, %s8109_s11 }
 0x524   : > { %v2258_v52 = vadd.f32 %v2254_v28, %v2245_v33 }
 0x525   : > { %v2273_v1 = vpop.permute.xlu0 %2272  ;;  %v2396_v16 = vpop.permute.xlu1 %2395 }
 0x526   : > { %v2407_v38 = vadd.f32 %v2396_v16, %v2382_v14  ;;  %v2283_v12 = vadd.f32 %v2273_v1, %v2258_v52  ;;  %v2417_v1 = vmul.f32 %v6618_v62, %v6459_v31 }
 0x527   : > { %1249 = vrot.lane.b32.xlu0 %v4921_v53, %s8110_s16 }
 0x528   : > { %v2420_v0 = vadd.f32 %v2416_v8, %v2407_v38  ;;  %v6630_v38 = vstv %s5016_s7  ;;  %s5023_s7 = sld [smem:[#allocation12 + $0x2a]] }
 0x529   : > { %v2298_v60 = vpop.permute.xlu0 %2297  ;;  %v2434_v27 = vpop.permute.xlu1 %2433 }
 0x52a   : > { %v2308_v46 = vadd.f32 %v2298_v60, %v2283_v12  ;;  %v2445_v35 = vadd.f32 %v2434_v27, %v2420_v0  ;;  %v2579_v12 = vmul.f32 %v6630_v38, %v6442_v47 }
 0x52b   : > { %1289 = vrot.lane.b32.xlu0 %v4921_v53, %s8111_s28 }
 0x52d   : > { %v2323_v34 = vpop.permute.xlu0 %2322  ;;  %v2459_v59 = vpop.permute.xlu1 %2458 }
 0x52e   : > { %v2333_v42 = vadd.f32 %v2323_v34, %v2308_v46  ;;  %v2470_v39 = vadd.f32 %v2459_v59, %v2445_v35 }
 0x52f   : > { %1329 = vrot.lane.b32.xlu0 %v4921_v53, %s8112_s17 }
 0x531   : > { %v2348_v13 = vpop.permute.xlu0 %2347  ;;  %v2484_v21 = vpop.permute.xlu1 %2483 }
 0x532   : > { %v2358_v33 = vadd.f32 %v2348_v13, %v2333_v42  ;;  %v2495_v28 = vadd.f32 %v2484_v21, %v2470_v39 }
 0x533   : > { %1369 = vrot.lane.b32.xlu0 %v4953_v7, %s5458_s14 }
 0x535   : > { %v2373_v49 = vpop.permute.xlu0 %2372  ;;  %v2509_v44 = vpop.permute.xlu1 %2508 }
 0x536   : > { %v2383_v14 = vadd.f32 %v2373_v49, %v2358_v33  ;;  %v2520_v52 = vadd.f32 %v2509_v44, %v2495_v28 }
 0x537   : > { %1409 = vrot.lane.b32.xlu0 %v4953_v7, %s5459_s20 }
 0x539   : > { %v2398_v16 = vpop.permute.xlu0 %2397  ;;  %v2534_v53 = vpop.permute.xlu1 %2533 }
 0x53a   : > { %v2408_v8 = vadd.f32 %v2398_v16, %v2383_v14  ;;  %v2545_v60 = vadd.f32 %v2534_v53, %v2520_v52 }
 0x53b   : > { %1449 = vrot.lane.b32.xlu0 %v4953_v7, %s5460_s8 }
 0x53c   : > { %v2421_v0 = vadd.f32 %v2417_v1, %v2408_v8 }
 0x53d   : > { %v2436_v27 = vpop.permute.xlu0 %2435  ;;  %v2559_v34 = vpop.permute.xlu1 %2558 }
 0x53e   : > { %v2570_v59 = vadd.f32 %v2559_v34, %v2545_v60  ;;  %v2446_v42 = vadd.f32 %v2436_v27, %v2421_v0  ;;  %v4919_v27 = vld [vmem:[#allocation4 + $0x2] ss:$0 sm:$0xff] }
 0x53f   : > { %1489 = vrot.lane.b32.xlu0 %v4953_v7, %s8108_s12 }
 0x540   : > { %v2583_v13 = vadd.f32 %v2579_v12, %v2570_v59  ;;  %v2580_v59 = vmul.f32 %v6630_v38, %v6532_v55  ;;  %v6642_v12 = vstv %s5023_s7  ;;  %s5030_s7 = sld [smem:[#allocation12 + $0x31]] }
 0x541   : > { %v2461_v21 = vpop.permute.xlu0 %2460  ;;  %v2597_v46 = vpop.permute.xlu1 %2596 }
 0x542   : > { %v2471_v39 = vadd.f32 %v2461_v21, %v2446_v42  ;;  %v2608_v33 = vadd.f32 %v2597_v46, %v2583_v13 }
 0x543   : > { %1529 = vrot.lane.b32.xlu0 %v4953_v7, %s8109_s11 }
 0x545   : > { %v2486_v31 = vpop.permute.xlu0 %2485  ;;  %v2622_v35 = vpop.permute.xlu1 %2621 }
 0x546   : > { %v2496_v47 = vadd.f32 %v2486_v31, %v2471_v39  ;;  %v2633_v16 = vadd.f32 %v2622_v35, %v2608_v33 }
 0x547   : > { %1569 = vrot.lane.b32.xlu0 %v4953_v7, %s8110_s16 }
 0x549   : > { %v2511_v49 = vpop.permute.xlu0 %2510  ;;  %v2647_v44 = vpop.permute.xlu1 %2646 }
 0x54a   : > { %v2521_v53 = vadd.f32 %v2511_v49, %v2496_v47  ;;  %v2658_v52 = vadd.f32 %v2647_v44, %v2633_v16 }
 0x54b   : > { %1609 = vrot.lane.b32.xlu0 %v4953_v7, %s8111_s28 }
 0x54d   : > { %v2536_v28 = vpop.permute.xlu0 %2535  ;;  %v2672_v14 = vpop.permute.xlu1 %2671 }
 0x54e   : > { %v2546_v1 = vadd.f32 %v2536_v28, %v2521_v53  ;;  %v2683_v34 = vadd.f32 %v2672_v14, %v2658_v52 }
 0x54f   : > { %1649 = vrot.lane.b32.xlu0 %v4953_v7, %s8112_s17  ;;  %v2742_v7 = vmul.f32 %v6642_v12, %v6515_v10 }
 0x551   : > { %v2561_v8 = vpop.permute.xlu0 %2560  ;;  %v2697_v60 = vpop.permute.xlu1 %2696 }
 0x552   : > { %v2571_v0 = vadd.f32 %v2561_v8, %v2546_v1  ;;  %v2708_v13 = vadd.f32 %v2697_v60, %v2683_v34 }
 0x553   : > { %1044 = vrot.lane.b32.xlu0 %v4919_v27, %s5458_s14 }
 0x554   : > { %v2584_v21 = vadd.f32 %v2580_v59, %v2571_v0 }
 0x555   : > { %v2599_v46 = vpop.permute.xlu0 %2598  ;;  %v2722_v31 = vpop.permute.xlu1 %2721 }
 0x556   : > { %v2733_v35 = vadd.f32 %v2722_v31, %v2708_v13  ;;  %v2609_v33 = vadd.f32 %v2599_v46, %v2584_v21  ;;  %v2743_v46 = vmul.f32 %v6642_v12, %v6584_v32  ;;  %v6654_v31 = vstv %s5030_s7  ;;  %v4951_v32 = vld [vmem:[#allocation4 + $0x3] ss:$0 sm:$0xff]  ;;  %s5069_s7 = sld [smem:[#allocation12 + $0x58]] }
 0x557   : > { %1085 = vrot.lane.b32.xlu0 %v4919_v27, %s5459_s20 }
 0x558   : > { %v2746_v42 = vadd.f32 %v2742_v7, %v2733_v35 }
 0x559   : > { %v2624_v49 = vpop.permute.xlu0 %2623  ;;  %v2760_v44 = vpop.permute.xlu1 %2759 }
 0x55a   : > { %v2634_v14 = vadd.f32 %v2624_v49, %v2609_v33  ;;  %v2771_v16 = vadd.f32 %v2760_v44, %v2746_v42  ;;  %v5315_v44 = vld [vmem:[#allocation5 + $0x30] sm:$0xff] }
 0x55b   : > { %1125 = vrot.lane.b32.xlu0 %v4919_v27, %s5460_s8 }
 0x55d   : > { %v2649_v55 = vpop.permute.xlu0 %2648  ;;  %v2785_v39 = vpop.permute.xlu1 %2784 }
 0x55e   : > { %v2659_v10 = vadd.f32 %v2649_v55, %v2634_v14  ;;  %v2796_v1 = vadd.f32 %v2785_v39, %v2771_v16  ;;  %v2906_v55 = vmul.f32 %v5315_v44, %v6654_v31 }
 0x55f   : > { %1165 = vrot.lane.b32.xlu0 %v4919_v27, %s8108_s12 }
 0x561   : > { %v2674_v47 = vpop.permute.xlu0 %2673  ;;  %v2810_v28 = vpop.permute.xlu1 %2809 }
 0x562   : > { %v2684_v8 = vadd.f32 %v2674_v47, %v2659_v10  ;;  %v2821_v60 = vadd.f32 %v2810_v28, %v2796_v1  ;;  %v6664_v1 = vstv %s5037_s29  ;;  %s5065_s29 = sld [smem:[#allocation12 + $0x54]] }
 0x563   : > { %1205 = vrot.lane.b32.xlu0 %v4919_v27, %s8109_s11 }
 0x565   : > { %v2699_v53 = vpop.permute.xlu0 %2698  ;;  %v2835_v52 = vpop.permute.xlu1 %2834 }
 0x566   : > { %v2709_v34 = vadd.f32 %v2699_v53, %v2684_v8  ;;  %v2846_v13 = vadd.f32 %v2835_v52, %v2821_v60 }
 0x567   : > { %1245 = vrot.lane.b32.xlu0 %v4919_v27, %s8110_s16 }
 0x569   : > { %v2724_v0 = vpop.permute.xlu0 %2723  ;;  %v2860_v59 = vpop.permute.xlu1 %2859 }
 0x56a   : > { %v2734_v21 = vadd.f32 %v2724_v0, %v2709_v34  ;;  %v2871_v35 = vadd.f32 %v2860_v59, %v2846_v13 }
 0x56b   : > { %1285 = vrot.lane.b32.xlu0 %v4919_v27, %s8111_s28 }
 0x56c   : > { %v2747_v7 = vadd.f32 %v2743_v46, %v2734_v21 }
 0x56d   : > { %v2762_v42 = vpop.permute.xlu0 %2761  ;;  %v2885_v49 = vpop.permute.xlu1 %2884 }
 0x56e   : > { %v2896_v39 = vadd.f32 %v2885_v49, %v2871_v35  ;;  %v2772_v53 = vadd.f32 %v2762_v42, %v2747_v7  ;;  %v5317_v35 = vld [vmem:[#allocation5 + $0x38] sm:$0xff] }
 0x56f   : > { %1325 = vrot.lane.b32.xlu0 %v4919_v27, %s8112_s17  ;;  %v2907_v7 = vmul.f32 %v5317_v35, %v6654_v31 }
 0x570   : > { %v2910_v33 = vadd.f32 %v2906_v55, %v2896_v39 }
 0x571   : > { %v2787_v47 = vpop.permute.xlu0 %2786 }
 0x572   : > { %v2935_v28 = vadd.f32 %v6087_v5, %v2910_v33  ;;  %v2797_v60 = vadd.f32 %v2787_v47, %v2772_v53  ;;  %v5316_v5 = vld [vmem:[#allocation5 + $0x31] sm:$0xff] }
 0x573   : > { %1365 = vrot.lane.b32.xlu0 %v4951_v32, %s5458_s14  ;;  %v3069_v34 = vmul.f32 %v5316_v5, %v6664_v1  ;;  %s5044_s14 = sld [smem:[#allocation12 + $0x3f]] }
 0x574   : > { %v2960_v14 = vadd.f32 %v6098_v29, %v2935_v28  ;;  %v5318_v28 = vld [vmem:[#allocation5 + $0x32] sm:$0xff] }
 0x575   : > { %v2812_v16 = vpop.permute.xlu0 %2811 }
 0x576   : > { %v2985_v10 = vadd.f32 %v6108_v9, %v2960_v14  ;;  %v2822_v0 = vadd.f32 %v2812_v16, %v2797_v60 }
 0x577   : > { %1405 = vrot.lane.b32.xlu0 %v4951_v32, %s5459_s20  ;;  %s5051_s20 = sld [smem:[#allocation12 + $0x46]] }
 0x578   : > { %v3010_v52 = vadd.f32 %v6116_v30, %v2985_v10 }
 0x579   : > { %v2837_v27 = vpop.permute.xlu0 %2836 }
 0x57a   : > { %v3035_v8 = vadd.f32 %v6128_v24, %v3010_v52  ;;  %v2847_v13 = vadd.f32 %v2837_v27, %v2822_v0  ;;  %v8116_v0 = vld [vmem:[#allocation73_spill] sm:$0xff] }
 0x57b   : > { %1445 = vrot.lane.b32.xlu0 %v4951_v32, %s5460_s8  ;;  %s5058_s8 = sld [smem:[#allocation12 + $0x4d]] }
 0x57c   : > { %v3060_v29 = vadd.f32 %v6143_v22, %v3035_v8 }
 0x57d   : > { %v2862_v9 = vpop.permute.xlu0 %2861  ;;  %v6701_v60 = vstv %s5051_s20  ;;  %s5071_s20 = sld [smem:[#allocation12 + $0x5a]] }
 0x57e   : > { %v3073_v59 = vadd.f32 %v3069_v34, %v3060_v29  ;;  %v2872_v21 = vadd.f32 %v2862_v9, %v2847_v13  ;;  %8114 = vst [vmem:[#allocation123_spill] sm:$0xff] %v6701_v60 }
 0x57f   : > { %1485 = vrot.lane.b32.xlu0 %v4951_v32, %s8108_s12  ;;  %s8142_s12 = smov 122  }
 0x580   : > { %v3098_v30 = vadd.f32 %v6162_v56, %v3073_v59  ;;  %v6679_v56 = vstv %s5044_s14  ;;  %s5070_s14 = sld [smem:[#allocation12 + $0x59]] }
 0x581   : > { %v2887_v46 = vpop.permute.xlu0 %2886  ;;  %8113 = vst [vmem:[#allocation122_spill] sm:$0xff] %v6679_v56 }
 0x582   : > { %v3123_v24 = vadd.f32 %v6174_v6, %v3098_v30  ;;  %v2897_v42 = vadd.f32 %v2887_v46, %v2872_v21  ;;  %v8118_v30 = vld [vmem:[#allocation68_spill] sm:$0xff] }
 0x583   : > { %1525 = vrot.lane.b32.xlu0 %v4951_v32, %s8109_s11  ;;  %s5066_s11 = sld [smem:[#allocation12 + $0x55]] }
 0x584   : > { %v3148_v22 = vadd.f32 %v6186_v4, %v3123_v24  ;;  %v2911_v49 = vadd.f32 %v2907_v7, %v2897_v42  ;;  %v3232_v4 = vmul.f32 %v5318_v28, %v6679_v56  ;;  %v8120_v42 = vld [vmem:[#allocation70_spill] sm:$0xff] }
 0x585   : > { %v1049_v44 = vpop.permute.xlu0 %1048 }
 0x586   : > { %v3173_v55 = vadd.f32 %v6198_v43, %v3148_v22  ;;  %v2936_v39 = vadd.f32 %v6141_v19, %v2911_v49  ;;  %1058 = vst.msk [vmem:[#allocation5 + $0x4b] sm:$0x1] %vm1054_vm8, %v1049_v44  ;;  %v8121_v49 = vld [vmem:[#allocation19_spill] sm:$0xff] }
 0x587   : > { %1565 = vrot.lane.b32.xlu0 %v4951_v32, %s8110_s16  ;;  %s5067_s16 = sld [smem:[#allocation12 + $0x56]] }
 0x588   : > { %v3198_v6 = vadd.f32 %v6210_v50, %v3173_v55  ;;  %v2961_v33 = vadd.f32 %v6160_v51, %v2936_v39  ;;  %v8122_v39 = vld [vmem:[#allocation79_spill] sm:$0xff] }
 0x589   : > { %v1090_v47 = vpop.permute.xlu0 %1089 }
 0x58a   : > { %v3223_v14 = vadd.f32 %v6224_v57, %v3198_v6  ;;  %v2986_v43 = vadd.f32 %v6172_v15, %v2961_v33  ;;  %1098 = vst.msk [vmem:[#allocation5 + $0x4c] sm:$0x1] %vm1054_vm8, %v1090_v47  ;;  %v5319_v15 = vld [vmem:[#allocation5 + $0x39] sm:$0xff] }
 0x58b   : > { %1605 = vrot.lane.b32.xlu0 %v4951_v32, %s8111_s28  ;;  %v3070_v53 = vmul.f32 %v5319_v15, %v6664_v1  ;;  %v8123_v47 = vld [vmem:[#allocation72_spill] sm:$0xff]  ;;  %v8128_v15 = vld [vmem:[#allocation21_spill] sm:$0xff]  ;;  %s5068_s28 = sld [smem:[#allocation12 + $0x57]] }
 0x58c   : > { %v3236_v19 = vadd.f32 %v3232_v4, %v3223_v14  ;;  %v3011_v16 = vadd.f32 %v6184_v18, %v2986_v43  ;;  %v8124_v4 = vld [vmem:[#allocation20_spill] sm:$0xff]  ;;  %v8125_v43 = vld [vmem:[#allocation75_spill] sm:$0xff] }
 0x58d   : > { %v1130_v10 = vpop.permute.xlu0 %1129 }
 0x58e   : > { %v3261_v50 = vadd.f32 %v6238_v26, %v3236_v19  ;;  %v3036_v51 = vadd.f32 %v6196_v58, %v3011_v16  ;;  %1138 = vst.msk [vmem:[#allocation5 + $0x4d] sm:$0x1] %vm1054_vm8, %v1130_v10  ;;  %v8126_v16 = vld [vmem:[#allocation82_spill] sm:$0xff] }
 0x58f   : > { %1645 = vrot.lane.b32.xlu0 %v4951_v32, %s8112_s17  ;;  %s8137_s17 = smov 123  }
 0x590   : > { %v3286_v57 = vadd.f32 %v6250_v2, %v3261_v50  ;;  %v3061_v52 = vadd.f32 %v6208_v23, %v3036_v51  ;;  %v5320_v23 = vld [vmem:[#allocation5 + $0x33] sm:$0xff] }
 0x591   : > { %v1170_v27 = vpop.permute.xlu0 %1169  ;;  %v3395_v34 = vmul.f32 %v5320_v23, %v6701_v60  ;;  %v8127_v51 = vld [vmem:[#allocation78_spill] sm:$0xff] }
 0x592   : > { %v3311_v18 = vadd.f32 %v6262_v45, %v3286_v57  ;;  %v3074_v8 = vadd.f32 %v3070_v53, %v3061_v52  ;;  %1178 = vst.msk [vmem:[#allocation5 + $0x4e] sm:$0x1] %vm1054_vm8, %v1170_v27  ;;  %v8115_v45 = vld [vmem:[#allocation64_spill] sm:$0xff]  ;;  %v8129_v52 = vld [vmem:[#allocation85_spill] sm:$0xff] }
 0x594   : > { %v3099_v26 = vadd.f32 %v6222_v11, %v3074_v8  ;;  %v3336_v58 = vadd.f32 %v6274_v37, %v3311_v18  ;;  %v8117_v11 = vld [vmem:[#allocation66_spill] sm:$0xff]  ;;  %v8130_v18 = vld [vmem:[#allocation81_spill] sm:$0xff] }
 0x595   : > { %v1210_v32 = vpop.permute.xlu0 %1209 }
 0x596   : > { %v3124_v2 = vadd.f32 %v6236_v17, %v3099_v26  ;;  %1218 = vst.msk [vmem:[#allocation5 + $0x4f] sm:$0x1] %vm1054_vm8, %v1210_v32  ;;  %v3361_v5 = vadd.f32 %v6286_v63, %v3336_v58  ;;  %v8119_v17 = vld [vmem:[#allocation76_spill] sm:$0xff]  ;;  %v8131_v58 = vld [vmem:[#allocation22_spill] sm:$0xff] }
 0x597   : > { %v5321_v63 = vld [vmem:[#allocation5 + $0x3a] sm:$0xff] }
 0x598   : > { %v3149_v29 = vadd.f32 %v8115_v45, %v3124_v2  ;;  %v3386_v9 = vadd.f32 %v8116_v0, %v3361_v5  ;;  %v3233_v7 = vmul.f32 %v5321_v63, %v6679_v56  ;;  %v6733_v2 = vstv %s5058_s8  ;;  %v8133_v5 = vld [vmem:[#allocation88_spill] sm:$0xff]  ;;  %v8135_v0 = vld [vmem:[#allocation91_spill] sm:$0xff]  ;;  %s5073_s8 = sld [smem:[#allocation12 + $0x5c]] }
 0x599   : > { %v1250_v59 = vpop.permute.xlu0 %1249  ;;  %8132 = vst [vmem:[#allocation64_spill] sm:$0xff] %v6733_v2 }
 0x59a   : > { %v3174_v13 = vadd.f32 %v8117_v11, %v3149_v29  ;;  %1258 = vst.msk [vmem:[#allocation5 + $0x50] sm:$0x1] %vm1054_vm8, %v1250_v59  ;;  %v3399_v37 = vadd.f32 %v3395_v34, %v3386_v9  ;;  %v8134_v34 = vld [vmem:[#allocation84_spill] sm:$0xff]  ;;  %v5322_v59 = vld [vmem:[#allocation5 + $0x34] sm:$0xff] }
 0x59b   : > { %v3558_v11 = vmul.f32 %v5322_v59, %v6733_v2 }
 0x59c   : > { %v3199_v21 = vadd.f32 %v8118_v30, %v3174_v13  ;;  %v3424_v46 = vadd.f32 %v8119_v17, %v3399_v37  ;;  %v8136_v13 = vld [vmem:[#allocation23_spill] sm:$0xff] }
 0x59d   : > { %v1290_v24 = vpop.permute.xlu0 %1289  ;;  %v2903_v35 = vld [vmem:[#allocation5 + $0x48] sm:$0xff] }
 0x59e   : > { %v3224_v22 = vadd.f32 %v8120_v42, %v3199_v21  ;;  %1298 = vst.msk [vmem:[#allocation5 + $0x51] sm:$0x1] %vm1054_vm8, %v1290_v24  ;;  %v2917_v44 = vmul.f32 %v8121_v49, %v2903_v35  ;;  %v3449_v6 = vadd.f32 %v8122_v39, %v3424_v46  ;;  %v2942_v14 = vmul.f32 %v8124_v4, %v2903_v35  ;;  %v8138_v21 = vld [vmem:[#allocation87_spill] sm:$0xff]  ;;  %v8139_v24 = vld [vmem:[#allocation94_spill] sm:$0xff]  ;;  %v8141_v39 = vld [vmem:[#allocation97_spill] sm:$0xff] }
 0x59f   : > { %v2967_v53 = vmul.f32 %v8128_v15, %v2903_v35  ;;  %v2992_v32 = vmul.f32 %v8131_v58, %v2903_v35  ;;  %v3017_v37 = vmul.f32 %v8136_v13, %v2903_v35 }
 0x5a0   : > { %v3237_v55 = vadd.f32 %v3233_v7, %v3224_v22  ;;  %2927 = vrot.lane.b32.xlu1 %v2917_v44, %s5466_s5  ;;  %v3474_v10 = vadd.f32 %v8126_v16, %v3449_v6  ;;  %v5323_v7 = vld [vmem:[#allocation5 + $0x3b] sm:$0xff] }
 0x5a1   : > { %v1330_v33 = vpop.permute.xlu0 %1329  ;;  %v3396_v42 = vmul.f32 %v5323_v7, %v6701_v60  ;;  %v8140_v22 = vld [vmem:[#allocation24_spill] sm:$0xff]  ;;  %v8145_v16 = vld [vmem:[#allocation103_spill] sm:$0xff]  ;;  %v8156_v7 = vld [vmem:[#allocation105_spill] sm:$0xff] }
 0x5a2   : > { %v3262_v28 = vadd.f32 %v8123_v47, %v3237_v55  ;;  %1338 = vst.msk [vmem:[#allocation5 + $0x52] sm:$0x1] %vm1054_vm8, %v1330_v33  ;;  %v3499_v27 = vadd.f32 %v8129_v52, %v3474_v10  ;;  %v3042_v44 = vmul.f32 %v8140_v22, %v2903_v35  ;;  %v3066_v55 = vld [vmem:[#allocation5 + $0x49] sm:$0xff]  ;;  %v6756_v35 = vld [vmem:[#allocation5 + $0x35] sm:$0xff] }
 0x5a3   : > { %v8148_v52 = vld [vmem:[#allocation106_spill] sm:$0xff] }
 0x5a4   : > { %v3287_v19 = vadd.f32 %v8125_v43, %v3262_v28  ;;  %2952 = vrot.lane.b32.xlu1 %v2942_v14, %s5467_s18  ;;  %v3524_v23 = vadd.f32 %v8133_v5, %v3499_v27  ;;  %v8143_v28 = vld [vmem:[#allocation100_spill] sm:$0xff]  ;;  %v8144_v43 = vld [vmem:[#allocation25_spill] sm:$0xff] }
 0x5a5   : > { %v1370_v50 = vpop.permute.xlu0 %1369  ;;  %v8151_v5 = vld [vmem:[#allocation109_spill] sm:$0xff] }
 0x5a6   : > { %v3312_v57 = vadd.f32 %v8127_v51, %v3287_v19  ;;  %1378 = vst.msk [vmem:[#allocation5 + $0x53] sm:$0x1] %vm1054_vm8, %v1370_v50  ;;  %v3549_v9 = vadd.f32 %v8135_v0, %v3524_v23  ;;  %v3080_v19 = vmul.f32 %v8144_v43, %v3066_v55  ;;  %v8146_v50 = vld [vmem:[#allocation90_spill] sm:$0xff] }
 0x5a8   : > { %2977 = vrot.lane.b32.xlu1 %v2967_v53, %s5468_s19  ;;  %v3337_v8 = vadd.f32 %v8130_v18, %v3312_v57  ;;  %v3562_v30 = vadd.f32 %v3558_v11, %v3549_v9  ;;  %v6758_v57 = vstv %s5065_s29  ;;  %v8149_v18 = vld [vmem:[#allocation93_spill] sm:$0xff]  ;;  %v8153_v11 = vld [vmem:[#allocation99_spill] sm:$0xff]  ;;  %s5074_s29 = sld [smem:[#allocation12 + $0x5d]] }
 0x5a9   : > { %v1410_v26 = vpop.permute.xlu0 %1409  ;;  %8147 = vst [vmem:[#allocation73_spill] sm:$0xff] %v6758_v57 }
 0x5aa   : > { %1418 = vst.msk [vmem:[#allocation5 + $0x54] sm:$0x1] %vm1054_vm8, %v1410_v26  ;;  %v3362_v45 = vadd.f32 %v8134_v34, %v3337_v8  ;;  %v3587_v63 = vadd.f32 %v8139_v24, %v3562_v30  ;;  %v8150_v26 = vld [vmem:[#allocation26_spill] sm:$0xff]  ;;  %v3721_v34 = vmul.f32 %v6758_v57, %v6756_v35 }
 0x5ac   : > { %3002 = vrot.lane.b32.xlu1 %v2992_v32, %s5469_s13  ;;  %v3387_v17 = vadd.f32 %v8138_v21, %v3362_v45  ;;  %v3612_v6 = vadd.f32 %v8141_v39, %v3587_v63  ;;  %v3105_v32 = vmul.f32 %v8150_v26, %v3066_v55  ;;  %v8152_v45 = vld [vmem:[#allocation96_spill] sm:$0xff]  ;;  %v8154_v21 = vld [vmem:[#allocation27_spill] sm:$0xff] }
 0x5ad   : > { %v1450_v29 = vpop.permute.xlu0 %1449 }
 0x5ae   : > { %1458 = vst.msk [vmem:[#allocation5 + $0x55] sm:$0x1] %vm1054_vm8, %v1450_v29  ;;  %v3400_v33 = vadd.f32 %v3396_v42, %v3387_v17  ;;  %v3637_v14 = vadd.f32 %v8143_v28, %v3612_v6  ;;  %v3130_v17 = vmul.f32 %v8154_v21, %v3066_v55 }
 0x5b0   : > { %3027 = vrot.lane.b32.xlu1 %v3017_v37, %s8137_s17  ;;  %v3662_v10 = vadd.f32 %v8145_v16, %v3637_v14  ;;  %v3425_v51 = vadd.f32 %v8146_v50, %v3400_v33  ;;  %v8157_v33 = vld [vmem:[#allocation28_spill] sm:$0xff] }
 0x5b1   : > { %v1490_v46 = vpop.permute.xlu0 %1489  ;;  %v8158_v14 = vld [vmem:[#allocation108_spill] sm:$0xff] }
 0x5b2   : > { %1498 = vst.msk [vmem:[#allocation5 + $0x56] sm:$0x1] %vm1054_vm8, %v1490_v46  ;;  %v3687_v27 = vadd.f32 %v8148_v52, %v3662_v10  ;;  %v3450_v8 = vadd.f32 %v8149_v18, %v3425_v51  ;;  %v8155_v46 = vld [vmem:[#allocation102_spill] sm:$0xff]  ;;  %v8159_v10 = vld [vmem:[#allocation29_spill] sm:$0xff]  ;;  %v8160_v51 = vld [vmem:[#allocation111_spill] sm:$0xff] }
 0x5b3   : > { %v3180_v50 = vmul.f32 %v8159_v10, %v3066_v55 }
 0x5b4   : > { %3052 = vrot.lane.b32.xlu1 %v3042_v44, %s8142_s12  ;;  %v3712_v23 = vadd.f32 %v8151_v5, %v3687_v27  ;;  %v3475_v29 = vadd.f32 %v8152_v45, %v3450_v8  ;;  %v5324_v44 = vld [vmem:[#allocation5 + $0x3c] sm:$0xff]  ;;  %v8161_v27 = vld [vmem:[#allocation30_spill] sm:$0xff] }
 0x5b5   : > { %v1530_v47 = vpop.permute.xlu0 %1529  ;;  %v3559_v39 = vmul.f32 %v5324_v44, %v6733_v2  ;;  %v3205_v18 = vmul.f32 %v8161_v27, %v3066_v55  ;;  %v3229_v8 = vld [vmem:[#allocation5 + $0x4a] sm:$0xff] }
 0x5b6   : > { %1538 = vst.msk [vmem:[#allocation5 + $0x57] sm:$0x1] %vm1054_vm8, %v1530_v47  ;;  %v6769_v59 = vadd.f32 %v3721_v34, %v3712_v23  ;;  %v3500_v37 = vadd.f32 %v8153_v11, %v3475_v29  ;;  %v8163_v34 = vld [vmem:[#allocation31_spill] sm:$0xff]  ;;  %v8165_v11 = vld [vmem:[#allocation32_spill] sm:$0xff] }
 0x5b7   : > { %v3243_v45 = vmul.f32 %v8163_v34, %v3229_v8 }
 0x5b8   : > { %3090 = vrot.lane.b32.xlu1 %v3080_v19, %s5466_s5  ;;  %v3525_v24 = vadd.f32 %v8155_v46, %v3500_v37  ;;  %v3268_v37 = vmul.f32 %v8165_v11, %v3229_v8  ;;  %v8166_v46 = vld [vmem:[#allocation117_spill] sm:$0xff] }
 0x5b9   : > { %v1570_v53 = vpop.permute.xlu0 %1569 }
 0x5ba   : > { %1578 = vst.msk [vmem:[#allocation5 + $0x58] sm:$0x1] %vm1054_vm8, %v1570_v53  ;;  %v3550_v42 = vadd.f32 %v8156_v7, %v3525_v24 }
 0x5bc   : > { %3115 = vrot.lane.b32.xlu1 %v3105_v32, %s5467_s18  ;;  %v3563_v47 = vadd.f32 %v3559_v39, %v3550_v42  ;;  %v8162_v32 = vld [vmem:[#allocation114_spill] sm:$0xff] }
 0x5bd   : > { %v1610_v0 = vpop.permute.xlu0 %1609  ;;  %v2904_v9 = vld [vmem:[#allocation5 + $0x50] sm:$0xff] }
 0x5be   : > { %1618 = vst.msk [vmem:[#allocation5 + $0x59] sm:$0x1] %vm1054_vm8, %v1610_v0  ;;  %v2918_v30 = vmul.f32 %v8121_v49, %v2904_v9  ;;  %v2943_v6 = vmul.f32 %v8124_v4, %v2904_v9  ;;  %v3155_v49 = vmul.f32 %v8157_v33, %v3066_v55  ;;  %v3588_v19 = vadd.f32 %v8158_v14, %v3563_v47  ;;  %v8164_v55 = vld [vmem:[#allocation116_spill] sm:$0xff]  ;;  %v8170_v47 = vld [vmem:[#allocation34_spill] sm:$0xff] }
 0x5bf   : > { %v2968_v16 = vmul.f32 %v8128_v15, %v2904_v9  ;;  %v2993_v52 = vmul.f32 %v8131_v58, %v2904_v9  ;;  %v3018_v23 = vmul.f32 %v8136_v13, %v2904_v9  ;;  %v3043_v0 = vmul.f32 %v8140_v22, %v2904_v9  ;;  %v8168_v9 = vld [vmem:[#allocation33_spill] sm:$0xff] }
 0x5c0   : > { %2929 = vrot.lane.b32.xlu0 %v2918_v30, %s5466_s5  ;;  %3140 = vrot.lane.b32.xlu1 %v3130_v17, %s5468_s19  ;;  %v3613_v53 = vadd.f32 %v8160_v51, %v3588_v19  ;;  %v6807_v30 = vld [vmem:[#allocation5 + $0x3d] sm:$0xff]  ;;  %v3293_v44 = vmul.f32 %v8168_v9, %v3229_v8  ;;  %v8171_v19 = vld [vmem:[#allocation35_spill] sm:$0xff] }
 0x5c1   : > { %v1650_v63 = vpop.permute.xlu0 %1649  ;;  %v3067_v17 = vld [vmem:[#allocation5 + $0x51] sm:$0xff]  ;;  %v3722_v42 = vmul.f32 %v6758_v57, %v6807_v30 }
 0x5c2   : > { %1658 = vst.msk [vmem:[#allocation5 + $0x5a] sm:$0x1] %vm1054_vm8, %v1650_v63  ;;  %v3638_v5 = vadd.f32 %v8162_v32, %v3613_v53  ;;  %v8167_v63 = vld [vmem:[#allocation118_spill] sm:$0xff]  ;;  %v3081_v22 = vmul.f32 %v8144_v43, %v3067_v17  ;;  %v3131_v14 = vmul.f32 %v8154_v21, %v3067_v17  ;;  %v3181_v21 = vmul.f32 %v8159_v10, %v3067_v17 }
 0x5c3   : > { %v3392_v53 = vld [vmem:[#allocation5 + $0x4b] sm:$0xff] }
 0x5c4   : > { %2954 = vrot.lane.b32.xlu0 %v2943_v6, %s5467_s18  ;;  %3165 = vrot.lane.b32.xlu1 %v3155_v49, %s5469_s13  ;;  %v3663_v29 = vadd.f32 %v8164_v55, %v3638_v5  ;;  %v3106_v49 = vmul.f32 %v8150_v26, %v3067_v17  ;;  %v3156_v26 = vmul.f32 %v8157_v33, %v3067_v17 }
 0x5c5   : > { %v1045_v28 = vpop.permute.xlu0 %1044  ;;  %v3206_v33 = vmul.f32 %v8161_v27, %v3067_v17 }
 0x5c6   : > { %1056 = vst.msk [vmem:[#allocation5 + $0x1b] sm:$0x1] %vm1054_vm8, %v1045_v28  ;;  %v3688_v13 = vadd.f32 %v8166_v46, %v3663_v29  ;;  %v3318_v28 = vmul.f32 %v8170_v47, %v3229_v8  ;;  %v8177_v46 = vld [vmem:[#allocation41_spill] sm:$0xff] }
 0x5c8   : > { %2979 = vrot.lane.b32.xlu0 %v2968_v16, %s5468_s19  ;;  %3190 = vrot.lane.b32.xlu1 %v3180_v50, %s8137_s17  ;;  %v3713_v7 = vadd.f32 %v8167_v63, %v3688_v13  ;;  %v3343_v16 = vmul.f32 %v8171_v19, %v3229_v8  ;;  %v3506_v13 = vmul.f32 %v8177_v46, %v3392_v53  ;;  %v8178_v63 = vld [vmem:[#allocation42_spill] sm:$0xff] }
 0x5c9   : > { %v1086_v4 = vpop.permute.xlu0 %1085 }
 0x5ca   : > { %1096 = vst.msk [vmem:[#allocation5 + $0x1c] sm:$0x1] %vm1054_vm8, %v1086_v4  ;;  %v6818_v39 = vadd.f32 %v3722_v42, %v3713_v7  ;;  %v8172_v4 = vld [vmem:[#allocation36_spill] sm:$0xff]  ;;  %v3531_v7 = vmul.f32 %v8178_v63, %v3392_v53  ;;  %v6865_v42 = vld [vmem:[#allocation5 + $0x4c] sm:$0xff] }
 0x5cb   : > { %v3368_v51 = vmul.f32 %v8172_v4, %v3229_v8  ;;  %v8174_v8 = vld [vmem:[#allocation38_spill] sm:$0xff] }
 0x5cc   : > { %3004 = vrot.lane.b32.xlu0 %v2993_v52, %s5469_s13  ;;  %3215 = vrot.lane.b32.xlu1 %v3205_v18, %s8142_s12  ;;  %8169 = vst [vmem:[#allocation66_spill] sm:$0xff] %v6818_v39  ;;  %v8173_v18 = vld [vmem:[#allocation37_spill] sm:$0xff]  ;;  %v3431_v5 = vmul.f32 %v8174_v8, %v3392_v53 }
 0x5cd   : > { %v1126_v15 = vpop.permute.xlu0 %1125 }
 0x5ce   : > { %1136 = vst.msk [vmem:[#allocation5 + $0x1d] sm:$0x1] %vm1054_vm8, %v1126_v15  ;;  %v3406_v15 = vmul.f32 %v8173_v18, %v3392_v53 }
 0x5d0   : > { %3029 = vrot.lane.b32.xlu0 %v3018_v23, %s8137_s17  ;;  %3253 = vrot.lane.b32.xlu1 %v3243_v45, %s5466_s5  ;;  %v3230_v23 = vld [vmem:[#allocation5 + $0x52] sm:$0xff] }
 0x5d1   : > { %v1166_v58 = vpop.permute.xlu0 %1165  ;;  %v3244_v10 = vmul.f32 %v8163_v34, %v3230_v23  ;;  %v3269_v27 = vmul.f32 %v8165_v11, %v3230_v23  ;;  %v3294_v34 = vmul.f32 %v8168_v9, %v3230_v23  ;;  %v3319_v11 = vmul.f32 %v8170_v47, %v3230_v23 }
 0x5d2   : > { %1176 = vst.msk [vmem:[#allocation5 + $0x1e] sm:$0x1] %vm1054_vm8, %v1166_v58  ;;  %v8175_v58 = vld [vmem:[#allocation39_spill] sm:$0xff]  ;;  %v3344_v9 = vmul.f32 %v8171_v19, %v3230_v23  ;;  %v3369_v47 = vmul.f32 %v8172_v4, %v3230_v23  ;;  %v8182_v4 = vld [vmem:[#allocation46_spill] sm:$0xff] }
 0x5d3   : > { %v3456_v55 = vmul.f32 %v8175_v58, %v3392_v53 }
 0x5d4   : > { %3054 = vrot.lane.b32.xlu0 %v3043_v0, %s8142_s12  ;;  %3278 = vrot.lane.b32.xlu1 %v3268_v37, %s5467_s18  ;;  %v8176_v0 = vld [vmem:[#allocation40_spill] sm:$0xff] }
 0x5d5   : > { %v1206_v24 = vpop.permute.xlu0 %1205  ;;  %v3481_v37 = vmul.f32 %v8176_v0, %v3392_v53 }
 0x5d6   : > { %1216 = vst.msk [vmem:[#allocation5 + $0x1f] sm:$0x1] %vm1054_vm8, %v1206_v24 }
 0x5d8   : > { %3092 = vrot.lane.b32.xlu0 %v3081_v22, %s5466_s5  ;;  %3303 = vrot.lane.b32.xlu1 %v3293_v44, %s5468_s19  ;;  %v8179_v44 = vld [vmem:[#allocation43_spill] sm:$0xff] }
 0x5d9   : > { %v1246_v6 = vpop.permute.xlu0 %1245 }
 0x5da   : > { %1256 = vst.msk [vmem:[#allocation5 + $0x20] sm:$0x1] %vm1054_vm8, %v1246_v6  ;;  %v3569_v6 = vmul.f32 %v8179_v44, %v6865_v42 }
 0x5dc   : > { %3117 = vrot.lane.b32.xlu0 %v3106_v49, %s5467_s18  ;;  %3328 = vrot.lane.b32.xlu1 %v3318_v28, %s5469_s13  ;;  %v8180_v28 = vld [vmem:[#allocation44_spill] sm:$0xff] }
 0x5dd   : > { %v1286_v43 = vpop.permute.xlu0 %1285 }
 0x5de   : > { %1296 = vst.msk [vmem:[#allocation5 + $0x21] sm:$0x1] %vm1054_vm8, %v1286_v43  ;;  %v3594_v43 = vmul.f32 %v8180_v28, %v6865_v42 }
 0x5e0   : > { %3142 = vrot.lane.b32.xlu0 %v3131_v14, %s5468_s19  ;;  %3353 = vrot.lane.b32.xlu1 %v3343_v16, %s8137_s17  ;;  %v3393_v14 = vld [vmem:[#allocation5 + $0x53] sm:$0xff]  ;;  %v8181_v16 = vld [vmem:[#allocation45_spill] sm:$0xff] }
 0x5e1   : > { %v1326_v50 = vpop.permute.xlu0 %1325  ;;  %v3407_v19 = vmul.f32 %v8173_v18, %v3393_v14  ;;  %v3457_v53 = vmul.f32 %v8175_v58, %v3393_v14  ;;  %v6894_v18 = vld [vmem:[#allocation5 + $0x18] sm:$0xff]  ;;  %v3507_v23 = vmul.f32 %v8177_v46, %v3393_v14 }
 0x5e2   : > { %1336 = vst.msk [vmem:[#allocation5 + $0x22] sm:$0x1] %vm1054_vm8, %v1326_v50  ;;  %v3619_v50 = vmul.f32 %v8181_v16, %v6865_v42 }
 0x5e4   : > { %3167 = vrot.lane.b32.xlu0 %v3156_v26, %s5469_s13  ;;  %3378 = vrot.lane.b32.xlu1 %v3368_v51, %s8142_s12  ;;  %v3432_v26 = vmul.f32 %v8174_v8, %v3393_v14  ;;  %v3644_v51 = vmul.f32 %v8182_v4, %v6865_v42 }
 0x5e5   : > { %v1366_v52 = vpop.permute.xlu0 %1365 }
 0x5e6   : > { %1376 = vst.msk [vmem:[#allocation5 + $0x23] sm:$0x1] %vm1054_vm8, %v1366_v52  ;;  %v8183_v52 = vld [vmem:[#allocation47_spill] sm:$0xff] }
 0x5e8   : > { %3192 = vrot.lane.b32.xlu0 %v3181_v21, %s8137_s17  ;;  %3416 = vrot.lane.b32.xlu1 %v3406_v15, %s5466_s5  ;;  %v3669_v21 = vmul.f32 %v8183_v52, %v6865_v42 }
 0x5e9   : > { %v1406_v32 = vpop.permute.xlu0 %1405 }
 0x5ea   : > { %1416 = vst.msk [vmem:[#allocation5 + $0x24] sm:$0x1] %vm1054_vm8, %v1406_v32  ;;  %v3482_v32 = vmul.f32 %v8176_v0, %v3393_v14  ;;  %v6917_v0 = vld [vmem:[#allocation5 + $0x54] sm:$0xff] }
 0x5ec   : > { %3217 = vrot.lane.b32.xlu0 %v3206_v33, %s8142_s12  ;;  %3441 = vrot.lane.b32.xlu1 %v3431_v5, %s5467_s18  ;;  %v8184_v33 = vld [vmem:[#allocation49_spill] sm:$0xff] }
 0x5ed   : > { %v1446_v45 = vpop.permute.xlu0 %1445  ;;  %v1775_v8 = vmul.f32 %v8184_v33, %v6894_v18 }
 0x5ee   : > { %1456 = vst.msk [vmem:[#allocation5 + $0x25] sm:$0x1] %vm1054_vm8, %v1446_v45  ;;  %v8185_v45 = vld [vmem:[#allocation50_spill] sm:$0xff] }
 0x5f0   : > { %3255 = vrot.lane.b32.xlu0 %v3244_v10, %s5466_s5  ;;  %3466 = vrot.lane.b32.xlu1 %v3456_v55, %s5468_s19  ;;  %v1800_v10 = vmul.f32 %v8185_v45, %v6894_v18  ;;  %v3532_v55 = vmul.f32 %v8178_v63, %v3393_v14 }
 0x5f1   : > { %v1486_v29 = vpop.permute.xlu0 %1485 }
 0x5f2   : > { %1496 = vst.msk [vmem:[#allocation5 + $0x26] sm:$0x1] %vm1054_vm8, %v1486_v29  ;;  %v8186_v29 = vld [vmem:[#allocation51_spill] sm:$0xff] }
 0x5f4   : > { %3280 = vrot.lane.b32.xlu0 %v3269_v27, %s5467_s18  ;;  %3491 = vrot.lane.b32.xlu1 %v3481_v37, %s5469_s13  ;;  %v1825_v27 = vmul.f32 %v8186_v29, %v6894_v18 }
 0x5f5   : > { %v1526_v17 = vpop.permute.xlu0 %1525 }
 0x5f6   : > { %1536 = vst.msk [vmem:[#allocation5 + $0x27] sm:$0x1] %vm1054_vm8, %v1526_v17  ;;  %v3570_v17 = vmul.f32 %v8179_v44, %v6917_v0 }
 0x5f8   : > { %3305 = vrot.lane.b32.xlu0 %v3294_v34, %s5468_s19  ;;  %3516 = vrot.lane.b32.xlu1 %v3506_v13, %s8137_s17  ;;  %v8187_v34 = vld [vmem:[#allocation52_spill] sm:$0xff] }
 0x5f9   : > { %v1566_v24 = vpop.permute.xlu0 %1565  ;;  %v1850_v46 = vmul.f32 %v8187_v34, %v6894_v18 }
 0x5fa   : > { %1576 = vst.msk [vmem:[#allocation5 + $0x28] sm:$0x1] %vm1054_vm8, %v1566_v24  ;;  %v3595_v24 = vmul.f32 %v8180_v28, %v6917_v0  ;;  %v8190_v28 = vld [vmem:[#allocation55_spill] sm:$0xff] }
 0x5fc   : > { %3330 = vrot.lane.b32.xlu0 %v3319_v11, %s5469_s13  ;;  %3541 = vrot.lane.b32.xlu1 %v3531_v7, %s8142_s12  ;;  %v8188_v11 = vld [vmem:[#allocation53_spill] sm:$0xff] }
 0x5fd   : > { %v1606_v22 = vpop.permute.xlu0 %1605  ;;  %v1875_v63 = vmul.f32 %v8188_v11, %v6894_v18 }
 0x5fe   : > { %1616 = vst.msk [vmem:[#allocation5 + $0x29] sm:$0x1] %vm1054_vm8, %v1606_v22  ;;  %v3620_v22 = vmul.f32 %v8181_v16, %v6917_v0  ;;  %v8191_v16 = vld [vmem:[#allocation56_spill] sm:$0xff] }
 0x600   : > { %3355 = vrot.lane.b32.xlu0 %v3344_v9, %s8137_s17  ;;  %3579 = vrot.lane.b32.xlu1 %v3569_v6, %s5466_s5  ;;  %v8189_v9 = vld [vmem:[#allocation54_spill] sm:$0xff]  ;;  %v6943_v6 = vld [vmem:[#allocation5 + $0x19] sm:$0xff] }
 0x601   : > { %v1646_v49 = vpop.permute.xlu0 %1645  ;;  %v1900_v44 = vmul.f32 %v8189_v9, %v6894_v18 }
 0x602   : > { %1656 = vst.msk [vmem:[#allocation5 + $0x2a] sm:$0x1] %vm1054_vm8, %v1646_v49 }
 0x604   : > { %3380 = vrot.lane.b32.xlu0 %v3369_v47, %s8142_s12  ;;  %3604 = vrot.lane.b32.xlu1 %v3594_v43, %s5467_s18  ;;  %v3645_v47 = vmul.f32 %v8182_v4, %v6917_v0  ;;  %v1938_v43 = vmul.f32 %v8190_v28, %v6943_v6 }
 0x608   : > { %3418 = vrot.lane.b32.xlu0 %v3407_v19, %s5466_s5  ;;  %3629 = vrot.lane.b32.xlu1 %v3619_v50, %s5468_s19  ;;  %v3670_v19 = vmul.f32 %v8183_v52, %v6917_v0  ;;  %v1963_v50 = vmul.f32 %v8191_v16, %v6943_v6 }
 0x60c   : > { %3443 = vrot.lane.b32.xlu0 %v3432_v26, %s5467_s18  ;;  %3654 = vrot.lane.b32.xlu1 %v3644_v51, %s5469_s13  ;;  %v6961_v26 = vld [vmem:[#allocation5 + $0x20] sm:$0xff] }
 0x610   : > { %3468 = vrot.lane.b32.xlu0 %v3457_v53, %s5468_s19  ;;  %3679 = vrot.lane.b32.xlu1 %v3669_v21, %s8137_s17  ;;  %v1776_v53 = vmul.f32 %v8184_v33, %v6961_v26  ;;  %v8193_v21 = vld [vmem:[#allocation57_spill] sm:$0xff] }
 0x612   : > { %v6898_v15 = vpop.permute.xlu1 %2927 }
 0x614   : > { %3493 = vrot.lane.b32.xlu0 %v3482_v32, %s5469_s13  ;;  %1785 = vrot.lane.b32.xlu1 %v1775_v8, %s5466_s5  ;;  %v1988_v32 = vmul.f32 %v8193_v21, %v6943_v6 }
 0x616   : > { %v6905_v5 = vpop.permute.xlu1 %2952 }
 0x618   : > { %3518 = vrot.lane.b32.xlu0 %v3507_v23, %s8137_s17  ;;  %1810 = vrot.lane.b32.xlu1 %v1800_v10, %s5467_s18  ;;  %v1801_v23 = vmul.f32 %v8185_v45, %v6961_v26  ;;  %v8195_v10 = vld [vmem:[#allocation58_spill] sm:$0xff] }
 0x61a   : > { %v6912_v58 = vpop.permute.xlu1 %2977 }
 0x61c   : > { %3543 = vrot.lane.b32.xlu0 %v3532_v55, %s8142_s12  ;;  %1835 = vrot.lane.b32.xlu1 %v1825_v27, %s5468_s19  ;;  %v2013_v55 = vmul.f32 %v8195_v10, %v6943_v6 }
 0x61e   : > { %v6921_v37 = vpop.permute.xlu1 %3002 }
 0x620   : > { %3581 = vrot.lane.b32.xlu0 %v3570_v17, %s5466_s5  ;;  %1860 = vrot.lane.b32.xlu1 %v1850_v46, %s5469_s13  ;;  %v1826_v17 = vmul.f32 %v8186_v29, %v6961_v26  ;;  %v8198_v46 = vld [vmem:[#allocation59_spill] sm:$0xff] }
 0x622   : > { %v6929_v13 = vpop.permute.xlu1 %3027 }
 0x624   : > { %3606 = vrot.lane.b32.xlu0 %v3595_v24, %s5467_s18  ;;  %1885 = vrot.lane.b32.xlu1 %v1875_v63, %s8137_s17  ;;  %v2038_v24 = vmul.f32 %v8198_v46, %v6943_v6 }
 0x626   : > { %v6937_v7 = vpop.permute.xlu1 %3052 }
 0x628   : > { %3631 = vrot.lane.b32.xlu0 %v3620_v22, %s5468_s19  ;;  %1910 = vrot.lane.b32.xlu1 %v1900_v44, %s8142_s12  ;;  %v1851_v22 = vmul.f32 %v8187_v34, %v6961_v26  ;;  %v8201_v44 = vld [vmem:[#allocation60_spill] sm:$0xff] }
 0x62a   : > { %v6947_v49 = vpop.permute.xlu1 %3090 }
 0x62c   : > { %3656 = vrot.lane.b32.xlu0 %v3645_v47, %s5469_s13  ;;  %1948 = vrot.lane.b32.xlu1 %v1938_v43, %s5466_s5  ;;  %v2063_v47 = vmul.f32 %v8201_v44, %v6943_v6  ;;  %v7003_v43 = vld [vmem:[#allocation5 + $0x1a] sm:$0xff] }
 0x62e   : > { %v6955_v14 = vpop.permute.xlu1 %3115 }
 0x630   : > { %3681 = vrot.lane.b32.xlu0 %v3670_v19, %s8137_s17  ;;  %1973 = vrot.lane.b32.xlu1 %v1963_v50, %s5467_s18  ;;  %v1876_v50 = vmul.f32 %v8188_v11, %v6961_v26 }
 0x632   : > { %v6965_v4 = vpop.permute.xlu0 %2929  ;;  %v6967_v51 = vpop.permute.xlu1 %3140 }
 0x633   : > { %8192 = vst [vmem:[#allocation68_spill] sm:$0xff] %v6965_v4 }
 0x634   : > { %1787 = vrot.lane.b32.xlu0 %v1776_v53, %s5466_s5  ;;  %1998 = vrot.lane.b32.xlu1 %v1988_v32, %s5468_s19  ;;  %v8204_v53 = vld [vmem:[#allocation61_spill] sm:$0xff] }
 0x635   : > { %v2101_v32 = vmul.f32 %v8204_v53, %v7003_v43 }
 0x636   : > { %v6975_v52 = vpop.permute.xlu0 %2954  ;;  %v6977_v8 = vpop.permute.xlu1 %3165 }
 0x637   : > { %8194 = vst [vmem:[#allocation76_spill] sm:$0xff] %v6975_v52 }
 0x638   : > { %1812 = vrot.lane.b32.xlu0 %v1801_v23, %s5467_s18  ;;  %2023 = vrot.lane.b32.xlu1 %v2013_v55, %s5469_s13  ;;  %v1901_v55 = vmul.f32 %v8189_v9, %v6961_v26 }
 0x63a   : > { %v6985_v33 = vpop.permute.xlu0 %2979  ;;  %v6987_v27 = vpop.permute.xlu1 %3190 }
 0x63b   : > { %8196 = vst [vmem:[#allocation70_spill] sm:$0xff] %v6985_v33  ;;  %8197 = vst [vmem:[#allocation19_spill] sm:$0xff] %v6987_v27 }
 0x63c   : > { %1837 = vrot.lane.b32.xlu0 %v1826_v17, %s5468_s19  ;;  %2048 = vrot.lane.b32.xlu1 %v2038_v24, %s8137_s17  ;;  %v8207_v17 = vld [vmem:[#allocation62_spill] sm:$0xff] }
 0x63d   : > { %v2126_v24 = vmul.f32 %v8207_v17, %v7003_v43 }
 0x63e   : > { %v6995_v45 = vpop.permute.xlu0 %3004  ;;  %v6997_v63 = vpop.permute.xlu1 %3215 }
 0x63f   : > { %8199 = vst [vmem:[#allocation79_spill] sm:$0xff] %v6995_v45  ;;  %8200 = vst [vmem:[#allocation72_spill] sm:$0xff] %v6997_v63  ;;  %v7067_v45 = vld [vmem:[#allocation5 + $0x1b] sm:$0xff] }
 0x640   : > { %1862 = vrot.lane.b32.xlu0 %v1851_v22, %s5469_s13  ;;  %2073 = vrot.lane.b32.xlu1 %v2063_v47, %s8142_s12  ;;  %v7025_v22 = vld [vmem:[#allocation5 + $0x21] sm:$0xff] }
 0x642   : > { %v7007_v29 = vpop.permute.xlu0 %3029  ;;  %v7009_v19 = vpop.permute.xlu1 %3253 }
 0x643   : > { %8202 = vst [vmem:[#allocation20_spill] sm:$0xff] %v7007_v29  ;;  %8203 = vst [vmem:[#allocation75_spill] sm:$0xff] %v7009_v19  ;;  %v7214_v19 = vld [vmem:[#allocation5 + $0x24] sm:$0xff] }
 0x644   : > { %1887 = vrot.lane.b32.xlu0 %v1876_v50, %s8137_s17  ;;  %2111 = vrot.lane.b32.xlu1 %v2101_v32, %s5466_s5  ;;  %v1939_v50 = vmul.f32 %v8190_v28, %v7025_v22  ;;  %v8210_v32 = vld [vmem:[#allocation63_spill] sm:$0xff] }
 0x645   : > { %v2151_v57 = vmul.f32 %v8210_v32, %v7003_v43 }
 0x646   : > { %v7017_v34 = vpop.permute.xlu0 %3054  ;;  %v7019_v23 = vpop.permute.xlu1 %3278 }
 0x647   : > { %8205 = vst [vmem:[#allocation82_spill] sm:$0xff] %v7017_v34  ;;  %8206 = vst [vmem:[#allocation78_spill] sm:$0xff] %v7019_v23 }
 0x648   : > { %1912 = vrot.lane.b32.xlu0 %v1901_v55, %s8142_s12  ;;  %2136 = vrot.lane.b32.xlu1 %v2126_v24, %s5467_s18  ;;  %v1964_v55 = vmul.f32 %v8191_v16, %v7025_v22  ;;  %v8213_v24 = vld [vmem:[#allocation65_spill] sm:$0xff] }
 0x64a   : > { %v7029_v11 = vpop.permute.xlu0 %3092  ;;  %v7031_v47 = vpop.permute.xlu1 %3303 }
 0x64b   : > { %8208 = vst [vmem:[#allocation21_spill] sm:$0xff] %v7029_v11  ;;  %8209 = vst [vmem:[#allocation85_spill] sm:$0xff] %v7031_v47  ;;  %v2176_v11 = vmul.f32 %v8213_v24, %v7003_v43 }
 0x64c   : > { %1950 = vrot.lane.b32.xlu0 %v1939_v50, %s5466_s5  ;;  %2161 = vrot.lane.b32.xlu1 %v2151_v57, %s5468_s19  ;;  %v1989_v57 = vmul.f32 %v8193_v21, %v7025_v22  ;;  %v8216_v50 = vld [vmem:[#allocation67_spill] sm:$0xff] }
 0x64e   : > { %v7039_v9 = vpop.permute.xlu0 %3117  ;;  %v7041_v2 = vpop.permute.xlu1 %3328 }
 0x64f   : > { %8211 = vst [vmem:[#allocation81_spill] sm:$0xff] %v7039_v9  ;;  %8212 = vst [vmem:[#allocation22_spill] sm:$0xff] %v7041_v2  ;;  %v2201_v9 = vmul.f32 %v8216_v50, %v7003_v43 }
 0x650   : > { %1975 = vrot.lane.b32.xlu0 %v1964_v55, %s5467_s18  ;;  %2186 = vrot.lane.b32.xlu1 %v2176_v11, %s5469_s13  ;;  %v2014_v11 = vmul.f32 %v8195_v10, %v7025_v22  ;;  %v8219_v55 = vld [vmem:[#allocation69_spill] sm:$0xff] }
 0x652   : > { %v7049_v28 = vpop.permute.xlu0 %3142  ;;  %v7051_v34 = vpop.permute.xlu1 %3353 }
 0x653   : > { %8214 = vst [vmem:[#allocation88_spill] sm:$0xff] %v7049_v28  ;;  %8215 = vst [vmem:[#allocation84_spill] sm:$0xff] %v7051_v34  ;;  %v2226_v28 = vmul.f32 %v8219_v55, %v7003_v43 }
 0x654   : > { %2000 = vrot.lane.b32.xlu0 %v1989_v57, %s5468_s19  ;;  %2211 = vrot.lane.b32.xlu1 %v2201_v9, %s8137_s17  ;;  %v2039_v9 = vmul.f32 %v8198_v46, %v7025_v22 }
 0x656   : > { %v7059_v16 = vpop.permute.xlu0 %3167  ;;  %v7061_v29 = vpop.permute.xlu1 %3378 }
 0x657   : > { %8217 = vst [vmem:[#allocation91_spill] sm:$0xff] %v7059_v16  ;;  %8218 = vst [vmem:[#allocation23_spill] sm:$0xff] %v7061_v29  ;;  %v8222_v16 = vld [vmem:[#allocation71_spill] sm:$0xff] }
 0x658   : > { %2025 = vrot.lane.b32.xlu0 %v2014_v11, %s5469_s13  ;;  %2236 = vrot.lane.b32.xlu1 %v2226_v28, %s8142_s12  ;;  %v2264_v60 = vmul.f32 %v8222_v16, %v7067_v45  ;;  %v2064_v28 = vmul.f32 %v8201_v44, %v7025_v22  ;;  %v8225_v11 = vld [vmem:[#allocation74_spill] sm:$0xff] }
 0x65a   : > { %v7071_v21 = vpop.permute.xlu0 %3192  ;;  %v7073_v57 = vpop.permute.xlu1 %3416 }
 0x65b   : > { %8220 = vst [vmem:[#allocation87_spill] sm:$0xff] %v7071_v21  ;;  %8221 = vst [vmem:[#allocation94_spill] sm:$0xff] %v7073_v57  ;;  %v2289_v21 = vmul.f32 %v8225_v11, %v7067_v45  ;;  %v7089_v57 = vld [vmem:[#allocation5 + $0x22] sm:$0xff] }
 0x65c   : > { %2050 = vrot.lane.b32.xlu0 %v2039_v9, %s8137_s17  ;;  %2274 = vrot.lane.b32.xlu1 %v2264_v60, %s5466_s5  ;;  %v2102_v60 = vmul.f32 %v8204_v53, %v7089_v57 }
 0x65e   : > { %v7081_v10 = vpop.permute.xlu0 %3217  ;;  %v7083_v29 = vpop.permute.xlu1 %3441 }
 0x65f   : > { %8223 = vst [vmem:[#allocation24_spill] sm:$0xff] %v7081_v10  ;;  %8224 = vst [vmem:[#allocation97_spill] sm:$0xff] %v7083_v29  ;;  %v8228_v10 = vld [vmem:[#allocation77_spill] sm:$0xff] }
 0x660   : > { %2075 = vrot.lane.b32.xlu0 %v2064_v28, %s8142_s12  ;;  %2299 = vrot.lane.b32.xlu1 %v2289_v21, %s5467_s18  ;;  %v2314_v29 = vmul.f32 %v8228_v10, %v7067_v45  ;;  %v2127_v21 = vmul.f32 %v8207_v17, %v7089_v57  ;;  %v8231_v28 = vld [vmem:[#allocation80_spill] sm:$0xff] }
 0x662   : > { %v7093_v46 = vpop.permute.xlu0 %3255  ;;  %v7095_v9 = vpop.permute.xlu1 %3466 }
 0x663   : > { %8226 = vst [vmem:[#allocation100_spill] sm:$0xff] %v7093_v46  ;;  %8227 = vst [vmem:[#allocation25_spill] sm:$0xff] %v7095_v9  ;;  %v2339_v46 = vmul.f32 %v8231_v28, %v7067_v45 }
 0x664   : > { %2113 = vrot.lane.b32.xlu0 %v2102_v60, %s5466_s5  ;;  %2324 = vrot.lane.b32.xlu1 %v2314_v29, %s5468_s19  ;;  %v2152_v29 = vmul.f32 %v8210_v32, %v7089_v57  ;;  %v8234_v60 = vld [vmem:[#allocation83_spill] sm:$0xff] }
 0x666   : > { %v7103_v44 = vpop.permute.xlu0 %3280  ;;  %v7105_v39 = vpop.permute.xlu1 %3491 }
 0x667   : > { %8229 = vst [vmem:[#allocation103_spill] sm:$0xff] %v7103_v44  ;;  %8230 = vst [vmem:[#allocation90_spill] sm:$0xff] %v7105_v39  ;;  %v2364_v44 = vmul.f32 %v8234_v60, %v7067_v45 }
 0x668   : > { %2138 = vrot.lane.b32.xlu0 %v2127_v21, %s5467_s18  ;;  %2349 = vrot.lane.b32.xlu1 %v2339_v46, %s5469_s13  ;;  %v2177_v46 = vmul.f32 %v8213_v24, %v7089_v57  ;;  %v8237_v21 = vld [vmem:[#allocation86_spill] sm:$0xff] }
 0x66a   : > { %v7113_v53 = vpop.permute.xlu0 %3305  ;;  %v7115_v9 = vpop.permute.xlu1 %3516 }
 0x66b   : > { %8232 = vst [vmem:[#allocation106_spill] sm:$0xff] %v7113_v53  ;;  %8233 = vst [vmem:[#allocation93_spill] sm:$0xff] %v7115_v9  ;;  %v2389_v53 = vmul.f32 %v8237_v21, %v7067_v45  ;;  %v7131_v9 = vld [vmem:[#allocation5 + $0x1c] sm:$0xff] }
 0x66c   : > { %2163 = vrot.lane.b32.xlu0 %v2152_v29, %s5468_s19  ;;  %2374 = vrot.lane.b32.xlu1 %v2364_v44, %s8137_s17  ;;  %v2202_v44 = vmul.f32 %v8216_v50, %v7089_v57 }
 0x66e   : > { %v7123_v17 = vpop.permute.xlu0 %3330  ;;  %v7125_v39 = vpop.permute.xlu1 %3541 }
 0x66f   : > { %8235 = vst [vmem:[#allocation26_spill] sm:$0xff] %v7123_v17  ;;  %8236 = vst [vmem:[#allocation109_spill] sm:$0xff] %v7125_v39  ;;  %v8240_v17 = vld [vmem:[#allocation89_spill] sm:$0xff] }
 0x670   : > { %2188 = vrot.lane.b32.xlu0 %v2177_v46, %s5469_s13  ;;  %2399 = vrot.lane.b32.xlu1 %v2389_v53, %s8142_s12  ;;  %v2427_v39 = vmul.f32 %v8240_v17, %v7131_v9  ;;  %v2227_v53 = vmul.f32 %v8219_v55, %v7089_v57  ;;  %v8243_v46 = vld [vmem:[#allocation92_spill] sm:$0xff] }
 0x672   : > { %v7135_v32 = vpop.permute.xlu0 %3355  ;;  %v7137_v29 = vpop.permute.xlu1 %3579 }
 0x673   : > { %8238 = vst [vmem:[#allocation96_spill] sm:$0xff] %v7135_v32  ;;  %8239 = vst [vmem:[#allocation99_spill] sm:$0xff] %v7137_v29  ;;  %v2452_v32 = vmul.f32 %v8243_v46, %v7131_v9  ;;  %v7153_v29 = vld [vmem:[#allocation5 + $0x23] sm:$0xff] }
 0x674   : > { %2213 = vrot.lane.b32.xlu0 %v2202_v44, %s8137_s17  ;;  %2437 = vrot.lane.b32.xlu1 %v2427_v39, %s5466_s5  ;;  %v2265_v39 = vmul.f32 %v8222_v16, %v7153_v29 }
 0x676   : > { %v7145_v24 = vpop.permute.xlu0 %3380  ;;  %v7147_v33 = vpop.permute.xlu1 %3604 }
 0x677   : > { %8241 = vst [vmem:[#allocation27_spill] sm:$0xff] %v7145_v24  ;;  %8242 = vst [vmem:[#allocation102_spill] sm:$0xff] %v7147_v33  ;;  %v8246_v24 = vld [vmem:[#allocation95_spill] sm:$0xff] }
 0x678   : > { %2238 = vrot.lane.b32.xlu0 %v2227_v53, %s8142_s12  ;;  %2462 = vrot.lane.b32.xlu1 %v2452_v32, %s5467_s18  ;;  %v2477_v33 = vmul.f32 %v8246_v24, %v7131_v9  ;;  %v2290_v32 = vmul.f32 %v8225_v11, %v7153_v29  ;;  %v8249_v53 = vld [vmem:[#allocation98_spill] sm:$0xff] }
 0x67a   : > { %v7157_v50 = vpop.permute.xlu0 %3418  ;;  %v7159_v44 = vpop.permute.xlu1 %3629 }
 0x67b   : > { %8244 = vst [vmem:[#allocation105_spill] sm:$0xff] %v7157_v50  ;;  %8245 = vst [vmem:[#allocation28_spill] sm:$0xff] %v7159_v44  ;;  %v2502_v50 = vmul.f32 %v8249_v53, %v7131_v9 }
 0x67c   : > { %2276 = vrot.lane.b32.xlu0 %v2265_v39, %s5466_s5  ;;  %2487 = vrot.lane.b32.xlu1 %v2477_v33, %s5468_s19  ;;  %v2315_v33 = vmul.f32 %v8228_v10, %v7153_v29  ;;  %v8252_v39 = vld [vmem:[#allocation101_spill] sm:$0xff] }
 0x67e   : > { %v7167_v55 = vpop.permute.xlu0 %3443  ;;  %v7169_v34 = vpop.permute.xlu1 %3654 }
 0x67f   : > { %8247 = vst [vmem:[#allocation108_spill] sm:$0xff] %v7167_v55  ;;  %8248 = vst [vmem:[#allocation29_spill] sm:$0xff] %v7169_v34  ;;  %v2527_v55 = vmul.f32 %v8252_v39, %v7131_v9 }
 0x680   : > { %2301 = vrot.lane.b32.xlu0 %v2290_v32, %s5467_s18  ;;  %2512 = vrot.lane.b32.xlu1 %v2502_v50, %s5469_s13  ;;  %v2340_v50 = vmul.f32 %v8231_v28, %v7153_v29  ;;  %v8254_v32 = vld [vmem:[#allocation104_spill] sm:$0xff]  ;;  %v8257_v28 = vld [vmem:[#allocation113_spill] sm:$0xff] }
 0x681   : > { %v1766_v2 = vmul.f32 %v8257_v28, %v6894_v18 }
 0x682   : > { %v7177_v16 = vpop.permute.xlu0 %3468  ;;  %v7179_v44 = vpop.permute.xlu1 %3679 }
 0x683   : > { %8250 = vst [vmem:[#allocation111_spill] sm:$0xff] %v7177_v16  ;;  %8251 = vst [vmem:[#allocation30_spill] sm:$0xff] %v7179_v44  ;;  %v2552_v16 = vmul.f32 %v8254_v32, %v7131_v9  ;;  %v7193_v44 = vld [vmem:[#allocation5 + $0x1d] sm:$0xff] }
 0x684   : > { %2326 = vrot.lane.b32.xlu0 %v2315_v33, %s5468_s19  ;;  %2537 = vrot.lane.b32.xlu1 %v2527_v55, %s8137_s17  ;;  %v2365_v55 = vmul.f32 %v8234_v60, %v7153_v29  ;;  %v8260_v60 = vld [vmem:[#allocation115_spill] sm:$0xff] }
 0x685   : > { %v1770_v23 = vadd.f32 %v1766_v2, %v8260_v60 }
 0x686   : > { %v7187_v11 = vpop.permute.xlu0 %3493  ;;  %v1786_v34 = vpop.permute.xlu1 %1785 }
 0x687   : > { %8253 = vst [vmem:[#allocation114_spill] sm:$0xff] %v7187_v11  ;;  %v8256_v11 = vld [vmem:[#allocation107_spill] sm:$0xff]  ;;  %v1795_v18 = vadd.f32 %v1786_v34, %v1770_v23  ;;  %v2453_v34 = vmul.f32 %v8243_v46, %v7214_v19  ;;  %v2665_v23 = vmul.f32 %v6480_v61, %v7193_v44  ;;  %v1929_v46 = vmul.f32 %v6520_v41, %v6943_v6 }
 0x688   : > { %2351 = vrot.lane.b32.xlu0 %v2340_v50, %s5469_s13  ;;  %2562 = vrot.lane.b32.xlu1 %v2552_v16, %s8142_s12  ;;  %v2590_v52 = vmul.f32 %v8256_v11, %v7193_v44  ;;  %v2390_v16 = vmul.f32 %v8237_v21, %v7153_v29  ;;  %v8261_v21 = vld [vmem:[#allocation112_spill] sm:$0xff] }
 0x689   : > { %v2640_v63 = vmul.f32 %v8261_v21, %v7193_v44 }
 0x68a   : > { %v7197_v10 = vpop.permute.xlu0 %3518  ;;  %v1811_v33 = vpop.permute.xlu1 %1810 }
 0x68b   : > { %8255 = vst [vmem:[#allocation31_spill] sm:$0xff] %v7197_v10  ;;  %v8259_v10 = vld [vmem:[#allocation110_spill] sm:$0xff]  ;;  %v1820_v56 = vadd.f32 %v1811_v33, %v1795_v18 }
 0x68c   : > { %2376 = vrot.lane.b32.xlu0 %v2365_v55, %s8137_s17  ;;  %2600 = vrot.lane.b32.xlu1 %v2590_v52, %s5466_s5  ;;  %v2615_v47 = vmul.f32 %v8259_v10, %v7193_v44 }
 0x68e   : > { %v7207_v4 = vpop.permute.xlu0 %3543  ;;  %v1836_v50 = vpop.permute.xlu1 %1835 }
 0x68f   : > { %8258 = vst [vmem:[#allocation116_spill] sm:$0xff] %v7207_v4  ;;  %v2428_v4 = vmul.f32 %v8240_v17, %v7214_v19  ;;  %v1845_v2 = vadd.f32 %v1836_v50, %v1820_v56  ;;  %v2478_v56 = vmul.f32 %v8246_v24, %v7214_v19  ;;  %v2715_v24 = vmul.f32 %v6505_v25, %v7193_v44 }
 0x690   : > { %2401 = vrot.lane.b32.xlu0 %v2390_v16, %s8142_s12  ;;  %2625 = vrot.lane.b32.xlu1 %v2615_v47, %s5467_s18 }
 0x692   : > { %v7218_v55 = vpop.permute.xlu0 %3581  ;;  %v1861_v52 = vpop.permute.xlu1 %1860 }
 0x693   : > { %v1870_v47 = vadd.f32 %v1861_v52, %v1845_v2 }
 0x694   : > { %2439 = vrot.lane.b32.xlu0 %v2428_v4, %s5466_s5  ;;  %2650 = vrot.lane.b32.xlu1 %v2640_v63, %s5468_s19  ;;  %v2690_v63 = vmul.f32 %v6494_v3, %v7193_v44 }
 0x696   : > { %v7226_v27 = vpop.permute.xlu0 %3606  ;;  %v1886_v16 = vpop.permute.xlu1 %1885 }
 0x697   : > { %8262 = vst [vmem:[#allocation32_spill] sm:$0xff] %v7226_v27  ;;  %v1895_v17 = vadd.f32 %v1886_v16, %v1870_v47  ;;  %v2503_v16 = vmul.f32 %v8249_v53, %v7214_v19  ;;  %v2528_v47 = vmul.f32 %v8252_v39, %v7214_v19 }
 0x698   : > { %2464 = vrot.lane.b32.xlu0 %v2453_v34, %s5467_s18  ;;  %2675 = vrot.lane.b32.xlu1 %v2665_v23, %s5469_s13  ;;  %v7250_v34 = vld [vmem:[#allocation5 + $0x1e] sm:$0xff] }
 0x69a   : > { %v7234_v33 = vpop.permute.xlu0 %3631  ;;  %v1911_v4 = vpop.permute.xlu1 %1910 }
 0x69b   : > { %8263 = vst [vmem:[#allocation117_spill] sm:$0xff] %v7234_v33  ;;  %v1920_v50 = vadd.f32 %v1911_v4, %v1895_v17  ;;  %v8266_v17 = vld [vmem:[#allocation119_spill] sm:$0xff] }
 0x69c   : > { %2489 = vrot.lane.b32.xlu0 %v2478_v56, %s5468_s19  ;;  %2700 = vrot.lane.b32.xlu1 %v2690_v63, %s8137_s17  ;;  %v2753_v4 = vmul.f32 %v8266_v17, %v7250_v34  ;;  %v2553_v63 = vmul.f32 %v8254_v32, %v7214_v19  ;;  %v1767_v32 = vmul.f32 %v8257_v28, %v6961_v26 }
 0x69d   : > { %v1933_v18 = vadd.f32 %v1929_v46, %v1920_v50  ;;  %v8267_v46 = vld [vmem:[#allocation120_spill] sm:$0xff] }
 0x69e   : > { %v7244_v52 = vpop.permute.xlu0 %3656  ;;  %v1949_v2 = vpop.permute.xlu1 %1948  ;;  %v2778_v50 = vmul.f32 %v8267_v46, %v7250_v34 }
 0x69f   : > { %8264 = vst [vmem:[#allocation118_spill] sm:$0xff] %v7244_v52  ;;  %v1958_v39 = vadd.f32 %v1949_v2, %v1933_v18  ;;  %v1771_v2 = vadd.f32 %v1767_v32, %v8260_v60  ;;  %v8268_v32 = vld [vmem:[#allocation121_spill] sm:$0xff] }
 0x6a0   : > { %2514 = vrot.lane.b32.xlu0 %v2503_v16, %s5469_s13  ;;  %2725 = vrot.lane.b32.xlu1 %v2715_v24, %s8142_s12  ;;  %v7266_v16 = vld [vmem:[#allocation5 + $0x25] sm:$0xff] }
 0x6a1   : > { %v2616_v18 = vmul.f32 %v8259_v10, %v7266_v16  ;;  %v2853_v10 = vmul.f32 %v6558_v20, %v7250_v34 }
 0x6a2   : > { %v7254_v6 = vpop.permute.xlu0 %3681  ;;  %v1974_v23 = vpop.permute.xlu1 %1973 }
 0x6a3   : > { %8265 = vst [vmem:[#allocation33_spill] sm:$0xff] %v7254_v6  ;;  %v1983_v52 = vadd.f32 %v1974_v23, %v1958_v39 }
 0x6a4   : > { %2539 = vrot.lane.b32.xlu0 %v2528_v47, %s8137_s17  ;;  %2763 = vrot.lane.b32.xlu1 %v2753_v4, %s5466_s5  ;;  %v2591_v47 = vmul.f32 %v8256_v11, %v7266_v16  ;;  %v2803_v4 = vmul.f32 %v6539_v40, %v7250_v34  ;;  %v2828_v11 = vmul.f32 %v6549_v48, %v7250_v34 }
 0x6a6   : > { %v1788_v53 = vpop.permute.xlu0 %1787  ;;  %v1999_v56 = vpop.permute.xlu1 %1998 }
 0x6a7   : > { %v1796_v26 = vadd.f32 %v1788_v53, %v1771_v2 }
 0x6a8   : > { %2564 = vrot.lane.b32.xlu0 %v2553_v63, %s8142_s12  ;;  %2788 = vrot.lane.b32.xlu1 %v2778_v50, %s5467_s18  ;;  %v2008_v63 = vadd.f32 %v1999_v56, %v1983_v52  ;;  %v2641_v52 = vmul.f32 %v8261_v21, %v7266_v16  ;;  %v2666_v21 = vmul.f32 %v6480_v61, %v7266_v16 }
 0x6a9   : > { %v1930_v61 = vmul.f32 %v6520_v41, %v7025_v22  ;;  %v7315_v41 = vld [vmem:[#allocation5 + $0x4d] sm:$0xff] }
 0x6aa   : > { %v1813_v24 = vpop.permute.xlu0 %1812  ;;  %v2024_v6 = vpop.permute.xlu1 %2023 }
 0x6ab   : > { %v2033_v27 = vadd.f32 %v2024_v6, %v2008_v63  ;;  %v1821_v56 = vadd.f32 %v1813_v24, %v1796_v26  ;;  %v2878_v63 = vmul.f32 %v8268_v32, %v7250_v34 }
 0x6ac   : > { %2602 = vrot.lane.b32.xlu0 %v2591_v47, %s5466_s5  ;;  %2813 = vrot.lane.b32.xlu1 %v2803_v4, %s5468_s19  ;;  %v2092_v47 = vmul.f32 %v6578_v36, %v7003_v43 }
 0x6ae   : > { %v1838_v33 = vpop.permute.xlu0 %1837  ;;  %v2049_v50 = vpop.permute.xlu1 %2048 }
 0x6af   : > { %v2058_v28 = vadd.f32 %v2049_v50, %v2033_v27  ;;  %v1846_v6 = vadd.f32 %v1838_v33, %v1821_v56  ;;  %v2691_v33 = vmul.f32 %v6494_v3, %v7266_v16  ;;  %v2716_v3 = vmul.f32 %v6505_v25, %v7266_v16 }
 0x6b0   : > { %2627 = vrot.lane.b32.xlu0 %v2616_v18, %s5467_s18  ;;  %2838 = vrot.lane.b32.xlu1 %v2828_v11, %s5469_s13  ;;  %v8269_v11 = vld [vmem:[#allocation48_spill] sm:$0xff] }
 0x6b1   : > { %v3694_v2 = vmul.f32 %v8269_v11, %v6865_v42 }
 0x6b2   : > { %v1863_v23 = vpop.permute.xlu0 %1862  ;;  %v2074_v39 = vpop.permute.xlu1 %2073 }
 0x6b3   : > { %v2083_v60 = vadd.f32 %v2074_v39, %v2058_v28  ;;  %v1871_v24 = vadd.f32 %v1863_v23, %v1846_v6  ;;  %v7305_v28 = vstv %s5066_s11  ;;  %s5075_s11 = sld [smem:[#allocation12 + $0x5e]] }
 0x6b4   : > { %2652 = vrot.lane.b32.xlu0 %v2641_v52, %s5468_s19  ;;  %2863 = vrot.lane.b32.xlu1 %v2853_v10, %s8137_s17  ;;  %v3730_v42 = vmul.f32 %v7305_v28, %v6756_v35  ;;  %v7313_v10 = vld [vmem:[#allocation5 + $0x26] sm:$0xff]  ;;  %v3732_v25 = vmul.f32 %v7305_v28, %v7315_v41 }
 0x6b5   : > { %v2096_v27 = vadd.f32 %v2092_v47, %v2083_v60  ;;  %v2754_v60 = vmul.f32 %v8266_v17, %v7313_v10 }
 0x6b6   : > { %v1888_v53 = vpop.permute.xlu0 %1887  ;;  %v2112_v4 = vpop.permute.xlu1 %2111 }
 0x6b7   : > { %v1896_v43 = vadd.f32 %v1888_v53, %v1871_v24  ;;  %v2121_v22 = vadd.f32 %v2112_v4, %v2096_v27  ;;  %v7323_v53 = vstv %s5067_s16  ;;  %v2779_v27 = vmul.f32 %v8267_v46, %v7313_v10  ;;  %s5076_s16 = sld [smem:[#allocation12 + $0x5f]] }
 0x6b8   : > { %2677 = vrot.lane.b32.xlu0 %v2666_v21, %s5469_s13  ;;  %2888 = vrot.lane.b32.xlu1 %v2878_v63, %s8142_s12  ;;  %v3755_v17 = vmul.f32 %v7323_v53, %v6756_v35  ;;  %v2255_v46 = vmul.f32 %v6604_v54, %v7067_v45 }
 0x6ba   : > { %v1913_v50 = vpop.permute.xlu0 %1912  ;;  %v2137_v18 = vpop.permute.xlu1 %2136 }
 0x6bb   : > { %v1921_v26 = vadd.f32 %v1913_v50, %v1896_v43  ;;  %v2146_v6 = vadd.f32 %v2137_v18, %v2121_v22 }
 0x6bc   : > { %2702 = vrot.lane.b32.xlu0 %v2691_v33, %s8137_s17  ;;  %3704 = vrot.lane.b32.xlu1 %v3694_v2, %s8142_s12  ;;  %v2804_v2 = vmul.f32 %v6539_v40, %v7313_v10  ;;  %v2829_v40 = vmul.f32 %v6549_v48, %v7313_v10  ;;  %v2093_v48 = vmul.f32 %v6578_v36, %v7089_v57 }
 0x6bd   : > { %v1934_v23 = vadd.f32 %v1930_v61, %v1921_v26  ;;  %v3757_v61 = vmul.f32 %v7323_v53, %v7315_v41 }
 0x6be   : > { %v1951_v39 = vpop.permute.xlu0 %1950  ;;  %v2162_v52 = vpop.permute.xlu1 %2161 }
 0x6bf   : > { %v2171_v21 = vadd.f32 %v2162_v52, %v2146_v6  ;;  %v1959_v43 = vadd.f32 %v1951_v39, %v1934_v23  ;;  %v2854_v6 = vmul.f32 %v6558_v20, %v7313_v10  ;;  %v2879_v20 = vmul.f32 %v8268_v32, %v7313_v10 }
 0x6c0   : > { %2727 = vrot.lane.b32.xlu0 %v2716_v3, %s8142_s12  ;;  %3738 = vrot.lane.b32.xlu1 %v3730_v42, %s5466_s5  ;;  %v7339_v3 = vstv %s5068_s28  ;;  %s5077_s28 = sld [smem:[#allocation12 + $0x60]] }
 0x6c2   : > { %v1976_v56 = vpop.permute.xlu0 %1975  ;;  %v2187_v47 = vpop.permute.xlu1 %2186 }
 0x6c3   : > { %v2196_v4 = vadd.f32 %v2187_v47, %v2171_v21  ;;  %v1984_v26 = vadd.f32 %v1976_v56, %v1959_v43  ;;  %v3780_v56 = vmul.f32 %v7339_v3, %v6756_v35  ;;  %v3782_v21 = vmul.f32 %v7339_v3, %v7315_v41 }
 0x6c4   : > { %2765 = vrot.lane.b32.xlu0 %v2754_v60, %s5466_s5  ;;  %3742 = vrot.lane.b32.xlu1 %v3732_v25, %s5466_s5 }
 0x6c6   : > { %v2001_v63 = vpop.permute.xlu0 %2000  ;;  %v2212_v24 = vpop.permute.xlu1 %2211 }
 0x6c7   : > { %v2221_v50 = vadd.f32 %v2212_v24, %v2196_v4  ;;  %v2009_v23 = vadd.f32 %v2001_v63, %v1984_v26  ;;  %v7355_v24 = vstv %s5069_s7  ;;  %s5078_s7 = sld [smem:[#allocation12 + $0x61]] }
 0x6c8   : > { %2790 = vrot.lane.b32.xlu0 %v2779_v27, %s5467_s18  ;;  %3763 = vrot.lane.b32.xlu1 %v3755_v17, %s5467_s18  ;;  %v3805_v43 = vmul.f32 %v7355_v24, %v6756_v35 }
 0x6ca   : > { %v2026_v18 = vpop.permute.xlu0 %2025  ;;  %v2237_v33 = vpop.permute.xlu1 %2236 }
 0x6cb   : > { %v2246_v52 = vadd.f32 %v2237_v33, %v2221_v50  ;;  %v2034_v47 = vadd.f32 %v2026_v18, %v2009_v23  ;;  %v3695_v18 = vmul.f32 %v8269_v11, %v6917_v0  ;;  %v3807_v33 = vmul.f32 %v7355_v24, %v7315_v41  ;;  %v7376_v23 = vld [vmem:[#allocation5 + $0x55] sm:$0xff] }
 0x6cc   : > { %2815 = vrot.lane.b32.xlu0 %v2804_v2, %s5468_s19  ;;  %3767 = vrot.lane.b32.xlu1 %v3757_v61, %s5467_s18  ;;  %v7369_v61 = vstv %s5070_s14  ;;  %s5477_s14 = smov 96  }
 0x6cd   : > { %v2259_v39 = vadd.f32 %v2255_v46, %v2246_v52  ;;  %v3731_v46 = vmul.f32 %v7305_v28, %v6807_v30  ;;  %v5325_v52 = vld [vmem:[#allocation5 + $0x35] sm:$0xff] }
 0x6ce   : > { %v2051_v42 = vpop.permute.xlu0 %2050  ;;  %v2275_v22 = vpop.permute.xlu1 %2274  ;;  %v3830_v0 = vmul.f32 %v5325_v52, %v7369_v61 }
 0x6cf   : > { %v2059_v45 = vadd.f32 %v2051_v42, %v2034_v47  ;;  %v2284_v36 = vadd.f32 %v2275_v22, %v2259_v39  ;;  %v3832_v47 = vmul.f32 %v7369_v61, %v7315_v41 }
 0x6d0   : > { %2840 = vrot.lane.b32.xlu0 %v2829_v40, %s5469_s13  ;;  %3788 = vrot.lane.b32.xlu1 %v3780_v56, %s5468_s19  ;;  %v3733_v56 = vmul.f32 %v7305_v28, %v7376_v23  ;;  %v3756_v28 = vmul.f32 %v7323_v53, %v6807_v30 }
 0x6d2   : > { %v2076_v60 = vpop.permute.xlu0 %2075  ;;  %v2300_v25 = vpop.permute.xlu1 %2299 }
 0x6d3   : > { %v2084_v63 = vadd.f32 %v2076_v60, %v2059_v45  ;;  %v2309_v2 = vadd.f32 %v2300_v25, %v2284_v36  ;;  %v2418_v60 = vmul.f32 %v6618_v62, %v7131_v9  ;;  %v3758_v36 = vmul.f32 %v7323_v53, %v7376_v23  ;;  %v5326_v53 = vld [vmem:[#allocation5 + $0x3d] sm:$0xff] }
 0x6d4   : > { %2865 = vrot.lane.b32.xlu0 %v2854_v6, %s8137_s17  ;;  %3792 = vrot.lane.b32.xlu1 %v3782_v21, %s5468_s19  ;;  %v7386_v6 = vstv %s5071_s20  ;;  %s5478_s20 = smov 112  }
 0x6d5   : > { %v2097_v27 = vadd.f32 %v2093_v48, %v2084_v63 }
 0x6d6   : > { %v2114_v17 = vpop.permute.xlu0 %2113  ;;  %v2325_v4 = vpop.permute.xlu1 %2324 }
 0x6d7   : > { %v2334_v35 = vadd.f32 %v2325_v4, %v2309_v2  ;;  %v2122_v39 = vadd.f32 %v2114_v17, %v2097_v27  ;;  %v3855_v17 = vmul.f32 %v5325_v52, %v7386_v6 }
 0x6d8   : > { %2890 = vrot.lane.b32.xlu0 %v2879_v20, %s8142_s12  ;;  %3813 = vrot.lane.b32.xlu1 %v3805_v43, %s5469_s13 }
 0x6da   : > { %v2139_v57 = vpop.permute.xlu0 %2138  ;;  %v2350_v50 = vpop.permute.xlu1 %2349 }
 0x6db   : > { %v2359_v11 = vadd.f32 %v2350_v50, %v2334_v35  ;;  %v2147_v45 = vadd.f32 %v2139_v57, %v2122_v39  ;;  %v3857_v57 = vmul.f32 %v7386_v6, %v7315_v41  ;;  %v2256_v50 = vmul.f32 %v6604_v54, %v7153_v29  ;;  %v7410_v54 = vld [vmem:[#allocation5 + $0x4e] sm:$0xff] }
 0x6dc   : > { %3706 = vrot.lane.b32.xlu0 %v3695_v18, %s8142_s12  ;;  %3817 = vrot.lane.b32.xlu1 %v3807_v33, %s5469_s13  ;;  %v7401_v18 = vld [vmem:[#allocation5 + $0x36] sm:$0xff]  ;;  %v7403_v33 = vstv %s5073_s8  ;;  %s5119_s8 = sshll.u32 %s5537_s25, 11 }
 0x6dd   : > { %v3895_v39 = vmul.f32 %v7403_v33, %v7410_v54 }
 0x6de   : > { %v2164_v32 = vpop.permute.xlu0 %2163  ;;  %v2375_v26 = vpop.permute.xlu1 %2374 }
 0x6df   : > { %v2384_v42 = vadd.f32 %v2375_v26, %v2359_v11  ;;  %v2172_v21 = vadd.f32 %v2164_v32, %v2147_v45  ;;  %v3781_v26 = vmul.f32 %v5326_v53, %v7339_v3  ;;  %v3783_v11 = vmul.f32 %v7339_v3, %v7376_v23 }
 0x6e0   : > { %3740 = vrot.lane.b32.xlu0 %v3731_v46, %s5466_s5  ;;  %3838 = vrot.lane.b32.xlu1 %v3830_v0, %s8137_s17  ;;  %v3893_v46 = vmul.f32 %v7403_v33, %v7401_v18  ;;  %v3806_v45 = vmul.f32 %v5326_v53, %v7355_v24 }
 0x6e2   : > { %v2189_v22 = vpop.permute.xlu0 %2188  ;;  %v2400_v40 = vpop.permute.xlu1 %2399 }
 0x6e3   : > { %v2409_v25 = vadd.f32 %v2400_v40, %v2384_v42  ;;  %v2197_v4 = vadd.f32 %v2189_v22, %v2172_v21  ;;  %v7418_v22 = vstv %s5074_s29  ;;  %s8327_s29 = sshll.u32 %s5636_s15, 7 }
 0x6e4   : > { %3744 = vrot.lane.b32.xlu0 %v3733_v56, %s5466_s5  ;;  %3842 = vrot.lane.b32.xlu1 %v3832_v47, %s8137_s17 }
 0x6e5   : > { %v2422_v48 = vadd.f32 %v2418_v60, %v2409_v25  ;;  %v3918_v60 = vmul.f32 %v7418_v22, %v7401_v18 }
 0x6e6   : > { %v2214_v63 = vpop.permute.xlu0 %2213  ;;  %v2438_v27 = vpop.permute.xlu1 %2437 }
 0x6e7   : > { %v2222_v9 = vadd.f32 %v2214_v63, %v2197_v4  ;;  %v2447_v29 = vadd.f32 %v2438_v27, %v2422_v48  ;;  %v3808_v27 = vmul.f32 %v7355_v24, %v7376_v23  ;;  %v3831_v24 = vmul.f32 %v5326_v53, %v7369_v61 }
 0x6e8   : > { %3765 = vrot.lane.b32.xlu0 %v3756_v28, %s5467_s18  ;;  %3863 = vrot.lane.b32.xlu1 %v3855_v17, %s8142_s12  ;;  %v3920_v28 = vmul.f32 %v7418_v22, %v7410_v54 }
 0x6ea   : > { %v2239_v20 = vpop.permute.xlu0 %2238  ;;  %v2463_v43 = vpop.permute.xlu1 %2462 }
 0x6eb   : > { %v2247_v30 = vadd.f32 %v2239_v20, %v2222_v9  ;;  %v2472_v42 = vadd.f32 %v2463_v43, %v2447_v29  ;;  %v2581_v9 = vmul.f32 %v6630_v38, %v7193_v44  ;;  %v7433_v20 = vstv %s5075_s11  ;;  %s7744_s11 = scalar_lea.vmem [#allocation13], %s8327_s29 }
 0x6ec   : > { %3769 = vrot.lane.b32.xlu0 %v3758_v36, %s5467_s18  ;;  %3867 = vrot.lane.b32.xlu1 %v3857_v57, %s8142_s12  ;;  %v2419_v29 = vmul.f32 %v6618_v62, %v7214_v19  ;;  %s4801_s25 = sshll.u32 %s7744_s11, 4  ;;  %s7760_s25 = int_to_ptr.vmem [resolvable:$true] %s4801_s25 }
 0x6ed   : > { %v2260_v2 = vadd.f32 %v2256_v50, %v2247_v30  ;;  %v3943_v30 = vmul.f32 %v7433_v20, %v7401_v18 }
 0x6ee   : > { %v2277_v35 = vpop.permute.xlu0 %2276  ;;  %v2488_v32 = vpop.permute.xlu1 %2487 }
 0x6ef   : > { %v2497_v40 = vadd.f32 %v2488_v32, %v2472_v42  ;;  %v2285_v25 = vadd.f32 %v2277_v35, %v2260_v2 }
 0x6f0   : > { %3790 = vrot.lane.b32.xlu0 %v3781_v26, %s5468_s19  ;;  %3901 = vrot.lane.b32.xlu1 %v3893_v46, %s5466_s5  ;;  %v3833_v26 = vmul.f32 %v7369_v61, %v7376_v23  ;;  %v3945_v46 = vmul.f32 %v7433_v20, %v7410_v54 }
 0x6f2   : > { %v2302_v52 = vpop.permute.xlu0 %2301  ;;  %v2513_v0 = vpop.permute.xlu1 %2512 }
 0x6f3   : > { %v2522_v3 = vadd.f32 %v2513_v0, %v2497_v40  ;;  %v2310_v17 = vadd.f32 %v2302_v52, %v2285_v25  ;;  %v7448_v0 = vstv %s5076_s16  ;;  %v3856_v40 = vmul.f32 %v5326_v53, %v7386_v6 }
 0x6f4   : > { %3794 = vrot.lane.b32.xlu0 %v3783_v11, %s5468_s19  ;;  %3905 = vrot.lane.b32.xlu1 %v3895_v39, %s5466_s5  ;;  %v3968_v61 = vmul.f32 %v7448_v0, %v7401_v18  ;;  %v7463_v53 = vstv %s5077_s28  ;;  %s7758_s28 = scalar_lea.hbm %s7818_s6, %s5119_s8 }
 0x6f6   : > { %v2327_v56 = vpop.permute.xlu0 %2326  ;;  %v2538_v47 = vpop.permute.xlu1 %2537 }
 0x6f7   : > { %v2547_v21 = vadd.f32 %v2538_v47, %v2522_v3  ;;  %v2335_v43 = vadd.f32 %v2327_v56, %v2310_v17  ;;  %v3858_v47 = vmul.f32 %v7386_v6, %v7376_v23  ;;  %v7461_v3 = vld [vmem:[#allocation5 + $0x3e] sm:$0xff]  ;;  %v3993_v6 = vmul.f32 %v7463_v53, %v7401_v18 }
 0x6f8   : > { %3815 = vrot.lane.b32.xlu0 %v3806_v45, %s5469_s13  ;;  %3926 = vrot.lane.b32.xlu1 %v3918_v60, %s5467_s18  ;;  %v3970_v45 = vmul.f32 %v7448_v0, %v7410_v54 }
 0x6fa   : > { %v2352_v48 = vpop.permute.xlu0 %2351  ;;  %v2563_v63 = vpop.permute.xlu1 %2562 }
 0x6fb   : > { %v2572_v4 = vadd.f32 %v2563_v63, %v2547_v21  ;;  %v2360_v2 = vadd.f32 %v2352_v48, %v2335_v43  ;;  %v3894_v63 = vmul.f32 %v7403_v33, %v7461_v3 }
 0x6fc   : > { %3819 = vrot.lane.b32.xlu0 %v3808_v27, %s5469_s13  ;;  %3930 = vrot.lane.b32.xlu1 %v3920_v28, %s5467_s18  ;;  %v7471_v28 = vld [vmem:[#allocation5 + $0x56] sm:$0xff] }
 0x6fd   : > { %v2585_v36 = vadd.f32 %v2581_v9, %v2572_v4 }
 0x6fe   : > { %v2377_v57 = vpop.permute.xlu0 %2376  ;;  %v2601_v50 = vpop.permute.xlu1 %2600 }
 0x6ff   : > { %v2385_v44 = vadd.f32 %v2377_v57, %v2360_v2  ;;  %v2610_v62 = vadd.f32 %v2601_v50, %v2585_v36  ;;  %v3896_v36 = vmul.f32 %v7403_v33, %v7471_v28  ;;  %v3995_v57 = vmul.f32 %v7463_v53, %v7410_v54 }
 0x700   : > { %3840 = vrot.lane.b32.xlu0 %v3831_v24, %s8137_s17  ;;  %3951 = vrot.lane.b32.xlu1 %v3943_v30, %s5468_s19  ;;  %v2744_v30 = vmul.f32 %v6642_v12, %v7250_v34  ;;  %v7481_v2 = vstv %s5078_s7  ;;  %v3919_v33 = vmul.f32 %v7418_v22, %v7461_v3  ;;  %s4787_s7 = scalar_lea.sflag [#allocation10], %s5636_s15 }
 0x702   : > { %v2402_v35 = vpop.permute.xlu0 %2401  ;;  %v2626_v32 = vpop.permute.xlu1 %2625 }
 0x703   : > { %v2410_v52 = vadd.f32 %v2402_v35, %v2385_v44  ;;  %v2635_v60 = vadd.f32 %v2626_v32, %v2610_v62 }
 0x704   : > { %3844 = vrot.lane.b32.xlu0 %v3833_v26, %s8137_s17  ;;  %3955 = vrot.lane.b32.xlu1 %v3945_v46, %s5468_s19  ;;  %v4018_v46 = vmul.f32 %v7481_v2, %v7401_v18 }
 0x705   : > { %v2423_v11 = vadd.f32 %v2419_v29, %v2410_v52 }
 0x706   : > { %v2440_v39 = vpop.permute.xlu0 %2439  ;;  %v2651_v42 = vpop.permute.xlu1 %2650 }
 0x707   : > { %v2660_v25 = vadd.f32 %v2651_v42, %v2635_v60  ;;  %v2448_v17 = vadd.f32 %v2440_v39, %v2423_v11  ;;  %v3921_v39 = vmul.f32 %v7418_v22, %v7471_v28  ;;  %v4020_v42 = vmul.f32 %v7481_v2, %v7410_v54 }
 0x708   : > { %3865 = vrot.lane.b32.xlu0 %v3856_v40, %s8142_s12  ;;  %3976 = vrot.lane.b32.xlu1 %v3968_v61, %s5469_s13  ;;  %v2582_v61 = vmul.f32 %v6630_v38, %v7266_v16 }
 0x70a   : > { %v2465_v19 = vpop.permute.xlu0 %2464  ;;  %v2676_v56 = vpop.permute.xlu1 %2675 }
 0x70b   : > { %v2685_v27 = vadd.f32 %v2676_v56, %v2660_v25  ;;  %v2473_v50 = vadd.f32 %v2465_v19, %v2448_v17  ;;  %v3946_v25 = vmul.f32 %v7433_v20, %v7471_v28 }
 0x70c   : > { %3869 = vrot.lane.b32.xlu0 %v3858_v47, %s8142_s12  ;;  %3980 = vrot.lane.b32.xlu1 %v3970_v45, %s5469_s13  ;;  %v3944_v47 = vmul.f32 %v7433_v20, %v7461_v3 }
 0x70e   : > { %v2490_v21 = vpop.permute.xlu0 %2489  ;;  %v2701_v48 = vpop.permute.xlu1 %2700 }
 0x70f   : > { %v2710_v4 = vadd.f32 %v2701_v48, %v2685_v27  ;;  %v2498_v44 = vadd.f32 %v2490_v21, %v2473_v50 }
 0x710   : > { %3903 = vrot.lane.b32.xlu0 %v3894_v63, %s5466_s5  ;;  %4001 = vrot.lane.b32.xlu1 %v3993_v6, %s8137_s17  ;;  %v3969_v63 = vmul.f32 %v7448_v0, %v7461_v3 }
 0x712   : > { %v2515_v9 = vpop.permute.xlu0 %2514  ;;  %v2726_v43 = vpop.permute.xlu1 %2725 }
 0x713   : > { %v2735_v24 = vadd.f32 %v2726_v43, %v2710_v4  ;;  %v2523_v29 = vadd.f32 %v2515_v9, %v2498_v44  ;;  %v3971_v43 = vmul.f32 %v7448_v0, %v7471_v28 }
 0x714   : > { %3907 = vrot.lane.b32.xlu0 %v3896_v36, %s5466_s5  ;;  %4005 = vrot.lane.b32.xlu1 %v3995_v57, %s8137_s17  ;;  %v5327_v36 = vld [vmem:[#allocation5 + $0x48] sm:$0xff]  ;;  %s5474_s5 = smov 48  }
 0x715   : > { %v2748_v35 = vadd.f32 %v2744_v30, %v2735_v24  ;;  %v2908_v57 = vmul.f32 %v5327_v36, %v6654_v31 }
 0x716   : > { %v2540_v32 = vpop.permute.xlu0 %2539  ;;  %v2764_v26 = vpop.permute.xlu1 %2763 }
 0x717   : > { %v2548_v34 = vadd.f32 %v2540_v32, %v2523_v29  ;;  %v2773_v22 = vadd.f32 %v2764_v26, %v2748_v35  ;;  %v3994_v32 = vmul.f32 %v7463_v53, %v7461_v3 }
 0x718   : > { %3928 = vrot.lane.b32.xlu0 %v3919_v33, %s5467_s18  ;;  %4026 = vrot.lane.b32.xlu1 %v4018_v46, %s8142_s12 }
 0x71a   : > { %v2565_v52 = vpop.permute.xlu0 %2564  ;;  %v2789_v11 = vpop.permute.xlu1 %2788 }
 0x71b   : > { %v2573_v40 = vadd.f32 %v2565_v52, %v2548_v34  ;;  %v2798_v21 = vadd.f32 %v2789_v11, %v2773_v22  ;;  %v3996_v52 = vmul.f32 %v7463_v53, %v7471_v28 }
 0x71c   : > { %3932 = vrot.lane.b32.xlu0 %v3921_v39, %s5467_s18  ;;  %4030 = vrot.lane.b32.xlu1 %v4020_v42, %s8142_s12  ;;  %s5072_s18 = sld [smem:[#allocation12 + $0x5b]] }
 0x71d   : > { %v2586_v62 = vadd.f32 %v2582_v61, %v2573_v40  ;;  %v2745_v40 = vmul.f32 %v6642_v12, %v7313_v10 }
 0x71e   : > { %v2603_v19 = vpop.permute.xlu0 %2602  ;;  %v2814_v56 = vpop.permute.xlu1 %2813 }
 0x71f   : > { %v2823_v38 = vadd.f32 %v2814_v56, %v2798_v21  ;;  %v2611_v27 = vadd.f32 %v2603_v19, %v2586_v62  ;;  %v4019_v19 = vmul.f32 %v7481_v2, %v7461_v3 }
 0x720   : > { %3953 = vrot.lane.b32.xlu0 %v3944_v47, %s5468_s19 }
 0x722   : > { %v2628_v45 = vpop.permute.xlu0 %2627  ;;  %v2839_v60 = vpop.permute.xlu1 %2838 }
 0x723   : > { %v2848_v6 = vadd.f32 %v2839_v60, %v2823_v38  ;;  %v2636_v20 = vadd.f32 %v2628_v45, %v2611_v27 }
 0x724   : > { %3957 = vrot.lane.b32.xlu0 %v3946_v25, %s5468_s19  ;;  %s5473_s19 = smov 32  }
 0x726   : > { %v2653_v16 = vpop.permute.xlu0 %2652  ;;  %v2864_v48 = vpop.permute.xlu1 %2863 }
 0x727   : > { %v2873_v17 = vadd.f32 %v2864_v48, %v2848_v6  ;;  %v2661_v24 = vadd.f32 %v2653_v16, %v2636_v20 }
 0x728   : > { %3978 = vrot.lane.b32.xlu0 %v3969_v63, %s5469_s13  ;;  %v8270_v63 = vld [vmem:[#allocation19_spill] sm:$0xff] }
 0x72a   : > { %v2678_v4 = vpop.permute.xlu0 %2677  ;;  %v2889_v9 = vpop.permute.xlu1 %2888 }
 0x72b   : > { %v2898_v50 = vadd.f32 %v2889_v9, %v2873_v17  ;;  %v2686_v26 = vadd.f32 %v2678_v4, %v2661_v24  ;;  %v8271_v4 = vld [vmem:[#allocation122_spill] sm:$0xff]  ;;  %v8273_v24 = vld [vmem:[#allocation75_spill] sm:$0xff] }
 0x72c   : > { %3982 = vrot.lane.b32.xlu0 %v3971_v43, %s5469_s13  ;;  %v8272_v43 = vld [vmem:[#allocation72_spill] sm:$0xff]  ;;  %s5472_s13 = smov 16  }
 0x72d   : > { %v2912_v30 = vadd.f32 %v2908_v57, %v2898_v50 }
 0x72e   : > { %v2703_v44 = vpop.permute.xlu0 %2702  ;;  %v7512_v35 = vpop.permute.xlu1 %3704 }
 0x72f   : > { %v2937_v33 = vadd.f32 %v6898_v15, %v2912_v30  ;;  %v2711_v46 = vadd.f32 %v2703_v44, %v2686_v26  ;;  %v8274_v26 = vld [vmem:[#allocation78_spill] sm:$0xff] }
 0x730   : > { %4003 = vrot.lane.b32.xlu0 %v3994_v32, %s8137_s17 }
 0x731   : > { %v2962_v0 = vadd.f32 %v6905_v5, %v2937_v33 }
 0x732   : > { %v2728_v29 = vpop.permute.xlu0 %2727  ;;  %v3739_v34 = vpop.permute.xlu1 %3738 }
 0x733   : > { %v2987_v11 = vadd.f32 %v6912_v58, %v2962_v0  ;;  %v2736_v39 = vadd.f32 %v2728_v29, %v2711_v46  ;;  %v3750_v42 = vadd.f32 %v3739_v34, %v6769_v59  ;;  %v5328_v58 = vld [vmem:[#allocation5 + $0x49] sm:$0xff] }
 0x734   : > { %4007 = vrot.lane.b32.xlu0 %v3996_v52, %s8137_s17  ;;  %v3071_v59 = vmul.f32 %v5328_v58, %v6664_v1  ;;  %v8275_v34 = vld [vmem:[#allocation85_spill] sm:$0xff]  ;;  %s5475_s17 = smov 64  }
 0x735   : > { %v3012_v15 = vadd.f32 %v6921_v37, %v2987_v11  ;;  %v2749_v61 = vadd.f32 %v2745_v40, %v2736_v39  ;;  %v4021_v37 = vmul.f32 %v7481_v2, %v7471_v28  ;;  %v8276_v11 = vld [vmem:[#allocation68_spill] sm:$0xff]  ;;  %v8277_v40 = vld [vmem:[#allocation22_spill] sm:$0xff] }
 0x736   : > { %v2766_v5 = vpop.permute.xlu0 %2765  ;;  %v7527_v62 = vpop.permute.xlu1 %3742 }
 0x737   : > { %v3037_v53 = vadd.f32 %v6929_v13, %v3012_v15  ;;  %v2774_v21 = vadd.f32 %v2766_v5, %v2749_v61  ;;  %v8278_v61 = vld [vmem:[#allocation76_spill] sm:$0xff] }
 0x738   : > { %4028 = vrot.lane.b32.xlu0 %v4019_v19, %s8142_s12 }
 0x739   : > { %v3062_v12 = vadd.f32 %v6937_v7, %v3037_v53 }
 0x73a   : > { %v2791_v10 = vpop.permute.xlu0 %2790  ;;  %v3764_v56 = vpop.permute.xlu1 %3763 }
 0x73b   : > { %v3075_v47 = vadd.f32 %v3071_v59, %v3062_v12  ;;  %v2799_v48 = vadd.f32 %v2791_v10, %v2774_v21  ;;  %v3775_v59 = vadd.f32 %v3764_v56, %v3750_v42  ;;  %v8280_v12 = vld [vmem:[#allocation70_spill] sm:$0xff] }
 0x73c   : > { %4032 = vrot.lane.b32.xlu0 %v4021_v37, %s8142_s12  ;;  %v8281_v37 = vld [vmem:[#allocation66_spill] sm:$0xff]  ;;  %s5476_s12 = smov 80  }
 0x73d   : > { %v3100_v22 = vadd.f32 %v6947_v49, %v3075_v47  ;;  %v5329_v49 = vld [vmem:[#allocation5 + $0x4a] sm:$0xff] }
 0x73e   : > { %v2816_v45 = vpop.permute.xlu0 %2815  ;;  %v7539_v60 = vpop.permute.xlu1 %3767  ;;  %v3234_v9 = vmul.f32 %v5329_v49, %v8271_v4  ;;  %v7573_v49 = vstv %s5072_s18  ;;  %s5380_s18 = scalar_lea.vmem %s7760_s25, 2048 }
 0x73f   : > { %v3125_v13 = vadd.f32 %v6955_v14, %v3100_v22  ;;  %v2824_v6 = vadd.f32 %v2816_v45, %v2799_v48  ;;  %v8282_v22 = vld [vmem:[#allocation23_spill] sm:$0xff]  ;;  %p5381_p12 = scmp.ne.s32.totalorder %s7760_s25, %s5380_s18 }
 0x741   : > { %v3150_v25 = vadd.f32 %v6967_v51, %v3125_v13  ;;  %v5331_v13 = vld [vmem:[#allocation5 + $0x4b] sm:$0xff]  ;;  %p5382_p2 = pnand %p5381_p12, %p8328_p0 }
 0x742   : > { %v2841_v38 = vpop.permute.xlu0 %2840  ;;  %v3789_v7 = vpop.permute.xlu1 %3788 }
 0x743   : > { %v3175_v16 = vadd.f32 %v6977_v8, %v3150_v25  ;;  %v2849_v14 = vadd.f32 %v2841_v38, %v2824_v6  ;;  %v5330_v8 = vld [vmem:[#allocation5 + $0x50] sm:$0xff]  ;;  %v3800_v38 = vadd.f32 %v3789_v7, %v3775_v59  ;;  %v8295_v59 = vld [vmem:[#allocation109_spill] sm:$0xff]  ;;  %p5383_p7 = pneg %p5382_p2 }
 0x744   : > { %v2909_v44 = vmul.f32 %v5330_v8, %v6654_v31  ;;  %v8279_v31 = vld [vmem:[#allocation84_spill] sm:$0xff]  ;;  %v8283_v25 = vld [vmem:[#allocation123_spill] sm:$0xff] }
 0x745   : > { %v3200_v2 = vadd.f32 %v8270_v63, %v3175_v16  ;;  %v3397_v21 = vmul.f32 %v5331_v13, %v8283_v25  ;;  %v8284_v16 = vld [vmem:[#allocation79_spill] sm:$0xff] }
 0x746   : > { %v2866_v27 = vpop.permute.xlu0 %2865  ;;  %v7545_v17 = vpop.permute.xlu1 %3792 }
 0x747   : > { %v3225_v20 = vadd.f32 %v8272_v43, %v3200_v2  ;;  %v2874_v51 = vadd.f32 %v2866_v27, %v2849_v14  ;;  %v8285_v27 = vld [vmem:[#allocation20_spill] sm:$0xff] }
 0x749   : > { %v3238_v36 = vadd.f32 %v3234_v9, %v3225_v20  ;;  %v8286_v9 = vld [vmem:[#allocation94_spill] sm:$0xff] }
 0x74a   : > { %v2891_v57 = vpop.permute.xlu0 %2890  ;;  %v3814_v50 = vpop.permute.xlu1 %3813  ;;  %v5332_v20 = vld [vmem:[#allocation5 + $0x51] sm:$0xff] }
 0x74b   : > { %v3263_v30 = vadd.f32 %v8273_v24, %v3238_v36  ;;  %v2899_v32 = vadd.f32 %v2891_v57, %v2874_v51  ;;  %v3825_v56 = vadd.f32 %v3814_v50, %v3800_v38  ;;  %v3072_v14 = vmul.f32 %v5332_v20, %v6664_v1  ;;  %v8287_v36 = vld [vmem:[#allocation82_spill] sm:$0xff]  ;;  %v8289_v50 = vld [vmem:[#allocation25_spill] sm:$0xff]  ;;  %v8298_v38 = vld [vmem:[#allocation87_spill] sm:$0xff] }
 0x74d   : > { %v3288_v33 = vadd.f32 %v8274_v26, %v3263_v30  ;;  %v2913_v0 = vadd.f32 %v2909_v44, %v2899_v32  ;;  %v8288_v30 = vld [vmem:[#allocation97_spill] sm:$0xff]  ;;  %v3884_v26 = vmul.f32 %v7573_v49, %v7401_v18 }
 0x74e   : > { %v7552_v46 = vpop.permute.xlu0 %3706  ;;  %v7554_v29 = vpop.permute.xlu1 %3817 }
 0x74f   : > { %v3313_v52 = vadd.f32 %v8275_v34, %v3288_v33  ;;  %v2938_v39 = vadd.f32 %v8276_v11, %v2913_v0  ;;  %v8290_v0 = vld [vmem:[#allocation21_spill] sm:$0xff] }
 0x751   : > { %v3338_v15 = vadd.f32 %v8277_v40, %v3313_v52  ;;  %v2963_v5 = vadd.f32 %v8278_v61, %v2938_v39  ;;  %v8291_v39 = vld [vmem:[#allocation90_spill] sm:$0xff] }
 0x752   : > { %v3741_v19 = vpop.permute.xlu0 %3740  ;;  %v3839_v53 = vpop.permute.xlu1 %3838 }
 0x753   : > { %v3363_v58 = vadd.f32 %v8279_v31, %v3338_v15  ;;  %v2988_v10 = vadd.f32 %v8280_v12, %v2963_v5  ;;  %v7563_v47 = vadd.f32 %v3741_v19, %v8281_v37  ;;  %v3850_v7 = vadd.f32 %v3839_v53, %v3825_v56  ;;  %v8292_v15 = vld [vmem:[#allocation81_spill] sm:$0xff]  ;;  %v8294_v53 = vld [vmem:[#allocation88_spill] sm:$0xff]  ;;  %v8299_v56 = vld [vmem:[#allocation99_spill] sm:$0xff] }
 0x754   : > { %v8293_v5 = vld [vmem:[#allocation93_spill] sm:$0xff]  ;;  %v8296_v37 = vld [vmem:[#allocation64_spill] sm:$0xff] }
 0x755   : > { %v3388_v45 = vadd.f32 %v8282_v22, %v3363_v58  ;;  %v3013_v48 = vadd.f32 %v8284_v16, %v2988_v10  ;;  %v5333_v10 = vld [vmem:[#allocation5 + $0x4c] sm:$0xff] }
 0x756   : > { %v7568_v63 = vpop.permute.xlu0 %3744  ;;  %v7570_v2 = vpop.permute.xlu1 %3842  ;;  %v3560_v22 = vmul.f32 %v5333_v10, %v8296_v37 }
 0x757   : > { %v3401_v6 = vadd.f32 %v3397_v21, %v3388_v45  ;;  %v3038_v42 = vadd.f32 %v8285_v27, %v3013_v48  ;;  %v8297_v45 = vld [vmem:[#allocation91_spill] sm:$0xff] }
 0x758   : > { %v5334_v27 = vld [vmem:[#allocation5 + $0x52] sm:$0xff] }
 0x759   : > { %v3426_v43 = vadd.f32 %v8286_v9, %v3401_v6  ;;  %v3063_v51 = vadd.f32 %v8287_v36, %v3038_v42  ;;  %v3235_v42 = vmul.f32 %v5334_v27, %v8271_v4 }
 0x75a   : > { %v3766_v57 = vpop.permute.xlu0 %3765  ;;  %v3864_v24 = vpop.permute.xlu1 %3863 }
 0x75b   : > { %v3451_v8 = vadd.f32 %v8288_v30, %v3426_v43  ;;  %v3076_v44 = vadd.f32 %v3072_v14, %v3063_v51  ;;  %v3875_v32 = vadd.f32 %v3864_v24, %v3850_v7  ;;  %v8300_v43 = vld [vmem:[#allocation24_spill] sm:$0xff]  ;;  %v8301_v14 = vld [vmem:[#allocation102_spill] sm:$0xff] }
 0x75c   : > { %v8302_v30 = vld [vmem:[#allocation28_spill] sm:$0xff] }
 0x75d   : > { %v3476_v33 = vadd.f32 %v8289_v50, %v3451_v8  ;;  %v3101_v34 = vadd.f32 %v8290_v0, %v3076_v44  ;;  %v7583_v52 = vadd.f32 %v3884_v26, %v3875_v32  ;;  %v8303_v44 = vld [vmem:[#allocation100_spill] sm:$0xff]  ;;  %v8304_v26 = vld [vmem:[#allocation29_spill] sm:$0xff] }
 0x75e   : > { %v7585_v11 = vpop.permute.xlu0 %3769  ;;  %v7587_v1 = vpop.permute.xlu1 %3867 }
 0x75f   : > { %v3501_v40 = vadd.f32 %v8291_v39, %v3476_v33  ;;  %v3126_v61 = vadd.f32 %v8292_v15, %v3101_v34  ;;  %v8305_v33 = vld [vmem:[#allocation103_spill] sm:$0xff]  ;;  %v8306_v39 = vld [vmem:[#allocation30_spill] sm:$0xff] }
 0x760   : > { %v8307_v15 = vld [vmem:[#allocation106_spill] sm:$0xff] }
 0x761   : > { %v3526_v19 = vadd.f32 %v8293_v5, %v3501_v40  ;;  %v3151_v31 = vadd.f32 %v8294_v53, %v3126_v61 }
 0x762   : > { %v3791_v58 = vpop.permute.xlu0 %3790  ;;  %v3902_v18 = vpop.permute.xlu1 %3901 }
 0x763   : > { %v3551_v12 = vadd.f32 %v8295_v59, %v3526_v19  ;;  %v3176_v13 = vadd.f32 %v8297_v45, %v3151_v31  ;;  %v8308_v19 = vld [vmem:[#allocation73_spill] sm:$0xff]  ;;  %v8309_v31 = vld [vmem:[#allocation26_spill] sm:$0xff]  ;;  %v8310_v45 = vld [vmem:[#allocation96_spill] sm:$0xff] }
 0x764   : > { %v3723_v53 = vmul.f32 %v8308_v19, %v7315_v41 }
 0x765   : > { %v3564_v21 = vadd.f32 %v3560_v22, %v3551_v12  ;;  %v3201_v16 = vadd.f32 %v8298_v38, %v3176_v13 }
 0x766   : > { %v7597_v48 = vpop.permute.xlu0 %3794  ;;  %v3906_v6 = vpop.permute.xlu1 %3905 }
 0x767   : > { %v3589_v9 = vadd.f32 %v8299_v56, %v3564_v21  ;;  %v3226_v20 = vadd.f32 %v8300_v43, %v3201_v16  ;;  %v3776_v21 = vadd.f32 %v3766_v57, %v7563_v47  ;;  %v8311_v16 = vld [vmem:[#allocation27_spill] sm:$0xff] }
 0x769   : > { %v3614_v36 = vadd.f32 %v8301_v14, %v3589_v9  ;;  %v3239_v51 = vadd.f32 %v3235_v42, %v3226_v20  ;;  %v5335_v42 = vld [vmem:[#allocation5 + $0x53] sm:$0xff] }
 0x76a   : > { %v3816_v7 = vpop.permute.xlu0 %3815  ;;  %v3927_v24 = vpop.permute.xlu1 %3926  ;;  %v3398_v56 = vmul.f32 %v5335_v42, %v8283_v25 }
 0x76b   : > { %v3639_v8 = vadd.f32 %v8302_v30, %v3614_v36  ;;  %v3264_v32 = vadd.f32 %v8303_v44, %v3239_v51  ;;  %v8312_v51 = vld [vmem:[#allocation105_spill] sm:$0xff] }
 0x76d   : > { %v3664_v50 = vadd.f32 %v8304_v26, %v3639_v8  ;;  %v3289_v0 = vadd.f32 %v8305_v33, %v3264_v32  ;;  %v8313_v8 = vld [vmem:[#allocation108_spill] sm:$0xff]  ;;  %v8314_v26 = vld [vmem:[#allocation111_spill] sm:$0xff] }
 0x76e   : > { %v7607_v34 = vpop.permute.xlu0 %3819  ;;  %v3931_v4 = vpop.permute.xlu1 %3930 }
 0x76f   : > { %v3689_v40 = vadd.f32 %v8306_v39, %v3664_v50  ;;  %v3314_v61 = vadd.f32 %v8307_v15, %v3289_v0  ;;  %v8315_v0 = vld [vmem:[#allocation114_spill] sm:$0xff]  ;;  %v8316_v15 = vld [vmem:[#allocation31_spill] sm:$0xff] }
 0x771   : > { %v3714_v5 = vadd.f32 %v7512_v35, %v3689_v40  ;;  %v3339_v59 = vadd.f32 %v8309_v31, %v3314_v61  ;;  %v3801_v35 = vadd.f32 %v3791_v58, %v3776_v21  ;;  %v3885_v58 = vmul.f32 %v7573_v49, %v7461_v3 }
 0x772   : > { %v3841_v12 = vpop.permute.xlu0 %3840  ;;  %v3952_v10 = vpop.permute.xlu1 %3951  ;;  %v3913_v3 = vadd.f32 %v3902_v18, %v7583_v52  ;;  %v8318_v52 = vld [vmem:[#allocation32_spill] sm:$0xff] }
 0x773   : > { %v3727_v22 = vadd.f32 %v3723_v53, %v3714_v5  ;;  %v3364_v13 = vadd.f32 %v8310_v45, %v3339_v59  ;;  %v3826_v14 = vadd.f32 %v3816_v7, %v3801_v35 }
 0x775   : > { %v3752_v38 = vadd.f32 %v7527_v62, %v3727_v22  ;;  %v3389_v27 = vadd.f32 %v8311_v16, %v3364_v13  ;;  %v3851_v47 = vadd.f32 %v3841_v12, %v3826_v14  ;;  %v5336_v12 = vld [vmem:[#allocation5 + $0x54] sm:$0xff]  ;;  %v3938_v13 = vadd.f32 %v3927_v24, %v3913_v3  ;;  %v8320_v24 = vld [vmem:[#allocation118_spill] sm:$0xff] }
 0x776   : > { %v7620_v9 = vpop.permute.xlu0 %3844  ;;  %v3956_v41 = vpop.permute.xlu1 %3955  ;;  %v3561_v22 = vmul.f32 %v5336_v12, %v8296_v37  ;;  %v3887_v3 = vmul.f32 %v7573_v49, %v7471_v28 }
 0x777   : > { %v3777_v43 = vadd.f32 %v7539_v60, %v3752_v38  ;;  %v3402_v20 = vadd.f32 %v3398_v56, %v3389_v27 }
 0x779   : > { %v3802_v36 = vadd.f32 %v7545_v17, %v3777_v43  ;;  %v3427_v30 = vadd.f32 %v8312_v51, %v3402_v20 }
 0x77a   : > { %v3866_v57 = vpop.permute.xlu0 %3865  ;;  %v3977_v62 = vpop.permute.xlu1 %3976 }
 0x77b   : > { %v3452_v44 = vadd.f32 %v8313_v8, %v3427_v30  ;;  %v3827_v32 = vadd.f32 %v7554_v29, %v3802_v36  ;;  %v3876_v25 = vadd.f32 %v3866_v57, %v3851_v47  ;;  %v3886_v29 = vmul.f32 %v7573_v49, %v7410_v54  ;;  %v8319_v36 = vld [vmem:[#allocation117_spill] sm:$0xff] }
 0x77d   : > { %v3477_v50 = vadd.f32 %v8314_v26, %v3452_v44  ;;  %v3852_v60 = vadd.f32 %v7570_v2, %v3827_v32  ;;  %v7631_v7 = vadd.f32 %v3885_v58, %v3876_v25  ;;  %v8317_v2 = vld [vmem:[#allocation116_spill] sm:$0xff]  ;;  %v8322_v44 = vlaneseq }
 0x77e   : > { %v7633_v17 = vpop.permute.xlu0 %3869  ;;  %v3981_v33 = vpop.permute.xlu1 %3980 }
 0x77f   : > { %v3502_v39 = vadd.f32 %v8315_v0, %v3477_v50  ;;  %v3877_v40 = vadd.f32 %v7587_v1, %v3852_v60  ;;  %v3963_v1 = vadd.f32 %v3952_v10, %v3938_v13  ;;  %vm7654_vm10 = vcmp.lt.s32.totalorder %v8322_v44, 16  ;;  %v8325_v60 = vld [vmem:[#allocation18_spill] sm:$0xff] }
 0x780   : > { %vm4091_vm11 = vcmp.ge.s32.totalorder %v8322_v44, 16  ;;  %vm4092_vm12 = vcmp.lt.s32.totalorder %v8322_v44, 32  ;;  %vm4134_vm14 = vcmp.ge.s32.totalorder %v8322_v44, 32  ;;  %vm4135_vm15 = vcmp.lt.s32.totalorder %v8322_v44, 48 }
 0x781   : > { %v3527_v61 = vadd.f32 %v8316_v15, %v3502_v39  ;;  %v3890_v5 = vadd.f32 %v3886_v29, %v3877_v40  ;;  %v3988_v56 = vadd.f32 %v3977_v62, %v3963_v1  ;;  %v3724_v62 = vmul.f32 %v8308_v19, %v7376_v23  ;;  %vm4093_vm13 = vmand %vm4091_vm11, %vm4092_vm12 }
 0x782   : > { %v3904_v53 = vpop.permute.xlu0 %3903  ;;  %v4002_v31 = vpop.permute.xlu1 %4001  ;;  %vm4136_vm0 = vmand %vm4134_vm14, %vm4135_vm15  ;;  %vm4177_vm1 = vcmp.ge.s32.totalorder %v8322_v44, 48  ;;  %vm4178_vm2 = vcmp.lt.s32.totalorder %v8322_v44, 64  ;;  %vm4220_vm4 = vcmp.ge.s32.totalorder %v8322_v44, 64  ;;  %vm4221_vm5 = vcmp.lt.s32.totalorder %v8322_v44, 80 }
 0x783   : > { %v3552_v59 = vadd.f32 %v8317_v2, %v3527_v61  ;;  %v3915_v45 = vadd.f32 %v3906_v6, %v3890_v5  ;;  %v4013_v43 = vadd.f32 %v4002_v31, %v3988_v56  ;;  %vm4179_vm3 = vmand %vm4177_vm1, %vm4178_vm2  ;;  %vm4263_vm7 = vcmp.ge.s32.totalorder %v8322_v44, 80 }
 0x784   : > { %vm4222_vm6 = vmand %vm4220_vm4, %vm4221_vm5  ;;  %vm4264_vm8 = vcmp.lt.s32.totalorder %v8322_v44, 96  ;;  %vm4307_vm11 = vcmp.lt.s32.totalorder %v8322_v44, 112  ;;  %vm4350_vm14 = vcmp.lt.s32.totalorder %v8322_v44, 128 }
 0x785   : > { %v3565_v21 = vadd.f32 %v3561_v22, %v3552_v59  ;;  %v3940_v38 = vadd.f32 %v3931_v4, %v3915_v45 }
 0x786   : > { %v3908_v16 = vpop.permute.xlu0 %3907  ;;  %v4006_v27 = vpop.permute.xlu1 %4005 }
 0x787   : > { %v3590_v54 = vadd.f32 %v7218_v55, %v3565_v21  ;;  %v3965_v42 = vadd.f32 %v3956_v41, %v3940_v38  ;;  %v8321_v55 = vld [vmem:[#allocation33_spill] sm:$0xff] }
 0x789   : > { %v3615_v18 = vadd.f32 %v8318_v52, %v3590_v54  ;;  %v3990_v35 = vadd.f32 %v3981_v33, %v3965_v42 }
 0x78a   : > { %v3929_v20 = vpop.permute.xlu0 %3928  ;;  %v4027_v14 = vpop.permute.xlu1 %4026 }
 0x78b   : > { %v3640_v37 = vadd.f32 %v8319_v36, %v3615_v18  ;;  %v4038_v6 = vadd.f32 %v4027_v14, %v4013_v43  ;;  %v4015_v4 = vadd.f32 %v4006_v27, %v3990_v35 }
 0x78d   : > { %v3665_v51 = vadd.f32 %v8320_v24, %v3640_v37  ;;  %4043 = vst.msk [vmem:[#allocation6] sm:$0xff] %vm4042_vm9, %v4038_v6 }
 0x78e   : > { %v3933_v10 = vpop.permute.xlu0 %3932  ;;  %v4031_v30 = vpop.permute.xlu1 %4030 }
 0x78f   : > { %v3690_v41 = vadd.f32 %v8321_v55, %v3665_v51  ;;  %v4040_v47 = vadd.f32 %v4031_v30, %v4015_v4 }
 0x791   : > { %v3715_v57 = vadd.f32 %v7552_v46, %v3690_v41  ;;  %4045 = vst.msk [vmem:[#allocation6 + $0x10] sm:$0xff] %vm4042_vm9, %v4040_v47 }
 0x792   : > { %v3954_v8 = vpop.permute.xlu0 %3953 }
 0x793   : > { %v3728_v25 = vadd.f32 %v3724_v62, %v3715_v57 }
 0x794   : > { %v5080_v58 = vld.sshfl [vmem:[#allocation6 + $0x1] sm:$0x1 pattern:$0x75316420]  ;;  %v4047_v26 = vld [vmem:[#allocation6] sm:$0x1] }
 0x795   : > { %v3753_v50 = vadd.f32 %v7568_v63, %v3728_v25  ;;  %v4070_v33 = vrot.slane %v5080_v58, %v8325_v60  ;;  %4051 = vst.msk [vmem:[#allocation7] sm:$0x1] %vm7654_vm10, %v4047_v26  ;;  %v5084_v14 = vld.sshfl [vmem:[#allocation6 + $0x3] sm:$0x1 pattern:$0x75316420] }
 0x796   : > { %v3958_v46 = vpop.permute.xlu0 %3957  ;;  %v4156_v37 = vrot.slane %v5084_v14, %v8325_v60  ;;  %v5086_v30 = vld.sshfl [vmem:[#allocation6 + $0x4] sm:$0x1 pattern:$0x75316420] }
 0x797   : > { %v3778_v23 = vadd.f32 %v7585_v11, %v3753_v50  ;;  %4085 = vrot.lane.b32.xlu1 %v4070_v33, %s5472_s13  ;;  %v4199_v41 = vrot.slane %v5086_v30, %v8325_v60  ;;  %v5088_v25 = vld.sshfl [vmem:[#allocation6 + $0x5] sm:$0x1 pattern:$0x75316420] }
 0x798   : > { %v5081_v19 = vld.sshfl [vmem:[#allocation6 + $0x11] sm:$0x1 pattern:$0x75316420]  ;;  %v4048_v0 = vld [vmem:[#allocation6 + $0x10] sm:$0x1]  ;;  %v4242_v26 = vrot.slane %v5088_v25, %v8325_v60 }
 0x799   : > { %v3803_v39 = vadd.f32 %v7597_v48, %v3778_v23  ;;  %v4084_v40 = vrot.slane %v5081_v19, %v8325_v60  ;;  %4052 = vst.msk [vmem:[#allocation7 + $0x2] sm:$0x1] %vm7654_vm10, %v4048_v0  ;;  %v3914_v48 = vadd.f32 %v3904_v53, %v7631_v7  ;;  %v5083_v18 = vld.sshfl [vmem:[#allocation6 + $0x12] sm:$0x1 pattern:$0x75316420] }
 0x79a   : > { %v3979_v63 = vpop.permute.xlu0 %3978  ;;  %v5085_v24 = vld.sshfl [vmem:[#allocation6 + $0x13] sm:$0x1 pattern:$0x75316420] }
 0x79b   : > { %v3828_v29 = vadd.f32 %v7607_v34, %v3803_v39  ;;  %4087 = vrot.lane.b32.xlu0 %v4084_v40, %s5472_s13  ;;  %v3939_v59 = vadd.f32 %v3929_v20, %v3914_v48  ;;  %v4127_v20 = vrot.slane %v5083_v18, %v8325_v60  ;;  %v5087_v57 = vld.sshfl [vmem:[#allocation6 + $0x14] sm:$0x1 pattern:$0x75316420] }
 0x79c   : > { %v4213_v32 = vrot.slane %v5087_v57, %v8325_v60  ;;  %v5089_v33 = vld.sshfl [vmem:[#allocation6 + $0x15] sm:$0x1 pattern:$0x75316420] }
 0x79d   : > { %v3853_v15 = vadd.f32 %v7620_v9, %v3828_v29  ;;  %v3964_v22 = vadd.f32 %v3954_v8, %v3939_v59  ;;  %v4256_v19 = vrot.slane %v5089_v33, %v8325_v60  ;;  %v5090_v0 = vld.sshfl [vmem:[#allocation6 + $0x6] sm:$0x1 pattern:$0x75316420] }
 0x79e   : > { %v3983_v11 = vpop.permute.xlu0 %3982  ;;  %v4285_v40 = vrot.slane %v5090_v0, %v8325_v60  ;;  %v5091_v29 = vld.sshfl [vmem:[#allocation6 + $0x16] sm:$0x1 pattern:$0x75316420] }
 0x79f   : > { %v3878_v61 = vadd.f32 %v7633_v17, %v3853_v15  ;;  %v3989_v13 = vadd.f32 %v3979_v63, %v3964_v22 }
 0x7a1   : > { %v3891_v5 = vadd.f32 %v3887_v3, %v3878_v61  ;;  %v4299_v61 = vrot.slane %v5091_v29, %v8325_v60  ;;  %v5092_v3 = vld.sshfl [vmem:[#allocation6 + $0x7] sm:$0x1 pattern:$0x75316420] }
 0x7a2   : > { %v4004_v31 = vpop.permute.xlu0 %4003  ;;  %v8326_v29 = vld [vmem:[#allocation17_spill] sm:$0xff] }
 0x7a3   : > { %v3916_v2 = vadd.f32 %v3908_v16, %v3891_v5  ;;  %v4014_v38 = vadd.f32 %v4004_v31, %v3989_v13  ;;  %v5082_v16 = vld.sshfl [vmem:[#allocation6 + $0x2] sm:$0x1 pattern:$0x75316420]  ;;  %v4328_v5 = vrot.slane %v5092_v3, %v8325_v60  ;;  %v4668_v13 = vld [vmem:[#allocation3] sm:$0xff] }
 0x7a4   : > { %v4113_v56 = vrot.slane %v5082_v16, %v8325_v60  ;;  %v4655_v3 = vld [vmem:[%s5642_s26 + $0x18] sm:$0xff] }
 0x7a5   : > { %v3941_v12 = vadd.f32 %v3933_v10, %v3916_v2  ;;  %v4170_v10 = vrot.slane %v5085_v24, %v8325_v60  ;;  %v5093_v2 = vld.sshfl [vmem:[#allocation6 + $0x17] sm:$0x1 pattern:$0x75316420] }
 0x7a6   : > { %v4008_v45 = vpop.permute.xlu0 %4007  ;;  %v4342_v22 = vrot.slane %v5093_v2, %v8325_v60  ;;  %v4657_v2 = vld [vmem:[%s5642_s26 + $0x28] sm:$0xff] }
 0x7a7   : > { %v3966_v34 = vadd.f32 %v3958_v46, %v3941_v12 }
 0x7a9   : > { %v3991_v21 = vadd.f32 %v3983_v11, %v3966_v34 }
 0x7aa   : > { %v4029_v9 = vpop.permute.xlu0 %4028 }
 0x7ab   : > { %v4039_v1 = vadd.f32 %v4029_v9, %v4014_v38  ;;  %v4016_v27 = vadd.f32 %v4008_v45, %v3991_v21  ;;  %v4670_v21 = vld [vmem:[#allocation3 + $0x10] sm:$0xff]  ;;  %v4669_v38 = vld [vmem:[#allocation3 + $0x8] sm:$0xff]  ;;  %v4672_v9 = vld [vmem:[#allocation3 + $0x20] sm:$0xff] }
 0x7ad   : > { %4044 = vst.msk [vmem:[#allocation6 + $0x8] sm:$0xff] %vm4042_vm9, %v4039_v1  ;;  %v4671_v1 = vld [vmem:[#allocation3 + $0x18] sm:$0xff] }
 0x7ae   : > { %v4033_v17 = vpop.permute.xlu0 %4032 }
 0x7af   : > { %v4041_v28 = vadd.f32 %v4033_v17, %v4016_v27  ;;  %v4674_v27 = vld [vmem:[#allocation3 + $0x30] sm:$0xff]  ;;  %v4673_v17 = vld [vmem:[#allocation3 + $0x28] sm:$0xff] }
 0x7b1   : > { %4046 = vst.msk [vmem:[#allocation6 + $0x18] sm:$0xff] %vm4042_vm9, %v4041_v28  ;;  %v4675_v28 = vld [vmem:[#allocation3 + $0x38] sm:$0xff]  ;;  %vm4265_vm9 = vmand %vm4263_vm7, %vm4264_vm8 }
 0x7b4   : > { %v5094_v49 = vld.sshfl [vmem:[#allocation6 + $0x9] sm:$0x1 pattern:$0x75316420]  ;;  %v4354_v7 = vld [vmem:[#allocation6 + $0x8] sm:$0x1] }
 0x7b5   : > { %v4375_v53 = vrot.slane %v5094_v49, %v8325_v60  ;;  %4356 = vst.msk [vmem:[#allocation7 + $0x1] sm:$0x1] %vm7654_vm10, %v4354_v7  ;;  %v5096_v35 = vld.sshfl [vmem:[#allocation6 + $0xa] sm:$0x1 pattern:$0x75316420] }
 0x7b6   : > { %v4415_v43 = vrot.slane %v5096_v35, %v8325_v60  ;;  %v5098_v51 = vld.sshfl [vmem:[#allocation6 + $0xb] sm:$0x1 pattern:$0x75316420] }
 0x7b7   : > { %4390 = vrot.lane.b32.xlu1 %v4375_v53, %s5472_s13  ;;  %v4455_v4 = vrot.slane %v5098_v51, %v8325_v60  ;;  %v5100_v62 = vld.sshfl [vmem:[#allocation6 + $0xc] sm:$0x1 pattern:$0x75316420] }
 0x7b8   : > { %v5095_v54 = vld.sshfl [vmem:[#allocation6 + $0x19] sm:$0x1 pattern:$0x75316420]  ;;  %v4355_v42 = vld [vmem:[#allocation6 + $0x18] sm:$0x1]  ;;  %v4495_v8 = vrot.slane %v5100_v62, %v8325_v60 }
 0x7b9   : > { %v4389_v52 = vrot.slane %v5095_v54, %v8325_v60  ;;  %4357 = vst.msk [vmem:[#allocation7 + $0x3] sm:$0x1] %vm7654_vm10, %v4355_v42  ;;  %v5097_v36 = vld.sshfl [vmem:[#allocation6 + $0x1a] sm:$0x1 pattern:$0x75316420] }
 0x7ba   : > { %v4429_v6 = vrot.slane %v5097_v36, %v8325_v60  ;;  %v5099_v55 = vld.sshfl [vmem:[#allocation6 + $0x1b] sm:$0x1 pattern:$0x75316420]  ;;  %vm4306_vm10 = vcmp.ge.s32.totalorder %v8322_v44, 96 }
 0x7bb   : > { %4128 = vrot.lane.b32.xlu1 %v4113_v56, %s5473_s19  ;;  %4392 = vrot.lane.b32.xlu0 %v4389_v52, %s5472_s13  ;;  %v4469_v47 = vrot.slane %v5099_v55, %v8325_v60  ;;  %v5101_v58 = vld.sshfl [vmem:[#allocation6 + $0x1c] sm:$0x1 pattern:$0x75316420]  ;;  %vm4308_vm12 = vmand %vm4306_vm10, %vm4307_vm11 }
 0x7bc   : > { %v4509_v50 = vrot.slane %v5101_v58, %v8325_v60  ;;  %v5102_v46 = vld.sshfl [vmem:[#allocation6 + $0xd] sm:$0x1 pattern:$0x75316420] }
 0x7bd   : > { %v4535_v23 = vrot.slane %v5102_v46, %v8325_v60  ;;  %v5103_v39 = vld.sshfl [vmem:[#allocation6 + $0x1d] sm:$0x1 pattern:$0x75316420] }
 0x7be   : > { %v4549_v63 = vrot.slane %v5103_v39, %v8325_v60  ;;  %v5104_v15 = vld.sshfl [vmem:[#allocation6 + $0xe] sm:$0x1 pattern:$0x75316420] }
 0x7bf   : > { %4430 = vrot.lane.b32.xlu1 %v4415_v43, %s5473_s19  ;;  %4130 = vrot.lane.b32.xlu0 %v4127_v20, %s5473_s19  ;;  %v4575_v11 = vrot.slane %v5104_v15, %v8325_v60  ;;  %v5105_v48 = vld.sshfl [vmem:[#allocation6 + $0x1e] sm:$0x1 pattern:$0x75316420]  ;;  %v4736_v15 = vsub.s32 0, %v8326_v29 }
 0x7c0   : > { %v4589_v31 = vrot.slane %v5105_v48, %v8325_v60  ;;  %v5106_v59 = vld.sshfl [vmem:[#allocation6 + $0xf] sm:$0x1 pattern:$0x75316420] }
 0x7c1   : > { %v4615_v12 = vrot.slane %v5106_v59, %v8325_v60  ;;  %v5107_v45 = vld.sshfl [vmem:[#allocation6 + $0x1f] sm:$0x1 pattern:$0x75316420]  ;;  %v4658_v59 = vld [vmem:[%s5642_s26 + $0x30] sm:$0xff] }
 0x7c2   : > { %v4629_v34 = vrot.slane %v5107_v45, %v8325_v60  ;;  %v4661_v45 = vld [vmem:[%s5642_s26 + $0x48] sm:$0xff] }
 0x7c3   : > { %4171 = vrot.lane.b32.xlu1 %v4156_v37, %s5474_s5  ;;  %4432 = vrot.lane.b32.xlu0 %v4429_v6, %s5473_s19  ;;  %s5479_s19 = smov [#allocation13]  }
 0x7c7   : > { %4470 = vrot.lane.b32.xlu1 %v4455_v4, %s5474_s5  ;;  %4173 = vrot.lane.b32.xlu0 %v4170_v10, %s5474_s5 }
 0x7cb   : > { %4214 = vrot.lane.b32.xlu1 %v4199_v41, %s5475_s17  ;;  %4472 = vrot.lane.b32.xlu0 %v4469_v47, %s5474_s5  ;;  %s5384_s5 = sshll.u32 %s5479_s19, 4  ;;  %s5385_s5 = int_to_ptr.vmem [resolvable:$false] %s5384_s5 }
 0x7cc   : > { %p5387_p8 = scmp.lt.s32.totalorder %s7760_s25, %s5385_s5 }
 0x7cf   : > { %4510 = vrot.lane.b32.xlu1 %v4495_v8, %s5475_s17  ;;  %4216 = vrot.lane.b32.xlu0 %v4213_v32, %s5475_s17 }
 0x7d3   : > { %4257 = vrot.lane.b32.xlu1 %v4242_v26, %s5476_s12  ;;  %4512 = vrot.lane.b32.xlu0 %v4509_v50, %s5475_s17  ;;  %s5386_s17 = scalar_lea.vmem %s5385_s5, 4096 }
 0x7d4   : > { %p5388_p9 = scmp.lt.s32.totalorder %s5386_s17, %s5380_s18 }
 0x7d6   : > { %p5389_p10 = por %p5388_p9, %p5387_p8 }
 0x7d7   : > { %4550 = vrot.lane.b32.xlu1 %v4535_v23, %s5476_s12  ;;  %4259 = vrot.lane.b32.xlu0 %v4256_v19, %s5476_s12 }
 0x7d8   : > { %p5390_p1 = pnand %p5389_p10, %p5383_p7 }
 0x7db   : > { %4300 = vrot.lane.b32.xlu1 %v4285_v40, %s5477_s14  ;;  %4552 = vrot.lane.b32.xlu0 %v4549_v63, %s5476_s12  ;;  %v4652_v40 = vld [vmem:[%s5642_s26] sm:$0xff]  ;;  %v4653_v63 = vld [vmem:[%s5642_s26 + $0x8] sm:$0xff] }
 0x7df   : > { %4590 = vrot.lane.b32.xlu1 %v4575_v11, %s5477_s14  ;;  %4302 = vrot.lane.b32.xlu0 %v4299_v61, %s5477_s14  ;;  %v4740_v11 = vsub.s32 1, %v8326_v29  ;;  %v4654_v61 = vld [vmem:[%s5642_s26 + $0x10] sm:$0xff] }
 0x7e3   : > { %4343 = vrot.lane.b32.xlu1 %v4328_v5, %s5478_s20  ;;  %4592 = vrot.lane.b32.xlu0 %v4589_v31, %s5477_s14  ;;  %v4656_v31 = vld [vmem:[%s5642_s26 + $0x20] sm:$0xff] }
 0x7e7   : > { %4630 = vrot.lane.b32.xlu1 %v4615_v12, %s5478_s20  ;;  %4345 = vrot.lane.b32.xlu0 %v4342_v22, %s5478_s20  ;;  %v4659_v12 = vld [vmem:[%s5642_s26 + $0x38] sm:$0xff]  ;;  %v4660_v22 = vld [vmem:[%s5642_s26 + $0x40] sm:$0xff] }
 0x7eb   : > { %4678 = vperm.xlu1 %5265, %v4668_v13   ;;  %4632 = vrot.lane.b32.xlu0 %v4629_v34, %s5478_s20 }
 0x7ef   : > { %4688 = vperm.xlu1 %5265, %v4670_v21   ;;  %4683 = vperm.xlu0 %5266, %v4669_v38  }
 0x7f3   : > { %4698 = vperm.xlu1 %5265, %v4672_v9   ;;  %4693 = vperm.xlu0 %5266, %v4671_v1  }
 0x7f7   : > { %4708 = vperm.xlu1 %5265, %v4674_v27   ;;  %4703 = vperm.xlu0 %5266, %v4673_v17  }
 0x7fb   : > { %4713 = vperm.xlu0 %5266, %v4675_v28  }
 0x809   : > { %v4086_v60 = vpop.permute.xlu1 %4085 }
 0x80a   : > { %4094 = vst.msk [vmem:[#allocation7] sm:$0x1] %vm4093_vm13, %v4086_v60 }
 0x80d   : > { %v4088_v49 = vpop.permute.xlu0 %4087 }
 0x80e   : > { %4095 = vst.msk [vmem:[#allocation7 + $0x2] sm:$0x1] %vm4093_vm13, %v4088_v49 }
 0x829   : > { %v4391_v7 = vpop.permute.xlu1 %4390 }
 0x82a   : > { %4396 = vst.msk [vmem:[#allocation7 + $0x1] sm:$0x1] %vm4093_vm13, %v4391_v7 }
 0x82d   : > { %v4393_v53 = vpop.permute.xlu0 %4392  ;;  %v4129_v16 = vpop.permute.xlu1 %4128 }
 0x82e   : > { %4397 = vst.msk [vmem:[#allocation7 + $0x3] sm:$0x1] %vm4093_vm13, %v4393_v53  ;;  %vm4349_vm13 = vcmp.ge.s32.totalorder %v8322_v44, 112 }
 0x82f   : > { %4137 = vst.msk [vmem:[#allocation7] sm:$0x1] %vm4136_vm0, %v4129_v16  ;;  %vm4351_vm15 = vmand %vm4349_vm13, %vm4350_vm14  ;;  %v4662_v16 = vld [vmem:[%s5642_s26 + $0x50] sm:$0xff] }
 0x831   : > { %v4131_v54 = vpop.permute.xlu0 %4130  ;;  %v4431_v42 = vpop.permute.xlu1 %4430 }
 0x832   : > { %4138 = vst.msk [vmem:[#allocation7 + $0x2] sm:$0x1] %vm4136_vm0, %v4131_v54  ;;  %4436 = vst.msk [vmem:[#allocation7 + $0x1] sm:$0x1] %vm4136_vm0, %v4431_v42  ;;  %v4663_v54 = vld [vmem:[%s5642_s26 + $0x58] sm:$0xff]  ;;  %v4664_v42 = vld [vmem:[%s5642_s26 + $0x60] sm:$0xff] }
 0x835   : > { %v4433_v56 = vpop.permute.xlu0 %4432  ;;  %v4172_v52 = vpop.permute.xlu1 %4171 }
 0x836   : > { %4437 = vst.msk [vmem:[#allocation7 + $0x3] sm:$0x1] %vm4136_vm0, %v4433_v56 }
 0x837   : > { %4180 = vst.msk [vmem:[#allocation7] sm:$0x1] %vm4179_vm3, %v4172_v52 }
 0x839   : > { %v4174_v18 = vpop.permute.xlu0 %4173  ;;  %v4471_v35 = vpop.permute.xlu1 %4470 }
 0x83a   : > { %4181 = vst.msk [vmem:[#allocation7 + $0x2] sm:$0x1] %vm4179_vm3, %v4174_v18  ;;  %4476 = vst.msk [vmem:[#allocation7 + $0x1] sm:$0x1] %vm4179_vm3, %v4471_v35 }
 0x83d   : > { %v4473_v43 = vpop.permute.xlu0 %4472  ;;  %v4215_v20 = vpop.permute.xlu1 %4214 }
 0x83e   : > { %4477 = vst.msk [vmem:[#allocation7 + $0x3] sm:$0x1] %vm4179_vm3, %v4473_v43  ;;  %v4665_v43 = vld [vmem:[%s5642_s26 + $0x68] sm:$0xff] }
 0x83f   : > { %4223 = vst.msk [vmem:[#allocation7] sm:$0x1] %vm4222_vm6, %v4215_v20 }
 0x841   : > { %v4217_v14 = vpop.permute.xlu0 %4216  ;;  %v4511_v36 = vpop.permute.xlu1 %4510 }
 0x842   : > { %4224 = vst.msk [vmem:[#allocation7 + $0x2] sm:$0x1] %vm4222_vm6, %v4217_v14  ;;  %4516 = vst.msk [vmem:[#allocation7 + $0x1] sm:$0x1] %vm4222_vm6, %v4511_v36  ;;  %v4666_v14 = vld [vmem:[%s5642_s26 + $0x70] sm:$0xff]  ;;  %v4667_v36 = vld [vmem:[%s5642_s26 + $0x78] sm:$0xff] }
 0x845   : > { %v4513_v37 = vpop.permute.xlu0 %4512  ;;  %v4258_v6 = vpop.permute.xlu1 %4257 }
 0x846   : > { %4517 = vst.msk [vmem:[#allocation7 + $0x3] sm:$0x1] %vm4222_vm6, %v4513_v37 }
 0x847   : > { %4266 = vst.msk [vmem:[#allocation7] sm:$0x1] %vm4265_vm9, %v4258_v6 }
 0x849   : > { %v4260_v24 = vpop.permute.xlu0 %4259  ;;  %v4551_v51 = vpop.permute.xlu1 %4550 }
 0x84a   : > { %4267 = vst.msk [vmem:[#allocation7 + $0x2] sm:$0x1] %vm4265_vm9, %v4260_v24  ;;  %4556 = vst.msk [vmem:[#allocation7 + $0x1] sm:$0x1] %vm4265_vm9, %v4551_v51 }
 0x84d   : > { %v4553_v4 = vpop.permute.xlu0 %4552  ;;  %v4301_v10 = vpop.permute.xlu1 %4300 }
 0x84e   : > { %4557 = vst.msk [vmem:[#allocation7 + $0x3] sm:$0x1] %vm4265_vm9, %v4553_v4 }
 0x84f   : > { %4309 = vst.msk [vmem:[#allocation7] sm:$0x1] %vm4308_vm12, %v4301_v10 }
 0x851   : > { %v4303_v30 = vpop.permute.xlu0 %4302  ;;  %v4591_v55 = vpop.permute.xlu1 %4590 }
 0x852   : > { %4310 = vst.msk [vmem:[#allocation7 + $0x2] sm:$0x1] %vm4308_vm12, %v4303_v30  ;;  %4596 = vst.msk [vmem:[#allocation7 + $0x1] sm:$0x1] %vm4308_vm12, %v4591_v55 }
 0x855   : > { %v4593_v41 = vpop.permute.xlu0 %4592  ;;  %v4344_v47 = vpop.permute.xlu1 %4343 }
 0x856   : > { %4597 = vst.msk [vmem:[#allocation7 + $0x3] sm:$0x1] %vm4308_vm12, %v4593_v41 }
 0x857   : > { %4352 = vst.msk [vmem:[#allocation7] sm:$0x1] %vm4351_vm15, %v4344_v47 }
 0x859   : > { %v4346_v57 = vpop.permute.xlu0 %4345  ;;  %v4631_v62 = vpop.permute.xlu1 %4630 }
 0x85a   : > { %4353 = vst.msk [vmem:[#allocation7 + $0x2] sm:$0x1] %vm4351_vm15, %v4346_v57  ;;  %4636 = vst.msk [vmem:[#allocation7 + $0x1] sm:$0x1] %vm4351_vm15, %v4631_v62 }
 0x85d   : > { %v4633_v8 = vpop.permute.xlu0 %4632 }
 0x85e   : > { %4637 = vst.msk [vmem:[#allocation7 + $0x3] sm:$0x1] %vm4351_vm15, %v4633_v8 }
 0x861   : > { %v4638_v32 = vld [vmem:[#allocation7] sm:$0x3] }
 0x862   : > { %v5108_v25 = vmul.f32 -1.442695, %v4638_v32 }
 0x864   : > { %5299 = vpow2.f32 %v5108_v25 }
 0x865   : > { %v4639_v44 = vld [vmem:[#allocation7 + $0x2] sm:$0x3] }
 0x866   : > { %v5109_v58 = vmul.f32 -1.442695, %v4639_v44  ;;  %v4679_v33 = vpop.permute.xlu1 %4678 }
 0x867   : > { %v4716_v13 = vmul.f32 %v4679_v33, %v4652_v40  ;;  %v4717_v21 = vmul.f32 %v4679_v33, %v4653_v63 }
 0x868   : > { %5301 = vpow2.f32 %v5109_v58 }
 0x86a   : > { %v4684_v46 = vpop.permute.xlu0 %4683  ;;  %v4689_v0 = vpop.permute.xlu1 %4688 }
 0x86b   : > { %v4718_v38 = vmul.f32 %v4684_v46, %v4654_v61  ;;  %v4719_v9 = vmul.f32 %v4684_v46, %v4655_v3  ;;  %v4720_v17 = vmul.f32 %v4689_v0, %v4656_v31  ;;  %v4721_v28 = vmul.f32 %v4689_v0, %v4657_v2 }
 0x86e   : > { %v4694_v39 = vpop.permute.xlu0 %4693  ;;  %v4699_v48 = vpop.permute.xlu1 %4698 }
 0x86f   : > { %v4722_v60 = vmul.f32 %v4694_v39, %v4658_v59  ;;  %v4723_v49 = vmul.f32 %v4694_v39, %v4659_v12  ;;  %v4724_v7 = vmul.f32 %v4699_v48, %v4660_v22  ;;  %v4725_v53 = vmul.f32 %v4699_v48, %v4661_v45 }
 0x871   : > { %v5300_v26 = vpop.eup %5299 }
 0x872   : > { %v4646_v50 = vadd.f32 1.0, %v5300_v26  ;;  %v4704_v5 = vpop.permute.xlu0 %4703  ;;  %v4709_v20 = vpop.permute.xlu1 %4708 }
 0x873   : > { %v4726_v41 = vmul.f32 %v4704_v5, %v4662_v16  ;;  %v4727_v47 = vmul.f32 %v4704_v5, %v4663_v54  ;;  %v4728_v57 = vmul.f32 %v4709_v20, %v4664_v42  ;;  %v4729_v62 = vmul.f32 %v4709_v20, %v4665_v43 }
 0x874   : > { %5303 = vrcp.f32 %v4646_v50 }
 0x875   : > { %v5302_v23 = vpop.eup %5301 }
 0x876   : > { %v4647_v19 = vadd.f32 1.0, %v5302_v23  ;;  %v4714_v37 = vpop.permute.xlu0 %4713 }
 0x877   : > { %v4730_v8 = vmul.f32 %v4714_v37, %v4666_v14  ;;  %v4731_v32 = vmul.f32 %v4714_v37, %v4667_v36 }
 0x878   : > { %5305 = vrcp.f32 %v4647_v19 }
 0x881   : > { %v5304_v34 = vpop.eup %5303 }
 0x882   : > { %v4737_v1 = vrot.slane %v5304_v34, %v4736_v15  ;;  %v4741_v27 = vrot.slane %v5304_v34, %v4740_v11 }
 0x884   : > { %v4754_v56 = vmul.f32 %v4737_v1, %v4716_v13  ;;  %v4755_v52 = vmul.f32 %v4741_v27, %v4717_v21  ;;  %v4756_v18 = vmul.f32 %v4737_v1, %v4718_v38  ;;  %v4757_v35 = vmul.f32 %v4741_v27, %v4719_v9 }
 0x885   : > { %v5306_v6 = vpop.eup %5305  ;;  %v4758_v24 = vmul.f32 %v4737_v1, %v4720_v17  ;;  %v4759_v51 = vmul.f32 %v4741_v27, %v4721_v28  ;;  %v4760_v4 = vmul.f32 %v4737_v1, %v4722_v60  ;;  %v4761_v10 = vmul.f32 %v4741_v27, %v4723_v49 }
 0x886   : > { %4770 = vst [vmem:[%s7744_s11] sm:$0xff] %v4754_v56  ;;  %4771 = vst [vmem:[%s7744_s11 + $0x8] sm:$0xff] %v4755_v52  ;;  %v4745_v30 = vrot.slane %v5306_v6, %v4736_v15  ;;  %v4749_v55 = vrot.slane %v5306_v6, %v4740_v11 }
 0x887   : > { %4772 = vst [vmem:[%s7744_s11 + $0x10] sm:$0xff] %v4756_v18  ;;  %4773 = vst [vmem:[%s7744_s11 + $0x18] sm:$0xff] %v4757_v35 }
 0x888   : > { %4774 = vst [vmem:[%s7744_s11 + $0x20] sm:$0xff] %v4758_v24  ;;  %4775 = vst [vmem:[%s7744_s11 + $0x28] sm:$0xff] %v4759_v51  ;;  %v4762_v25 = vmul.f32 %v4745_v30, %v4724_v7  ;;  %v4763_v44 = vmul.f32 %v4749_v55, %v4725_v53  ;;  %v4764_v58 = vmul.f32 %v4745_v30, %v4726_v41 }
 0x889   : > { %4776 = vst [vmem:[%s7744_s11 + $0x30] sm:$0xff] %v4760_v4  ;;  %4777 = vst [vmem:[%s7744_s11 + $0x38] sm:$0xff] %v4761_v10  ;;  %v4765_v26 = vmul.f32 %v4749_v55, %v4727_v47  ;;  %v4766_v50 = vmul.f32 %v4745_v30, %v4728_v57  ;;  %v4767_v33 = vmul.f32 %v4749_v55, %v4729_v62 }
 0x88a   : > { %v4768_v46 = vmul.f32 %v4745_v30, %v4730_v8  ;;  %v4769_v23 = vmul.f32 %v4749_v55, %v4731_v32  ;;  %4778 = vst [vmem:[%s7744_s11 + $0x40] sm:$0xff] %v4762_v25  ;;  %4779 = vst [vmem:[%s7744_s11 + $0x48] sm:$0xff] %v4763_v44 }
 0x88b   : > { %4780 = vst [vmem:[%s7744_s11 + $0x50] sm:$0xff] %v4764_v58  ;;  %4781 = vst [vmem:[%s7744_s11 + $0x58] sm:$0xff] %v4765_v26 }
 0x88c   : > { %4782 = vst [vmem:[%s7744_s11 + $0x60] sm:$0xff] %v4766_v50  ;;  %4783 = vst [vmem:[%s7744_s11 + $0x68] sm:$0xff] %v4767_v33 }
 0x88d   : > { %4784 = vst [vmem:[%s7744_s11 + $0x70] sm:$0xff] %v4768_v46  ;;  %4785 = vst [vmem:[%s7744_s11 + $0x78] sm:$0xff] %v4769_v23 }
 0x88e   : > { %5393 = shalt.err (!%p5390_p1)
}
 0x88f   : > { %s5394_s12 = scalar_lea.hbm %s7758_s28, 2048  ;;  %s5398_s8 = scalar_lea.hbm %s7818_s6, 4096 }
 0x890   : > { %p5395_p4 = scmp.ne.s32.totalorder %s7758_s28, %s5394_s12  ;;  %p5399_p6 = scmp.lt.s32.totalorder %s7758_s28, %s7818_s6 }
 0x891   : > { %p5400_p13 = scmp.lt.s32.totalorder %s5398_s8, %s5394_s12 }
 0x892   : > { %p5396_p11 = pnand %p5395_p4, %p8328_p0 }
 0x893   : > { %p5401_p3 = por %p5400_p13, %p5399_p6 }
 0x894   : > { %p5397_p5 = pneg %p5396_p11 }
 0x896   : > { %p5402_p12 = pnand %p5401_p3, %p5397_p5 }
 0x898   : > { %5405 = shalt.err (!%p5402_p12)
}
 0x899   : > { %s5480_s26 = smov 256  }
 0x89a   : > { %5186 = dma.vmem_to_hbm [thread:$0]  (%p8328_p0), %s7760_s25, 2048, %s7758_s28, %s4787_s7, %s5480_s26, %s5480_s26, %s5472_s13  }
 0x89b PF: > { %s4816_s16 = sand.u32 1, %s5436_s21   ;;  %p8329_p2 = scmp.ne.s32.totalorder %s7992_s10, 0 }
 0x89c   : > { %p8330_p7 = scmp.ge.s32.totalorder %s5448_s24, 2  ;;  %s4817_s18 = scalar_lea.sflag [#allocation10], %s4816_s16 }
 0x89e   : > { %p5197_p8 = pnand %p8330_p7, %p8329_p2 }
 0x8a0   : > { %p5198_p9 = pneg %p5197_p8 }
 0x8a2   : > { %5431 = dma.done.wait (%p5198_p9), %s4817_s18, 2048  }
 0x8a3   : > { %5433 = vsyncadd (%p5198_p9), %s4817_s18, 4294965248  ;;  %p20_p10 = scmp.ge.s32.totalorder %s5541_s27, 4   ;;  %s8331_s21 = smov %s5440_s22 }
 0x8a4   : > { %s8332_s22 = smov %s5444_s23  ;;  %s8333_s23 = smov %s5553_s30 }
 0x8a5   : > { %s8334_s24 = smov %s5541_s27  ;;  %22 = sbr.rel (!%p20_p10) target bundleno = 8 (0x8), region = 98 }
 0x8aa   :  { %4822 = vsyncpa [#allocation9], 1 }
 0x8ab   :  { %4824 = vsyncpa [#allocation9 + $0x1], 1 }
 0x8ac   :  { %4825 = vsyncpa [#allocation10], 1 }
 0x8ad   :  { %4827 = vsyncpa [#allocation10 + $0x1], 1 }
 0x8ae   :  { %4828 = vsyncpa [#allocation11], 1 }
 0x8af   :  { %4830 = vsyncpa [#allocation11 + $0x1], 1 }

</bundles_post_ra>
